<compile_context>
chip_gen: v5e
topology: v5e:2x2
jax: 0.10.0
libtpu: 0.0.40
codegen_flags: <defaults>
</compile_context>

<pallas_src>
import functools

import jax
import jax.numpy as jnp
from jax import lax
from jax.experimental import pallas as pl
from jax.experimental.pallas import tpu as pltpu

BN_EPS = 1e-5
LANE = 128


def _round_up(x, m):
    return (x + m - 1) // m * m


# ---------------------------------------------------------------------------
# Shared: 3x3 depthwise conv of one image tile, f32 accumulation.
# ---------------------------------------------------------------------------
def _depthwise_f32(xp_ref, taps, Ho, Wo, stride):
    # xp_ref: (1, Hp, Wp, Cp) bf16 ref, zero-padded (1-px halo + channel pad)
    # taps  : (9, Cp) f32 values, row-major (kh, kw)
    # returns (1, Ho, Wo, Cp) f32
    _, Hp, Wp, Cp = xp_ref.shape
    acc = jnp.zeros((1, Ho, Wo, Cp), jnp.float32)

    if stride == 1:
        # Offsets are folded directly into each vld (no full-tile VMEM copies
        # from value-level sublane slices).
        for kh in range(3):
            for kw in range(3):
                patch = xp_ref[:, kh:kh + Ho, kw:kw + Wo, :].astype(jnp.float32)
                acc = acc + patch * taps[3 * kh + kw]
        return acc

    # TODO(synk): stride != 1 path (not exercised by the test below) keeps
    # value-level slicing; optimize with an even/odd W-phase split if a
    # strided MobileNet block becomes hot.
    for kh in range(3):
        hi = kh + stride * (Ho - 1) + 1
        rows = xp_ref[:, kh:hi, :, :].astype(jnp.float32)
        rows = lax.slice(rows, (0, 0, 0, 0), (1, hi - kh, Wp, Cp),
                         (1, stride, 1, 1))                 # H decimation
        for kw in range(3):
            patch = lax.slice(rows, (0, 0, kw, 0),
                              (1, Ho, kw + stride * (Wo - 1) + 1, Cp),
                              (1, 1, stride, 1))
            acc = acc + patch * taps[3 * kh + kw]
    return acc


# ---------------------------------------------------------------------------
# Pass 1: depthwise 3x3 -> per-image (sum, sumsq) only (for BatchNorm1).
# ---------------------------------------------------------------------------
def _dw_stats_kernel(xp_ref, dw_ref, st_ref, *, Ho, Wo, stride):
    Cp = xp_ref.shape[-1]
    taps = dw_ref[...].astype(jnp.float32)                  # (9, Cp)
    y = _depthwise_f32(xp_ref, taps, Ho, Wo, stride).reshape(Ho * Wo, Cp)
    st_ref[:, 0:1, :] = jnp.sum(y, axis=0, keepdims=True).reshape(1, 1, Cp)
    st_ref[:, 1:2, :] = jnp.sum(y * y, axis=0, keepdims=True).reshape(1, 1, Cp)


# ---------------------------------------------------------------------------
# Pass 2: recompute depthwise with BN1 folded into the taps, ReLU,
#         pointwise 1x1 on the MXU (bf16 operands, f32 accumulate),
#         emit z (bf16) + per-image (sum, sumsq) of z (for BatchNorm2).
# ---------------------------------------------------------------------------
def _dw_pw_kernel(xp_ref, dws_ref, t1_ref, pw_ref, z_ref, st_ref, *, stride):
    # xp_ref : (1, Hp, Wp, Cp)  bf16
    # dws_ref: (9, Cp)          f32, BN1 scale already folded into each tap
    # t1_ref : (1, Cp)          f32, BN1 shift (per-channel bias)
    # pw_ref : (Cp, Cop)        bf16 pointwise weights
    # z_ref  : (1, Ho, Wo, Cop) bf16 (pre-BN2)
    # st_ref : (1, 2, Cop)      f32 [sum, sumsq] of z over this image
    _, Ho, Wo, Cop = z_ref.shape
    Cp = xp_ref.shape[-1]

    taps = dws_ref[...].astype(jnp.float32)
    y = _depthwise_f32(xp_ref, taps, Ho, Wo, stride).reshape(Ho * Wo, Cp)
    y = jnp.maximum(y + t1_ref[...], 0.0)                   # BN1 shift + ReLU

    z = jnp.dot(y.astype(jnp.bfloat16), pw_ref[...],        # (M,128)x(128,Cop)
                preferred_element_type=jnp.float32)
    z_ref[...] = z.reshape(1, Ho, Wo, Cop).astype(z_ref.dtype)

    st_ref[:, 0:1, :] = jnp.sum(z, axis=0, keepdims=True).reshape(1, 1, Cop)
    st_ref[:, 1:2, :] = jnp.sum(z * z, axis=0, keepdims=True).reshape(1, 1, Cop)


# ---------------------------------------------------------------------------
# Wrapper
# ---------------------------------------------------------------------------
def depthwise_separable_conv(x_nchw, dw, pw, g1, b1, g2, b2, *, stride=1,
                             vmem_limit_bytes=48 * 1024 * 1024):
    """Forward pass of the MobileNet depthwise-separable block.

    x_nchw: (N, C, H, W) float32
    dw    : (3, 3, C)    depthwise weights (PyTorch (C,1,3,3) permuted)
    pw    : (C, Cout)    pointwise weights (PyTorch (Cout,C,1,1)[:, :, 0, 0].T)
    g*/b* : (1, C)/(1, Cout) BatchNorm affine parameters
    Returns (N, Cout, Ho, Wo) float32 (training-mode BatchNorm semantics).
    """
    N, C, H, W = x_nchw.shape
    Cout = pw.shape[1]
    Hp, Wp = H + 2, W + 2
    Ho = (Hp - 3) // stride + 1
    Wo = (Wp - 3) // stride + 1
    Cp = _round_up(max(C, LANE), LANE)          # lane-dense channel padding
    Cop = _round_up(max(Cout, LANE), LANE)
    M = N * Ho * Wo
    f32, bf16 = jnp.float32, jnp.bfloat16

    # NCHW -> NHWC; one pad adds both the conv halo and the channel padding.
    # Input is streamed as bf16 (f32 accumulation happens in-kernel).
    x = jnp.transpose(x_nchw.astype(f32), (0, 2, 3, 1))
    xp = jnp.pad(x, ((0, 0), (1, 1), (1, 1), (0, Cp - C))).astype(bf16)

    dw9 = jnp.pad(dw.astype(f32).reshape(9, C), ((0, 0), (0, Cp - C)))
    pwp = jnp.pad(pw.astype(f32), ((0, Cp - C), (0, Cop - Cout))).astype(bf16)
    g1p = jnp.pad(g1.astype(f32).reshape(1, C), ((0, 0), (0, Cp - C)))
    b1p = jnp.pad(b1.astype(f32).reshape(1, C), ((0, 0), (0, Cp - C)))
    g2p = jnp.pad(g2.astype(f32).reshape(1, Cout), ((0, 0), (0, Cop - Cout)))
    b2p = jnp.pad(b2.astype(f32).reshape(1, Cout), ((0, 0), (0, Cop - Cout)))

    cp = pltpu.CompilerParams(
        dimension_semantics=("parallel",),      # megacore sharding
        vmem_limit_bytes=vmem_limit_bytes)      # sized for v7x; raise on v5e/v6e

    # ---- pass 1: depthwise 3x3 -> BN1 partial statistics only --------------
    st1 = pl.pallas_call(
        functools.partial(_dw_stats_kernel, Ho=Ho, Wo=Wo, stride=stride),
        out_shape=jax.ShapeDtypeStruct((N, 2, Cp), f32),
        grid=(N,),
        in_specs=[pl.BlockSpec((1, Hp, Wp, Cp), lambda i: (i, 0, 0, 0)),
                  pl.BlockSpec((9, Cp), lambda i: (0, 0))],
        out_specs=pl.BlockSpec((1, 2, Cp), lambda i: (i, 0, 0)),
        compiler_params=cp,
    )(xp, dw9)

    # ---- finalize BN1 (global batch mean, biased batch var); fold into taps -
    s1 = jnp.sum(st1, axis=0)                          # (2, Cp)
    mean1 = s1[0] / M
    var1 = jnp.maximum(s1[1] / M - mean1 * mean1, 0.0)
    scale1 = g1p * lax.rsqrt(var1 + BN_EPS)            # (1, Cp)
    shift1 = b1p - mean1 * scale1                      # (1, Cp)
    dw9s = dw9 * scale1                                # BN1 scale folded into taps

    # ---- pass 2: depthwise(+BN1,ReLU) recompute + 1x1 MXU matmul + BN2 stats
    z, st2 = pl.pallas_call(
        functools.partial(_dw_pw_kernel, stride=stride),
        out_shape=(jax.ShapeDtypeStruct((N, Ho, Wo, Cop), bf16),
                   jax.ShapeDtypeStruct((N, 2, Cop), f32)),
        grid=(N,),
        in_specs=[pl.BlockSpec((1, Hp, Wp, Cp), lambda i: (i, 0, 0, 0)),
                  pl.BlockSpec((9, Cp), lambda i: (0, 0)),
                  pl.BlockSpec((1, Cp), lambda i: (0, 0)),
                  pl.BlockSpec((Cp, Cop), lambda i: (0, 0))],
        out_specs=(pl.BlockSpec((1, Ho, Wo, Cop), lambda i: (i, 0, 0, 0)),
                   pl.BlockSpec((1, 2, Cop), lambda i: (i, 0, 0))),
        compiler_params=cp,
    )(xp, dw9s, shift1, pwp)

    # ---- finalize BN2; BN2 + ReLU + un-pad fused into the output transpose --
    s2 = jnp.sum(st2, axis=0)
    mean2 = s2[0] / M
    var2 = jnp.maximum(s2[1] / M - mean2 * mean2, 0.0)
    scale2 = g2p * lax.rsqrt(var2 + BN_EPS)            # (1, Cop)
    shift2 = b2p - mean2 * scale2                      # (1, Cop)

    out = jnp.maximum(
        z[..., :Cout].astype(f32) * scale2[0, :Cout] + shift2[0, :Cout], 0.0)
    return jnp.transpose(out, (0, 3, 1, 2))            # NHWC -> NCHW, f32


# ---------------------------------------------------------------------------
# Pure-JAX reference (for an in-script sanity check).
# ---------------------------------------------------------------------------
def _reference(x, dw, pw, g1, b1, g2, b2, stride):
    N, C, H, W = x.shape
    Cout = pw.shape[1]
    Ho = (H + 2 - 3) // stride + 1
    Wo = (W + 2 - 3) // stride + 1
    xp = jnp.pad(x, ((0, 0), (0, 0), (1, 1), (1, 1)))
    y = jnp.zeros((N, C, Ho, Wo), jnp.float32)
    for kh in range(3):
        for kw in range(3):
            patch = xp[:, :, kh:kh + stride * (Ho - 1) + 1:stride,
                       kw:kw + stride * (Wo - 1) + 1:stride]
            y = y + patch * dw[kh, kw, :][None, :, None, None]
    mean1 = jnp.mean(y, axis=(0, 2, 3), keepdims=True)
    var1 = jnp.mean((y - mean1) ** 2, axis=(0, 2, 3), keepdims=True)
    y = (y - mean1) * lax.rsqrt(var1 + BN_EPS)
    y = jnp.maximum(y * g1.reshape(1, C, 1, 1) + b1.reshape(1, C, 1, 1), 0.0)
    z = jnp.einsum('nchw,cd->ndhw', y, pw, precision=jax.lax.Precision.HIGHEST)
    mean2 = jnp.mean(z, axis=(0, 2, 3), keepdims=True)
    var2 = jnp.mean((z - mean2) ** 2, axis=(0, 2, 3), keepdims=True)
    z = (z - mean2) * lax.rsqrt(var2 + BN_EPS)
    z = z * g2.reshape(1, Cout, 1, 1) + b2.reshape(1, Cout, 1, 1)
    return jnp.maximum(z, 0.0)


if __name__ == "__main__":
    # Small shapes consistent with the module's forward.
    N, C_in, C_out, H, W = 2, 4, 8, 16, 16
    stride = 1

    key = jax.random.PRNGKey(0)
    k_x, k_dw, k_pw, k_g1, k_b1, k_g2, k_b2 = jax.random.split(key, 7)

    x = jax.random.normal(k_x, (N, C_in, H, W), jnp.float32)
    # depthwise weight: PyTorch (C_in, 1, 3, 3) -> kernel layout (3, 3, C_in)
    dw = 0.1 * jax.random.normal(k_dw, (3, 3, C_in), jnp.float32)
    # pointwise weight: PyTorch (C_out, C_in, 1, 1) -> kernel layout (C_in, C_out)
    pw = 0.1 * jax.random.normal(k_pw, (C_in, C_out), jnp.float32)
    # BatchNorm affine params (gamma, beta), perturbed from the default (1, 0).
    g1 = 1.0 + 0.1 * jax.random.normal(k_g1, (1, C_in), jnp.float32)
    b1 = 0.1 * jax.random.normal(k_b1, (1, C_in), jnp.float32)
    g2 = 1.0 + 0.1 * jax.random.normal(k_g2, (1, C_out), jnp.float32)
    b2 = 0.1 * jax.random.normal(k_b2, (1, C_out), jnp.float32)

    fwd = jax.jit(functools.partial(depthwise_separable_conv, stride=stride))
    out = fwd(x, dw, pw, g1, b1, g2, b2)
    jax.block_until_ready(out)
    assert out.shape == (N, C_out, H // stride, W // stride), out.shape

    ref = _reference(x, dw, pw, g1, b1, g2, b2, stride)
    err = float(jnp.max(jnp.abs(out - ref)))
    assert err < 5e-2, f"max abs error vs reference: {err}"

    print("KERNEL_OK")
</pallas_src>

<mosaic_0001>
module attributes {stable_mosaic.version = 11 : i64} {
  func.func @_dw_stats_kernel(%arg0: i32, %arg1: memref<1x18x18x128xbf16, #tpu.memory_space<vmem>>, %arg2: memref<9x128xf32, #tpu.memory_space<vmem>>, %arg3: memref<1x2x128xf32, #tpu.memory_space<vmem>>) attributes {dimension_semantics = [#tpu.dimension_semantics<parallel>], iteration_bounds = array<i64: 2>, scalar_prefetch = 0 : i64, scratch_operands = 0 : i64, tpu.core_type = #tpu.core_type<tc>, window_params = [{transform_indices = @transform_0, window_bounds = array<i64: 1, 18, 18, 128>}, {pipeline_mode = #tpu.pipeline_mode<synchronous>, transform_indices = @transform_1, window_bounds = array<i64: 9, 128>}, {transform_indices = @transform_2, window_bounds = array<i64: 1, 2, 128>}]} {
    %c0 = arith.constant 0 : index
    %c0_0 = arith.constant 0 : index
    %0 = vector.load %arg2[%c0, %c0_0] : memref<9x128xf32, #tpu.memory_space<vmem>>, vector<9x128xf32>
    %cst = arith.constant 0.000000e+00 : f32
    %1 = vector.broadcast %cst : f32 to vector<1x16x16x128xf32>
    %c0_1 = arith.constant 0 : index
    %c0_2 = arith.constant 0 : index
    %c0_3 = arith.constant 0 : index
    %c0_4 = arith.constant 0 : index
    %2 = vector.load %arg1[%c0_1, %c0_2, %c0_3, %c0_4] : memref<1x18x18x128xbf16, #tpu.memory_space<vmem>>, vector<1x16x16x128xbf16>
    %3 = arith.extf %2 : vector<1x16x16x128xbf16> to vector<1x16x16x128xf32>
    %4 = vector.extract_strided_slice %0 {offsets = [0, 0], sizes = [1, 128], strides = [1, 1]} : vector<9x128xf32> to vector<1x128xf32>
    %5 = vector.shape_cast %4 : vector<1x128xf32> to vector<128xf32>
    %6 = vector.shape_cast %5 : vector<128xf32> to vector<1x1x1x128xf32>
    %7 = vector.broadcast %6 : vector<1x1x1x128xf32> to vector<1x16x16x128xf32>
    %8 = arith.mulf %3, %7 : vector<1x16x16x128xf32>
    %9 = arith.addf %1, %8 : vector<1x16x16x128xf32>
    %c0_5 = arith.constant 0 : index
    %c0_6 = arith.constant 0 : index
    %c1 = arith.constant 1 : index
    %c0_7 = arith.constant 0 : index
    %10 = vector.load %arg1[%c0_5, %c0_6, %c1, %c0_7] : memref<1x18x18x128xbf16, #tpu.memory_space<vmem>>, vector<1x16x16x128xbf16>
    %11 = arith.extf %10 : vector<1x16x16x128xbf16> to vector<1x16x16x128xf32>
    %12 = vector.extract_strided_slice %0 {offsets = [1, 0], sizes = [1, 128], strides = [1, 1]} : vector<9x128xf32> to vector<1x128xf32>
    %13 = vector.shape_cast %12 : vector<1x128xf32> to vector<128xf32>
    %14 = vector.shape_cast %13 : vector<128xf32> to vector<1x1x1x128xf32>
    %15 = vector.broadcast %14 : vector<1x1x1x128xf32> to vector<1x16x16x128xf32>
    %16 = arith.mulf %11, %15 : vector<1x16x16x128xf32>
    %17 = arith.addf %9, %16 : vector<1x16x16x128xf32>
    %c0_8 = arith.constant 0 : index
    %c0_9 = arith.constant 0 : index
    %c2 = arith.constant 2 : index
    %c0_10 = arith.constant 0 : index
    %18 = vector.load %arg1[%c0_8, %c0_9, %c2, %c0_10] : memref<1x18x18x128xbf16, #tpu.memory_space<vmem>>, vector<1x16x16x128xbf16>
    %19 = arith.extf %18 : vector<1x16x16x128xbf16> to vector<1x16x16x128xf32>
    %20 = vector.extract_strided_slice %0 {offsets = [2, 0], sizes = [1, 128], strides = [1, 1]} : vector<9x128xf32> to vector<1x128xf32>
    %21 = vector.shape_cast %20 : vector<1x128xf32> to vector<128xf32>
    %22 = vector.shape_cast %21 : vector<128xf32> to vector<1x1x1x128xf32>
    %23 = vector.broadcast %22 : vector<1x1x1x128xf32> to vector<1x16x16x128xf32>
    %24 = arith.mulf %19, %23 : vector<1x16x16x128xf32>
    %25 = arith.addf %17, %24 : vector<1x16x16x128xf32>
    %c0_11 = arith.constant 0 : index
    %c1_12 = arith.constant 1 : index
    %c0_13 = arith.constant 0 : index
    %c0_14 = arith.constant 0 : index
    %26 = vector.load %arg1[%c0_11, %c1_12, %c0_13, %c0_14] : memref<1x18x18x128xbf16, #tpu.memory_space<vmem>>, vector<1x16x16x128xbf16>
    %27 = arith.extf %26 : vector<1x16x16x128xbf16> to vector<1x16x16x128xf32>
    %28 = vector.extract_strided_slice %0 {offsets = [3, 0], sizes = [1, 128], strides = [1, 1]} : vector<9x128xf32> to vector<1x128xf32>
    %29 = vector.shape_cast %28 : vector<1x128xf32> to vector<128xf32>
    %30 = vector.shape_cast %29 : vector<128xf32> to vector<1x1x1x128xf32>
    %31 = vector.broadcast %30 : vector<1x1x1x128xf32> to vector<1x16x16x128xf32>
    %32 = arith.mulf %27, %31 : vector<1x16x16x128xf32>
    %33 = arith.addf %25, %32 : vector<1x16x16x128xf32>
    %c0_15 = arith.constant 0 : index
    %c1_16 = arith.constant 1 : index
    %c1_17 = arith.constant 1 : index
    %c0_18 = arith.constant 0 : index
    %34 = vector.load %arg1[%c0_15, %c1_16, %c1_17, %c0_18] : memref<1x18x18x128xbf16, #tpu.memory_space<vmem>>, vector<1x16x16x128xbf16>
    %35 = arith.extf %34 : vector<1x16x16x128xbf16> to vector<1x16x16x128xf32>
    %36 = vector.extract_strided_slice %0 {offsets = [4, 0], sizes = [1, 128], strides = [1, 1]} : vector<9x128xf32> to vector<1x128xf32>
    %37 = vector.shape_cast %36 : vector<1x128xf32> to vector<128xf32>
    %38 = vector.shape_cast %37 : vector<128xf32> to vector<1x1x1x128xf32>
    %39 = vector.broadcast %38 : vector<1x1x1x128xf32> to vector<1x16x16x128xf32>
    %40 = arith.mulf %35, %39 : vector<1x16x16x128xf32>
    %41 = arith.addf %33, %40 : vector<1x16x16x128xf32>
    %c0_19 = arith.constant 0 : index
    %c1_20 = arith.constant 1 : index
    %c2_21 = arith.constant 2 : index
    %c0_22 = arith.constant 0 : index
    %42 = vector.load %arg1[%c0_19, %c1_20, %c2_21, %c0_22] : memref<1x18x18x128xbf16, #tpu.memory_space<vmem>>, vector<1x16x16x128xbf16>
    %43 = arith.extf %42 : vector<1x16x16x128xbf16> to vector<1x16x16x128xf32>
    %44 = vector.extract_strided_slice %0 {offsets = [5, 0], sizes = [1, 128], strides = [1, 1]} : vector<9x128xf32> to vector<1x128xf32>
    %45 = vector.shape_cast %44 : vector<1x128xf32> to vector<128xf32>
    %46 = vector.shape_cast %45 : vector<128xf32> to vector<1x1x1x128xf32>
    %47 = vector.broadcast %46 : vector<1x1x1x128xf32> to vector<1x16x16x128xf32>
    %48 = arith.mulf %43, %47 : vector<1x16x16x128xf32>
    %49 = arith.addf %41, %48 : vector<1x16x16x128xf32>
    %c0_23 = arith.constant 0 : index
    %c2_24 = arith.constant 2 : index
    %c0_25 = arith.constant 0 : index
    %c0_26 = arith.constant 0 : index
    %50 = vector.load %arg1[%c0_23, %c2_24, %c0_25, %c0_26] : memref<1x18x18x128xbf16, #tpu.memory_space<vmem>>, vector<1x16x16x128xbf16>
    %51 = arith.extf %50 : vector<1x16x16x128xbf16> to vector<1x16x16x128xf32>
    %52 = vector.extract_strided_slice %0 {offsets = [6, 0], sizes = [1, 128], strides = [1, 1]} : vector<9x128xf32> to vector<1x128xf32>
    %53 = vector.shape_cast %52 : vector<1x128xf32> to vector<128xf32>
    %54 = vector.shape_cast %53 : vector<128xf32> to vector<1x1x1x128xf32>
    %55 = vector.broadcast %54 : vector<1x1x1x128xf32> to vector<1x16x16x128xf32>
    %56 = arith.mulf %51, %55 : vector<1x16x16x128xf32>
    %57 = arith.addf %49, %56 : vector<1x16x16x128xf32>
    %c0_27 = arith.constant 0 : index
    %c2_28 = arith.constant 2 : index
    %c1_29 = arith.constant 1 : index
    %c0_30 = arith.constant 0 : index
    %58 = vector.load %arg1[%c0_27, %c2_28, %c1_29, %c0_30] : memref<1x18x18x128xbf16, #tpu.memory_space<vmem>>, vector<1x16x16x128xbf16>
    %59 = arith.extf %58 : vector<1x16x16x128xbf16> to vector<1x16x16x128xf32>
    %60 = vector.extract_strided_slice %0 {offsets = [7, 0], sizes = [1, 128], strides = [1, 1]} : vector<9x128xf32> to vector<1x128xf32>
    %61 = vector.shape_cast %60 : vector<1x128xf32> to vector<128xf32>
    %62 = vector.shape_cast %61 : vector<128xf32> to vector<1x1x1x128xf32>
    %63 = vector.broadcast %62 : vector<1x1x1x128xf32> to vector<1x16x16x128xf32>
    %64 = arith.mulf %59, %63 : vector<1x16x16x128xf32>
    %65 = arith.addf %57, %64 : vector<1x16x16x128xf32>
    %c0_31 = arith.constant 0 : index
    %c2_32 = arith.constant 2 : index
    %c2_33 = arith.constant 2 : index
    %c0_34 = arith.constant 0 : index
    %66 = vector.load %arg1[%c0_31, %c2_32, %c2_33, %c0_34] : memref<1x18x18x128xbf16, #tpu.memory_space<vmem>>, vector<1x16x16x128xbf16>
    %67 = arith.extf %66 : vector<1x16x16x128xbf16> to vector<1x16x16x128xf32>
    %68 = vector.extract_strided_slice %0 {offsets = [8, 0], sizes = [1, 128], strides = [1, 1]} : vector<9x128xf32> to vector<1x128xf32>
    %69 = vector.shape_cast %68 : vector<1x128xf32> to vector<128xf32>
    %70 = vector.shape_cast %69 : vector<128xf32> to vector<1x1x1x128xf32>
    %71 = vector.broadcast %70 : vector<1x1x1x128xf32> to vector<1x16x16x128xf32>
    %72 = arith.mulf %67, %71 : vector<1x16x16x128xf32>
    %73 = arith.addf %65, %72 : vector<1x16x16x128xf32>
    %74 = vector.shape_cast %73 : vector<1x16x16x128xf32> to vector<256x128xf32>
    %cst_35 = arith.constant dense<0.000000e+00> : vector<128xf32>
    %75 = vector.multi_reduction <add>, %74, %cst_35 [0] : vector<256x128xf32> to vector<128xf32>
    %76 = vector.shape_cast %75 : vector<128xf32> to vector<1x128xf32>
    %77 = vector.shape_cast %76 : vector<1x128xf32> to vector<1x1x128xf32>
    %c0_36 = arith.constant 0 : index
    %c0_37 = arith.constant 0 : index
    %c0_38 = arith.constant 0 : index
    %78 = vector.load %arg3[%c0_36, %c0_37, %c0_38] : memref<1x2x128xf32, #tpu.memory_space<vmem>>, vector<1x1x128xf32>
    tpu.vector_store %arg3[%c0_36, %c0_37, %c0_38], %77 {strides = array<i32>} : memref<1x2x128xf32, #tpu.memory_space<vmem>>, vector<1x1x128xf32>,
    %79 = arith.mulf %74, %74 : vector<256x128xf32>
    %cst_39 = arith.constant dense<0.000000e+00> : vector<128xf32>
    %80 = vector.multi_reduction <add>, %79, %cst_39 [0] : vector<256x128xf32> to vector<128xf32>
    %81 = vector.shape_cast %80 : vector<128xf32> to vector<1x128xf32>
    %82 = vector.shape_cast %81 : vector<1x128xf32> to vector<1x1x128xf32>
    %c0_40 = arith.constant 0 : index
    %c1_41 = arith.constant 1 : index
    %c0_42 = arith.constant 0 : index
    %83 = vector.load %arg3[%c0_40, %c1_41, %c0_42] : memref<1x2x128xf32, #tpu.memory_space<vmem>>, vector<1x1x128xf32>
    tpu.vector_store %arg3[%c0_40, %c1_41, %c0_42], %82 {strides = array<i32>} : memref<1x2x128xf32, #tpu.memory_space<vmem>>, vector<1x1x128xf32>,
    return
  }
  func.func @transform_0(%arg0: i32) -> (i32, i32, i32, i32) {
    %c0_i32 = arith.constant 0 : i32
    %c0_i32_0 = arith.constant 0 : i32
    %c0_i32_1 = arith.constant 0 : i32
    %c0_i32_2 = arith.constant 0 : i32
    return %arg0, %c0_i32, %c0_i32_0, %c0_i32_1 : i32, i32, i32, i32
  }
  func.func @transform_1(%arg0: i32) -> (i32, i32) {
    %c0_i32 = arith.constant 0 : i32
    %c0_i32_0 = arith.constant 0 : i32
    %c0_i32_1 = arith.constant 0 : i32
    return %c0_i32, %c0_i32_0 : i32, i32
  }
  func.func @transform_2(%arg0: i32) -> (i32, i32, i32) {
    %c0_i32 = arith.constant 0 : i32
    %c0_i32_0 = arith.constant 0 : i32
    %c0_i32_1 = arith.constant 0 : i32
    return %arg0, %c0_i32, %c0_i32_0 : i32, i32, i32
  }
}

module attributes {stable_mosaic.version = 11 : i64} {
  func.func @_dw_pw_kernel(%arg0: i32, %arg1: memref<1x18x18x128xbf16, #tpu.memory_space<vmem>>, %arg2: memref<9x128xf32, #tpu.memory_space<vmem>>, %arg3: memref<1x128xf32, #tpu.memory_space<vmem>>, %arg4: memref<128x128xbf16, #tpu.memory_space<vmem>>, %arg5: memref<1x16x16x128xbf16, #tpu.memory_space<vmem>>, %arg6: memref<1x2x128xf32, #tpu.memory_space<vmem>>) attributes {dimension_semantics = [#tpu.dimension_semantics<parallel>], iteration_bounds = array<i64: 2>, scalar_prefetch = 0 : i64, scratch_operands = 0 : i64, tpu.core_type = #tpu.core_type<tc>, window_params = [{transform_indices = @transform_0, window_bounds = array<i64: 1, 18, 18, 128>}, {pipeline_mode = #tpu.pipeline_mode<synchronous>, transform_indices = @transform_1, window_bounds = array<i64: 9, 128>}, {pipeline_mode = #tpu.pipeline_mode<synchronous>, transform_indices = @transform_2, window_bounds = array<i64: 1, 128>}, {pipeline_mode = #tpu.pipeline_mode<synchronous>, transform_indices = @transform_3, window_bounds = array<i64: 128, 128>}, {transform_indices = @transform_4, window_bounds = array<i64: 1, 16, 16, 128>}, {transform_indices = @transform_5, window_bounds = array<i64: 1, 2, 128>}]} {
    %c0 = arith.constant 0 : index
    %c0_0 = arith.constant 0 : index
    %0 = vector.load %arg2[%c0, %c0_0] : memref<9x128xf32, #tpu.memory_space<vmem>>, vector<9x128xf32>
    %cst = arith.constant 0.000000e+00 : f32
    %1 = vector.broadcast %cst : f32 to vector<1x16x16x128xf32>
    %c0_1 = arith.constant 0 : index
    %c0_2 = arith.constant 0 : index
    %c0_3 = arith.constant 0 : index
    %c0_4 = arith.constant 0 : index
    %2 = vector.load %arg1[%c0_1, %c0_2, %c0_3, %c0_4] : memref<1x18x18x128xbf16, #tpu.memory_space<vmem>>, vector<1x16x16x128xbf16>
    %3 = arith.extf %2 : vector<1x16x16x128xbf16> to vector<1x16x16x128xf32>
    %4 = vector.extract_strided_slice %0 {offsets = [0, 0], sizes = [1, 128], strides = [1, 1]} : vector<9x128xf32> to vector<1x128xf32>
    %5 = vector.shape_cast %4 : vector<1x128xf32> to vector<128xf32>
    %6 = vector.shape_cast %5 : vector<128xf32> to vector<1x1x1x128xf32>
    %7 = vector.broadcast %6 : vector<1x1x1x128xf32> to vector<1x16x16x128xf32>
    %8 = arith.mulf %3, %7 : vector<1x16x16x128xf32>
    %9 = arith.addf %1, %8 : vector<1x16x16x128xf32>
    %c0_5 = arith.constant 0 : index
    %c0_6 = arith.constant 0 : index
    %c1 = arith.constant 1 : index
    %c0_7 = arith.constant 0 : index
    %10 = vector.load %arg1[%c0_5, %c0_6, %c1, %c0_7] : memref<1x18x18x128xbf16, #tpu.memory_space<vmem>>, vector<1x16x16x128xbf16>
    %11 = arith.extf %10 : vector<1x16x16x128xbf16> to vector<1x16x16x128xf32>
    %12 = vector.extract_strided_slice %0 {offsets = [1, 0], sizes = [1, 128], strides = [1, 1]} : vector<9x128xf32> to vector<1x128xf32>
    %13 = vector.shape_cast %12 : vector<1x128xf32> to vector<128xf32>
    %14 = vector.shape_cast %13 : vector<128xf32> to vector<1x1x1x128xf32>
    %15 = vector.broadcast %14 : vector<1x1x1x128xf32> to vector<1x16x16x128xf32>
    %16 = arith.mulf %11, %15 : vector<1x16x16x128xf32>
    %17 = arith.addf %9, %16 : vector<1x16x16x128xf32>
    %c0_8 = arith.constant 0 : index
    %c0_9 = arith.constant 0 : index
    %c2 = arith.constant 2 : index
    %c0_10 = arith.constant 0 : index
    %18 = vector.load %arg1[%c0_8, %c0_9, %c2, %c0_10] : memref<1x18x18x128xbf16, #tpu.memory_space<vmem>>, vector<1x16x16x128xbf16>
    %19 = arith.extf %18 : vector<1x16x16x128xbf16> to vector<1x16x16x128xf32>
    %20 = vector.extract_strided_slice %0 {offsets = [2, 0], sizes = [1, 128], strides = [1, 1]} : vector<9x128xf32> to vector<1x128xf32>
    %21 = vector.shape_cast %20 : vector<1x128xf32> to vector<128xf32>
    %22 = vector.shape_cast %21 : vector<128xf32> to vector<1x1x1x128xf32>
    %23 = vector.broadcast %22 : vector<1x1x1x128xf32> to vector<1x16x16x128xf32>
    %24 = arith.mulf %19, %23 : vector<1x16x16x128xf32>
    %25 = arith.addf %17, %24 : vector<1x16x16x128xf32>
    %c0_11 = arith.constant 0 : index
    %c1_12 = arith.constant 1 : index
    %c0_13 = arith.constant 0 : index
    %c0_14 = arith.constant 0 : index
    %26 = vector.load %arg1[%c0_11, %c1_12, %c0_13, %c0_14] : memref<1x18x18x128xbf16, #tpu.memory_space<vmem>>, vector<1x16x16x128xbf16>
    %27 = arith.extf %26 : vector<1x16x16x128xbf16> to vector<1x16x16x128xf32>
    %28 = vector.extract_strided_slice %0 {offsets = [3, 0], sizes = [1, 128], strides = [1, 1]} : vector<9x128xf32> to vector<1x128xf32>
    %29 = vector.shape_cast %28 : vector<1x128xf32> to vector<128xf32>
    %30 = vector.shape_cast %29 : vector<128xf32> to vector<1x1x1x128xf32>
    %31 = vector.broadcast %30 : vector<1x1x1x128xf32> to vector<1x16x16x128xf32>
    %32 = arith.mulf %27, %31 : vector<1x16x16x128xf32>
    %33 = arith.addf %25, %32 : vector<1x16x16x128xf32>
    %c0_15 = arith.constant 0 : index
    %c1_16 = arith.constant 1 : index
    %c1_17 = arith.constant 1 : index
    %c0_18 = arith.constant 0 : index
    %34 = vector.load %arg1[%c0_15, %c1_16, %c1_17, %c0_18] : memref<1x18x18x128xbf16, #tpu.memory_space<vmem>>, vector<1x16x16x128xbf16>
    %35 = arith.extf %34 : vector<1x16x16x128xbf16> to vector<1x16x16x128xf32>
    %36 = vector.extract_strided_slice %0 {offsets = [4, 0], sizes = [1, 128], strides = [1, 1]} : vector<9x128xf32> to vector<1x128xf32>
    %37 = vector.shape_cast %36 : vector<1x128xf32> to vector<128xf32>
    %38 = vector.shape_cast %37 : vector<128xf32> to vector<1x1x1x128xf32>
    %39 = vector.broadcast %38 : vector<1x1x1x128xf32> to vector<1x16x16x128xf32>
    %40 = arith.mulf %35, %39 : vector<1x16x16x128xf32>
    %41 = arith.addf %33, %40 : vector<1x16x16x128xf32>
    %c0_19 = arith.constant 0 : index
    %c1_20 = arith.constant 1 : index
    %c2_21 = arith.constant 2 : index
    %c0_22 = arith.constant 0 : index
    %42 = vector.load %arg1[%c0_19, %c1_20, %c2_21, %c0_22] : memref<1x18x18x128xbf16, #tpu.memory_space<vmem>>, vector<1x16x16x128xbf16>
    %43 = arith.extf %42 : vector<1x16x16x128xbf16> to vector<1x16x16x128xf32>
    %44 = vector.extract_strided_slice %0 {offsets = [5, 0], sizes = [1, 128], strides = [1, 1]} : vector<9x128xf32> to vector<1x128xf32>
    %45 = vector.shape_cast %44 : vector<1x128xf32> to vector<128xf32>
    %46 = vector.shape_cast %45 : vector<128xf32> to vector<1x1x1x128xf32>
    %47 = vector.broadcast %46 : vector<1x1x1x128xf32> to vector<1x16x16x128xf32>
    %48 = arith.mulf %43, %47 : vector<1x16x16x128xf32>
    %49 = arith.addf %41, %48 : vector<1x16x16x128xf32>
    %c0_23 = arith.constant 0 : index
    %c2_24 = arith.constant 2 : index
    %c0_25 = arith.constant 0 : index
    %c0_26 = arith.constant 0 : index
    %50 = vector.load %arg1[%c0_23, %c2_24, %c0_25, %c0_26] : memref<1x18x18x128xbf16, #tpu.memory_space<vmem>>, vector<1x16x16x128xbf16>
    %51 = arith.extf %50 : vector<1x16x16x128xbf16> to vector<1x16x16x128xf32>
    %52 = vector.extract_strided_slice %0 {offsets = [6, 0], sizes = [1, 128], strides = [1, 1]} : vector<9x128xf32> to vector<1x128xf32>
    %53 = vector.shape_cast %52 : vector<1x128xf32> to vector<128xf32>
    %54 = vector.shape_cast %53 : vector<128xf32> to vector<1x1x1x128xf32>
    %55 = vector.broadcast %54 : vector<1x1x1x128xf32> to vector<1x16x16x128xf32>
    %56 = arith.mulf %51, %55 : vector<1x16x16x128xf32>
    %57 = arith.addf %49, %56 : vector<1x16x16x128xf32>
    %c0_27 = arith.constant 0 : index
    %c2_28 = arith.constant 2 : index
    %c1_29 = arith.constant 1 : index
    %c0_30 = arith.constant 0 : index
    %58 = vector.load %arg1[%c0_27, %c2_28, %c1_29, %c0_30] : memref<1x18x18x128xbf16, #tpu.memory_space<vmem>>, vector<1x16x16x128xbf16>
    %59 = arith.extf %58 : vector<1x16x16x128xbf16> to vector<1x16x16x128xf32>
    %60 = vector.extract_strided_slice %0 {offsets = [7, 0], sizes = [1, 128], strides = [1, 1]} : vector<9x128xf32> to vector<1x128xf32>
    %61 = vector.shape_cast %60 : vector<1x128xf32> to vector<128xf32>
    %62 = vector.shape_cast %61 : vector<128xf32> to vector<1x1x1x128xf32>
    %63 = vector.broadcast %62 : vector<1x1x1x128xf32> to vector<1x16x16x128xf32>
    %64 = arith.mulf %59, %63 : vector<1x16x16x128xf32>
    %65 = arith.addf %57, %64 : vector<1x16x16x128xf32>
    %c0_31 = arith.constant 0 : index
    %c2_32 = arith.constant 2 : index
    %c2_33 = arith.constant 2 : index
    %c0_34 = arith.constant 0 : index
    %66 = vector.load %arg1[%c0_31, %c2_32, %c2_33, %c0_34] : memref<1x18x18x128xbf16, #tpu.memory_space<vmem>>, vector<1x16x16x128xbf16>
    %67 = arith.extf %66 : vector<1x16x16x128xbf16> to vector<1x16x16x128xf32>
    %68 = vector.extract_strided_slice %0 {offsets = [8, 0], sizes = [1, 128], strides = [1, 1]} : vector<9x128xf32> to vector<1x128xf32>
    %69 = vector.shape_cast %68 : vector<1x128xf32> to vector<128xf32>
    %70 = vector.shape_cast %69 : vector<128xf32> to vector<1x1x1x128xf32>
    %71 = vector.broadcast %70 : vector<1x1x1x128xf32> to vector<1x16x16x128xf32>
    %72 = arith.mulf %67, %71 : vector<1x16x16x128xf32>
    %73 = arith.addf %65, %72 : vector<1x16x16x128xf32>
    %74 = vector.shape_cast %73 : vector<1x16x16x128xf32> to vector<256x128xf32>
    %c0_35 = arith.constant 0 : index
    %c0_36 = arith.constant 0 : index
    %75 = vector.load %arg3[%c0_35, %c0_36] : memref<1x128xf32, #tpu.memory_space<vmem>>, vector<1x128xf32>
    %76 = vector.broadcast %75 : vector<1x128xf32> to vector<256x128xf32>
    %77 = arith.addf %74, %76 : vector<256x128xf32>
    %cst_37 = arith.constant 0.000000e+00 : f32
    %78 = vector.broadcast %cst_37 : f32 to vector<256x128xf32>
    %79 = arith.maximumf %77, %78 : vector<256x128xf32>
    %80 = arith.truncf %79 : vector<256x128xf32> to vector<256x128xbf16>
    %c0_38 = arith.constant 0 : index
    %c0_39 = arith.constant 0 : index
    %81 = vector.load %arg4[%c0_38, %c0_39] : memref<128x128xbf16, #tpu.memory_space<vmem>>, vector<128x128xbf16>
    %cst_40 = arith.constant dense<0.000000e+00> : vector<256x128xf32>
    %82 = tpu.matmul %80, %81, %cst_40 {dimension_numbers = #tpu.dot_dimension_numbers<[1], [0], [0], [1], [0, 0, 1, 1], [], []>} : vector<256x128xbf16>, vector<128x128xbf16>, vector<256x128xf32> -> vector<256x128xf32>
    %83 = vector.shape_cast %82 : vector<256x128xf32> to vector<1x16x16x128xf32>
    %84 = arith.truncf %83 : vector<1x16x16x128xf32> to vector<1x16x16x128xbf16>
    %c0_41 = arith.constant 0 : index
    %c0_42 = arith.constant 0 : index
    %c0_43 = arith.constant 0 : index
    %c0_44 = arith.constant 0 : index
    %85 = vector.load %arg5[%c0_41, %c0_42, %c0_43, %c0_44] : memref<1x16x16x128xbf16, #tpu.memory_space<vmem>>, vector<1x16x16x128xbf16>
    tpu.vector_store %arg5[%c0_41, %c0_42, %c0_43, %c0_44], %84 {strides = array<i32>} : memref<1x16x16x128xbf16, #tpu.memory_space<vmem>>, vector<1x16x16x128xbf16>,
    %cst_45 = arith.constant dense<0.000000e+00> : vector<128xf32>
    %86 = vector.multi_reduction <add>, %82, %cst_45 [0] : vector<256x128xf32> to vector<128xf32>
    %87 = vector.shape_cast %86 : vector<128xf32> to vector<1x128xf32>
    %88 = vector.shape_cast %87 : vector<1x128xf32> to vector<1x1x128xf32>
    %c0_46 = arith.constant 0 : index
    %c0_47 = arith.constant 0 : index
    %c0_48 = arith.constant 0 : index
    %89 = vector.load %arg6[%c0_46, %c0_47, %c0_48] : memref<1x2x128xf32, #tpu.memory_space<vmem>>, vector<1x1x128xf32>
    tpu.vector_store %arg6[%c0_46, %c0_47, %c0_48], %88 {strides = array<i32>} : memref<1x2x128xf32, #tpu.memory_space<vmem>>, vector<1x1x128xf32>,
    %90 = arith.mulf %82, %82 : vector<256x128xf32>
    %cst_49 = arith.constant dense<0.000000e+00> : vector<128xf32>
    %91 = vector.multi_reduction <add>, %90, %cst_49 [0] : vector<256x128xf32> to vector<128xf32>
    %92 = vector.shape_cast %91 : vector<128xf32> to vector<1x128xf32>
    %93 = vector.shape_cast %92 : vector<1x128xf32> to vector<1x1x128xf32>
    %c0_50 = arith.constant 0 : index
    %c1_51 = arith.constant 1 : index
    %c0_52 = arith.constant 0 : index
    %94 = vector.load %arg6[%c0_50, %c1_51, %c0_52] : memref<1x2x128xf32, #tpu.memory_space<vmem>>, vector<1x1x128xf32>
    tpu.vector_store %arg6[%c0_50, %c1_51, %c0_52], %93 {strides = array<i32>} : memref<1x2x128xf32, #tpu.memory_space<vmem>>, vector<1x1x128xf32>,
    return
  }
  func.func @transform_0(%arg0: i32) -> (i32, i32, i32, i32) {
    %c0_i32 = arith.constant 0 : i32
    %c0_i32_0 = arith.constant 0 : i32
    %c0_i32_1 = arith.constant 0 : i32
    %c0_i32_2 = arith.constant 0 : i32
    return %arg0, %c0_i32, %c0_i32_0, %c0_i32_1 : i32, i32, i32, i32
  }
  func.func @transform_1(%arg0: i32) -> (i32, i32) {
    %c0_i32 = arith.constant 0 : i32
    %c0_i32_0 = arith.constant 0 : i32
    %c0_i32_1 = arith.constant 0 : i32
    return %c0_i32, %c0_i32_0 : i32, i32
  }
  func.func @transform_2(%arg0: i32) -> (i32, i32) {
    %c0_i32 = arith.constant 0 : i32
    %c0_i32_0 = arith.constant 0 : i32
    %c0_i32_1 = arith.constant 0 : i32
    return %c0_i32, %c0_i32_0 : i32, i32
  }
  func.func @transform_3(%arg0: i32) -> (i32, i32) {
    %c0_i32 = arith.constant 0 : i32
    %c0_i32_0 = arith.constant 0 : i32
    %c0_i32_1 = arith.constant 0 : i32
    return %c0_i32, %c0_i32_0 : i32, i32
  }
  func.func @transform_4(%arg0: i32) -> (i32, i32, i32, i32) {
    %c0_i32 = arith.constant 0 : i32
    %c0_i32_0 = arith.constant 0 : i32
    %c0_i32_1 = arith.constant 0 : i32
    %c0_i32_2 = arith.constant 0 : i32
    return %arg0, %c0_i32, %c0_i32_0, %c0_i32_1 : i32, i32, i32, i32
  }
  func.func @transform_5(%arg0: i32) -> (i32, i32, i32) {
    %c0_i32 = arith.constant 0 : i32
    %c0_i32_0 = arith.constant 0 : i32
    %c0_i32_1 = arith.constant 0 : i32
    return %arg0, %c0_i32, %c0_i32_0 : i32, i32, i32
  }
}

</mosaic_0001>

<bundles_post_ra>
// kernel: depthwise_separable_conv.2
= control target key start
LH: loop header
LB: loop body
LE: loop exit
PB: predicated region body
PF: predicated region fallthrough
CT: control target
= control target key end

     0   :  { %s2624_s9 = smov 0   ;;  %s5747_s0 = inlined_call_operand.vmem [shape: bf16[2,18,18,128], index: 0, kind: input, shape index: {}]   ;;  %s5748_s1 = inlined_call_operand.vmem [shape: f32[9,128], index: 1, kind: input, shape index: {}]   ;;  %s5749_s2 = inlined_call_operand.vmem [shape: f32[2,2,128], index: 2, kind: output, shape index: {}]  }
   0x1 LB: > { %s2334_s10 = sadd.s32 4294967295, %s2607_s9   ;;  %p2338_p0 = scmp.ge.s32.totalorder %s2607_s9, 1  ;;  %s2607_s9 = sphi %s2624_s9, %s12_s9  }
   0x2   : > { %p112_p1 = scmp.lt.s32.totalorder %s2607_s9, 3 }
   0x4   : > { %p113_p2 = pnand %p2338_p0, %p112_p1 }
   0x6   : > { %116 = sbr.rel (%p113_p2) target bundleno = 565 (0x235), region = 28 }
   0xb   : > { %p133_p3 = scmp.lt.s32.totalorder %s2334_s10, 1  ;;  %v2643_v0 = vld [vmem:[%s5748_s1] sm:$0xff]  ;;  %vm402_vm0 = vcmask 1046528   ;;  %vm676_vm1 = vcmask 1045504  }
   0xc   : > { %5924 = vst [vmem:[#allocation2_spill] sm:$0xff] %v2643_v0  ;;  %v2656_v7 = vperm.slane %v2643_v0, 0  ;;  %v2669_v13 = vperm.slane %v2643_v0, 1 }
   0xd   : > { %s6724_s10 = smov (!%p133_p3, %s2334_s10), 1 }
   0xe   : > { %s2590_s11 = smul.u32 216, %s6724_s10  ;;  %s2340_s21 = sshll.u32 %s6724_s10, 1 }
   0xf   : > { %s141_s24 = scalar_lea.vmem %s5749_s2, %s2340_s21 }
  0x10   : > { %s2638_s14 = scalar_lea.vmem %s5747_s0, %s2590_s11 }
  0x11   : > { %v2646_v1 = vld [vmem:[%s2638_s14] sm:$0xff]   ;;  %v2567_v2 = vld [vmem:[%s2638_s14 + $0x18] sm:$0xff]   ;;  %v2650_v3 = vld [vmem:[%s2638_s14 + $0xc] sm:$0xff]  }
  0x12   : > { %v2568_v4 = vld [vmem:[%s2638_s14 + $0x30] sm:$0xff]   ;;  %v2569_v5 = vld [vmem:[%s2638_s14 + $0x48] sm:$0xff]   ;;  %v2570_v6 = vld [vmem:[%s2638_s14 + $0x60] sm:$0xff]   ;;  %v5755_v8 = vunpack.c.l.bf16 %v2646_v1  ;;  %v2660_v9 = vunpack.c.h.bf16 %v2646_v1  ;;  %v2662_v10 = vunpack.c.l.bf16 %v2567_v2  ;;  %v2671_v14 = vunpack.c.h.bf16 %v2567_v2 }
  0x13   : > { %v2665_v11 = vld [vmem:[%s2638_s14 + $0x24] sm:$0xff]   ;;  %v2571_v12 = vld [vmem:[%s2638_s14 + $0x78] sm:$0xff]   ;;  %v2673_v15 = vunpack.c.l.bf16 %v2568_v4  ;;  %v2675_v16 = vunpack.c.h.bf16 %v2568_v4  ;;  %v2572_v17 = vld [vmem:[%s2638_s14 + $0x90] sm:$0xff]   ;;  %v5753_v19 = vunpack.c.l.bf16 %v2650_v3  ;;  %v2683_v21 = vunpack.c.l.bf16 %v2569_v5 }
  0x14   : > { %5925 = vst [vmem:[#allocation3_spill] sm:$0xff] %v2660_v9  ;;  %v2573_v18 = vld [vmem:[%s2638_s14 + $0xa8] sm:$0xff]   ;;  %v2681_v20 = vld [vmem:[%s2638_s14 + $0x3c] sm:$0xff]   ;;  %v2685_v22 = vunpack.c.h.bf16 %v2569_v5  ;;  %v2688_v23 = vld [vmem:[%s2638_s14 + $0x54] sm:$0xff]   ;;  %v2690_v24 = vunpack.c.l.bf16 %v2570_v6  ;;  %v2693_v25 = vunpack.c.h.bf16 %v2650_v3  ;;  %v2695_v26 = vunpack.c.h.bf16 %v2570_v6 }
  0x15   : > { %5926 = vst [vmem:[#allocation4_spill] sm:$0xff] %v2662_v10  ;;  %v2698_v27 = vld [vmem:[%s2638_s14 + $0x6c] sm:$0xff]   ;;  %v2700_v28 = vunpack.c.l.bf16 %v2571_v12  ;;  %v2702_v29 = vunpack.c.h.bf16 %v2571_v12  ;;  %v2705_v30 = vld [vmem:[%s2638_s14 + $0x84] sm:$0xff]   ;;  %v5752_v31 = vunpack.c.l.bf16 %v2665_v11  ;;  %v2708_v32 = vunpack.c.l.bf16 %v2572_v17  ;;  %v2713_v34 = vld [vmem:[%s2638_s14 + $0x9c] sm:$0xff]  }
  0x16   : > { %5927 = vst [vmem:[#allocation5_spill] sm:$0xff] %v2671_v14  ;;  %v2710_v33 = vunpack.c.h.bf16 %v2572_v17  ;;  %v2715_v35 = vunpack.c.l.bf16 %v2573_v18  ;;  %v2718_v36 = vld [vmem:[%s2638_s14 + $0xb4] sm:$0xff]   ;;  %v2721_v37 = vunpack.c.h.bf16 %v2665_v11  ;;  %v2723_v38 = vunpack.c.h.bf16 %v2573_v18  ;;  %v2832_v18 = vld [vmem:[%s2638_s14 + $0x8] sm:$0x1]  ;;  %v2858_v49 = vld [vmem:[%s2638_s14 + $0x2c] sm:$0x1] }
  0x17   : > { %5928 = vst [vmem:[#allocation6_spill] sm:$0xff] %v2673_v15  ;;  %v5751_v39 = vunpack.c.l.bf16 %v2681_v20  ;;  %v2727_v40 = vunpack.c.h.bf16 %v2681_v20  ;;  %v5750_v41 = vunpack.c.l.bf16 %v2688_v23  ;;  %v2731_v42 = vunpack.c.h.bf16 %v2688_v23  ;;  %v2861_v47 = vld [vmem:[%s2638_s14 + $0x38] sm:$0x1]  ;;  %v2864_v0 = vld [vmem:[%s2638_s14 + $0x44] sm:$0x1] }
  0x18   : > { %5929 = vst [vmem:[#allocation7_spill] sm:$0xff] %v2675_v16  ;;  %v5754_v43 = vunpack.c.l.bf16 %v2698_v27  ;;  %v2735_v44 = vunpack.c.h.bf16 %v2698_v27  ;;  %v5758_v45 = vunpack.c.l.bf16 %v2705_v30  ;;  %v2739_v46 = vunpack.c.h.bf16 %v2705_v30 }
  0x19   : > { %5930 = vst [vmem:[#allocation8_spill] sm:$0xff] %v2683_v21  ;;  %v2743_v48 = vunpack.c.h.bf16 %v2713_v34  ;;  %v2747_v50 = vunpack.c.h.bf16 %v2718_v36  ;;  %v2752_v51 = vmul.f32 %v5755_v8, %v2656_v7  ;;  %v2756_v52 = vmul.f32 %v2660_v9, %v2656_v7 }
  0x1a   : > { %5931 = vst [vmem:[#allocation9_spill] sm:$0xff] %v2685_v22  ;;  %v2761_v53 = vmul.f32 %v2656_v7, %v5753_v19  ;;  %v2765_v54 = vmul.f32 %v2656_v7, %v2693_v25  ;;  %v2769_v55 = vmul.f32 %v2662_v10, %v2656_v7  ;;  %v2773_v56 = vmul.f32 %v2671_v14, %v2656_v7 }
  0x1b   : > { %5932 = vst [vmem:[#allocation10_spill] sm:$0xff] %v2690_v24  ;;  %v2778_v57 = vmul.f32 %v2656_v7, %v5752_v31  ;;  %v2782_v58 = vmul.f32 %v2656_v7, %v2721_v37  ;;  %v2786_v59 = vmul.f32 %v2673_v15, %v2656_v7  ;;  %v2790_v60 = vmul.f32 %v2675_v16, %v2656_v7 }
  0x1c   : > { %5933 = vst [vmem:[#allocation11_spill] sm:$0xff] %v2693_v25  ;;  %v2795_v61 = vmul.f32 %v2656_v7, %v5751_v39  ;;  %v2799_v62 = vmul.f32 %v2656_v7, %v2727_v40  ;;  %v2803_v63 = vmul.f32 %v2683_v21, %v2656_v7  ;;  %v2807_v2 = vmul.f32 %v2685_v22, %v2656_v7  ;;  %v2838_v39 = vld [vmem:[%s2638_s14 + $0x20] sm:$0x1] }
  0x1d   : > { %5934 = vst [vmem:[#allocation12_spill] sm:$0xff] %v2695_v26  ;;  %v2812_v4 = vmul.f32 %v2656_v7, %v5750_v41  ;;  %v2816_v5 = vmul.f32 %v2656_v7, %v2731_v42  ;;  %v2820_v6 = vmul.f32 %v2690_v24, %v2656_v7  ;;  %v2824_v12 = vmul.f32 %v2695_v26, %v2656_v7  ;;  %v2835_v41 = vld [vmem:[%s2638_s14 + $0x14] sm:$0x1] }
  0x1e   : > { %5935 = vst [vmem:[#allocation13_spill] sm:$0xff] %v2700_v28  ;;  %v2829_v17 = vmul.f32 %v2656_v7, %v5754_v43  ;;  %v2842_v31 = vmul.f32 %v2656_v7, %v2735_v44  ;;  %v2846_v19 = vmul.f32 %v2700_v28, %v2656_v7  ;;  %v2850_v43 = vmul.f32 %v2702_v29, %v2656_v7 }
  0x1f   : > { %5936 = vst [vmem:[#allocation14_spill] sm:$0xff] %v2702_v29  ;;  %v2855_v8 = vmul.f32 %v2656_v7, %v5758_v45  ;;  %v2876_v45 = vmul.f32 %v2710_v33, %v2656_v7 }
  0x20   : > { %5937 = vst [vmem:[#allocation15_spill] sm:$0xff] %v2708_v32 }
  0x21   : > { %5938 = vst [vmem:[#allocation16_spill] sm:$0xff] %v2710_v33 }
  0x22   : > { %5939 = vst [vmem:[#allocation17_spill] sm:$0xff] %v2715_v35 }
  0x23   : > { %5940 = vst [vmem:[#allocation18_spill] sm:$0xff] %v2721_v37 }
  0x24   : > { %5941 = vst [vmem:[#allocation19_spill] sm:$0xff] %v2723_v38 }
  0x25   : > { %5942 = vst [vmem:[#allocation20_spill] sm:$0xff] %v2727_v40 }
  0x26   : > { %5943 = vst [vmem:[#allocation21_spill] sm:$0xff] %v2731_v42 }
  0x27   : > { %5944 = vst [vmem:[#allocation22_spill] sm:$0xff] %v2735_v44 }
  0x28   : > { %5945 = vst [vmem:[#allocation23_spill] sm:$0xff] %v2739_v46 }
  0x29   : > { %5946 = vst [vmem:[#allocation24_spill] sm:$0xff] %v2747_v50 }
  0x2a   : > { %5947 = vst [vmem:[#allocation25_spill] sm:$0xff] %v2773_v56 }
  0x2b   : > { %5948 = vst [vmem:[#allocation26_spill] sm:$0xff] %v2778_v57  ;;  %v307_v57 = vmul.f32 %v2660_v9, %v2669_v13 }
  0x2c   : > { %5949 = vst [vmem:[#allocation27_spill] sm:$0xff] %v2782_v58 }
  0x2d   : > { %5950 = vst [vmem:[#allocation28_spill] sm:$0xff] %v2786_v59  ;;  %v2963_v59 = vmul.f32 %v2669_v13, %v2693_v25 }
  0x2e   : > { %5951 = vst [vmem:[#allocation29_spill] sm:$0xff] %v2790_v60  ;;  %v5996_v60 = vunpack.c.l.bf16 %v2665_v11  ;;  %v5998_v11 = vunpack.c.l.bf16 %v2861_v47 }
  0x2f   : > { %5952 = vst [vmem:[#allocation30_spill] sm:$0xff] %v2795_v61  ;;  %v2935_v61 = vld [vmem:[%s2638_s14 + $0xbc] sm:$0x1] }
  0x30   : > { %5953 = vst [vmem:[#allocation31_spill] sm:$0xff] %v2799_v62  ;;  %v5992_v62 = vunpack.c.l.bf16 %v2832_v18 }
  0x31   : > { %5954 = vst [vmem:[#allocation32_spill] sm:$0xff] %v2803_v63  ;;  %v2926_v63 = vld [vmem:[%s2638_s14 + $0xa4] sm:$0x1] }
  0x32   : > { %5955 = vst [vmem:[#allocation33_spill] sm:$0xff] %v2807_v2  ;;  %v2916_v2 = vld [vmem:[%s2638_s14 + $0x8c] sm:$0x1] }
  0x33   : > { %5956 = vst [vmem:[#allocation34_spill] sm:$0xff] %v2812_v4  ;;  %v2913_v4 = vld [vmem:[%s2638_s14 + $0x80] sm:$0x1] }
  0x34   : > { %5957 = vst [vmem:[#allocation35_spill] sm:$0xff] %v2816_v5  ;;  %v2910_v5 = vld [vmem:[%s2638_s14 + $0x74] sm:$0x1] }
  0x35   : > { %5958 = vst [vmem:[#allocation36_spill] sm:$0xff] %v2820_v6  ;;  %v2898_v6 = vmul.f32 %v2715_v35, %v2656_v7 }
  0x36   : > { %5959 = vst [vmem:[#allocation37_spill] sm:$0xff] %v2824_v12  ;;  %v2887_v12 = vld [vmem:[%s2638_s14 + $0x5c] sm:$0x1] }
  0x37   : > { %5960 = vst [vmem:[#allocation38_spill] sm:$0xff] %v2829_v17  ;;  %v2884_v17 = vld [vmem:[%s2638_s14 + $0x50] sm:$0x1] }
  0x38   : > { %5961 = vst [vmem:[#allocation39_spill] sm:$0xff] %v2832_v18 }
  0x39   : > { %5962 = vst [vmem:[#allocation40_spill] sm:$0xff] %v2835_v41 }
  0x3a   : > { %5963 = vst [vmem:[#allocation41_spill] sm:$0xff] %v2838_v39 }
  0x3b   : > { %5964 = vst [vmem:[#allocation42_spill] sm:$0xff] %v2842_v31 }
  0x3c   : > { %5965 = vst [vmem:[#allocation43_spill] sm:$0xff] %v2846_v19  ;;  %v2868_v19 = vmul.f32 %v2656_v7, %v2739_v46 }
  0x3d   : > { %5966 = vst [vmem:[#allocation44_spill] sm:$0xff] %v2850_v43  ;;  %v2872_v43 = vmul.f32 %v2708_v32, %v2656_v7 }
  0x3e   : > { %5967 = vst [vmem:[#allocation45_spill] sm:$0xff] %v2855_v8  ;;  %v5974_v8 = vunpack.c.l.bf16 %v2713_v34 }
  0x3f   : > { %5968 = vst [vmem:[#allocation46_spill] sm:$0xff] %v2858_v49 }
  0x40   : > { %5969 = vst [vmem:[#allocation47_spill] sm:$0xff] %v2861_v47  ;;  %v2881_v31 = vmul.f32 %v2656_v7, %v5974_v8  ;;  %v5982_v8 = vunpack.c.l.bf16 %v2718_v36  ;;  %v3026_v47 = vmul.f32 %v2683_v21, %v2669_v13  ;;  %v6003_v21 = vunpack.c.l.bf16 %v2887_v12 }
  0x41   : > { %5970 = vst [vmem:[#allocation48_spill] sm:$0xff] %v2864_v0 }
  0x42   : > { %5971 = vst [vmem:[#allocation49_spill] sm:$0xff] %v2868_v19  ;;  %v2890_v19 = vld [vmem:[%s2638_s14 + $0x68] sm:$0x1] }
  0x43   : > { %5972 = vst [vmem:[#allocation50_spill] sm:$0xff] %v2872_v43  ;;  %v2894_v43 = vmul.f32 %v2656_v7, %v2743_v48 }
  0x44   : > { %5973 = vst [vmem:[#allocation51_spill] sm:$0xff] %v2876_v45  ;;  %v2902_v45 = vmul.f32 %v2723_v38, %v2656_v7 }
  0x45   : > { %5975 = vst [vmem:[#allocation52_spill] sm:$0xff] %v2881_v31  ;;  %v2907_v31 = vmul.f32 %v2656_v7, %v5982_v8  ;;  %v308_v8 = vmul.f32 %v2669_v13, %v5992_v62  ;;  %v2976_v62 = vmul.f32 %v2671_v14, %v2669_v13  ;;  %v3049_v14 = vmul.f32 %v2669_v13, %v6003_v21 }
  0x46   : > { %5976 = vst [vmem:[#allocation53_spill] sm:$0xff] %v2884_v17  ;;  %v3071_v21 = vmul.f32 %v2669_v13, %v2735_v44  ;;  %v6008_v44 = vunpack.c.l.bf16 %v2705_v30 }
  0x47   : > { %5977 = vst [vmem:[#allocation54_spill] sm:$0xff] %v2887_v12  ;;  %v406_v18 = vrot.slane %v308_v8, 1  ;;  %v6014_v8 = vunpack.c.l.bf16 %v2718_v36 }
  0x48   : > { %5978 = vst [vmem:[#allocation55_spill] sm:$0xff] %v2890_v19 }
  0x49   : > { %5979 = vst [vmem:[#allocation56_spill] sm:$0xff] %v2894_v43  ;;  %v2920_v43 = vmul.f32 %v2656_v7, %v2747_v50  ;;  %v5994_v7 = vunpack.c.l.bf16 %v2835_v41  ;;  %v2986_v41 = vmul.f32 %v2669_v13, %v5996_v60  ;;  %v3008_v60 = vmul.f32 %v2669_v13, %v5998_v11 }
  0x4a   : > { %5980 = vst [vmem:[#allocation57_spill] sm:$0xff] %v2898_v6  ;;  %v2923_v6 = vld [vmem:[%s2638_s14 + $0x98] sm:$0x1]  ;;  %v3030_v11 = vmul.f32 %v2685_v22, %v2669_v13 }
  0x4b   : > { %5981 = vst [vmem:[#allocation58_spill] sm:$0xff] %v2902_v45  ;;  %v2929_v45 = vld [vmem:[%s2638_s14 + $0xb0] sm:$0x1]  ;;  %v6010_v30 = vunpack.c.l.bf16 %v2923_v6 }
  0x4c   : > { %5983 = vst [vmem:[#allocation59_spill] sm:$0xff] %v2907_v31  ;;  %v5993_v31 = vunpack.c.l.bf16 %v2650_v3  ;;  %v5995_v3 = vunpack.c.l.bf16 %v2838_v39  ;;  %v2999_v39 = vmul.f32 %v2673_v15, %v2669_v13  ;;  %v6000_v15 = vunpack.c.l.bf16 %v2864_v0 }
  0x4d   : > { %5984 = vst [vmem:[#allocation60_spill] sm:$0xff] %v2910_v5 }
  0x4e   : > { %5985 = vst [vmem:[#allocation61_spill] sm:$0xff] %v2913_v4  ;;  %v309_v56 = vmul.f32 %v2669_v13, %v5993_v31  ;;  %v2981_v31 = vmul.f32 %v2669_v13, %v5995_v3  ;;  %v3003_v3 = vmul.f32 %v2675_v16, %v2669_v13  ;;  %v3022_v16 = vmul.f32 %v2669_v13, %v6000_v15 }
  0x4f   : > { %5986 = vst [vmem:[#allocation62_spill] sm:$0xff] %v2916_v2  ;;  %v3044_v15 = vmul.f32 %v2669_v13, %v2731_v42  ;;  %v6005_v42 = vunpack.c.l.bf16 %v2698_v27  ;;  %v6007_v27 = vunpack.c.l.bf16 %v2913_v4  ;;  %v3107_v4 = vmul.f32 %v2708_v32, %v2669_v13 }
  0x50   : > { %5987 = vst [vmem:[#allocation63_spill] sm:$0xff] %v2920_v43  ;;  %v5991_v43 = vunpack.c.l.bf16 %v2646_v1  ;;  %v2968_v1 = vmul.f32 %v2669_v13, %v5994_v7  ;;  %v2990_v7 = vmul.f32 %v2669_v13, %v2721_v37  ;;  %v5999_v37 = vunpack.c.l.bf16 %v2681_v20 }
  0x51   : > { %5988 = vst [vmem:[#allocation64_spill] sm:$0xff] %v2923_v6  ;;  %v6001_v20 = vunpack.c.l.bf16 %v2884_v17  ;;  %v3053_v17 = vmul.f32 %v2690_v24, %v2669_v13  ;;  %v3067_v12 = vmul.f32 %v2669_v13, %v6005_v42  ;;  %v6006_v24 = vunpack.c.l.bf16 %v2910_v5 }
  0x52   : > { %5989 = vst [vmem:[#allocation65_spill] sm:$0xff] %v2926_v63  ;;  %v306_v58 = vmul.f32 %v5991_v43, %v2669_v13  ;;  %v2972_v43 = vmul.f32 %v2662_v10, %v2669_v13  ;;  %v5997_v10 = vunpack.c.l.bf16 %v2858_v49  ;;  %v3013_v49 = vmul.f32 %v2669_v13, %v5999_v37 }
  0x53   : > { %5990 = vst [vmem:[#allocation66_spill] sm:$0xff] %v2929_v45  ;;  %v3035_v37 = vmul.f32 %v2669_v13, %v6001_v20  ;;  %v3057_v20 = vmul.f32 %v2695_v26, %v2669_v13  ;;  %v3076_v22 = vmul.f32 %v2669_v13, %v6006_v24  ;;  %v3089_v42 = vmul.f32 %v2669_v13, %v6007_v27 }
  0x54   : > { %v2995_v25 = vmul.f32 %v2669_v13, %v5997_v10  ;;  %v3017_v10 = vmul.f32 %v2669_v13, %v2727_v40  ;;  %v6002_v40 = vunpack.c.l.bf16 %v2688_v23  ;;  %v6004_v23 = vunpack.c.l.bf16 %v2890_v19 }
  0x55   : > { %v3080_v19 = vmul.f32 %v2700_v28, %v2669_v13  ;;  %v3094_v5 = vmul.f32 %v2669_v13, %v6008_v44  ;;  %v3098_v24 = vmul.f32 %v2669_v13, %v2739_v46  ;;  %v6009_v28 = vunpack.c.l.bf16 %v2916_v2 }
  0x56   : > { %v3040_v0 = vmul.f32 %v2669_v13, %v6002_v40  ;;  %v3062_v40 = vmul.f32 %v2669_v13, %v6004_v23  ;;  %v3084_v23 = vmul.f32 %v2702_v29, %v2669_v13  ;;  %v3111_v27 = vmul.f32 %v2710_v33, %v2669_v13 }
  0x57   : > { %v3103_v26 = vmul.f32 %v2669_v13, %v6009_v28  ;;  %v3116_v44 = vmul.f32 %v2669_v13, %v6010_v30  ;;  %v6011_v46 = vunpack.c.l.bf16 %v2713_v34  ;;  %v403_v28 = vrot.slane %v306_v58, 1 }
  0x58   : > { %v404_v29 = vrot.slane %v307_v57, 1  ;;  %v3125_v32 = vmul.f32 %v2669_v13, %v2743_v48  ;;  %v6012_v33 = vunpack.c.l.bf16 %v2926_v63  ;;  %v408_v6 = vrot.slane %v309_v56, 1 }
  0x59   : > { %v3121_v2 = vmul.f32 %v2669_v13, %v6011_v46  ;;  %v409_v30 = vrot.slane %v2963_v59, 1  ;;  %v3135_v34 = vmul.f32 %v2715_v35, %v2669_v13  ;;  %v3139_v46 = vmul.f32 %v2723_v38, %v2669_v13 }
  0x5a   : > { %v3130_v9 = vmul.f32 %v2669_v13, %v6012_v33  ;;  %v6013_v57 = vunpack.c.l.bf16 %v2929_v45  ;;  %v3149_v33 = vmul.f32 %v2669_v13, %v6014_v8  ;;  %v3153_v56 = vmul.f32 %v2669_v13, %v2747_v50 }
  0x5b   : > { %v6015_v59 = vunpack.c.l.bf16 %v2935_v61  ;;  %v411_v38 = vrot.slane %v2968_v1, 1  ;;  %v413_v45 = vrot.slane %v2972_v43, 1  ;;  %v3166_v36 = vsel %vm402_vm0, %v404_v29, %v406_v18 }
  0x5c   : > { %v3144_v58 = vmul.f32 %v2669_v13, %v6013_v57  ;;  %v3163_v57 = vsel %vm402_vm0, %v403_v28, %v404_v29  ;;  %v414_v8 = vrot.slane %v2976_v62, 1  ;;  %v416_v50 = vrot.slane %v2981_v31, 1 }
  0x5d   : > { %v3158_v35 = vmul.f32 %v2669_v13, %v6015_v59  ;;  %v3171_v63 = vsel %vm402_vm0, %v408_v6, %v409_v30  ;;  %v418_v13 = vrot.slane %v2986_v41, 1  ;;  %v419_v59 = vrot.slane %v2990_v7, 1 }
  0x5e   : > { %v421_v1 = vrot.slane %v2995_v25, 1  ;;  %v423_v43 = vrot.slane %v2999_v39, 1  ;;  %v424_v28 = vrot.slane %v3003_v3, 1  ;;  %v426_v29 = vrot.slane %v3008_v60, 1 }
  0x5f   : > { %v428_v18 = vrot.slane %v3013_v49, 1  ;;  %v429_v62 = vrot.slane %v3017_v10, 1  ;;  %v431_v31 = vrot.slane %v3022_v16, 1  ;;  %v433_v6 = vrot.slane %v3026_v47, 1 }
  0x60   : > { %v434_v41 = vrot.slane %v3030_v11, 1  ;;  %v436_v7 = vrot.slane %v3035_v37, 1  ;;  %v438_v25 = vrot.slane %v3040_v0, 1  ;;  %v439_v39 = vrot.slane %v3044_v15, 1 }
  0x61   : > { %v441_v3 = vrot.slane %v3049_v14, 1  ;;  %v412_v60 = vsel %vm402_vm0, %v409_v30, %v411_v38  ;;  %v415_v49 = vsel %vm402_vm0, %v413_v45, %v414_v8  ;;  %v443_v10 = vrot.slane %v3053_v17, 1 }
  0x62   : > { %v444_v16 = vrot.slane %v3057_v20, 1  ;;  %v417_v47 = vsel %vm402_vm0, %v414_v8, %v416_v50  ;;  %v420_v11 = vsel %vm402_vm0, %v418_v13, %v419_v59  ;;  %v422_v37 = vsel %vm402_vm0, %v419_v59, %v421_v1 }
  0x63   : > { %v446_v0 = vrot.slane %v3062_v40, 1  ;;  %v425_v15 = vsel %vm402_vm0, %v423_v43, %v424_v28  ;;  %v427_v14 = vsel %vm402_vm0, %v424_v28, %v426_v29  ;;  %v430_v38 = vsel %vm402_vm0, %v428_v18, %v429_v62 }
  0x64   : > { %v432_v45 = vsel %vm402_vm0, %v429_v62, %v431_v31  ;;  %v435_v17 = vsel %vm402_vm0, %v433_v6, %v434_v41  ;;  %v437_v20 = vsel %vm402_vm0, %v434_v41, %v436_v7  ;;  %v440_v50 = vsel %vm402_vm0, %v438_v25, %v439_v39 }
  0x65   : > { %v442_v30 = vsel %vm402_vm0, %v439_v39, %v441_v3  ;;  %v445_v8 = vsel %vm402_vm0, %v443_v10, %v444_v16  ;;  %v448_v40 = vrot.slane %v3067_v12, 1  ;;  %v449_v13 = vrot.slane %v3071_v21, 1 }
  0x66   : > { %v451_v59 = vrot.slane %v3076_v22, 1  ;;  %v447_v1 = vsel %vm402_vm0, %v444_v16, %v446_v0  ;;  %v453_v43 = vrot.slane %v3080_v19, 1  ;;  %v454_v28 = vrot.slane %v3084_v23, 1 }
  0x67   : > { %v456_v29 = vrot.slane %v3089_v42, 1  ;;  %v458_v18 = vrot.slane %v3094_v5, 1  ;;  %v459_v62 = vrot.slane %v3098_v24, 1  ;;  %v461_v31 = vrot.slane %v3103_v26, 1 }
  0x68   : > { %v463_v12 = vrot.slane %v3107_v4, 1  ;;  %v464_v21 = vrot.slane %v3111_v27, 1  ;;  %v466_v22 = vrot.slane %v3116_v44, 1  ;;  %v468_v6 = vrot.slane %v3121_v2, 1 }
  0x69   : > { %v469_v19 = vrot.slane %v3125_v32, 1  ;;  %v471_v23 = vrot.slane %v3130_v9, 1  ;;  %v473_v42 = vrot.slane %v3135_v34, 1  ;;  %v474_v5 = vrot.slane %v3139_v46, 1 }
  0x6a   : > { %v476_v24 = vrot.slane %v3144_v58, 1  ;;  %v450_v26 = vsel %vm402_vm0, %v448_v40, %v449_v13  ;;  %v478_v4 = vrot.slane %v3149_v33, 1  ;;  %v479_v27 = vrot.slane %v3153_v56, 1 }
  0x6b   : > { %v481_v44 = vrot.slane %v3158_v35, 1  ;;  %v452_v2 = vsel %vm402_vm0, %v449_v13, %v451_v59  ;;  %v455_v32 = vsel %vm402_vm0, %v453_v43, %v454_v28  ;;  %v457_v9 = vsel %vm402_vm0, %v454_v28, %v456_v29  ;;  %v6018_v13 = vld [vmem:[#allocation26_spill] sm:$0xff]  ;;  %v6022_v43 = vld [vmem:[#allocation28_spill] sm:$0xff] }
  0x6c   : > { %v460_v34 = vsel %vm402_vm0, %v458_v18, %v459_v62  ;;  %v462_v46 = vsel %vm402_vm0, %v459_v62, %v461_v31  ;;  %v465_v58 = vsel %vm402_vm0, %v463_v12, %v464_v21  ;;  %v467_v41 = vsel %vm402_vm0, %v464_v21, %v466_v22  ;;  %v6030_v28 = vld [vmem:[#allocation32_spill] sm:$0xff]  ;;  %v6040_v12 = vld [vmem:[#allocation37_spill] sm:$0xff]  ;;  %v6042_v21 = vld [vmem:[#allocation38_spill] sm:$0xff] }
  0x6d   : > { %v470_v33 = vsel %vm402_vm0, %v468_v6, %v469_v19  ;;  %v472_v56 = vsel %vm402_vm0, %v469_v19, %v471_v23  ;;  %v475_v35 = vsel %vm402_vm0, %v473_v42, %v474_v5  ;;  %v477_v7 = vsel %vm402_vm0, %v474_v5, %v476_v24  ;;  %v6038_v31 = vld [vmem:[#allocation36_spill] sm:$0xff]  ;;  %v548_v22 = vld [vmem:[%s2638_s14 + $0xc] sm:$0xe]  ;;  %v6044_v6 = vld [vmem:[#allocation42_spill] sm:$0xff] }
  0x6e   : > { %v3241_v25 = vadd.f32 %v3163_v57, %v2752_v51  ;;  %v480_v39 = vsel %vm402_vm0, %v478_v4, %v479_v27  ;;  %v482_v3 = vsel %vm402_vm0, %v479_v27, %v481_v44  ;;  %v3247_v10 = vadd.f32 %v3166_v36, %v2756_v52  ;;  %v6016_v51 = vld [vmem:[#allocation25_spill] sm:$0xff]  ;;  %v6020_v52 = vld [vmem:[#allocation27_spill] sm:$0xff]  ;;  %v6048_v23 = vld [vmem:[#allocation44_spill] sm:$0xff] }
  0x6f   : > { %v3251_v16 = vadd.f32 %v3171_v63, %v2761_v53  ;;  %v3254_v0 = vadd.f32 %v412_v60, %v2765_v54  ;;  %v3257_v40 = vadd.f32 %v415_v49, %v2769_v55  ;;  %v3260_v57 = vadd.f32 %v417_v47, %v6016_v51  ;;  %v6024_v63 = vld [vmem:[#allocation29_spill] sm:$0xff]  ;;  %v6026_v60 = vld [vmem:[#allocation30_spill] sm:$0xff]  ;;  %v6028_v49 = vld [vmem:[#allocation31_spill] sm:$0xff] }
  0x70   : > { %v3263_v59 = vadd.f32 %v420_v11, %v6018_v13  ;;  %v3266_v36 = vadd.f32 %v422_v37, %v6020_v52  ;;  %v3269_v53 = vadd.f32 %v425_v15, %v6022_v43  ;;  %v3272_v54 = vadd.f32 %v427_v14, %v6024_v63  ;;  %v6032_v37 = vld [vmem:[#allocation33_spill] sm:$0xff]  ;;  %v6034_v15 = vld [vmem:[#allocation34_spill] sm:$0xff]  ;;  %v6036_v14 = vld [vmem:[#allocation35_spill] sm:$0xff] }
  0x71   : > { %6017 = vst [vmem:[#allocation25_spill] sm:$0xff] %v3260_v57  ;;  %v3275_v55 = vadd.f32 %v430_v38, %v6026_v60  ;;  %v3278_v47 = vadd.f32 %v432_v45, %v6028_v49  ;;  %v3281_v11 = vadd.f32 %v435_v17, %v6030_v28  ;;  %v3284_v29 = vadd.f32 %v437_v20, %v6032_v37  ;;  %v547_v20 = vld [vmem:[%s2638_s14] sm:$0xe]  ;;  %v6046_v19 = vld [vmem:[#allocation43_spill] sm:$0xff]  ;;  %v6050_v42 = vld [vmem:[#allocation45_spill] sm:$0xff] }
  0x72   : > { %6019 = vst [vmem:[#allocation26_spill] sm:$0xff] %v3263_v59  ;;  %v3287_v18 = vadd.f32 %v440_v50, %v6034_v15  ;;  %v3290_v62 = vadd.f32 %v442_v30, %v6036_v14  ;;  %v3293_v38 = vadd.f32 %v445_v8, %v6038_v31  ;;  %v3296_v45 = vadd.f32 %v447_v1, %v6040_v12  ;;  %v549_v5 = vld [vmem:[%s2638_s14 + $0x18] sm:$0xe]  ;;  %v550_v24 = vld [vmem:[%s2638_s14 + $0x24] sm:$0xe]  ;;  %v6058_v51 = vld [vmem:[#allocation52_spill] sm:$0xff] }
  0x73   : > { %6021 = vst [vmem:[#allocation27_spill] sm:$0xff] %v3266_v36  ;;  %v3299_v17 = vadd.f32 %v450_v26, %v6042_v21  ;;  %v3304_v50 = vadd.f32 %v452_v2, %v6044_v6  ;;  %v3307_v30 = vadd.f32 %v455_v32, %v6046_v19  ;;  %v3310_v8 = vadd.f32 %v457_v9, %v6048_v23  ;;  %v551_v26 = vld [vmem:[%s2638_s14 + $0x30] sm:$0xe]  ;;  %v6052_v4 = vld [vmem:[#allocation49_spill] sm:$0xff]  ;;  %v6054_v44 = vld [vmem:[#allocation50_spill] sm:$0xff] }
  0x74   : > { %6023 = vst [vmem:[#allocation28_spill] sm:$0xff] %v3269_v53  ;;  %v3313_v1 = vadd.f32 %v460_v34, %v6050_v42  ;;  %v3319_v27 = vadd.f32 %v462_v46, %v6052_v4  ;;  %v3322_v2 = vadd.f32 %v465_v58, %v6054_v44  ;;  %v6056_v32 = vld [vmem:[#allocation51_spill] sm:$0xff]  ;;  %v3328_v34 = vadd.f32 %v470_v33, %v6058_v51  ;;  %v552_v13 = vld [vmem:[%s2638_s14 + $0x3c] sm:$0xe]  ;;  %v554_v43 = vld [vmem:[%s2638_s14 + $0x54] sm:$0xe] }
  0x75   : > { %6025 = vst [vmem:[#allocation29_spill] sm:$0xff] %v3272_v54  ;;  %v3325_v9 = vadd.f32 %v467_v41, %v6056_v32  ;;  %v553_v52 = vld [vmem:[%s2638_s14 + $0x48] sm:$0xe]  ;;  %v6060_v63 = vld [vmem:[#allocation56_spill] sm:$0xff]  ;;  %v6062_v46 = vld [vmem:[#allocation57_spill] sm:$0xff]  ;;  %v563_v19 = vunpack.c.l.bf16 %v547_v20  ;;  %v565_v23 = vunpack.c.l.bf16 %v549_v5  ;;  %v567_v4 = vunpack.c.l.bf16 %v551_v26 }
  0x76   : > { %6027 = vst [vmem:[#allocation30_spill] sm:$0xff] %v3275_v55  ;;  %v3334_v60 = vadd.f32 %v472_v56, %v6060_v63  ;;  %v3337_v49 = vadd.f32 %v475_v35, %v6062_v46  ;;  %v6064_v58 = vld [vmem:[#allocation58_spill] sm:$0xff]  ;;  %v6066_v37 = vld [vmem:[#allocation59_spill] sm:$0xff]  ;;  %v557_v14 = vld [vmem:[%s2638_s14 + $0x78] sm:$0xe]  ;;  %v564_v35 = vunpack.c.l.bf16 %v548_v22  ;;  %v568_v44 = vunpack.c.l.bf16 %v552_v13 }
  0x77   : > { %6029 = vst [vmem:[#allocation31_spill] sm:$0xff] %v3278_v47  ;;  %v3340_v28 = vadd.f32 %v477_v7, %v6064_v58  ;;  %v3343_v41 = vadd.f32 %v480_v39, %v6066_v37  ;;  %v555_v15 = vld [vmem:[%s2638_s14 + $0x60] sm:$0xe]  ;;  %v556_v33 = vld [vmem:[%s2638_s14 + $0x6c] sm:$0xe]  ;;  %v566_v39 = vunpack.c.l.bf16 %v550_v24  ;;  %v570_v46 = vunpack.c.l.bf16 %v554_v43  ;;  %v6112_v55 = vld [vmem:[#allocation65_spill] sm:$0xff] }
  0x78   : > { %6031 = vst [vmem:[#allocation32_spill] sm:$0xff] %v3281_v11  ;;  %v6068_v31 = vld [vmem:[#allocation63_spill] sm:$0xff]  ;;  %v558_v21 = vld [vmem:[%s2638_s14 + $0x84] sm:$0xe]  ;;  %v559_v6 = vld [vmem:[%s2638_s14 + $0x90] sm:$0xe]  ;;  %v571_v58 = vunpack.c.l.bf16 %v555_v15  ;;  %v572_v37 = vunpack.c.l.bf16 %v556_v33  ;;  %v6113_v54 = vunpack.c.l.bf16 %v6112_v55 }
  0x79   : > { %6033 = vst [vmem:[#allocation33_spill] sm:$0xff] %v3284_v29  ;;  %v3349_v12 = vadd.f32 %v482_v3, %v6068_v31  ;;  %v3354_v56 = vld [vmem:[%s2638_s14 + $0x9c] sm:$0xe]  ;;  %v3357_v42 = vld [vmem:[%s2638_s14 + $0xa8] sm:$0xe]  ;;  %v6070_v32 = vld [vmem:[#allocation2_spill] sm:$0xff]  ;;  %v569_v3 = vunpack.c.l.bf16 %v553_v52  ;;  %v573_v31 = vunpack.c.l.bf16 %v557_v14  ;;  %v574_v20 = vunpack.c.l.bf16 %v558_v21 }
  0x7a   : > { %6035 = vst [vmem:[#allocation34_spill] sm:$0xff] %v3287_v18  ;;  %v3360_v7 = vld [vmem:[%s2638_s14 + $0xb4] sm:$0xe]  ;;  %v3363_v51 = vperm.slane %v6070_v32, 2  ;;  %v3366_v63 = vld [vmem:[%s2638_s14 + $0xc] sm:$0xff]   ;;  %v575_v22 = vunpack.c.l.bf16 %v559_v6  ;;  %v576_v5 = vunpack.c.l.bf16 %v3354_v56 }
  0x7b   : > { %6037 = vst [vmem:[#allocation35_spill] sm:$0xff] %v3290_v62  ;;  %v578_v24 = vunpack.c.l.bf16 %v3360_v7  ;;  %v3373_v13 = vunpack.c.h.bf16 %v3366_v63  ;;  %v6073_v52 = vld [vmem:[#allocation3_spill] sm:$0xff] }
  0x7c   : > { %6039 = vst [vmem:[#allocation36_spill] sm:$0xff] %v3293_v38  ;;  %v580_v32 = vmul.f32 %v3363_v51, %v563_v19  ;;  %v581_v43 = vmul.f32 %v6073_v52, %v3363_v51  ;;  %v6074_v15 = vld [vmem:[#allocation39_spill] sm:$0xff]  ;;  %v583_v21 = vmul.f32 %v3363_v51, %v564_v35  ;;  %v6079_v19 = vld [vmem:[#allocation5_spill] sm:$0xff]  ;;  %v3400_v35 = vmul.f32 %v3363_v51, %v566_v39 }
  0x7d   : > { %6041 = vst [vmem:[#allocation37_spill] sm:$0xff] %v3296_v45  ;;  %v6075_v33 = vunpack.c.l.bf16 %v6074_v15  ;;  %v6076_v6 = vld [vmem:[#allocation11_spill] sm:$0xff]  ;;  %v6080_v52 = vld [vmem:[#allocation41_spill] sm:$0xff]  ;;  %v3544_v55 = vmul.f32 %v3363_v51, %v578_v24 }
  0x7e   : > { %6043 = vst [vmem:[#allocation38_spill] sm:$0xff] %v3299_v17  ;;  %v584_v56 = vmul.f32 %v3363_v51, %v6076_v6  ;;  %v6081_v15 = vunpack.c.l.bf16 %v6080_v52  ;;  %v6082_v6 = vld [vmem:[#allocation18_spill] sm:$0xff]  ;;  %v6085_v52 = vld [vmem:[#allocation7_spill] sm:$0xff]  ;;  %v678_v47 = vrot.slane %v581_v43, 2  ;;  %v682_v53 = vrot.slane %v583_v21, 2 }
  0x7f   : > { %6045 = vst [vmem:[#allocation42_spill] sm:$0xff] %v3304_v50  ;;  %v582_v14 = vmul.f32 %v3363_v51, %v6075_v33  ;;  %v6100_v50 = vld [vmem:[#allocation22_spill] sm:$0xff]  ;;  %v6106_v62 = vld [vmem:[#allocation23_spill] sm:$0xff] }
  0x80   : > { %6047 = vst [vmem:[#allocation43_spill] sm:$0xff] %v3307_v30  ;;  %v3397_v33 = vmul.f32 %v3363_v51, %v6081_v15  ;;  %v6086_v15 = vld [vmem:[#allocation47_spill] sm:$0xff] }
  0x81   : > { %6049 = vst [vmem:[#allocation44_spill] sm:$0xff] %v3310_v8 }
  0x82   : > { %6051 = vst [vmem:[#allocation45_spill] sm:$0xff] %v3313_v1  ;;  %v690_v24 = vrot.slane %v3397_v33, 2 }
  0x83   : > { %6053 = vst [vmem:[#allocation49_spill] sm:$0xff] %v3319_v27  ;;  %v6094_v27 = vld [vmem:[#allocation21_spill] sm:$0xff] }
  0x84   : > { %6055 = vst [vmem:[#allocation50_spill] sm:$0xff] %v3322_v2 }
  0x85   : > { %6057 = vst [vmem:[#allocation51_spill] sm:$0xff] %v3325_v9  ;;  %v6092_v9 = vld [vmem:[#allocation53_spill] sm:$0xff] }
  0x86   : > { %6059 = vst [vmem:[#allocation52_spill] sm:$0xff] %v3328_v34 }
  0x87   : > { %6061 = vst [vmem:[#allocation56_spill] sm:$0xff] %v3334_v60  ;;  %v6089_v60 = vld [vmem:[#allocation48_spill] sm:$0xff] }
  0x88   : > { %6063 = vst [vmem:[#allocation57_spill] sm:$0xff] %v3337_v49  ;;  %v6087_v49 = vunpack.c.l.bf16 %v6086_v15  ;;  %v6091_v15 = vld [vmem:[#allocation9_spill] sm:$0xff] }
  0x89   : > { %6065 = vst [vmem:[#allocation58_spill] sm:$0xff] %v3340_v28  ;;  %v3416_v28 = vmul.f32 %v6085_v52, %v3363_v51  ;;  %v3436_v52 = vmul.f32 %v3363_v51, %v569_v3 }
  0x8a   : > { %6067 = vst [vmem:[#allocation59_spill] sm:$0xff] %v3343_v41  ;;  %v3421_v39 = vmul.f32 %v3363_v51, %v6087_v49  ;;  %v3440_v49 = vmul.f32 %v6091_v15, %v3363_v51  ;;  %v3460_v15 = vmul.f32 %v3363_v51, %v571_v58 }
  0x8b   : > { %6069 = vst [vmem:[#allocation63_spill] sm:$0xff] %v3349_v12  ;;  %v577_v12 = vunpack.c.l.bf16 %v3357_v42  ;;  %v6077_v42 = vld [vmem:[#allocation40_spill] sm:$0xff] }
  0x8c   : > { %6071 = vst [vmem:[#allocation67_spill] sm:$0xff] %v3366_v63  ;;  %v6078_v7 = vunpack.c.l.bf16 %v6077_v42  ;;  %v3392_v63 = vmul.f32 %v6079_v19, %v3363_v51  ;;  %v3404_v42 = vmul.f32 %v3363_v51, %v6082_v6  ;;  %v3412_v19 = vmul.f32 %v3363_v51, %v567_v4 }
  0x8d   : > { %6072 = vst [vmem:[#allocation68_spill] sm:$0xff] %v3373_v13  ;;  %v3388_v13 = vmul.f32 %v3363_v51, %v565_v23  ;;  %v3424_v6 = vmul.f32 %v3363_v51, %v568_v44  ;;  %v6090_v4 = vunpack.c.l.bf16 %v6089_v60  ;;  %v6093_v44 = vunpack.c.l.bf16 %v6092_v9  ;;  %v6097_v9 = vld [vmem:[#allocation12_spill] sm:$0xff] }
  0x8e   : > { %v585_v26 = vmul.f32 %v3363_v51, %v6078_v7  ;;  %v6083_v7 = vld [vmem:[#allocation46_spill] sm:$0xff]  ;;  %v3452_v60 = vmul.f32 %v3363_v51, %v6094_v27  ;;  %v3464_v8 = vmul.f32 %v6097_v9, %v3363_v51  ;;  %v3472_v27 = vmul.f32 %v3363_v51, %v572_v37 }
  0x8f   : > { %v6084_v41 = vunpack.c.l.bf16 %v6083_v7  ;;  %v6088_v7 = vld [vmem:[#allocation20_spill] sm:$0xff]  ;;  %v3433_v34 = vmul.f32 %v3363_v51, %v6090_v4  ;;  %v3445_v2 = vmul.f32 %v3363_v51, %v6093_v44  ;;  %v6095_v4 = vld [vmem:[#allocation54_spill] sm:$0xff]  ;;  %v6098_v44 = vld [vmem:[#allocation55_spill] sm:$0xff]  ;;  %v3484_v9 = vmul.f32 %v3363_v51, %v573_v31 }
  0x90   : > { %v6096_v1 = vunpack.c.l.bf16 %v6095_v4  ;;  %v6099_v30 = vunpack.c.l.bf16 %v6098_v44  ;;  %v3476_v4 = vmul.f32 %v3363_v51, %v6100_v50  ;;  %v6103_v44 = vld [vmem:[#allocation14_spill] sm:$0xff]  ;;  %v3496_v50 = vmul.f32 %v3363_v51, %v574_v20 }
  0x91   : > { %v3409_v23 = vmul.f32 %v3363_v51, %v6084_v41  ;;  %v3428_v41 = vmul.f32 %v3363_v51, %v6088_v7  ;;  %v3448_v7 = vmul.f32 %v3363_v51, %v570_v46  ;;  %v3488_v45 = vmul.f32 %v6103_v44, %v3363_v51 }
  0x92   : > { %v3457_v3 = vmul.f32 %v3363_v51, %v6096_v1  ;;  %v3469_v46 = vmul.f32 %v3363_v51, %v6099_v30  ;;  %v6101_v1 = vld [vmem:[#allocation60_spill] sm:$0xff]  ;;  %v6104_v30 = vld [vmem:[#allocation61_spill] sm:$0xff]  ;;  %v3508_v44 = vmul.f32 %v3363_v51, %v575_v22  ;;  %v680_v22 = vrot.slane %v582_v14, 2 }
  0x93   : > { %v6102_v17 = vunpack.c.l.bf16 %v6101_v1  ;;  %v6105_v38 = vunpack.c.l.bf16 %v6104_v30  ;;  %v3500_v1 = vmul.f32 %v3363_v51, %v6106_v62  ;;  %v6109_v30 = vld [vmem:[#allocation16_spill] sm:$0xff]  ;;  %v3520_v62 = vmul.f32 %v3363_v51, %v576_v5  ;;  %v6114_v5 = vld [vmem:[#allocation19_spill] sm:$0xff] }
  0x94   : > { %v3512_v29 = vmul.f32 %v6109_v30, %v3363_v51  ;;  %v3529_v30 = vmul.f32 %v3363_v51, %v6113_v54  ;;  %v685_v36 = vrot.slane %v585_v26, 2  ;;  %v3536_v59 = vmul.f32 %v6114_v5, %v3363_v51  ;;  %v6117_v54 = vld [vmem:[#allocation24_spill] sm:$0xff] }
  0x95   : > { %v3481_v58 = vmul.f32 %v3363_v51, %v6102_v17  ;;  %v3493_v37 = vmul.f32 %v3363_v51, %v6105_v38  ;;  %v6107_v17 = vld [vmem:[#allocation62_spill] sm:$0xff]  ;;  %v6110_v38 = vld [vmem:[#allocation64_spill] sm:$0xff]  ;;  %v3548_v43 = vmul.f32 %v3363_v51, %v6117_v54  ;;  %v6118_v26 = vunpack.c.l.bf16 %v2935_v61 }
  0x96   : > { %v6108_v18 = vunpack.c.l.bf16 %v6107_v17  ;;  %v6111_v11 = vunpack.c.l.bf16 %v6110_v38  ;;  %v3524_v17 = vmul.f32 %v3363_v51, %v2743_v48  ;;  %v683_v38 = vrot.slane %v584_v56, 2  ;;  %v6115_v48 = vld [vmem:[#allocation66_spill] sm:$0xff] }
  0x97   : > { %v6116_v57 = vunpack.c.l.bf16 %v6115_v48  ;;  %v687_v14 = vrot.slane %v3388_v13, 2  ;;  %v688_v21 = vrot.slane %v3392_v63, 2  ;;  %v692_v48 = vrot.slane %v3400_v35, 2 }
  0x98   : > { %v3505_v31 = vmul.f32 %v3363_v51, %v6108_v18  ;;  %v3517_v20 = vmul.f32 %v3363_v51, %v6111_v11  ;;  %v677_v18 = vrot.slane %v580_v32, 2  ;;  %v3532_v11 = vmul.f32 %v3363_v51, %v577_v12 }
  0x99   : > { %v3541_v32 = vmul.f32 %v3363_v51, %v6116_v57  ;;  %v3553_v12 = vmul.f32 %v3363_v51, %v6118_v26  ;;  %v3561_v57 = vsel %vm676_vm1, %v678_v47, %v680_v22  ;;  %v3566_v54 = vsel %vm676_vm1, %v682_v53, %v683_v38 }
  0x9a   : > { %v3558_v56 = vsel %vm676_vm1, %v677_v18, %v678_v47  ;;  %v3569_v61 = vsel %vm676_vm1, %v683_v38, %v685_v36  ;;  %v693_v51 = vrot.slane %v3404_v42, 2  ;;  %v695_v63 = vrot.slane %v3409_v23, 2 }
  0x9b   : > { %v697_v13 = vrot.slane %v3412_v19, 2  ;;  %v698_v18 = vrot.slane %v3416_v28, 2  ;;  %v700_v47 = vrot.slane %v3421_v39, 2  ;;  %v702_v33 = vrot.slane %v3424_v6, 2 }
  0x9c   : > { %v703_v35 = vrot.slane %v3428_v41, 2  ;;  %v705_v53 = vrot.slane %v3433_v34, 2  ;;  %v707_v22 = vrot.slane %v3436_v52, 2  ;;  %v708_v36 = vrot.slane %v3440_v49, 2 }
  0x9d   : > { %v710_v42 = vrot.slane %v3445_v2, 2  ;;  %v712_v23 = vrot.slane %v3448_v7, 2  ;;  %v713_v19 = vrot.slane %v3452_v60, 2  ;;  %v715_v28 = vrot.slane %v3457_v3, 2 }
  0x9e   : > { %v689_v39 = vsel %vm676_vm1, %v687_v14, %v688_v21  ;;  %v691_v6 = vsel %vm676_vm1, %v688_v21, %v690_v24  ;;  %v717_v41 = vrot.slane %v3460_v15, 2  ;;  %v718_v34 = vrot.slane %v3464_v8, 2 }
  0x9f   : > { %v694_v52 = vsel %vm676_vm1, %v692_v48, %v693_v51  ;;  %v696_v49 = vsel %vm676_vm1, %v693_v51, %v695_v63  ;;  %v699_v2 = vsel %vm676_vm1, %v697_v13, %v698_v18  ;;  %v720_v7 = vrot.slane %v3469_v46, 2 }
  0xa0   : > { %v701_v60 = vsel %vm676_vm1, %v698_v18, %v700_v47  ;;  %v704_v3 = vsel %vm676_vm1, %v702_v33, %v703_v35  ;;  %v706_v38 = vsel %vm676_vm1, %v703_v35, %v705_v53  ;;  %v709_v26 = vsel %vm676_vm1, %v707_v22, %v708_v36 }
  0xa1   : > { %v711_v15 = vsel %vm676_vm1, %v708_v36, %v710_v42  ;;  %v714_v8 = vsel %vm676_vm1, %v712_v23, %v713_v19  ;;  %v716_v14 = vsel %vm676_vm1, %v713_v19, %v715_v28  ;;  %v722_v21 = vrot.slane %v3472_v27, 2 }
  0xa2   : > { %v719_v24 = vsel %vm676_vm1, %v717_v41, %v718_v34  ;;  %v723_v46 = vrot.slane %v3476_v4, 2  ;;  %v725_v48 = vrot.slane %v3481_v58, 2  ;;  %v727_v51 = vrot.slane %v3484_v9, 2 }
  0xa3   : > { %v721_v63 = vsel %vm676_vm1, %v718_v34, %v720_v7  ;;  %v728_v13 = vrot.slane %v3488_v45, 2  ;;  %v730_v18 = vrot.slane %v3493_v37, 2  ;;  %v732_v47 = vrot.slane %v3496_v50, 2 }
  0xa4   : > { %v733_v33 = vrot.slane %v3500_v1, 2  ;;  %v735_v27 = vrot.slane %v3505_v31, 2  ;;  %v737_v35 = vrot.slane %v3508_v44, 2  ;;  %v738_v4 = vrot.slane %v3512_v29, 2 }
  0xa5   : > { %v740_v58 = vrot.slane %v3517_v20, 2  ;;  %v742_v9 = vrot.slane %v3520_v62, 2  ;;  %v743_v53 = vrot.slane %v3524_v17, 2  ;;  %v745_v45 = vrot.slane %v3529_v30, 2 }
  0xa6   : > { %v724_v37 = vsel %vm676_vm1, %v722_v21, %v723_v46  ;;  %v747_v50 = vrot.slane %v3532_v11, 2  ;;  %v748_v1 = vrot.slane %v3536_v59, 2  ;;  %v750_v31 = vrot.slane %v3541_v32, 2  ;;  %v6121_v21 = vld [vmem:[#allocation27_spill] sm:$0xff] }
  0xa7   : > { %v726_v44 = vsel %vm676_vm1, %v723_v46, %v725_v48  ;;  %v752_v29 = vrot.slane %v3544_v55, 2  ;;  %v753_v20 = vrot.slane %v3548_v43, 2  ;;  %v755_v62 = vrot.slane %v3553_v12, 2  ;;  %v6122_v48 = vld [vmem:[#allocation28_spill] sm:$0xff] }
  0xa8   : > { %v729_v17 = vsel %vm676_vm1, %v727_v51, %v728_v13  ;;  %v731_v30 = vsel %vm676_vm1, %v728_v13, %v730_v18  ;;  %v734_v22 = vsel %vm676_vm1, %v732_v47, %v733_v33  ;;  %v736_v11 = vsel %vm676_vm1, %v733_v33, %v735_v27  ;;  %v6127_v13 = vld [vmem:[#allocation33_spill] sm:$0xff]  ;;  %v6128_v18 = vld [vmem:[#allocation34_spill] sm:$0xff]  ;;  %v6129_v47 = vld [vmem:[#allocation35_spill] sm:$0xff] }
  0xa9   : > { %v739_v59 = vsel %vm676_vm1, %v737_v35, %v738_v4  ;;  %v741_v32 = vsel %vm676_vm1, %v738_v4, %v740_v58  ;;  %v744_v36 = vsel %vm676_vm1, %v742_v9, %v743_v53  ;;  %v746_v55 = vsel %vm676_vm1, %v743_v53, %v745_v45  ;;  %v6130_v33 = vld [vmem:[#allocation36_spill] sm:$0xff]  ;;  %v6131_v27 = vld [vmem:[#allocation37_spill] sm:$0xff]  ;;  %v6132_v35 = vld [vmem:[#allocation38_spill] sm:$0xff] }
  0xaa   : > { %v749_v43 = vsel %vm676_vm1, %v747_v50, %v748_v1  ;;  %v751_v12 = vsel %vm676_vm1, %v748_v1, %v750_v31  ;;  %v3637_v42 = vadd.f32 %v3558_v56, %v3241_v25  ;;  %v3641_v23 = vadd.f32 %v3561_v57, %v3247_v10  ;;  %v6119_v25 = vld [vmem:[#allocation25_spill] sm:$0xff]  ;;  %v6120_v10 = vld [vmem:[#allocation26_spill] sm:$0xff]  ;;  %v6135_v58 = vld [vmem:[#allocation43_spill] sm:$0xff] }
  0xab   : > { %v754_v19 = vsel %vm676_vm1, %v752_v29, %v753_v20  ;;  %v756_v28 = vsel %vm676_vm1, %v753_v20, %v755_v62  ;;  %v3647_v41 = vadd.f32 %v3566_v54, %v3251_v16  ;;  %v3651_v34 = vadd.f32 %v3569_v61, %v3254_v0  ;;  %v6123_v16 = vld [vmem:[#allocation29_spill] sm:$0xff]  ;;  %v6124_v0 = vld [vmem:[#allocation30_spill] sm:$0xff]  ;;  %v6125_v61 = vld [vmem:[#allocation31_spill] sm:$0xff] }
  0xac   : > { %v3654_v7 = vadd.f32 %v689_v39, %v3257_v40  ;;  %v3657_v56 = vadd.f32 %v691_v6, %v6119_v25  ;;  %v3660_v57 = vadd.f32 %v694_v52, %v6120_v10  ;;  %v3663_v46 = vadd.f32 %v696_v49, %v6121_v21  ;;  %v6126_v6 = vld [vmem:[#allocation32_spill] sm:$0xff]  ;;  %v6133_v4 = vld [vmem:[#allocation42_spill] sm:$0xff]  ;;  %v6139_v53 = vld [vmem:[#allocation45_spill] sm:$0xff] }
  0xad   : > { %v3666_v51 = vadd.f32 %v699_v2, %v6122_v48  ;;  %v3669_v54 = vadd.f32 %v701_v60, %v6123_v16  ;;  %v3672_v40 = vadd.f32 %v704_v3, %v6124_v0  ;;  %v3675_v39 = vadd.f32 %v706_v38, %v6125_v61  ;;  %v6137_v9 = vld [vmem:[#allocation44_spill] sm:$0xff]  ;;  %v6141_v45 = vld [vmem:[#allocation49_spill] sm:$0xff]  ;;  %v2581_v50 = vld [vmem:[%s2638_s14 + $0xc0] sm:$0xff]  }
  0xae   : > { %v3678_v52 = vadd.f32 %v709_v26, %v6126_v6  ;;  %v3681_v49 = vadd.f32 %v711_v15, %v6127_v13  ;;  %v3684_v2 = vadd.f32 %v714_v8, %v6128_v18  ;;  %v3687_v60 = vadd.f32 %v716_v14, %v6129_v47  ;;  %v6144_v1 = vld [vmem:[#allocation50_spill] sm:$0xff]  ;;  %v6148_v20 = vld [vmem:[#allocation52_spill] sm:$0xff]  ;;  %v6154_v25 = vld [vmem:[#allocation57_spill] sm:$0xff] }
  0xaf   : > { %v3690_v3 = vadd.f32 %v719_v24, %v6130_v33  ;;  %v3693_v38 = vadd.f32 %v721_v63, %v6131_v27  ;;  %v3696_v26 = vadd.f32 %v724_v37, %v6132_v35  ;;  %v3699_v15 = vadd.f32 %v726_v44, %v6133_v4  ;;  %v3714_v37 = vld [vmem:[%s2638_s14 + $0x24] sm:$0xff]   ;;  %v3754_v61 = vld [vmem:[%s2638_s14 + $0x9c] sm:$0xff]   ;;  %v3768_v13 = vld [vmem:[%s2638_s14 + $0x14] sm:$0x1] }
  0xb0   : > { %v3702_v8 = vadd.f32 %v729_v17, %v6135_v58  ;;  %v3705_v14 = vadd.f32 %v731_v30, %v6137_v9  ;;  %v3708_v24 = vadd.f32 %v734_v22, %v6139_v53  ;;  %v3711_v63 = vadd.f32 %v736_v11, %v6141_v45  ;;  %6143 = vst [vmem:[#allocation18_spill] sm:$0xff] %v3714_v37  ;;  %v6146_v44 = vld [vmem:[#allocation51_spill] sm:$0xff]  ;;  %v6150_v17 = vld [vmem:[#allocation56_spill] sm:$0xff]  ;;  %v3730_v22 = vld [vmem:[%s2638_s14 + $0x3c] sm:$0xff]  }
  0xb1   : > { %6134 = vst [vmem:[#allocation3_spill] sm:$0xff] %v3699_v15  ;;  %v3718_v31 = vadd.f32 %v739_v59, %v6144_v1  ;;  %v3721_v29 = vadd.f32 %v741_v32, %v6146_v44  ;;  %v3724_v62 = vadd.f32 %v744_v36, %v6148_v20  ;;  %v3727_v30 = vadd.f32 %v746_v55, %v6150_v17  ;;  %v3733_v11 = vld [vmem:[%s2638_s14 + $0x54] sm:$0xff]   ;;  %v6156_v59 = vld [vmem:[#allocation58_spill] sm:$0xff]  ;;  %v6158_v32 = vld [vmem:[#allocation59_spill] sm:$0xff] }
  0xb2   : > { %6136 = vst [vmem:[#allocation39_spill] sm:$0xff] %v3702_v8  ;;  %v3736_v10 = vadd.f32 %v749_v43, %v6154_v25  ;;  %v3739_v21 = vadd.f32 %v751_v12, %v6156_v59  ;;  %v3742_v48 = vadd.f32 %v754_v19, %v6158_v32  ;;  %v6160_v36 = vld [vmem:[#allocation63_spill] sm:$0xff]  ;;  %v3757_v43 = vld [vmem:[%s2638_s14 + $0xb4] sm:$0xff]   ;;  %v3759_v6 = vunpack.c.l.bf16 %v2581_v50  ;;  %v3771_v18 = vld [vmem:[%s2638_s14 + $0x20] sm:$0x1] }
  0xb3   : > { %6138 = vst [vmem:[#allocation11_spill] sm:$0xff] %v3705_v14  ;;  %v3745_v16 = vadd.f32 %v756_v28, %v6160_v36  ;;  %v3748_v55 = vld [vmem:[%s2638_s14 + $0x6c] sm:$0xff]   ;;  %v3751_v0 = vld [vmem:[%s2638_s14 + $0x84] sm:$0xff]   ;;  %v3761_v12 = vunpack.c.h.bf16 %v2581_v50  ;;  %v3765_v28 = vunpack.c.h.bf16 %v3714_v37  ;;  %v3775_v33 = vunpack.c.h.bf16 %v3730_v22  ;;  %v3785_v58 = vld [vmem:[%s2638_s14 + $0x38] sm:$0x1] }
  0xb4   : > { %6140 = vst [vmem:[#allocation40_spill] sm:$0xff] %v3708_v24  ;;  %v3779_v35 = vunpack.c.h.bf16 %v3733_v11  ;;  %v3782_v4 = vld [vmem:[%s2638_s14 + $0x2c] sm:$0x1]  ;;  %v3788_v9 = vld [vmem:[%s2638_s14 + $0x44] sm:$0x1]  ;;  %v3792_v45 = vunpack.c.h.bf16 %v3748_v55  ;;  %v3803_v25 = vunpack.c.h.bf16 %v3751_v0  ;;  %v3807_v32 = vunpack.c.h.bf16 %v3754_v61  ;;  %v6184_v50 = vld [vmem:[#allocation5_spill] sm:$0xff] }
  0xb5   : > { %6142 = vst [vmem:[#allocation41_spill] sm:$0xff] %v3711_v63  ;;  %v6174_v1 = vld [vmem:[#allocation2_spill] sm:$0xff]  ;;  %v3797_v20 = vld [vmem:[%s2638_s14 + $0x50] sm:$0x1]  ;;  %v3800_v17 = vld [vmem:[%s2638_s14 + $0x5c] sm:$0x1]  ;;  %v3811_v53 = vunpack.c.h.bf16 %v3757_v43 }
  0xb6   : > { %6145 = vst [vmem:[#allocation46_spill] sm:$0xff] %v3718_v31  ;;  %v886_v44 = vperm.slane %v6174_v1, 3  ;;  %v6185_v1 = vunpack.c.l.bf16 %v3714_v37  ;;  %v6192_v37 = vld [vmem:[#allocation10_spill] sm:$0xff]  ;;  %v6199_v14 = vld [vmem:[#allocation16_spill] sm:$0xff] }
  0xb7   : > { %6147 = vst [vmem:[#allocation47_spill] sm:$0xff] %v3721_v29  ;;  %v6196_v63 = vld [vmem:[#allocation14_spill] sm:$0xff] }
  0xb8   : > { %6149 = vst [vmem:[#allocation20_spill] sm:$0xff] %v3724_v62  ;;  %v6183_v62 = vld [vmem:[#allocation4_spill] sm:$0xff]  ;;  %v891_v27 = vmul.f32 %v886_v44, %v6185_v1  ;;  %v892_v47 = vmul.f32 %v886_v44, %v3765_v28  ;;  %v900_v1 = vmul.f32 %v886_v44, %v3779_v35 }
  0xb9   : > { %6151 = vst [vmem:[#allocation48_spill] sm:$0xff] %v3727_v30  ;;  %v889_v29 = vmul.f32 %v6183_v62, %v886_v44 }
  0xba   : > { %6152 = vst [vmem:[#allocation53_spill] sm:$0xff] %v3730_v22 }
  0xbb   : > { %6153 = vst [vmem:[#allocation21_spill] sm:$0xff] %v3733_v11 }
  0xbc   : > { %6155 = vst [vmem:[#allocation54_spill] sm:$0xff] %v3736_v10  ;;  %v6182_v10 = vld [vmem:[#allocation68_spill] sm:$0xff] }
  0xbd   : > { %6157 = vst [vmem:[#allocation55_spill] sm:$0xff] %v3739_v21  ;;  %v888_v30 = vmul.f32 %v886_v44, %v6182_v10 }
  0xbe   : > { %6159 = vst [vmem:[#allocation22_spill] sm:$0xff] %v3742_v48  ;;  %v6180_v48 = vld [vmem:[#allocation67_spill] sm:$0xff] }
  0xbf   : > { %6161 = vst [vmem:[#allocation60_spill] sm:$0xff] %v3745_v16  ;;  %v6181_v21 = vunpack.c.l.bf16 %v6180_v48  ;;  %v6188_v16 = vunpack.c.l.bf16 %v3730_v22  ;;  %v6193_v48 = vld [vmem:[#allocation12_spill] sm:$0xff]  ;;  %v6195_v22 = vld [vmem:[#allocation13_spill] sm:$0xff] }
  0xc0   : > { %6162 = vst [vmem:[#allocation61_spill] sm:$0xff] %v3748_v55 }
  0xc1   : > { %6163 = vst [vmem:[#allocation23_spill] sm:$0xff] %v3759_v6  ;;  %v887_v36 = vmul.f32 %v886_v44, %v6181_v21  ;;  %v896_v21 = vmul.f32 %v886_v44, %v3775_v33 }
  0xc2   : > { %6164 = vst [vmem:[#allocation62_spill] sm:$0xff] %v3761_v12 }
  0xc3   : > { %6165 = vst [vmem:[#allocation64_spill] sm:$0xff] %v3765_v28  ;;  %v901_v28 = vmul.f32 %v6192_v37, %v886_v44  ;;  %v910_v37 = vmul.f32 %v6199_v14, %v886_v44  ;;  %v3861_v14 = vadd.f32 %v887_v36, %v3637_v42  ;;  %v3969_v36 = vld [vmem:[%s2638_s14 + $0xc8] sm:$0x1] }
  0xc4   : > { %6166 = vst [vmem:[#allocation65_spill] sm:$0xff] %v3768_v13  ;;  %v890_v13 = vmul.f32 %v6184_v50, %v886_v44  ;;  %v6191_v50 = vunpack.c.l.bf16 %v3733_v11  ;;  %v6198_v11 = vld [vmem:[#allocation15_spill] sm:$0xff] }
  0xc5   : > { %6167 = vst [vmem:[#allocation66_spill] sm:$0xff] %v3771_v18  ;;  %v6190_v18 = vld [vmem:[#allocation9_spill] sm:$0xff] }
  0xc6   : > { %6168 = vst [vmem:[#allocation24_spill] sm:$0xff] %v3775_v33  ;;  %v898_v62 = vmul.f32 %v6190_v18, %v886_v44  ;;  %v899_v10 = vmul.f32 %v886_v44, %v6191_v50  ;;  %v905_v33 = vmul.f32 %v6195_v22, %v886_v44  ;;  %v6197_v18 = vunpack.c.l.bf16 %v3751_v0 }
  0xc7   : > { %6169 = vst [vmem:[#allocation25_spill] sm:$0xff] %v3779_v35  ;;  %v908_v50 = vmul.f32 %v886_v44, %v3803_v25  ;;  %v909_v35 = vmul.f32 %v6198_v11, %v886_v44  ;;  %v914_v22 = vmul.f32 %v6114_v5, %v886_v44  ;;  %v918_v11 = vmul.f32 %v3761_v12, %v886_v44 }
  0xc8   : > { %6170 = vst [vmem:[#allocation26_spill] sm:$0xff] %v3782_v4  ;;  %v907_v24 = vmul.f32 %v886_v44, %v6197_v18  ;;  %v916_v18 = vmul.f32 %v886_v44, %v3811_v53  ;;  %v3870_v5 = vadd.f32 %v890_v13, %v3651_v34  ;;  %v3888_v34 = vadd.f32 %v896_v21, %v3669_v54  ;;  %v3942_v13 = vld [vmem:[%s2638_s14 + $0x8c] sm:$0x1]  ;;  %v6242_v21 = vld [vmem:[#allocation54_spill] sm:$0xff] }
  0xc9   : > { %6171 = vst [vmem:[#allocation27_spill] sm:$0xff] %v3785_v58  ;;  %v6186_v58 = vld [vmem:[#allocation6_spill] sm:$0xff] }
  0xca   : > { %6172 = vst [vmem:[#allocation28_spill] sm:$0xff] %v3788_v9  ;;  %v893_v19 = vmul.f32 %v6186_v58, %v886_v44  ;;  %v6187_v9 = vld [vmem:[#allocation7_spill] sm:$0xff]  ;;  %v902_v58 = vmul.f32 %v6193_v48, %v886_v44  ;;  %v6200_v48 = vunpack.c.l.bf16 %v3754_v61 }
  0xcb   : > { %6173 = vst [vmem:[#allocation29_spill] sm:$0xff] %v3792_v45  ;;  %v894_v59 = vmul.f32 %v6187_v9, %v886_v44  ;;  %v6194_v9 = vunpack.c.l.bf16 %v3748_v55  ;;  %v6201_v55 = vld [vmem:[#allocation17_spill] sm:$0xff] }
  0xcc   : > { %6175 = vst [vmem:[#allocation30_spill] sm:$0xff] %v3797_v20  ;;  %v6189_v20 = vld [vmem:[#allocation8_spill] sm:$0xff]  ;;  %v911_v8 = vmul.f32 %v886_v44, %v6200_v48  ;;  %v3864_v48 = vadd.f32 %v888_v30, %v3641_v23  ;;  %v3879_v42 = vadd.f32 %v893_v19, %v3660_v57  ;;  %v3897_v57 = vadd.f32 %v899_v10, %v3678_v52  ;;  %v6228_v19 = vld [vmem:[#allocation41_spill] sm:$0xff] }
  0xcd   : > { %6176 = vst [vmem:[#allocation31_spill] sm:$0xff] %v3800_v17  ;;  %v895_v17 = vmul.f32 %v886_v44, %v6188_v16  ;;  %v897_v4 = vmul.f32 %v6189_v20, %v886_v44  ;;  %v903_v31 = vmul.f32 %v886_v44, %v6194_v9  ;;  %v904_v16 = vmul.f32 %v886_v44, %v3792_v45 }
  0xce   : > { %6177 = vst [vmem:[#allocation32_spill] sm:$0xff] %v3803_v25  ;;  %v906_v20 = vmul.f32 %v6196_v63, %v886_v44  ;;  %v912_v9 = vmul.f32 %v886_v44, %v3807_v32  ;;  %v913_v45 = vmul.f32 %v6201_v55, %v886_v44  ;;  %v6202_v63 = vunpack.c.l.bf16 %v3757_v43 }
  0xcf   : > { %6178 = vst [vmem:[#allocation33_spill] sm:$0xff] %v3807_v32  ;;  %v917_v25 = vmul.f32 %v3759_v6, %v886_v44  ;;  %v3867_v32 = vadd.f32 %v889_v29, %v3647_v41  ;;  %v3876_v6 = vadd.f32 %v892_v47, %v3657_v56  ;;  %v3882_v23 = vadd.f32 %v894_v59, %v3663_v46  ;;  %v6217_v29 = vld [vmem:[#allocation3_spill] sm:$0xff]  ;;  %v3945_v47 = vld [vmem:[%s2638_s14 + $0x98] sm:$0x1]  ;;  %v3966_v59 = vld [vmem:[%s2638_s14 + $0xbc] sm:$0x1] }
  0xd0   : > { %6179 = vst [vmem:[#allocation34_spill] sm:$0xff] %v3811_v53  ;;  %v915_v15 = vmul.f32 %v886_v44, %v6202_v63  ;;  %v3873_v63 = vadd.f32 %v891_v27, %v3654_v7  ;;  %v3885_v41 = vadd.f32 %v895_v17, %v3666_v51  ;;  %v3891_v7 = vadd.f32 %v897_v4, %v3672_v40  ;;  %v6233_v27 = vld [vmem:[#allocation46_spill] sm:$0xff]  ;;  %v6235_v4 = vld [vmem:[#allocation47_spill] sm:$0xff]  ;;  %v6237_v44 = vld [vmem:[#allocation20_spill] sm:$0xff] }
  0xd1   : > { %6203 = vst [vmem:[#allocation35_spill] sm:$0xff] %v3876_v6  ;;  %v3894_v56 = vadd.f32 %v898_v62, %v3675_v39  ;;  %v3900_v46 = vadd.f32 %v900_v1, %v3681_v49  ;;  %v3903_v51 = vadd.f32 %v901_v28, %v3684_v2  ;;  %v3906_v54 = vadd.f32 %v902_v58, %v3687_v60  ;;  %v3921_v62 = vld [vmem:[%s2638_s14 + $0x68] sm:$0x1]  ;;  %v3924_v2 = vld [vmem:[%s2638_s14 + $0x74] sm:$0x1] }
  0xd2   : > { %6204 = vst [vmem:[#allocation36_spill] sm:$0xff] %v3879_v42  ;;  %v3909_v40 = vadd.f32 %v903_v31, %v3690_v3  ;;  %v3912_v39 = vadd.f32 %v904_v16, %v3693_v38  ;;  %v3915_v52 = vadd.f32 %v905_v33, %v3696_v26  ;;  %v3918_v49 = vadd.f32 %v906_v20, %v6217_v29  ;;  %v3927_v60 = vld [vmem:[%s2638_s14 + $0x80] sm:$0x1]  ;;  %v6222_v3 = vld [vmem:[#allocation39_spill] sm:$0xff]  ;;  %v6226_v26 = vld [vmem:[#allocation40_spill] sm:$0xff] }
  0xd3   : > { %6205 = vst [vmem:[#allocation37_spill] sm:$0xff] %v3882_v23  ;;  %v3930_v31 = vadd.f32 %v907_v24, %v6222_v3  ;;  %v6224_v38 = vld [vmem:[#allocation11_spill] sm:$0xff]  ;;  %v3936_v10 = vadd.f32 %v909_v35, %v6226_v26  ;;  %v3939_v28 = vadd.f32 %v910_v37, %v6228_v19  ;;  %v3948_v33 = vld [vmem:[%s2638_s14 + $0xa4] sm:$0x1]  ;;  %v3951_v24 = vadd.f32 %v911_v8, %v6233_v27  ;;  %v6239_v20 = vld [vmem:[#allocation48_spill] sm:$0xff] }
  0xd4   : > { %6206 = vst [vmem:[#allocation38_spill] sm:$0xff] %v3885_v41  ;;  %v3933_v30 = vadd.f32 %v908_v50, %v6224_v38  ;;  %v3954_v58 = vadd.f32 %v912_v9, %v6235_v4  ;;  %v3957_v35 = vadd.f32 %v913_v45, %v6237_v44  ;;  %v3960_v37 = vadd.f32 %v914_v22, %v6239_v20  ;;  %v3963_v17 = vld [vmem:[%s2638_s14 + $0xb0] sm:$0x1]  ;;  %v6244_v8 = vld [vmem:[#allocation55_spill] sm:$0xff]  ;;  %v6246_v50 = vld [vmem:[#allocation22_spill] sm:$0xff] }
  0xd5   : > { %6207 = vst [vmem:[#allocation42_spill] sm:$0xff] %v3888_v34  ;;  %v3972_v1 = vadd.f32 %v915_v15, %v6242_v21  ;;  %v3975_v16 = vadd.f32 %v916_v18, %v6244_v8  ;;  %v3978_v9 = vadd.f32 %v917_v25, %v6246_v50  ;;  %v3983_v22 = vld [vmem:[%s5748_s1] sm:$0xff]  ;;  %v3989_v29 = vld [vmem:[%s2638_s14 + $0xc] sm:$0xe]  ;;  %v3992_v3 = vld [vmem:[%s2638_s14 + $0x18] sm:$0xe]  ;;  %v6305_v23 = vunpack.c.l.bf16 %v3963_v17 }
  0xd6   : > { %6208 = vst [vmem:[#allocation43_spill] sm:$0xff] %v3891_v7  ;;  %v3986_v45 = vperm.slane %v3983_v22, 4  ;;  %v6251_v15 = vld [vmem:[#allocation60_spill] sm:$0xff]  ;;  %v6253_v50 = vld [vmem:[#allocation67_spill] sm:$0xff]  ;;  %v6256_v27 = vld [vmem:[#allocation65_spill] sm:$0xff]  ;;  %v6306_v6 = vunpack.c.l.bf16 %v3757_v43  ;;  %v6309_v43 = vunpack.c.l.bf16 %v3969_v36 }
  0xd7   : > { %6209 = vst [vmem:[#allocation44_spill] sm:$0xff] %v3894_v56  ;;  %v3995_v38 = vadd.f32 %v918_v11, %v6251_v15  ;;  %v6254_v15 = vunpack.c.l.bf16 %v6253_v50  ;;  %v6255_v25 = vld [vmem:[#allocation68_spill] sm:$0xff]  ;;  %v6257_v18 = vunpack.c.l.bf16 %v6256_v27  ;;  %v6259_v21 = vld [vmem:[#allocation5_spill] sm:$0xff]  ;;  %v6260_v11 = vld [vmem:[#allocation66_spill] sm:$0xff] }
  0xd8   : > { %6210 = vst [vmem:[#allocation45_spill] sm:$0xff] %v3897_v57  ;;  %v985_v19 = vmul.f32 %v3986_v45, %v6255_v25  ;;  %v6258_v44 = vld [vmem:[#allocation4_spill] sm:$0xff]  ;;  %v6262_v50 = vld [vmem:[#allocation18_spill] sm:$0xff] }
  0xd9   : > { %6211 = vst [vmem:[#allocation49_spill] sm:$0xff] %v3900_v46  ;;  %v984_v26 = vmul.f32 %v3986_v45, %v6254_v15  ;;  %v986_v4 = vmul.f32 %v3986_v45, %v6257_v18  ;;  %v987_v20 = vmul.f32 %v6258_v44, %v3986_v45  ;;  %v6264_v25 = vld [vmem:[#allocation64_spill] sm:$0xff]  ;;  %v6265_v18 = vld [vmem:[#allocation26_spill] sm:$0xff] }
  0xda   : > { %6212 = vst [vmem:[#allocation50_spill] sm:$0xff] %v3903_v51  ;;  %v4030_v27 = vmul.f32 %v3986_v45, %v6264_v25  ;;  %v6271_v25 = vld [vmem:[#allocation53_spill] sm:$0xff] }
  0xdb   : > { %6213 = vst [vmem:[#allocation51_spill] sm:$0xff] %v3906_v54  ;;  %v1083_v41 = vrot.slane %v986_v4, 1 }
  0xdc   : > { %6214 = vst [vmem:[#allocation52_spill] sm:$0xff] %v3909_v40 }
  0xdd   : > { %6215 = vst [vmem:[#allocation56_spill] sm:$0xff] %v3912_v39 }
  0xde   : > { %6216 = vst [vmem:[#allocation57_spill] sm:$0xff] %v3915_v52 }
  0xdf   : > { %6218 = vst [vmem:[#allocation58_spill] sm:$0xff] %v3918_v49 }
  0xe0   : > { %6219 = vst [vmem:[#allocation59_spill] sm:$0xff] %v3921_v62 }
  0xe1   : > { %6220 = vst [vmem:[#allocation63_spill] sm:$0xff] %v3924_v2 }
  0xe2   : > { %6221 = vst [vmem:[#allocation2_spill] sm:$0xff] %v3927_v60 }
  0xe3   : > { %6223 = vst [vmem:[#allocation17_spill] sm:$0xff] %v3930_v31 }
  0xe4   : > { %6225 = vst [vmem:[#allocation3_spill] sm:$0xff] %v3933_v30 }
  0xe5   : > { %6227 = vst [vmem:[#allocation39_spill] sm:$0xff] %v3936_v10 }
  0xe6   : > { %6229 = vst [vmem:[#allocation11_spill] sm:$0xff] %v3939_v28 }
  0xe7   : > { %6230 = vst [vmem:[#allocation40_spill] sm:$0xff] %v3942_v13 }
  0xe8   : > { %6231 = vst [vmem:[#allocation41_spill] sm:$0xff] %v3945_v47 }
  0xe9   : > { %6232 = vst [vmem:[#allocation69_spill] sm:$0xff] %v3948_v33 }
  0xea   : > { %6234 = vst [vmem:[#allocation46_spill] sm:$0xff] %v3951_v24 }
  0xeb   : > { %6236 = vst [vmem:[#allocation47_spill] sm:$0xff] %v3954_v58 }
  0xec   : > { %6238 = vst [vmem:[#allocation20_spill] sm:$0xff] %v3957_v35 }
  0xed   : > { %6240 = vst [vmem:[#allocation48_spill] sm:$0xff] %v3960_v37 }
  0xee   : > { %6241 = vst [vmem:[#allocation70_spill] sm:$0xff] %v3966_v59 }
  0xef   : > { %6243 = vst [vmem:[#allocation54_spill] sm:$0xff] %v3972_v1  ;;  %v6272_v1 = vunpack.c.l.bf16 %v6271_v25  ;;  %v6278_v25 = vld [vmem:[#allocation30_spill] sm:$0xff] }
  0xf0   : > { %6245 = vst [vmem:[#allocation55_spill] sm:$0xff] %v3975_v16 }
  0xf1   : > { %6247 = vst [vmem:[#allocation22_spill] sm:$0xff] %v3978_v9 }
  0xf2   : > { %6248 = vst [vmem:[#allocation71_spill] sm:$0xff] %v3983_v22  ;;  %v988_v22 = vmul.f32 %v6259_v21, %v3986_v45  ;;  %v6267_v21 = vld [vmem:[#allocation6_spill] sm:$0xff] }
  0xf3   : > { %6249 = vst [vmem:[#allocation72_spill] sm:$0xff] %v3989_v29  ;;  %v6261_v29 = vunpack.c.l.bf16 %v6260_v11  ;;  %v4039_v9 = vmul.f32 %v6267_v21, %v3986_v45  ;;  %v6274_v21 = vld [vmem:[#allocation28_spill] sm:$0xff] }
  0xf4   : > { %6250 = vst [vmem:[#allocation73_spill] sm:$0xff] %v3992_v3  ;;  %v6263_v3 = vunpack.c.l.bf16 %v6262_v50  ;;  %v6269_v50 = vld [vmem:[#allocation27_spill] sm:$0xff]  ;;  %v6275_v35 = vunpack.c.l.bf16 %v6274_v21  ;;  %v1086_v42 = vrot.slane %v988_v22, 1  ;;  %v4205_v22 = vmul.f32 %v3761_v12, %v3986_v45 }
  0xf5   : > { %6252 = vst [vmem:[#allocation60_spill] sm:$0xff] %v3995_v38  ;;  %v989_v8 = vmul.f32 %v3986_v45, %v6261_v29  ;;  %v6266_v38 = vunpack.c.l.bf16 %v6265_v18  ;;  %v6268_v29 = vld [vmem:[#allocation7_spill] sm:$0xff]  ;;  %v4053_v18 = vmul.f32 %v3986_v45, %v6272_v1  ;;  %v6279_v1 = vunpack.c.l.bf16 %v6278_v25 }
  0xf6   : > { %v4026_v15 = vmul.f32 %v3986_v45, %v6263_v3  ;;  %v4043_v11 = vmul.f32 %v6268_v29, %v3986_v45  ;;  %v6270_v3 = vunpack.c.l.bf16 %v6269_v50  ;;  %v4062_v58 = vmul.f32 %v3986_v45, %v6275_v35  ;;  %v6276_v29 = vld [vmem:[#allocation8_spill] sm:$0xff]  ;;  %v6282_v35 = vld [vmem:[#allocation25_spill] sm:$0xff] }
  0xf7   : > { %v4035_v44 = vmul.f32 %v3986_v45, %v6266_v38  ;;  %v6273_v38 = vld [vmem:[#allocation24_spill] sm:$0xff]  ;;  %v4066_v50 = vmul.f32 %v6276_v29, %v3986_v45  ;;  %v4075_v28 = vmul.f32 %v3986_v45, %v6279_v1  ;;  %v4084_v30 = vmul.f32 %v3986_v45, %v6282_v35  ;;  %v6283_v29 = vld [vmem:[#allocation31_spill] sm:$0xff]  ;;  %v6288_v35 = vld [vmem:[#allocation61_spill] sm:$0xff] }
  0xf8   : > { %v4048_v16 = vmul.f32 %v3986_v45, %v6270_v3  ;;  %v4057_v37 = vmul.f32 %v3986_v45, %v6273_v38  ;;  %v6277_v3 = vld [vmem:[#allocation9_spill] sm:$0xff]  ;;  %v6284_v31 = vunpack.c.l.bf16 %v6283_v29  ;;  %v6286_v1 = vld [vmem:[#allocation12_spill] sm:$0xff]  ;;  %v6289_v39 = vunpack.c.l.bf16 %v6288_v35 }
  0xf9   : > { %v4070_v24 = vmul.f32 %v6277_v3, %v3986_v45  ;;  %v6280_v38 = vld [vmem:[#allocation21_spill] sm:$0xff]  ;;  %v6285_v3 = vld [vmem:[#allocation10_spill] sm:$0xff]  ;;  %v4097_v52 = vmul.f32 %v6286_v1, %v3986_v45  ;;  %v1095_v12 = vrot.slane %v4039_v9, 1 }
  0xfa   : > { %v6281_v10 = vunpack.c.l.bf16 %v6280_v38  ;;  %v4089_v49 = vmul.f32 %v3986_v45, %v6284_v31  ;;  %v4093_v25 = vmul.f32 %v6285_v3, %v3986_v45  ;;  %v4107_v29 = vmul.f32 %v3986_v45, %v6289_v39  ;;  %v6290_v31 = vld [vmem:[#allocation29_spill] sm:$0xff] }
  0xfb   : > { %v4111_v40 = vmul.f32 %v3986_v45, %v6290_v31  ;;  %v6291_v3 = vunpack.c.l.bf16 %v3924_v2  ;;  %v6292_v1 = vld [vmem:[#allocation13_spill] sm:$0xff]  ;;  %v6294_v39 = vunpack.c.l.bf16 %v3927_v60  ;;  %v6295_v31 = vunpack.c.l.bf16 %v3751_v0 }
  0xfc   : > { %v4080_v21 = vmul.f32 %v3986_v45, %v6281_v10  ;;  %v6287_v10 = vunpack.c.l.bf16 %v3921_v62  ;;  %v4120_v62 = vmul.f32 %v6292_v1, %v3986_v45  ;;  %v6297_v1 = vunpack.c.l.bf16 %v3942_v13 }
  0xfd   : > { %v4116_v54 = vmul.f32 %v3986_v45, %v6291_v3  ;;  %v4129_v35 = vmul.f32 %v3986_v45, %v6294_v39  ;;  %v4134_v2 = vmul.f32 %v3986_v45, %v6295_v31  ;;  %v6296_v3 = vld [vmem:[#allocation32_spill] sm:$0xff]  ;;  %v6300_v0 = vunpack.c.l.bf16 %v3945_v47 }
  0xfe   : > { %v4102_v38 = vmul.f32 %v3986_v45, %v6287_v10  ;;  %v6293_v10 = vld [vmem:[#allocation14_spill] sm:$0xff]  ;;  %v4138_v46 = vmul.f32 %v3986_v45, %v6296_v3  ;;  %v4143_v57 = vmul.f32 %v3986_v45, %v6297_v1  ;;  %v6299_v39 = vld [vmem:[#allocation16_spill] sm:$0xff]  ;;  %v6301_v3 = vunpack.c.l.bf16 %v3754_v61  ;;  %v6302_v1 = vld [vmem:[#allocation33_spill] sm:$0xff] }
  0xff   : > { %v4124_v51 = vmul.f32 %v6293_v10, %v3986_v45  ;;  %v6298_v10 = vld [vmem:[#allocation15_spill] sm:$0xff]  ;;  %v4151_v56 = vmul.f32 %v6299_v39, %v3986_v45  ;;  %v4156_v31 = vmul.f32 %v3986_v45, %v6300_v0  ;;  %v4165_v7 = vmul.f32 %v3986_v45, %v6302_v1 }
 0x100   : > { %v4147_v60 = vmul.f32 %v6298_v10, %v3986_v45  ;;  %v4161_v13 = vmul.f32 %v3986_v45, %v6301_v3  ;;  %v6303_v10 = vunpack.c.l.bf16 %v3948_v33  ;;  %v4174_v47 = vmul.f32 %v6201_v55, %v3986_v45  ;;  %v6304_v0 = vld [vmem:[#allocation19_spill] sm:$0xff] }
 0x101   : > { %v4178_v39 = vmul.f32 %v6304_v0, %v3986_v45  ;;  %v1080_v61 = vrot.slane %v984_v26, 1  ;;  %v1081_v3 = vrot.slane %v985_v19, 1  ;;  %v4183_v1 = vmul.f32 %v3986_v45, %v6305_v23  ;;  %v6308_v23 = vld [vmem:[#allocation23_spill] sm:$0xff] }
 0x102   : > { %v4170_v34 = vmul.f32 %v3986_v45, %v6303_v10  ;;  %v1085_v33 = vrot.slane %v987_v20, 1  ;;  %v1088_v10 = vrot.slane %v989_v8, 1  ;;  %v4188_v55 = vmul.f32 %v3986_v45, %v6306_v6 }
 0x103   : > { %v4192_v0 = vmul.f32 %v3986_v45, %v3811_v53  ;;  %v6307_v26 = vunpack.c.l.bf16 %v3966_v59  ;;  %v4201_v4 = vmul.f32 %v6308_v23, %v3986_v45  ;;  %v4210_v6 = vmul.f32 %v3986_v45, %v6309_v43 }
 0x104   : > { %v1090_v20 = vrot.slane %v4026_v15, 1  ;;  %v1091_v8 = vrot.slane %v4030_v27, 1  ;;  %v4218_v59 = vsel %vm402_vm0, %v1081_v3, %v1083_v41  ;;  %v1093_v23 = vrot.slane %v4035_v44, 1 }
 0x105   : > { %v4197_v19 = vmul.f32 %v3986_v45, %v6307_v26  ;;  %v4215_v26 = vsel %vm402_vm0, %v1080_v61, %v1081_v3  ;;  %v4223_v53 = vsel %vm402_vm0, %v1085_v33, %v1086_v42  ;;  %v4226_v45 = vsel %vm402_vm0, %v1086_v42, %v1088_v10 }
 0x106   : > { %v1096_v15 = vrot.slane %v4043_v11, 1  ;;  %v1098_v27 = vrot.slane %v4048_v16, 1  ;;  %v1100_v61 = vrot.slane %v4053_v18, 1  ;;  %v1101_v43 = vrot.slane %v4057_v37, 1 }
 0x107   : > { %v1103_v41 = vrot.slane %v4062_v58, 1  ;;  %v1105_v44 = vrot.slane %v4066_v50, 1  ;;  %v1106_v9 = vrot.slane %v4070_v24, 1  ;;  %v1108_v33 = vrot.slane %v4075_v28, 1 }
 0x108   : > { %v1110_v3 = vrot.slane %v4080_v21, 1  ;;  %v1111_v42 = vrot.slane %v4084_v30, 1  ;;  %v1113_v11 = vrot.slane %v4089_v49, 1  ;;  %v1115_v16 = vrot.slane %v4093_v25, 1 }
 0x109   : > { %v1116_v18 = vrot.slane %v4097_v52, 1  ;;  %v1118_v37 = vrot.slane %v4102_v38, 1  ;;  %v1092_v58 = vsel %vm402_vm0, %v1090_v20, %v1091_v8  ;;  %v1094_v50 = vsel %vm402_vm0, %v1091_v8, %v1093_v23 }
 0x10a   : > { %v1120_v24 = vrot.slane %v4107_v29, 1  ;;  %v1121_v28 = vrot.slane %v4111_v40, 1  ;;  %v1097_v21 = vsel %vm402_vm0, %v1095_v12, %v1096_v15  ;;  %v1099_v30 = vsel %vm402_vm0, %v1096_v15, %v1098_v27 }
 0x10b   : > { %v1102_v49 = vsel %vm402_vm0, %v1100_v61, %v1101_v43  ;;  %v1123_v25 = vrot.slane %v4116_v54, 1  ;;  %v1104_v52 = vsel %vm402_vm0, %v1101_v43, %v1103_v41  ;;  %v1107_v38 = vsel %vm402_vm0, %v1105_v44, %v1106_v9 }
 0x10c   : > { %v1109_v10 = vsel %vm402_vm0, %v1106_v9, %v1108_v33  ;;  %v1112_v23 = vsel %vm402_vm0, %v1110_v3, %v1111_v42  ;;  %v1114_v29 = vsel %vm402_vm0, %v1111_v42, %v1113_v11  ;;  %v1117_v40 = vsel %vm402_vm0, %v1115_v16, %v1116_v18 }
 0x10d   : > { %v1119_v12 = vsel %vm402_vm0, %v1116_v18, %v1118_v37  ;;  %v1125_v20 = vrot.slane %v4120_v62, 1  ;;  %v1122_v8 = vsel %vm402_vm0, %v1120_v24, %v1121_v28  ;;  %v1126_v54 = vrot.slane %v4124_v51, 1 }
 0x10e   : > { %v1128_v15 = vrot.slane %v4129_v35, 1  ;;  %v1130_v27 = vrot.slane %v4134_v2, 1  ;;  %v1124_v61 = vsel %vm402_vm0, %v1121_v28, %v1123_v25  ;;  %v1131_v43 = vrot.slane %v4138_v46, 1 }
 0x10f   : > { %v1133_v41 = vrot.slane %v4143_v57, 1  ;;  %v1135_v44 = vrot.slane %v4147_v60, 1  ;;  %v1136_v9 = vrot.slane %v4151_v56, 1  ;;  %v1138_v62 = vrot.slane %v4156_v31, 1 }
 0x110   : > { %v1140_v33 = vrot.slane %v4161_v13, 1  ;;  %v1141_v51 = vrot.slane %v4165_v7, 1  ;;  %v1143_v35 = vrot.slane %v4170_v34, 1  ;;  %v1145_v2 = vrot.slane %v4174_v47, 1 }
 0x111   : > { %v1146_v3 = vrot.slane %v4178_v39, 1  ;;  %v1148_v46 = vrot.slane %v4183_v1, 1  ;;  %v1127_v57 = vsel %vm402_vm0, %v1125_v20, %v1126_v54  ;;  %v1150_v60 = vrot.slane %v4188_v55, 1 }
 0x112   : > { %v1151_v56 = vrot.slane %v4192_v0, 1  ;;  %v1153_v31 = vrot.slane %v4197_v19, 1  ;;  %v1129_v13 = vsel %vm402_vm0, %v1126_v54, %v1128_v15  ;;  %v1155_v7 = vrot.slane %v4201_v4, 1  ;;  %v6313_v54 = vld [vmem:[#allocation37_spill] sm:$0xff] }
 0x113   : > { %v1156_v34 = vrot.slane %v4205_v22, 1  ;;  %v1158_v47 = vrot.slane %v4210_v6, 1  ;;  %v1132_v39 = vsel %vm402_vm0, %v1130_v27, %v1131_v43  ;;  %v1134_v1 = vsel %vm402_vm0, %v1131_v43, %v1133_v41  ;;  %v6321_v27 = vld [vmem:[#allocation44_spill] sm:$0xff]  ;;  %v6323_v43 = vld [vmem:[#allocation45_spill] sm:$0xff] }
 0x114   : > { %v1137_v42 = vsel %vm402_vm0, %v1135_v44, %v1136_v9  ;;  %v1139_v55 = vsel %vm402_vm0, %v1136_v9, %v1138_v62  ;;  %v1142_v0 = vsel %vm402_vm0, %v1140_v33, %v1141_v51  ;;  %v1144_v19 = vsel %vm402_vm0, %v1141_v51, %v1143_v35  ;;  %v6325_v41 = vld [vmem:[#allocation49_spill] sm:$0xff]  ;;  %v6327_v44 = vld [vmem:[#allocation50_spill] sm:$0xff] }
 0x115   : > { %v1147_v11 = vsel %vm402_vm0, %v1145_v2, %v1146_v3  ;;  %v1149_v4 = vsel %vm402_vm0, %v1146_v3, %v1148_v46  ;;  %v1152_v22 = vsel %vm402_vm0, %v1150_v60, %v1151_v56  ;;  %v1154_v6 = vsel %vm402_vm0, %v1151_v56, %v1153_v31  ;;  %v6335_v51 = vld [vmem:[#allocation57_spill] sm:$0xff]  ;;  %v6337_v35 = vld [vmem:[#allocation58_spill] sm:$0xff] }
 0x116   : > { %v4294_v16 = vadd.f32 %v4215_v26, %v3861_v14  ;;  %v4298_v18 = vadd.f32 %v4218_v59, %v3864_v48  ;;  %v1157_v37 = vsel %vm402_vm0, %v1155_v7, %v1156_v34  ;;  %v1159_v24 = vsel %vm402_vm0, %v1156_v34, %v1158_v47  ;;  %v6310_v14 = vld [vmem:[#allocation35_spill] sm:$0xff]  ;;  %v6311_v48 = vld [vmem:[#allocation36_spill] sm:$0xff]  ;;  %v2391_v2 = vld [vmem:[%s2638_s14 + $0x24] sm:$0xe] }
 0x117   : > { %v4304_v28 = vadd.f32 %v4223_v53, %v3867_v32  ;;  %v4308_v25 = vadd.f32 %v4226_v45, %v3870_v5  ;;  %v4311_v20 = vadd.f32 %v1092_v58, %v3873_v63  ;;  %v4314_v26 = vadd.f32 %v1094_v50, %v6310_v14  ;;  %v6315_v53 = vld [vmem:[#allocation38_spill] sm:$0xff]  ;;  %v6319_v63 = vld [vmem:[#allocation43_spill] sm:$0xff]  ;;  %v2393_v3 = vld [vmem:[%s2638_s14 + $0x3c] sm:$0xe] }
 0x118   : > { %v4317_v59 = vadd.f32 %v1097_v21, %v6311_v48  ;;  %v4320_v15 = vadd.f32 %v1099_v30, %v6313_v54  ;;  %v4323_v32 = vadd.f32 %v1102_v49, %v6315_v53  ;;  %v6317_v5 = vld [vmem:[#allocation42_spill] sm:$0xff]  ;;  %v4329_v58 = vadd.f32 %v1107_v38, %v6319_v63  ;;  %v6331_v38 = vld [vmem:[#allocation52_spill] sm:$0xff]  ;;  %v6349_v14 = vld [vmem:[#allocation47_spill] sm:$0xff] }
 0x119   : > { %v4326_v45 = vadd.f32 %v1104_v52, %v6317_v5  ;;  %v4332_v50 = vadd.f32 %v1109_v10, %v6321_v27  ;;  %v4335_v21 = vadd.f32 %v1112_v23, %v6323_v43  ;;  %v4338_v30 = vadd.f32 %v1114_v29, %v6325_v41  ;;  %v6329_v52 = vld [vmem:[#allocation51_spill] sm:$0xff]  ;;  %v6333_v10 = vld [vmem:[#allocation56_spill] sm:$0xff]  ;;  %v2396_v34 = vld [vmem:[%s2638_s14 + $0x60] sm:$0xe] }
 0x11a   : > { %6312 = vst [vmem:[#allocation67_spill] sm:$0xff] %v4317_v59  ;;  %v4341_v49 = vadd.f32 %v1117_v40, %v6327_v44  ;;  %v4344_v9 = vadd.f32 %v1119_v12, %v6329_v52  ;;  %v4347_v62 = vadd.f32 %v1122_v8, %v6331_v38  ;;  %v4350_v33 = vadd.f32 %v1124_v61, %v6333_v10  ;;  %v2392_v40 = vld [vmem:[%s2638_s14 + $0x30] sm:$0xe]  ;;  %v6339_v12 = vld [vmem:[#allocation17_spill] sm:$0xff]  ;;  %v6341_v8 = vld [vmem:[#allocation3_spill] sm:$0xff] }
 0x11b   : > { %6314 = vst [vmem:[#allocation4_spill] sm:$0xff] %v4320_v15  ;;  %v4353_v23 = vadd.f32 %v1127_v57, %v6335_v51  ;;  %v4356_v29 = vadd.f32 %v1129_v13, %v6337_v35  ;;  %v4362_v46 = vadd.f32 %v1132_v39, %v6339_v12  ;;  %v4365_v60 = vadd.f32 %v1134_v1, %v6341_v8  ;;  %v6343_v61 = vld [vmem:[#allocation39_spill] sm:$0xff]  ;;  %v2395_v7 = vld [vmem:[%s2638_s14 + $0x54] sm:$0xe]  ;;  %v6347_v47 = vld [vmem:[#allocation46_spill] sm:$0xff] }
 0x11c   : > { %6316 = vst [vmem:[#allocation18_spill] sm:$0xff] %v4323_v32  ;;  %v4368_v56 = vadd.f32 %v1137_v42, %v6343_v61  ;;  %v6345_v57 = vld [vmem:[#allocation11_spill] sm:$0xff]  ;;  %v4377_v39 = vadd.f32 %v1142_v0, %v6347_v47  ;;  %v4380_v1 = vadd.f32 %v1144_v19, %v6349_v14  ;;  %v6351_v48 = vld [vmem:[#allocation20_spill] sm:$0xff]  ;;  %v2398_v5 = vld [vmem:[%s2638_s14 + $0x78] sm:$0xe]  ;;  %v1242_v12 = vunpack.c.l.bf16 %v2391_v2 }
 0x11d   : > { %6318 = vst [vmem:[#allocation6_spill] sm:$0xff] %v4326_v45  ;;  %v4371_v31 = vadd.f32 %v1139_v55, %v6345_v57  ;;  %v2394_v13 = vld [vmem:[%s2638_s14 + $0x48] sm:$0xe]  ;;  %v4383_v42 = vadd.f32 %v1147_v11, %v6351_v48  ;;  %v6353_v54 = vld [vmem:[#allocation48_spill] sm:$0xff]  ;;  %v2397_v55 = vld [vmem:[%s2638_s14 + $0x6c] sm:$0xe]  ;;  %v1243_v8 = vunpack.c.l.bf16 %v2392_v40  ;;  %v1246_v47 = vunpack.c.l.bf16 %v2395_v7 }
 0x11e   : > { %6320 = vst [vmem:[#allocation53_spill] sm:$0xff] %v4329_v58  ;;  %v4386_v53 = vadd.f32 %v1149_v4, %v6353_v54  ;;  %v2399_v63 = vld [vmem:[%s2638_s14 + $0x84] sm:$0xe]  ;;  %v6357_v41 = vld [vmem:[#allocation55_spill] sm:$0xff]  ;;  %v6361_v19 = vld [vmem:[#allocation60_spill] sm:$0xff]  ;;  %v1247_v14 = vunpack.c.l.bf16 %v2396_v34  ;;  %v1249_v48 = vunpack.c.l.bf16 %v2398_v5 }
 0x11f   : > { %6322 = vst [vmem:[#allocation8_spill] sm:$0xff] %v4332_v50  ;;  %v6355_v27 = vld [vmem:[#allocation54_spill] sm:$0xff]  ;;  %v4395_v44 = vadd.f32 %v1154_v6, %v6357_v41  ;;  %v4401_v38 = vadd.f32 %v1159_v24, %v6361_v19  ;;  %v2400_v11 = vld [vmem:[%s2638_s14 + $0x90] sm:$0xe]  ;;  %v2401_v10 = vld [vmem:[%s2638_s14 + $0x9c] sm:$0xe]  ;;  %v1248_v24 = vunpack.c.l.bf16 %v2397_v55  ;;  %v1250_v54 = vunpack.c.l.bf16 %v2399_v63 }
 0x120   : > { %6324 = vst [vmem:[#allocation21_spill] sm:$0xff] %v4335_v21  ;;  %v4392_v43 = vadd.f32 %v1152_v22, %v6355_v27  ;;  %v6359_v0 = vld [vmem:[#allocation22_spill] sm:$0xff]  ;;  %v2402_v4 = vld [vmem:[%s2638_s14 + $0xa8] sm:$0xe]  ;;  %v4407_v51 = vld [vmem:[%s2638_s14 + $0xb4] sm:$0xe]  ;;  %v1244_v22 = vunpack.c.l.bf16 %v2393_v3  ;;  %v1251_v27 = vunpack.c.l.bf16 %v2400_v11  ;;  %v1252_v41 = vunpack.c.l.bf16 %v2401_v10 }
 0x121   : > { %6326 = vst [vmem:[#allocation10_spill] sm:$0xff] %v4338_v30  ;;  %v4398_v52 = vadd.f32 %v1157_v37, %v6359_v0  ;;  %v4410_v35 = vld [vmem:[%s2638_s14 + $0xc0] sm:$0xe]  ;;  %v6363_v61 = vld [vmem:[#allocation71_spill] sm:$0xff]  ;;  %v4416_v6 = vld [vmem:[%s2638_s14 + $0x18] sm:$0xff]   ;;  %v1245_v37 = vunpack.c.l.bf16 %v2394_v13  ;;  %v1253_v0 = vunpack.c.l.bf16 %v2402_v4  ;;  %v1254_v19 = vunpack.c.l.bf16 %v4407_v51 }
 0x122   : > { %6328 = vst [vmem:[#allocation61_spill] sm:$0xff] %v4341_v49  ;;  %v4413_v57 = vperm.slane %v6363_v61, 5  ;;  %v1255_v2 = vunpack.c.l.bf16 %v4410_v35  ;;  %v6365_v3 = vld [vmem:[#allocation72_spill] sm:$0xff]  ;;  %v6368_v7 = vld [vmem:[#allocation65_spill] sm:$0xff]  ;;  %v4430_v5 = vunpack.c.h.bf16 %v4416_v6  ;;  %v6374_v35 = vld [vmem:[#allocation66_spill] sm:$0xff] }
 0x123   : > { %6330 = vst [vmem:[#allocation13_spill] sm:$0xff] %v4344_v9  ;;  %v6366_v61 = vunpack.c.l.bf16 %v6365_v3  ;;  %v6369_v34 = vunpack.c.l.bf16 %v6368_v7  ;;  %v6371_v63 = vld [vmem:[#allocation73_spill] sm:$0xff]  ;;  %v6376_v7 = vld [vmem:[#allocation64_spill] sm:$0xff]  ;;  %v6377_v40 = vld [vmem:[#allocation26_spill] sm:$0xff] }
 0x124   : > { %6332 = vst [vmem:[#allocation15_spill] sm:$0xff] %v4347_v62  ;;  %v6372_v11 = vunpack.c.l.bf16 %v6371_v63  ;;  %v6373_v4 = vld [vmem:[#allocation5_spill] sm:$0xff]  ;;  %v6378_v63 = vunpack.c.l.bf16 %v6377_v40 }
 0x125   : > { %6334 = vst [vmem:[#allocation35_spill] sm:$0xff] %v4350_v33  ;;  %v1259_v55 = vmul.f32 %v4413_v57, %v6369_v34  ;;  %v4437_v51 = vmul.f32 %v6373_v4, %v4413_v57  ;;  %v4449_v34 = vmul.f32 %v4413_v57, %v6376_v7  ;;  %v4457_v4 = vmul.f32 %v4413_v57, %v1243_v8  ;;  %v6400_v33 = vld [vmem:[#allocation32_spill] sm:$0xff]  ;;  %v6406_v30 = vld [vmem:[#allocation33_spill] sm:$0xff] }
 0x126   : > { %6336 = vst [vmem:[#allocation36_spill] sm:$0xff] %v4353_v23  ;;  %v1260_v10 = vmul.f32 %v4413_v57, %v6372_v11  ;;  %v4454_v11 = vmul.f32 %v4413_v57, %v6378_v63  ;;  %v4469_v7 = vmul.f32 %v4413_v57, %v1244_v22  ;;  %v6383_v63 = vld [vmem:[#allocation28_spill] sm:$0xff] }
 0x127   : > { %6338 = vst [vmem:[#allocation37_spill] sm:$0xff] %v4356_v29  ;;  %v1356_v58 = vrot.slane %v1259_v55, 2 }
 0x128   : > { %6340 = vst [vmem:[#allocation38_spill] sm:$0xff] %v4362_v46  ;;  %v1358_v32 = vrot.slane %v1260_v10, 2 }
 0x129   : > { %6342 = vst [vmem:[#allocation42_spill] sm:$0xff] %v4365_v60  ;;  %v6394_v60 = vld [vmem:[#allocation29_spill] sm:$0xff] }
 0x12a   : > { %6344 = vst [vmem:[#allocation43_spill] sm:$0xff] %v4368_v56 }
 0x12b   : > { %6346 = vst [vmem:[#allocation44_spill] sm:$0xff] %v4371_v31 }
 0x12c   : > { %6348 = vst [vmem:[#allocation45_spill] sm:$0xff] %v4377_v39 }
 0x12d   : > { %6350 = vst [vmem:[#allocation49_spill] sm:$0xff] %v4380_v1  ;;  %v6388_v1 = vld [vmem:[#allocation25_spill] sm:$0xff] }
 0x12e   : > { %6352 = vst [vmem:[#allocation50_spill] sm:$0xff] %v4383_v42 }
 0x12f   : > { %6354 = vst [vmem:[#allocation51_spill] sm:$0xff] %v4386_v53 }
 0x130   : > { %6356 = vst [vmem:[#allocation52_spill] sm:$0xff] %v4392_v43  ;;  %v6384_v43 = vunpack.c.l.bf16 %v6383_v63  ;;  %v4497_v63 = vmul.f32 %v4413_v57, %v6388_v1  ;;  %v4517_v1 = vmul.f32 %v4413_v57, %v1248_v24 }
 0x131   : > { %6358 = vst [vmem:[#allocation56_spill] sm:$0xff] %v4395_v44  ;;  %v6382_v44 = vld [vmem:[#allocation24_spill] sm:$0xff] }
 0x132   : > { %6360 = vst [vmem:[#allocation57_spill] sm:$0xff] %v4398_v52  ;;  %v6367_v52 = vld [vmem:[#allocation68_spill] sm:$0xff]  ;;  %v4473_v40 = vmul.f32 %v4413_v57, %v6382_v44  ;;  %v4478_v8 = vmul.f32 %v4413_v57, %v6384_v43  ;;  %v4493_v44 = vmul.f32 %v4413_v57, %v1246_v47  ;;  %v6389_v43 = vld [vmem:[#allocation31_spill] sm:$0xff] }
 0x133   : > { %6362 = vst [vmem:[#allocation58_spill] sm:$0xff] %v4401_v38  ;;  %v1257_v38 = vmul.f32 %v4413_v57, %v6366_v61  ;;  %v1258_v13 = vmul.f32 %v4413_v57, %v6367_v52  ;;  %v6375_v61 = vunpack.c.l.bf16 %v6374_v35  ;;  %v4445_v52 = vmul.f32 %v4413_v57, %v1242_v12  ;;  %v6379_v35 = vld [vmem:[#allocation7_spill] sm:$0xff] }
 0x134   : > { %6364 = vst [vmem:[#allocation17_spill] sm:$0xff] %v4416_v6  ;;  %v6390_v39 = vunpack.c.l.bf16 %v6389_v43  ;;  %v4521_v43 = vmul.f32 %v4413_v57, %v6394_v60  ;;  %v4541_v60 = vmul.f32 %v4413_v57, %v1250_v54 }
 0x135   : > { %6370 = vst [vmem:[#allocation3_spill] sm:$0xff] %v4430_v5  ;;  %v4442_v3 = vmul.f32 %v4413_v57, %v6375_v61  ;;  %v4461_v5 = vmul.f32 %v6379_v35, %v4413_v57  ;;  %v6380_v61 = vld [vmem:[#allocation27_spill] sm:$0xff]  ;;  %v4481_v35 = vmul.f32 %v4413_v57, %v1245_v37  ;;  %v1353_v50 = vrot.slane %v1257_v38, 2 }
 0x136   : > { %v6381_v6 = vunpack.c.l.bf16 %v6380_v61  ;;  %v6385_v61 = vld [vmem:[#allocation9_spill] sm:$0xff]  ;;  %v4502_v37 = vmul.f32 %v4413_v57, %v6390_v39  ;;  %v6395_v39 = vld [vmem:[#allocation63_spill] sm:$0xff]  ;;  %v1363_v15 = vrot.slane %v4445_v52, 2  ;;  %v1373_v52 = vrot.slane %v4469_v7, 2 }
 0x137   : > { %v4485_v53 = vmul.f32 %v6385_v61, %v4413_v57  ;;  %v4505_v61 = vmul.f32 %v4413_v57, %v1247_v14  ;;  %v6396_v46 = vunpack.c.l.bf16 %v6395_v39  ;;  %v4545_v39 = vmul.f32 %v4413_v57, %v6400_v33 }
 0x138   : > { %v4466_v12 = vmul.f32 %v4413_v57, %v6381_v6  ;;  %v6386_v6 = vld [vmem:[#allocation30_spill] sm:$0xff]  ;;  %v4565_v33 = vmul.f32 %v4413_v57, %v1252_v41  ;;  %v6410_v41 = vunpack.c.l.bf16 %v3963_v17  ;;  %v4602_v17 = vmul.f32 %v4413_v57, %v1255_v2 }
 0x139   : > { %v6387_v42 = vunpack.c.l.bf16 %v6386_v6  ;;  %v6391_v6 = vld [vmem:[#allocation12_spill] sm:$0xff]  ;;  %v4526_v14 = vmul.f32 %v4413_v57, %v6396_v46  ;;  %v1364_v2 = vrot.slane %v4449_v34, 2  ;;  %v1379_v34 = vrot.slane %v4485_v53, 2 }
 0x13a   : > { %v4509_v31 = vmul.f32 %v6391_v6, %v4413_v57  ;;  %v4529_v6 = vmul.f32 %v4413_v57, %v1249_v48  ;;  %v6401_v46 = vld [vmem:[#allocation40_spill] sm:$0xff]  ;;  %v1393_v53 = vrot.slane %v4517_v1, 2 }
 0x13b   : > { %v4490_v22 = vmul.f32 %v4413_v57, %v6387_v42  ;;  %v6392_v42 = vld [vmem:[#allocation59_spill] sm:$0xff]  ;;  %v6402_v62 = vunpack.c.l.bf16 %v6401_v46  ;;  %v4569_v46 = vmul.f32 %v4413_v57, %v6406_v30  ;;  %v4586_v30 = vmul.f32 %v4413_v57, %v6410_v41  ;;  %v6414_v41 = vld [vmem:[#allocation62_spill] sm:$0xff] }
 0x13c   : > { %v6393_v56 = vunpack.c.l.bf16 %v6392_v42  ;;  %v6397_v42 = vld [vmem:[#allocation14_spill] sm:$0xff]  ;;  %v4606_v10 = vmul.f32 %v6414_v41, %v4413_v57  ;;  %v1366_v41 = vrot.slane %v4454_v11, 2  ;;  %v1389_v7 = vrot.slane %v4509_v31, 2 }
 0x13d   : > { %v4533_v29 = vmul.f32 %v6397_v42, %v4413_v57  ;;  %v4550_v48 = vmul.f32 %v4413_v57, %v6402_v62  ;;  %v4553_v42 = vmul.f32 %v4413_v57, %v1251_v27  ;;  %v6407_v62 = vld [vmem:[#allocation69_spill] sm:$0xff]  ;;  %v1381_v11 = vrot.slane %v4490_v22, 2 }
 0x13e   : > { %v4514_v47 = vmul.f32 %v4413_v57, %v6393_v56  ;;  %v6398_v56 = vld [vmem:[#allocation2_spill] sm:$0xff]  ;;  %v6408_v21 = vunpack.c.l.bf16 %v6407_v62  ;;  %v1359_v62 = vrot.slane %v4437_v51, 2  ;;  %v6415_v51 = vunpack.c.l.bf16 %v3969_v36 }
 0x13f   : > { %v6399_v23 = vunpack.c.l.bf16 %v6398_v56  ;;  %v6403_v56 = vld [vmem:[#allocation16_spill] sm:$0xff]  ;;  %v1368_v36 = vrot.slane %v4457_v4, 2  ;;  %v1384_v4 = vrot.slane %v4497_v63, 2  ;;  %v1394_v22 = vrot.slane %v4521_v43, 2 }
 0x140   : > { %v4557_v9 = vmul.f32 %v6403_v56, %v4413_v57  ;;  %v4574_v27 = vmul.f32 %v4413_v57, %v6408_v21  ;;  %v4577_v56 = vmul.f32 %v4413_v57, %v1253_v0  ;;  %v4590_v21 = vmul.f32 %v4413_v57, %v1254_v19  ;;  %v6411_v0 = vld [vmem:[#allocation34_spill] sm:$0xff] }
 0x141   : > { %v4538_v24 = vmul.f32 %v4413_v57, %v6399_v23  ;;  %v6404_v23 = vld [vmem:[#allocation41_spill] sm:$0xff]  ;;  %v4594_v38 = vmul.f32 %v4413_v57, %v6411_v0  ;;  %v4611_v19 = vmul.f32 %v4413_v57, %v6415_v51  ;;  %v1361_v0 = vrot.slane %v4442_v3, 2 }
 0x142   : > { %v6405_v49 = vunpack.c.l.bf16 %v6404_v23  ;;  %v1354_v23 = vrot.slane %v1258_v13, 2  ;;  %v6412_v13 = vld [vmem:[#allocation70_spill] sm:$0xff]  ;;  %v4624_v59 = vsel %vm676_vm1, %v1358_v32, %v1359_v62  ;;  %v1371_v3 = vrot.slane %v4466_v12, 2 }
 0x143   : > { %v6413_v55 = vunpack.c.l.bf16 %v6412_v13  ;;  %v1383_v32 = vrot.slane %v4493_v44, 2  ;;  %v1388_v12 = vrot.slane %v4505_v61, 2  ;;  %v1367_v44 = vsel %vm676_vm1, %v1364_v2, %v1366_v41 }
 0x144   : > { %v4562_v54 = vmul.f32 %v4413_v57, %v6405_v49  ;;  %v6409_v49 = vld [vmem:[#allocation19_spill] sm:$0xff]  ;;  %v4616_v13 = vsel %vm676_vm1, %v1353_v50, %v1354_v23  ;;  %v1374_v50 = vrot.slane %v4473_v40, 2  ;;  %v1391_v40 = vrot.slane %v4514_v47, 2 }
 0x145   : > { %v4581_v45 = vmul.f32 %v6409_v49, %v4413_v57  ;;  %v4599_v49 = vmul.f32 %v4413_v57, %v6413_v55  ;;  %v4619_v55 = vsel %vm676_vm1, %v1354_v23, %v1356_v58  ;;  %v1369_v57 = vrot.slane %v4461_v5, 2 }
 0x146   : > { %v1376_v58 = vrot.slane %v4478_v8, 2  ;;  %v1378_v23 = vrot.slane %v4481_v35, 2  ;;  %v1386_v5 = vrot.slane %v4502_v37, 2  ;;  %v1362_v8 = vsel %vm676_vm1, %v1359_v62, %v1361_v0 }
 0x147   : > { %v1365_v35 = vsel %vm676_vm1, %v1363_v15, %v1364_v2  ;;  %v1370_v63 = vsel %vm676_vm1, %v1368_v36, %v1369_v57  ;;  %v1372_v37 = vsel %vm676_vm1, %v1369_v57, %v1371_v3  ;;  %v1396_v61 = vrot.slane %v4526_v14, 2 }
 0x148   : > { %v1375_v31 = vsel %vm676_vm1, %v1373_v52, %v1374_v50  ;;  %v1377_v47 = vsel %vm676_vm1, %v1374_v50, %v1376_v58  ;;  %v1380_v62 = vsel %vm676_vm1, %v1378_v23, %v1379_v34  ;;  %v1382_v15 = vsel %vm676_vm1, %v1379_v34, %v1381_v11 }
 0x149   : > { %v1385_v1 = vsel %vm676_vm1, %v1383_v32, %v1384_v4  ;;  %v1387_v43 = vsel %vm676_vm1, %v1384_v4, %v1386_v5  ;;  %v1390_v41 = vsel %vm676_vm1, %v1388_v12, %v1389_v7  ;;  %v1392_v51 = vsel %vm676_vm1, %v1389_v7, %v1391_v40 }
 0x14a   : > { %v1395_v0 = vsel %vm676_vm1, %v1393_v53, %v1394_v22  ;;  %v1398_v14 = vrot.slane %v4529_v6, 2  ;;  %v1399_v2 = vrot.slane %v4533_v29, 2  ;;  %v1401_v36 = vrot.slane %v4538_v24, 2 }
 0x14b   : > { %v1397_v57 = vsel %vm676_vm1, %v1394_v22, %v1396_v61  ;;  %v1403_v3 = vrot.slane %v4541_v60, 2  ;;  %v1404_v52 = vrot.slane %v4545_v39, 2  ;;  %v1406_v50 = vrot.slane %v4550_v48, 2 }
 0x14c   : > { %v1408_v58 = vrot.slane %v4553_v42, 2  ;;  %v1409_v23 = vrot.slane %v4557_v9, 2  ;;  %v1411_v34 = vrot.slane %v4562_v54, 2  ;;  %v1413_v6 = vrot.slane %v4565_v33, 2 }
 0x14d   : > { %v1414_v29 = vrot.slane %v4569_v46, 2  ;;  %v1416_v24 = vrot.slane %v4574_v27, 2  ;;  %v1418_v11 = vrot.slane %v4577_v56, 2  ;;  %v1419_v60 = vrot.slane %v4581_v45, 2 }
 0x14e   : > { %v1421_v39 = vrot.slane %v4586_v30, 2  ;;  %v1423_v48 = vrot.slane %v4590_v21, 2  ;;  %v1424_v42 = vrot.slane %v4594_v38, 2  ;;  %v1426_v9 = vrot.slane %v4599_v49, 2 }
 0x14f   : > { %v1400_v54 = vsel %vm676_vm1, %v1398_v14, %v1399_v2  ;;  %v1428_v33 = vrot.slane %v4602_v17, 2  ;;  %v1429_v46 = vrot.slane %v4606_v10, 2  ;;  %v1431_v27 = vrot.slane %v4611_v19, 2 }
 0x150   : > { %v1402_v56 = vsel %vm676_vm1, %v1399_v2, %v1401_v36  ;;  %v1405_v45 = vsel %vm676_vm1, %v1403_v3, %v1404_v52  ;;  %v1407_v30 = vsel %vm676_vm1, %v1404_v52, %v1406_v50  ;;  %v1410_v21 = vsel %vm676_vm1, %v1408_v58, %v1409_v23  ;;  %v6417_v2 = vld [vmem:[#allocation4_spill] sm:$0xff]  ;;  %v6424_v3 = vld [vmem:[#allocation61_spill] sm:$0xff]  ;;  %v6427_v50 = vld [vmem:[#allocation15_spill] sm:$0xff] }
 0x151   : > { %v1412_v38 = vsel %vm676_vm1, %v1409_v23, %v1411_v34  ;;  %v1415_v49 = vsel %vm676_vm1, %v1413_v6, %v1414_v29  ;;  %v1417_v32 = vsel %vm676_vm1, %v1414_v29, %v1416_v24  ;;  %v1420_v17 = vsel %vm676_vm1, %v1418_v11, %v1419_v60  ;;  %v6425_v52 = vld [vmem:[#allocation13_spill] sm:$0xff]  ;;  %v6429_v58 = vld [vmem:[#allocation35_spill] sm:$0xff]  ;;  %v6431_v23 = vld [vmem:[#allocation36_spill] sm:$0xff] }
 0x152   : > { %v1422_v10 = vsel %vm676_vm1, %v1419_v60, %v1421_v39  ;;  %v1425_v19 = vsel %vm676_vm1, %v1423_v48, %v1424_v42  ;;  %v1427_v4 = vsel %vm676_vm1, %v1424_v42, %v1426_v9  ;;  %v4694_v5 = vadd.f32 %v4616_v13, %v4294_v16  ;;  %v6416_v13 = vld [vmem:[#allocation67_spill] sm:$0xff]  ;;  %v6433_v34 = vld [vmem:[#allocation37_spill] sm:$0xff]  ;;  %v6435_v6 = vld [vmem:[#allocation38_spill] sm:$0xff] }
 0x153   : > { %v1430_v12 = vsel %vm676_vm1, %v1428_v33, %v1429_v46  ;;  %v1432_v7 = vsel %vm676_vm1, %v1429_v46, %v1431_v27  ;;  %v4700_v40 = vadd.f32 %v4619_v55, %v4298_v18  ;;  %v4704_v53 = vadd.f32 %v4624_v59, %v4304_v28  ;;  %v6418_v18 = vld [vmem:[#allocation18_spill] sm:$0xff]  ;;  %v6420_v59 = vld [vmem:[#allocation53_spill] sm:$0xff]  ;;  %v6439_v24 = vld [vmem:[#allocation43_spill] sm:$0xff] }
 0x154   : > { %v4707_v22 = vadd.f32 %v1362_v8, %v4308_v25  ;;  %v4710_v61 = vadd.f32 %v1365_v35, %v4311_v20  ;;  %v4713_v16 = vadd.f32 %v1367_v44, %v4314_v26  ;;  %v4716_v14 = vadd.f32 %v1370_v63, %v6416_v13  ;;  %v6419_v28 = vld [vmem:[#allocation6_spill] sm:$0xff]  ;;  %v6421_v8 = vld [vmem:[#allocation8_spill] sm:$0xff]  ;;  %v6422_v35 = vld [vmem:[#allocation21_spill] sm:$0xff] }
 0x155   : > { %v4719_v36 = vadd.f32 %v1372_v37, %v6417_v2  ;;  %v4722_v55 = vadd.f32 %v1375_v31, %v6418_v18  ;;  %v4725_v25 = vadd.f32 %v1377_v47, %v6419_v28  ;;  %v4728_v20 = vadd.f32 %v1380_v62, %v6420_v59  ;;  %v6423_v63 = vld [vmem:[#allocation10_spill] sm:$0xff]  ;;  %v4770_v11 = vld [vmem:[%s2638_s14 + $0x48] sm:$0xff]   ;;  %v6443_v60 = vld [vmem:[#allocation44_spill] sm:$0xff] }
 0x156   : > { %v4731_v26 = vadd.f32 %v1382_v15, %v6421_v8  ;;  %v4734_v44 = vadd.f32 %v1385_v1, %v6422_v35  ;;  %v4737_v37 = vadd.f32 %v1387_v43, %v6423_v63  ;;  %v4740_v31 = vadd.f32 %v1390_v41, %v6424_v3  ;;  %v6437_v29 = vld [vmem:[#allocation42_spill] sm:$0xff]  ;;  %6442 = vst [vmem:[#allocation60_spill] sm:$0xff] %v4770_v11  ;;  %v6445_v48 = vld [vmem:[#allocation45_spill] sm:$0xff]  ;;  %v4806_v18 = vld [vmem:[%s2638_s14 + $0xa8] sm:$0xff]  }
 0x157   : > { %v4743_v47 = vadd.f32 %v1392_v51, %v6425_v52  ;;  %v4746_v62 = vadd.f32 %v1395_v0, %v6427_v50  ;;  %v4749_v15 = vadd.f32 %v1397_v57, %v6429_v58  ;;  %v4752_v1 = vadd.f32 %v1400_v54, %v6431_v23  ;;  %v4767_v57 = vld [vmem:[%s2638_s14 + $0x30] sm:$0xff]   ;;  %v6447_v9 = vld [vmem:[#allocation49_spill] sm:$0xff]  ;;  %v6449_v33 = vld [vmem:[#allocation50_spill] sm:$0xff] }
 0x158   : > { %v4755_v43 = vadd.f32 %v1402_v56, %v6433_v34  ;;  %v4758_v41 = vadd.f32 %v1405_v45, %v6435_v6  ;;  %v4761_v51 = vadd.f32 %v1407_v30, %v6437_v29  ;;  %v4764_v0 = vadd.f32 %v1410_v21, %v6439_v24  ;;  %6441 = vst [vmem:[#allocation22_spill] sm:$0xff] %v4767_v57  ;;  %v4785_v27 = vld [vmem:[%s2638_s14 + $0x60] sm:$0xff]   ;;  %v4788_v56 = vld [vmem:[%s2638_s14 + $0x78] sm:$0xff]   ;;  %v6453_v45 = vld [vmem:[#allocation51_spill] sm:$0xff] }
 0x159   : > { %6426 = vst [vmem:[#allocation39_spill] sm:$0xff] %v4743_v47  ;;  %v4773_v39 = vadd.f32 %v1412_v38, %v6443_v60  ;;  %v4776_v42 = vadd.f32 %v1415_v49, %v6445_v48  ;;  %v4779_v54 = vadd.f32 %v1417_v32, %v6447_v9  ;;  %v4782_v46 = vadd.f32 %v1420_v17, %v6449_v33  ;;  %v6455_v21 = vld [vmem:[#allocation52_spill] sm:$0xff]  ;;  %v6459_v32 = vld [vmem:[#allocation57_spill] sm:$0xff]  ;;  %v6462_v28 = vld [vmem:[#allocation58_spill] sm:$0xff] }
 0x15a   : > { %6428 = vst [vmem:[#allocation11_spill] sm:$0xff] %v4746_v62  ;;  %v4791_v30 = vadd.f32 %v1422_v10, %v6453_v45  ;;  %v4794_v38 = vadd.f32 %v1425_v19, %v6455_v21  ;;  %v6457_v49 = vld [vmem:[#allocation56_spill] sm:$0xff]  ;;  %v4800_v2 = vadd.f32 %v1430_v12, %v6459_v32  ;;  %v4809_v59 = vadd.f32 %v1432_v7, %v6462_v28  ;;  %v4812_v10 = vld [vmem:[%s2638_s14 + $0x24] sm:$0xff]   ;;  %v4847_v29 = vld [vmem:[%s2638_s14 + $0x9c] sm:$0xff]  }
 0x15b   : > { %6430 = vst [vmem:[#allocation46_spill] sm:$0xff] %v4749_v15  ;;  %v4797_v13 = vadd.f32 %v1427_v4, %v6457_v49  ;;  %v4803_v17 = vld [vmem:[%s2638_s14 + $0x90] sm:$0xff]   ;;  %v4816_v8 = vunpack.c.h.bf16 %v4767_v57  ;;  %v4819_v4 = vld [vmem:[%s2638_s14 + $0x3c] sm:$0xff]   ;;  %v4823_v35 = vunpack.c.h.bf16 %v4770_v11  ;;  %v4830_v3 = vunpack.c.h.bf16 %v4785_v27  ;;  %v4840_v23 = vld [vmem:[%s2638_s14 + $0x84] sm:$0xff]  }
 0x15c   : > { %6432 = vst [vmem:[#allocation47_spill] sm:$0xff] %v4752_v1  ;;  %v4826_v63 = vld [vmem:[%s2638_s14 + $0x54] sm:$0xff]   ;;  %v4833_v52 = vld [vmem:[%s2638_s14 + $0x6c] sm:$0xff]   ;;  %v4837_v58 = vunpack.c.h.bf16 %v4788_v56  ;;  %v4844_v6 = vunpack.c.h.bf16 %v4803_v17  ;;  %v4851_v60 = vunpack.c.h.bf16 %v4806_v18  ;;  %v4861_v45 = vunpack.c.h.bf16 %v4812_v10  ;;  %v4865_v49 = vld [vmem:[%s2638_s14 + $0x20] sm:$0x1] }
 0x15d   : > { %6434 = vst [vmem:[#allocation20_spill] sm:$0xff] %v4755_v43  ;;  %v4854_v48 = vld [vmem:[%s2638_s14 + $0xb4] sm:$0xff]   ;;  %v4857_v9 = vld [vmem:[%s2638_s14 + $0xcc] sm:$0xff]   ;;  %v4868_v32 = vunpack.c.h.bf16 %v4819_v4  ;;  %v4872_v24 = vunpack.c.h.bf16 %v4826_v63  ;;  %v4882_v12 = vld [vmem:[%s2638_s14 + $0x44] sm:$0x1]  ;;  %v4885_v21 = vunpack.c.h.bf16 %v4833_v52  ;;  %v4889_v33 = vunpack.c.h.bf16 %v4840_v23 }
 0x15e   : > { %6436 = vst [vmem:[#allocation48_spill] sm:$0xff] %v4758_v41  ;;  %v4876_v50 = vld [vmem:[%s2638_s14 + $0x2c] sm:$0x1]  ;;  %v4879_v7 = vld [vmem:[%s2638_s14 + $0x38] sm:$0x1]  ;;  %v6495_v62 = vunpack.c.l.bf16 %v4812_v10  ;;  %v6496_v34 = vunpack.c.l.bf16 %v4767_v57  ;;  %v6500_v57 = vunpack.c.l.bf16 %v4785_v27 }
 0x15f   : > { %6438 = vst [vmem:[#allocation54_spill] sm:$0xff] %v4761_v51  ;;  %v6485_v28 = vld [vmem:[#allocation71_spill] sm:$0xff]  ;;  %v6492_v41 = vld [vmem:[#allocation17_spill] sm:$0xff] }
 0x160   : > { %6440 = vst [vmem:[#allocation55_spill] sm:$0xff] %v4764_v0  ;;  %v4907_v19 = vld [vmem:[%s2638_s14 + $0x68] sm:$0x1]  ;;  %v6493_v43 = vunpack.c.l.bf16 %v6492_v41 }
 0x161   : > { %6444 = vst [vmem:[#allocation72_spill] sm:$0xff] %v4773_v39  ;;  %v6494_v15 = vld [vmem:[#allocation3_spill] sm:$0xff] }
 0x162   : > { %6446 = vst [vmem:[#allocation68_spill] sm:$0xff] %v4776_v42 }
 0x163   : > { %6448 = vst [vmem:[#allocation65_spill] sm:$0xff] %v4779_v54 }
 0x164   : > { %6450 = vst [vmem:[#allocation73_spill] sm:$0xff] %v4782_v46  ;;  %v4904_v46 = vunpack.c.h.bf16 %v4854_v48 }
 0x165   : > { %6451 = vst [vmem:[#allocation5_spill] sm:$0xff] %v4785_v27  ;;  %v6504_v27 = vunpack.c.l.bf16 %v4803_v17 }
 0x166   : > { %6452 = vst [vmem:[#allocation66_spill] sm:$0xff] %v4788_v56 }
 0x167   : > { %6454 = vst [vmem:[#allocation64_spill] sm:$0xff] %v4791_v30  ;;  %v6497_v30 = vunpack.c.l.bf16 %v4819_v4 }
 0x168   : > { %6456 = vst [vmem:[#allocation26_spill] sm:$0xff] %v4794_v38  ;;  %v4900_v38 = vunpack.c.h.bf16 %v4847_v29 }
 0x169   : > { %6458 = vst [vmem:[#allocation7_spill] sm:$0xff] %v4797_v13  ;;  %v4896_v13 = vld [vmem:[%s2638_s14 + $0x5c] sm:$0x1] }
 0x16a   : > { %6460 = vst [vmem:[#allocation27_spill] sm:$0xff] %v4800_v2  ;;  %v4893_v2 = vld [vmem:[%s2638_s14 + $0x50] sm:$0x1] }
 0x16b   : > { %6461 = vst [vmem:[#allocation24_spill] sm:$0xff] %v4803_v17 }
 0x16c   : > { %6463 = vst [vmem:[#allocation28_spill] sm:$0xff] %v4809_v59  ;;  %v1562_v59 = vperm.slane %v6485_v28, 6  ;;  %v4911_v28 = vunpack.c.h.bf16 %v4857_v9 }
 0x16d   : > { %6464 = vst [vmem:[#allocation9_spill] sm:$0xff] %v4816_v8 }
 0x16e   : > { %6465 = vst [vmem:[#allocation30_spill] sm:$0xff] %v4819_v4  ;;  %v1563_v1 = vmul.f32 %v6493_v43, %v1562_v59  ;;  %v1564_v54 = vmul.f32 %v6494_v15, %v1562_v59  ;;  %v1565_v47 = vmul.f32 %v1562_v59, %v6495_v62  ;;  %v1566_v39 = vmul.f32 %v1562_v59, %v4861_v45 }
 0x16f   : > { %6466 = vst [vmem:[#allocation25_spill] sm:$0xff] %v4823_v35  ;;  %v1568_v0 = vmul.f32 %v4816_v8, %v1562_v59  ;;  %v1569_v51 = vmul.f32 %v1562_v59, %v6497_v30  ;;  %v6498_v43 = vunpack.c.l.bf16 %v4770_v11  ;;  %v6499_v62 = vunpack.c.l.bf16 %v4826_v63 }
 0x170   : > { %6467 = vst [vmem:[#allocation31_spill] sm:$0xff] %v4826_v63  ;;  %v1576_v8 = vmul.f32 %v4830_v3, %v1562_v59  ;;  %v6501_v4 = vunpack.c.l.bf16 %v4833_v52  ;;  %v6502_v11 = vunpack.c.l.bf16 %v4788_v56  ;;  %v6503_v63 = vunpack.c.l.bf16 %v4840_v23 }
 0x171   : > { %6468 = vst [vmem:[#allocation12_spill] sm:$0xff] %v4830_v3  ;;  %v1573_v42 = vmul.f32 %v1562_v59, %v6499_v62  ;;  %v1584_v3 = vmul.f32 %v4844_v6, %v1562_v59  ;;  %v6506_v56 = vunpack.c.l.bf16 %v4806_v18 }
 0x172   : > { %6469 = vst [vmem:[#allocation59_spill] sm:$0xff] %v4833_v52  ;;  %v1577_v30 = vmul.f32 %v1562_v59, %v6501_v4  ;;  %v1581_v62 = vmul.f32 %v1562_v59, %v6503_v63  ;;  %v6505_v52 = vunpack.c.l.bf16 %v4847_v29 }
 0x173   : > { %6470 = vst [vmem:[#allocation29_spill] sm:$0xff] %v4837_v58 }
 0x174   : > { %6471 = vst [vmem:[#allocation63_spill] sm:$0xff] %v4840_v23  ;;  %v1585_v4 = vmul.f32 %v1562_v59, %v6505_v52  ;;  %v6507_v23 = vunpack.c.l.bf16 %v4854_v48  ;;  %v1594_v52 = vmul.f32 %v1562_v59, %v4911_v28 }
 0x175   : > { %6472 = vst [vmem:[#allocation14_spill] sm:$0xff] %v4844_v6  ;;  %v6510_v6 = vunpack.c.l.bf16 %v4857_v9 }
 0x176   : > { %6473 = vst [vmem:[#allocation2_spill] sm:$0xff] %v4847_v29  ;;  %v1589_v63 = vmul.f32 %v1562_v59, %v6507_v23  ;;  %v4977_v23 = vadd.f32 %v1566_v39, %v4707_v22  ;;  %v5028_v39 = vld [vmem:[%s2638_s14 + $0x80] sm:$0x1] }
 0x177   : > { %6474 = vst [vmem:[#allocation32_spill] sm:$0xff] %v4851_v60  ;;  %v1593_v29 = vmul.f32 %v1562_v59, %v6510_v6  ;;  %v4983_v6 = vadd.f32 %v1568_v0, %v4713_v16  ;;  %v6526_v0 = vld [vmem:[#allocation47_spill] sm:$0xff] }
 0x178   : > { %6475 = vst [vmem:[#allocation40_spill] sm:$0xff] %v4854_v48  ;;  %v4974_v48 = vadd.f32 %v1565_v47, %v4704_v53 }
 0x179   : > { %6476 = vst [vmem:[#allocation16_spill] sm:$0xff] %v4861_v45 }
 0x17a   : > { %6477 = vst [vmem:[#allocation41_spill] sm:$0xff] %v4865_v49 }
 0x17b   : > { %6478 = vst [vmem:[#allocation33_spill] sm:$0xff] %v4868_v32 }
 0x17c   : > { %6479 = vst [vmem:[#allocation69_spill] sm:$0xff] %v4872_v24 }
 0x17d   : > { %6480 = vst [vmem:[#allocation19_spill] sm:$0xff] %v4876_v50  ;;  %v6508_v50 = vld [vmem:[#allocation23_spill] sm:$0xff] }
 0x17e   : > { %6481 = vst [vmem:[#allocation34_spill] sm:$0xff] %v4879_v7  ;;  %v1567_v7 = vmul.f32 %v6496_v34, %v1562_v59  ;;  %v1575_v34 = vmul.f32 %v6500_v57, %v1562_v59  ;;  %v1583_v57 = vmul.f32 %v6504_v27, %v1562_v59  ;;  %v1591_v17 = vmul.f32 %v6508_v50, %v1562_v59  ;;  %v6509_v27 = vld [vmem:[#allocation62_spill] sm:$0xff] }
 0x17f   : > { %6482 = vst [vmem:[#allocation70_spill] sm:$0xff] %v4882_v12  ;;  %v1572_v12 = vmul.f32 %v4823_v35, %v1562_v59  ;;  %v1580_v35 = vmul.f32 %v4837_v58, %v1562_v59  ;;  %v1588_v58 = vmul.f32 %v4851_v60, %v1562_v59  ;;  %v1592_v45 = vmul.f32 %v6509_v27, %v1562_v59 }
 0x180   : > { %6483 = vst [vmem:[#allocation67_spill] sm:$0xff] %v4885_v21  ;;  %v4980_v27 = vadd.f32 %v1567_v7, %v4710_v61  ;;  %v4998_v61 = vadd.f32 %v1573_v42, %v4728_v20  ;;  %v5049_v7 = vld [vmem:[%s2638_s14 + $0xa4] sm:$0x1] }
 0x181   : > { %6484 = vst [vmem:[#allocation4_spill] sm:$0xff] %v4889_v33  ;;  %v4995_v22 = vadd.f32 %v1572_v12, %v4725_v25  ;;  %v6520_v25 = vld [vmem:[#allocation39_spill] sm:$0xff] }
 0x182   : > { %6486 = vst [vmem:[#allocation18_spill] sm:$0xff] %v4893_v2  ;;  %v1571_v2 = vmul.f32 %v6498_v43, %v1562_v59  ;;  %v1579_v43 = vmul.f32 %v6502_v11, %v1562_v59  ;;  %v1587_v11 = vmul.f32 %v6506_v56, %v1562_v59  ;;  %v4971_v56 = vadd.f32 %v1564_v54, %v4700_v40  ;;  %v6532_v54 = vld [vmem:[#allocation48_spill] sm:$0xff]  ;;  %v5043_v12 = vld [vmem:[%s2638_s14 + $0x8c] sm:$0x1] }
 0x183   : > { %6487 = vst [vmem:[#allocation6_spill] sm:$0xff] %v4896_v13  ;;  %v1570_v13 = vmul.f32 %v1562_v59, %v4868_v32  ;;  %v1578_v32 = vmul.f32 %v1562_v59, %v4885_v21  ;;  %v1586_v21 = vmul.f32 %v1562_v59, %v4900_v38 }
 0x184   : > { %6488 = vst [vmem:[#allocation53_spill] sm:$0xff] %v4900_v38  ;;  %v4968_v38 = vadd.f32 %v1563_v1, %v4694_v5  ;;  %v4986_v5 = vadd.f32 %v1569_v51, %v4716_v14  ;;  %v4992_v53 = vadd.f32 %v1571_v2, %v4722_v55  ;;  %v5004_v14 = vadd.f32 %v1575_v34, %v4734_v44  ;;  %v6522_v1 = vld [vmem:[#allocation11_spill] sm:$0xff]  ;;  %v6524_v51 = vld [vmem:[#allocation46_spill] sm:$0xff]  ;;  %v6543_v34 = vld [vmem:[#allocation68_spill] sm:$0xff] }
 0x185   : > { %6489 = vst [vmem:[#allocation8_spill] sm:$0xff] %v4904_v46  ;;  %v4989_v40 = vadd.f32 %v1570_v13, %v4719_v36  ;;  %v5007_v36 = vadd.f32 %v1576_v8, %v4737_v37  ;;  %v5010_v55 = vadd.f32 %v1577_v30, %v4740_v31  ;;  %v5013_v47 = vadd.f32 %v1578_v32, %v6520_v25  ;;  %v5025_v37 = vld [vmem:[%s2638_s14 + $0x74] sm:$0x1]  ;;  %v6534_v2 = vld [vmem:[#allocation54_spill] sm:$0xff]  ;;  %v5067_v25 = vld [vmem:[%s2638_s14 + $0xbc] sm:$0x1] }
 0x186   : > { %6490 = vst [vmem:[#allocation21_spill] sm:$0xff] %v4907_v19  ;;  %v1574_v19 = vmul.f32 %v1562_v59, %v4872_v24  ;;  %v1582_v24 = vmul.f32 %v1562_v59, %v4889_v33  ;;  %v1590_v33 = vmul.f32 %v1562_v59, %v4904_v46  ;;  %v5016_v20 = vadd.f32 %v1579_v43, %v6522_v1  ;;  %v6530_v31 = vld [vmem:[#allocation20_spill] sm:$0xff]  ;;  %v6545_v43 = vld [vmem:[#allocation65_spill] sm:$0xff]  ;;  %v5070_v1 = vld [vmem:[%s2638_s14 + $0xc8] sm:$0x1] }
 0x187   : > { %6491 = vst [vmem:[#allocation10_spill] sm:$0xff] %v4911_v28  ;;  %v5022_v44 = vadd.f32 %v1581_v62, %v6526_v0  ;;  %v5034_v13 = vadd.f32 %v1583_v57, %v6532_v54  ;;  %v5037_v59 = vadd.f32 %v1584_v3, %v6534_v2  ;;  %v6541_v32 = vld [vmem:[#allocation72_spill] sm:$0xff]  ;;  %v5055_v30 = vadd.f32 %v1587_v11, %v6543_v34  ;;  %v6547_v62 = vld [vmem:[#allocation73_spill] sm:$0xff]  ;;  %v6556_v11 = vld [vmem:[#allocation7_spill] sm:$0xff] }
 0x188   : > { %6511 = vst [vmem:[#allocation61_spill] sm:$0xff] %v4986_v5  ;;  %v5001_v16 = vadd.f32 %v1574_v19, %v4731_v26  ;;  %v5019_v26 = vadd.f32 %v1580_v35, %v6524_v51  ;;  %v5031_v42 = vadd.f32 %v1582_v24, %v6530_v31  ;;  %v6536_v19 = vld [vmem:[#allocation55_spill] sm:$0xff]  ;;  %v5046_v35 = vld [vmem:[%s2638_s14 + $0x98] sm:$0x1]  ;;  %v5052_v24 = vadd.f32 %v1586_v21, %v6541_v32  ;;  %v6552_v51 = vld [vmem:[#allocation64_spill] sm:$0xff] }
 0x189   : > { %6512 = vst [vmem:[#allocation13_spill] sm:$0xff] %v4989_v40  ;;  %v5040_v8 = vadd.f32 %v1585_v4, %v6536_v19  ;;  %v5058_v3 = vadd.f32 %v1588_v58, %v6545_v43  ;;  %v5061_v57 = vadd.f32 %v1589_v63, %v6547_v62  ;;  %v5064_v4 = vld [vmem:[%s2638_s14 + $0xb0] sm:$0x1]  ;;  %v5073_v0 = vadd.f32 %v1590_v33, %v6552_v51  ;;  %v6554_v21 = vld [vmem:[#allocation26_spill] sm:$0xff]  ;;  %v5082_v58 = vld [vmem:[%s2638_s14 + $0xd4] sm:$0x1] }
 0x18a   : > { %6513 = vst [vmem:[#allocation15_spill] sm:$0xff] %v4992_v53  ;;  %v5076_v31 = vadd.f32 %v1591_v17, %v6554_v21  ;;  %v5079_v54 = vadd.f32 %v1592_v45, %v6556_v11  ;;  %v6559_v2 = vld [vmem:[#allocation71_spill] sm:$0xff]  ;;  %v5088_v19 = vld [vmem:[%s2638_s14 + $0x18] sm:$0xe]  ;;  %v6563_v43 = vld [vmem:[#allocation28_spill] sm:$0xff]  ;;  %v6566_v17 = vunpack.c.l.bf16 %v6492_v41  ;;  %v6567_v21 = vunpack.c.l.bf16 %v4865_v49 }
 0x18b   : > { %6514 = vst [vmem:[#allocation35_spill] sm:$0xff] %v4995_v22  ;;  %v5085_v63 = vperm.slane %v6559_v2, 7  ;;  %v6561_v32 = vld [vmem:[#allocation27_spill] sm:$0xff]  ;;  %v5094_v62 = vadd.f32 %v1594_v52, %v6563_v43  ;;  %v5099_v51 = vld [vmem:[%s2638_s14 + $0x24] sm:$0xe]  ;;  %v6569_v52 = vld [vmem:[#allocation16_spill] sm:$0xff] }
 0x18c   : > { %6515 = vst [vmem:[#allocation36_spill] sm:$0xff] %v4998_v61  ;;  %v5091_v34 = vadd.f32 %v1593_v29, %v6561_v32  ;;  %v6568_v29 = vunpack.c.l.bf16 %v4812_v10  ;;  %v6575_v10 = vld [vmem:[#allocation34_spill] sm:$0xff] }
 0x18d   : > { %6516 = vst [vmem:[#allocation37_spill] sm:$0xff] %v5001_v16  ;;  %v1660_v33 = vmul.f32 %v6566_v17, %v5085_v63  ;;  %v1661_v45 = vmul.f32 %v6494_v15, %v5085_v63  ;;  %v1662_v11 = vmul.f32 %v5085_v63, %v6567_v21  ;;  %v5123_v43 = vmul.f32 %v5085_v63, %v6569_v52  ;;  %v6574_v21 = vld [vmem:[#allocation9_spill] sm:$0xff] }
 0x18e   : > { %6517 = vst [vmem:[#allocation38_spill] sm:$0xff] %v5004_v14  ;;  %v1663_v32 = vmul.f32 %v5085_v63, %v6568_v29  ;;  %v5137_v2 = vmul.f32 %v6574_v21, %v5085_v63  ;;  %v6576_v29 = vunpack.c.l.bf16 %v6575_v10  ;;  %v6582_v21 = vld [vmem:[#allocation60_spill] sm:$0xff] }
 0x18f   : > { %6518 = vst [vmem:[#allocation42_spill] sm:$0xff] %v5007_v36  ;;  %v6583_v10 = vunpack.c.l.bf16 %v6582_v21  ;;  %v6590_v21 = vld [vmem:[#allocation6_spill] sm:$0xff]  ;;  %v1757_v40 = vrot.slane %v1661_v45, 1  ;;  %v1759_v5 = vrot.slane %v1662_v11, 1  ;;  %v6623_v45 = vunpack.c.l.bf16 %v5070_v1 }
 0x190   : > { %6519 = vst [vmem:[#allocation43_spill] sm:$0xff] %v5010_v55 }
 0x191   : > { %6521 = vst [vmem:[#allocation44_spill] sm:$0xff] %v5013_v47  ;;  %v5310_v11 = vmul.f32 %v5085_v63, %v6623_v45 }
 0x192   : > { %6523 = vst [vmem:[#allocation45_spill] sm:$0xff] %v5016_v20 }
 0x193   : > { %6525 = vst [vmem:[#allocation49_spill] sm:$0xff] %v5019_v26 }
 0x194   : > { %6527 = vst [vmem:[#allocation50_spill] sm:$0xff] %v5022_v44 }
 0x195   : > { %6528 = vst [vmem:[#allocation51_spill] sm:$0xff] %v5025_v37 }
 0x196   : > { %6529 = vst [vmem:[#allocation52_spill] sm:$0xff] %v5028_v39 }
 0x197   : > { %6531 = vst [vmem:[#allocation56_spill] sm:$0xff] %v5031_v42 }
 0x198   : > { %6533 = vst [vmem:[#allocation57_spill] sm:$0xff] %v5034_v13 }
 0x199   : > { %6535 = vst [vmem:[#allocation58_spill] sm:$0xff] %v5037_v59 }
 0x19a   : > { %6537 = vst [vmem:[#allocation17_spill] sm:$0xff] %v5040_v8  ;;  %v5161_v8 = vmul.f32 %v6583_v10, %v5085_v63  ;;  %v6591_v10 = vunpack.c.l.bf16 %v6590_v21 }
 0x19b   : > { %6538 = vst [vmem:[#allocation23_spill] sm:$0xff] %v5043_v12 }
 0x19c   : > { %6539 = vst [vmem:[#allocation39_spill] sm:$0xff] %v5046_v35  ;;  %v5184_v42 = vmul.f32 %v5085_v63, %v6591_v10  ;;  %v6599_v10 = vld [vmem:[#allocation67_spill] sm:$0xff] }
 0x19d   : > { %6540 = vst [vmem:[#allocation11_spill] sm:$0xff] %v5049_v7  ;;  %v5207_v15 = vmul.f32 %v5085_v63, %v6599_v10  ;;  %v6605_v10 = vld [vmem:[#allocation63_spill] sm:$0xff] }
 0x19e   : > { %6542 = vst [vmem:[#allocation46_spill] sm:$0xff] %v5052_v24  ;;  %v6606_v55 = vunpack.c.l.bf16 %v6605_v10 }
 0x19f   : > { %6544 = vst [vmem:[#allocation47_spill] sm:$0xff] %v5055_v30 }
 0x1a0   : > { %6546 = vst [vmem:[#allocation20_spill] sm:$0xff] %v5058_v3 }
 0x1a1   : > { %6548 = vst [vmem:[#allocation48_spill] sm:$0xff] %v5061_v57  ;;  %v6577_v57 = vld [vmem:[#allocation30_spill] sm:$0xff] }
 0x1a2   : > { %6549 = vst [vmem:[#allocation54_spill] sm:$0xff] %v5064_v4  ;;  %v6578_v3 = vunpack.c.l.bf16 %v6577_v57 }
 0x1a3   : > { %6550 = vst [vmem:[#allocation55_spill] sm:$0xff] %v5067_v25 }
 0x1a4   : > { %6551 = vst [vmem:[#allocation72_spill] sm:$0xff] %v5070_v1 }
 0x1a5   : > { %6553 = vst [vmem:[#allocation68_spill] sm:$0xff] %v5073_v0  ;;  %v5142_v0 = vmul.f32 %v5085_v63, %v6576_v29  ;;  %v6584_v29 = vld [vmem:[#allocation25_spill] sm:$0xff] }
 0x1a6   : > { %6555 = vst [vmem:[#allocation65_spill] sm:$0xff] %v5076_v31  ;;  %v5165_v57 = vmul.f32 %v6584_v29, %v5085_v63  ;;  %v6592_v29 = vld [vmem:[#allocation5_spill] sm:$0xff] }
 0x1a7   : > { %6557 = vst [vmem:[#allocation73_spill] sm:$0xff] %v5079_v54 }
 0x1a8   : > { %6558 = vst [vmem:[#allocation64_spill] sm:$0xff] %v5082_v58 }
 0x1a9   : > { %6560 = vst [vmem:[#allocation26_spill] sm:$0xff] %v5088_v19 }
 0x1aa   : > { %6562 = vst [vmem:[#allocation7_spill] sm:$0xff] %v5091_v34  ;;  %v6572_v34 = vld [vmem:[#allocation22_spill] sm:$0xff] }
 0x1ab   : > { %6564 = vst [vmem:[#allocation71_spill] sm:$0xff] %v5094_v62  ;;  %v6570_v62 = vld [vmem:[#allocation19_spill] sm:$0xff]  ;;  %v6573_v54 = vunpack.c.l.bf16 %v6572_v34 }
 0x1ac   : > { %6565 = vst [vmem:[#allocation27_spill] sm:$0xff] %v5099_v51  ;;  %v6571_v41 = vunpack.c.l.bf16 %v6570_v62  ;;  %v5147_v62 = vmul.f32 %v5085_v63, %v6578_v3  ;;  %v6585_v3 = vld [vmem:[#allocation18_spill] sm:$0xff] }
 0x1ad   : > { %v5133_v31 = vmul.f32 %v6573_v54, %v5085_v63  ;;  %v6580_v54 = vld [vmem:[#allocation70_spill] sm:$0xff]  ;;  %v6586_v59 = vunpack.c.l.bf16 %v6585_v3  ;;  %v6593_v3 = vunpack.c.l.bf16 %v6592_v29  ;;  %v6600_v29 = vunpack.c.l.bf16 %v5025_v37 }
 0x1ae   : > { %v5128_v17 = vmul.f32 %v5085_v63, %v6571_v41  ;;  %v6579_v41 = vld [vmem:[#allocation33_spill] sm:$0xff]  ;;  %v6581_v34 = vunpack.c.l.bf16 %v6580_v54  ;;  %v5231_v37 = vmul.f32 %v5085_v63, %v6606_v55  ;;  %v6612_v55 = vunpack.c.l.bf16 %v5046_v35 }
 0x1af   : > { %v5151_v30 = vmul.f32 %v5085_v63, %v6579_v41  ;;  %v5170_v52 = vmul.f32 %v5085_v63, %v6586_v59  ;;  %v6587_v41 = vld [vmem:[#allocation31_spill] sm:$0xff]  ;;  %v5189_v44 = vmul.f32 %v6593_v3, %v5085_v63  ;;  %v6594_v59 = vld [vmem:[#allocation12_spill] sm:$0xff]  ;;  %v5212_v3 = vmul.f32 %v5085_v63, %v6600_v29 }
 0x1b0   : > { %v5156_v24 = vmul.f32 %v5085_v63, %v6581_v34  ;;  %v6588_v51 = vunpack.c.l.bf16 %v6587_v41  ;;  %v6589_v34 = vld [vmem:[#allocation69_spill] sm:$0xff]  ;;  %v5193_v41 = vmul.f32 %v6594_v59, %v5085_v63  ;;  %v6601_v59 = vld [vmem:[#allocation66_spill] sm:$0xff]  ;;  %v6607_v29 = vld [vmem:[#allocation4_spill] sm:$0xff]  ;;  %v5254_v16 = vmul.f32 %v5085_v63, %v6612_v55 }
 0x1b1   : > { %v5179_v13 = vmul.f32 %v5085_v63, %v6589_v34  ;;  %v6597_v34 = vld [vmem:[#allocation59_spill] sm:$0xff]  ;;  %v5235_v36 = vmul.f32 %v5085_v63, %v6607_v29  ;;  %v6613_v29 = vld [vmem:[#allocation2_spill] sm:$0xff]  ;;  %v6617_v35 = vunpack.c.l.bf16 %v4806_v18  ;;  %v5291_v18 = vmul.f32 %v5085_v63, %v4904_v46 }
 0x1b2   : > { %v5175_v54 = vmul.f32 %v5085_v63, %v6588_v51  ;;  %v6595_v51 = vld [vmem:[#allocation21_spill] sm:$0xff]  ;;  %v6598_v49 = vunpack.c.l.bf16 %v6597_v34  ;;  %v6614_v61 = vunpack.c.l.bf16 %v6613_v29  ;;  %v5277_v29 = vmul.f32 %v4851_v60, %v5085_v63 }
 0x1b3   : > { %v6596_v26 = vunpack.c.l.bf16 %v6595_v51  ;;  %v6602_v51 = vunpack.c.l.bf16 %v6601_v59  ;;  %v6608_v59 = vunpack.c.l.bf16 %v5043_v12  ;;  %v1766_v1 = vrot.slane %v5133_v31, 1 }
 0x1b4   : > { %v5203_v21 = vmul.f32 %v5085_v63, %v6598_v49  ;;  %v6604_v49 = vunpack.c.l.bf16 %v5028_v39  ;;  %v5259_v12 = vmul.f32 %v5085_v63, %v6614_v61  ;;  %v6618_v61 = vunpack.c.l.bf16 %v5064_v4 }
 0x1b5   : > { %v5198_v20 = vmul.f32 %v5085_v63, %v6596_v26  ;;  %v5217_v19 = vmul.f32 %v6602_v51, %v5085_v63  ;;  %v6603_v26 = vld [vmem:[#allocation29_spill] sm:$0xff]  ;;  %v5240_v51 = vmul.f32 %v5085_v63, %v6608_v59  ;;  %v1761_v4 = vrot.slane %v1663_v32, 1 }
 0x1b6   : > { %v5221_v34 = vmul.f32 %v6603_v26, %v5085_v63  ;;  %v5226_v47 = vmul.f32 %v5085_v63, %v6604_v49  ;;  %v6609_v26 = vld [vmem:[#allocation24_spill] sm:$0xff]  ;;  %v6611_v49 = vld [vmem:[#allocation14_spill] sm:$0xff]  ;;  %v6615_v59 = vld [vmem:[#allocation53_spill] sm:$0xff]  ;;  %v5282_v55 = vmul.f32 %v5085_v63, %v6618_v61  ;;  %v1762_v61 = vrot.slane %v5123_v43, 1 }
 0x1b7   : > { %v6610_v39 = vunpack.c.l.bf16 %v6609_v26  ;;  %v5249_v10 = vmul.f32 %v6611_v49, %v5085_v63  ;;  %v5263_v22 = vmul.f32 %v5085_v63, %v6615_v59  ;;  %v5273_v49 = vmul.f32 %v6617_v35, %v5085_v63  ;;  %v6619_v59 = vld [vmem:[#allocation40_spill] sm:$0xff] }
 0x1b8   : > { %v6620_v53 = vunpack.c.l.bf16 %v6619_v59  ;;  %v6621_v35 = vunpack.c.l.bf16 %v5067_v25  ;;  %v5301_v59 = vmul.f32 %v6508_v50, %v5085_v63  ;;  %v6624_v25 = vunpack.c.l.bf16 %v4857_v9 }
 0x1b9   : > { %v5245_v14 = vmul.f32 %v6610_v39, %v5085_v63  ;;  %v6616_v39 = vunpack.c.l.bf16 %v5049_v7  ;;  %v5319_v32 = vmul.f32 %v5085_v63, %v4911_v28  ;;  %v6625_v50 = vunpack.c.l.bf16 %v5082_v58  ;;  %v6672_v58 = vld [vmem:[#allocation69_spill] sm:$0xff] }
 0x1ba   : > { %v5287_v7 = vmul.f32 %v5085_v63, %v6620_v53  ;;  %v5296_v60 = vmul.f32 %v5085_v63, %v6621_v35  ;;  %v6622_v53 = vld [vmem:[#allocation62_spill] sm:$0xff]  ;;  %v5315_v35 = vmul.f32 %v5085_v63, %v6624_v25  ;;  %v5332_v9 = vsel %vm402_vm0, %v1757_v40, %v1759_v5 }
 0x1bb   : > { %v5268_v26 = vmul.f32 %v5085_v63, %v6616_v39  ;;  %v1756_v39 = vrot.slane %v1660_v33, 1  ;;  %v5305_v33 = vmul.f32 %v6622_v53, %v5085_v63  ;;  %v5324_v43 = vmul.f32 %v5085_v63, %v6625_v50 }
 0x1bc   : > { %v1764_v53 = vrot.slane %v5128_v17, 1  ;;  %v1767_v25 = vrot.slane %v5137_v2, 1  ;;  %v1769_v28 = vrot.slane %v5142_v0, 1  ;;  %v5337_v46 = vsel %vm402_vm0, %v1761_v4, %v1762_v61 }
 0x1bd   : > { %v5329_v45 = vsel %vm402_vm0, %v1756_v39, %v1757_v40  ;;  %v1771_v63 = vrot.slane %v5147_v62, 1  ;;  %v1772_v50 = vrot.slane %v5151_v30, 1  ;;  %v1774_v17 = vrot.slane %v5156_v24, 1 }
 0x1be   : > { %v1776_v31 = vrot.slane %v5161_v8, 1  ;;  %v1777_v39 = vrot.slane %v5165_v57, 1  ;;  %v1779_v5 = vrot.slane %v5170_v52, 1  ;;  %v1781_v40 = vrot.slane %v5175_v54, 1 }
 0x1bf   : > { %v1782_v2 = vrot.slane %v5179_v13, 1  ;;  %v1784_v0 = vrot.slane %v5184_v42, 1  ;;  %v1786_v4 = vrot.slane %v5189_v44, 1  ;;  %v1787_v62 = vrot.slane %v5193_v41, 1 }
 0x1c0   : > { %v1789_v30 = vrot.slane %v5198_v20, 1  ;;  %v1791_v24 = vrot.slane %v5203_v21, 1  ;;  %v1792_v8 = vrot.slane %v5207_v15, 1  ;;  %v1794_v57 = vrot.slane %v5212_v3, 1 }
 0x1c1   : > { %v1765_v52 = vsel %vm402_vm0, %v1762_v61, %v1764_v53  ;;  %v1768_v54 = vsel %vm402_vm0, %v1766_v1, %v1767_v25  ;;  %v1796_v13 = vrot.slane %v5217_v19, 1  ;;  %v1797_v42 = vrot.slane %v5221_v34, 1 }
 0x1c2   : > { %v1770_v44 = vsel %vm402_vm0, %v1767_v25, %v1769_v28  ;;  %v1773_v41 = vsel %vm402_vm0, %v1771_v63, %v1772_v50  ;;  %v1775_v20 = vsel %vm402_vm0, %v1772_v50, %v1774_v17  ;;  %v1799_v21 = vrot.slane %v5226_v47, 1 }
 0x1c3   : > { %v1778_v15 = vsel %vm402_vm0, %v1776_v31, %v1777_v39  ;;  %v1780_v3 = vsel %vm402_vm0, %v1777_v39, %v1779_v5  ;;  %v1783_v61 = vsel %vm402_vm0, %v1781_v40, %v1782_v2  ;;  %v1785_v1 = vsel %vm402_vm0, %v1782_v2, %v1784_v0 }
 0x1c4   : > { %v1788_v19 = vsel %vm402_vm0, %v1786_v4, %v1787_v62  ;;  %v1790_v34 = vsel %vm402_vm0, %v1787_v62, %v1789_v30  ;;  %v1793_v28 = vsel %vm402_vm0, %v1791_v24, %v1792_v8  ;;  %v1795_v53 = vsel %vm402_vm0, %v1792_v8, %v1794_v57 }
 0x1c5   : > { %v1798_v25 = vsel %vm402_vm0, %v1796_v13, %v1797_v42  ;;  %v1801_v47 = vrot.slane %v5231_v37, 1  ;;  %v1802_v63 = vrot.slane %v5235_v36, 1  ;;  %v1804_v50 = vrot.slane %v5240_v51, 1 }
 0x1c6   : > { %v1800_v17 = vsel %vm402_vm0, %v1797_v42, %v1799_v21  ;;  %v1806_v31 = vrot.slane %v5245_v14, 1  ;;  %v1807_v39 = vrot.slane %v5249_v10, 1  ;;  %v1809_v5 = vrot.slane %v5254_v16, 1 }
 0x1c7   : > { %v1811_v40 = vrot.slane %v5259_v12, 1  ;;  %v1812_v2 = vrot.slane %v5263_v22, 1  ;;  %v1814_v0 = vrot.slane %v5268_v26, 1  ;;  %v1816_v37 = vrot.slane %v5273_v49, 1 }
 0x1c8   : > { %v1817_v36 = vrot.slane %v5277_v29, 1  ;;  %v1819_v51 = vrot.slane %v5282_v55, 1  ;;  %v1821_v4 = vrot.slane %v5287_v7, 1  ;;  %v1822_v14 = vrot.slane %v5291_v18, 1 }
 0x1c9   : > { %v1824_v10 = vrot.slane %v5296_v60, 1  ;;  %v1826_v16 = vrot.slane %v5301_v59, 1  ;;  %v1827_v12 = vrot.slane %v5305_v33, 1  ;;  %v1829_v22 = vrot.slane %v5310_v11, 1 }
 0x1ca   : > { %v1803_v26 = vsel %vm402_vm0, %v1801_v47, %v1802_v63  ;;  %v1831_v49 = vrot.slane %v5315_v35, 1  ;;  %v1832_v29 = vrot.slane %v5319_v32, 1  ;;  %v1834_v55 = vrot.slane %v5324_v43, 1 }
 0x1cb   : > { %v1805_v7 = vsel %vm402_vm0, %v1802_v63, %v1804_v50  ;;  %v1808_v18 = vsel %vm402_vm0, %v1806_v31, %v1807_v39  ;;  %v1810_v60 = vsel %vm402_vm0, %v1807_v39, %v1809_v5  ;;  %v1813_v59 = vsel %vm402_vm0, %v1811_v40, %v1812_v2  ;;  %v6630_v63 = vld [vmem:[#allocation13_spill] sm:$0xff]  ;;  %v6632_v31 = vld [vmem:[#allocation35_spill] sm:$0xff] }
 0x1cc   : > { %v1815_v33 = vsel %vm402_vm0, %v1812_v2, %v1814_v0  ;;  %v1818_v11 = vsel %vm402_vm0, %v1816_v37, %v1817_v36  ;;  %v1820_v62 = vsel %vm402_vm0, %v1817_v36, %v1819_v51  ;;  %v1823_v35 = vsel %vm402_vm0, %v1821_v4, %v1822_v14  ;;  %v6638_v2 = vld [vmem:[#allocation44_spill] sm:$0xff]  ;;  %v6639_v0 = vld [vmem:[#allocation26_spill] sm:$0xff]  ;;  %v6641_v36 = vld [vmem:[#allocation3_spill] sm:$0xff] }
 0x1cd   : > { %v1825_v32 = vsel %vm402_vm0, %v1822_v14, %v1824_v10  ;;  %v5404_v43 = vsel %vm402_vm0, %v1826_v16, %v1827_v12  ;;  %v5407_v30 = vsel %vm402_vm0, %v1827_v12, %v1829_v22  ;;  %v5411_v24 = vadd.f32 %v5329_v45, %v4968_v38  ;;  %v5430_v38 = vld [vmem:[%s5748_s1 + $0x8] ss:$0 sm:$0xff]  ;;  %v6644_v4 = vld [vmem:[#allocation45_spill] sm:$0xff]  ;;  %v6646_v10 = vld [vmem:[#allocation50_spill] sm:$0xff] }
 0x1ce   : > { %6626 = vst [vmem:[#allocation28_spill] sm:$0xff] %v5407_v30  ;;  %v5414_v8 = vsel %vm402_vm0, %v1831_v49, %v1832_v29  ;;  %v5417_v57 = vsel %vm402_vm0, %v1832_v29, %v1834_v55  ;;  %v5421_v13 = vadd.f32 %v5332_v9, %v4971_v56  ;;  %v5425_v42 = vadd.f32 %v5337_v46, %v4974_v48  ;;  %v6629_v56 = vld [vmem:[#allocation61_spill] sm:$0xff]  ;;  %v6631_v48 = vld [vmem:[#allocation15_spill] sm:$0xff]  ;;  %v6647_v12 = vld [vmem:[#allocation56_spill] sm:$0xff] }
 0x1cf   : > { %6627 = vst [vmem:[#allocation22_spill] sm:$0xff] %v5414_v8  ;;  %v5433_v45 = vadd.f32 %v1765_v52, %v4977_v23  ;;  %v5436_v21 = vadd.f32 %v1768_v54, %v4980_v27  ;;  %v5439_v47 = vadd.f32 %v1770_v44, %v4983_v6  ;;  %v5442_v9 = vadd.f32 %v1773_v41, %v6629_v56  ;;  %v6633_v23 = vld [vmem:[#allocation36_spill] sm:$0xff]  ;;  %v6634_v27 = vld [vmem:[#allocation37_spill] sm:$0xff]  ;;  %v6635_v6 = vld [vmem:[#allocation38_spill] sm:$0xff] }
 0x1d0   : > { %6628 = vst [vmem:[#allocation30_spill] sm:$0xff] %v5417_v57  ;;  %v5445_v46 = vadd.f32 %v1775_v20, %v6630_v63  ;;  %v5448_v50 = vadd.f32 %v1778_v15, %v6631_v48  ;;  %v5451_v39 = vadd.f32 %v1780_v3, %v6632_v31  ;;  %v5454_v52 = vadd.f32 %v1783_v61, %v6633_v23  ;;  %v6636_v41 = vld [vmem:[#allocation42_spill] sm:$0xff]  ;;  %v6637_v20 = vld [vmem:[#allocation43_spill] sm:$0xff]  ;;  %v2455_v15 = vld [vmem:[%s2638_s14 + $0x30] sm:$0xe] }
 0x1d1   : > { %v5457_v54 = vadd.f32 %v1785_v1, %v6634_v27  ;;  %v5460_v44 = vadd.f32 %v1788_v19, %v6635_v6  ;;  %v5463_v5 = vadd.f32 %v1790_v34, %v6636_v41  ;;  %v5466_v40 = vadd.f32 %v1793_v28, %v6637_v20  ;;  %v6642_v19 = vld [vmem:[#allocation41_spill] sm:$0xff]  ;;  %v6649_v63 = vld [vmem:[#allocation27_spill] sm:$0xff]  ;;  %v6651_v31 = vld [vmem:[#allocation16_spill] sm:$0xff] }
 0x1d2   : > { %v5470_v3 = vadd.f32 %v1795_v53, %v6638_v2  ;;  %v6640_v37 = vunpack.c.l.bf16 %v6639_v0  ;;  %v1934_v1 = vmul.f32 %v5430_v38, %v6641_v36  ;;  %v6643_v51 = vunpack.c.l.bf16 %v6642_v19  ;;  %v6645_v14 = vld [vmem:[#allocation49_spill] sm:$0xff]  ;;  %v6655_v41 = vld [vmem:[#allocation47_spill] sm:$0xff]  ;;  %v5515_v2 = vld [vmem:[%s2638_s14 + $0x54] sm:$0xe] }
 0x1d3   : > { %v5481_v28 = vadd.f32 %v1798_v25, %v6644_v4  ;;  %v5484_v53 = vadd.f32 %v1800_v17, %v6645_v14  ;;  %v5487_v16 = vadd.f32 %v1803_v26, %v6646_v10  ;;  %v5490_v22 = vadd.f32 %v1805_v7, %v6647_v12  ;;  %v6648_v49 = vld [vmem:[#allocation57_spill] sm:$0xff]  ;;  %v6652_v17 = vld [vmem:[#allocation58_spill] sm:$0xff]  ;;  %v6661_v12 = vld [vmem:[#allocation68_spill] sm:$0xff] }
 0x1d4   : > { %v1933_v61 = vmul.f32 %v5430_v38, %v6640_v37  ;;  %v1935_v34 = vmul.f32 %v5430_v38, %v6643_v51  ;;  %v5493_v29 = vadd.f32 %v1808_v18, %v6648_v49  ;;  %v2456_v55 = vld [vmem:[%s2638_s14 + $0x3c] sm:$0xe]  ;;  %v1918_v56 = vunpack.c.l.bf16 %v2455_v15  ;;  %v6654_v7 = vld [vmem:[#allocation46_spill] sm:$0xff]  ;;  %v2457_v15 = vld [vmem:[%s2638_s14 + $0x48] sm:$0xe] }
 0x1d5   : > { %v6650_v48 = vunpack.c.l.bf16 %v6649_v63  ;;  %v1937_v23 = vmul.f32 %v5430_v38, %v6651_v31  ;;  %v5502_v27 = vadd.f32 %v1810_v60, %v6652_v17  ;;  %v6653_v26 = vld [vmem:[#allocation17_spill] sm:$0xff]  ;;  %v5508_v18 = vadd.f32 %v1815_v33, %v6654_v7  ;;  %v5518_v0 = vld [vmem:[%s2638_s14 + $0x60] sm:$0xe]  ;;  %v5521_v37 = vld [vmem:[%s2638_s14 + $0x6c] sm:$0xe] }
 0x1d6   : > { %v5505_v6 = vadd.f32 %v1813_v59, %v6653_v26  ;;  %v5511_v20 = vadd.f32 %v1818_v11, %v6655_v41  ;;  %v6656_v60 = vld [vmem:[#allocation19_spill] sm:$0xff]  ;;  %v2029_v19 = vrot.slane %v1933_v61, 2  ;;  %v2030_v51 = vrot.slane %v1934_v1, 2  ;;  %v6658_v33 = vld [vmem:[#allocation20_spill] sm:$0xff]  ;;  %v5536_v63 = vld [vmem:[%s2638_s14 + $0x78] sm:$0xe] }
 0x1d7   : > { %v1936_v25 = vmul.f32 %v5430_v38, %v6650_v48  ;;  %v6657_v36 = vunpack.c.l.bf16 %v6656_v60  ;;  %v2032_v4 = vrot.slane %v1935_v34, 2  ;;  %v5527_v14 = vadd.f32 %v1820_v62, %v6658_v33  ;;  %v6659_v11 = vld [vmem:[#allocation48_spill] sm:$0xff]  ;;  %v5539_v31 = vld [vmem:[%s2638_s14 + $0x84] sm:$0xe]  ;;  %v6663_v34 = vld [vmem:[#allocation9_spill] sm:$0xff] }
 0x1d8   : > { %v5530_v10 = vadd.f32 %v1823_v35, %v6659_v11  ;;  %v5533_v49 = vadd.f32 %v1825_v32, %v6661_v12  ;;  %v1919_v48 = vunpack.c.l.bf16 %v2456_v55  ;;  %v5542_v61 = vld [vmem:[%s2638_s14 + $0x90] sm:$0xe]  ;;  %v1939_v1 = vmul.f32 %v5430_v38, %v1918_v56  ;;  %v5551_v41 = vld [vmem:[%s2638_s14 + $0x9c] sm:$0xe]  ;;  %v5554_v60 = vld [vmem:[%s2638_s14 + $0xa8] sm:$0xe] }
 0x1d9   : > { %v1938_v59 = vmul.f32 %v5430_v38, %v6657_v36  ;;  %v1940_v62 = vmul.f32 %v5430_v38, %v6663_v34  ;;  %v2034_v17 = vrot.slane %v1936_v25, 2  ;;  %v2035_v26 = vrot.slane %v1937_v23, 2  ;;  %v6664_v36 = vld [vmem:[#allocation34_spill] sm:$0xff] }
 0x1da   : > { %6660 = vst [vmem:[#allocation60_spill] sm:$0xff] %v5530_v10  ;;  %v1920_v35 = vunpack.c.l.bf16 %v2457_v15  ;;  %v1921_v32 = vunpack.c.l.bf16 %v5515_v2  ;;  %v1922_v7 = vunpack.c.l.bf16 %v5518_v0  ;;  %v6665_v33 = vunpack.c.l.bf16 %v6664_v36  ;;  %v5562_v15 = vld [vmem:[%s2638_s14 + $0xb4] sm:$0xe]  ;;  %v5569_v55 = vld [vmem:[%s2638_s14 + $0xc0] sm:$0xe]  ;;  %v6666_v36 = vld [vmem:[#allocation33_spill] sm:$0xff] }
 0x1db   : > { %6662 = vst [vmem:[#allocation31_spill] sm:$0xff] %v5533_v49  ;;  %v2031_v11 = vsel %vm676_vm1, %v2029_v19, %v2030_v51  ;;  %v2033_v25 = vsel %vm676_vm1, %v2030_v51, %v2032_v4  ;;  %v2037_v23 = vrot.slane %v1938_v59, 2  ;;  %v1942_v34 = vmul.f32 %v5430_v38, %v1919_v48  ;;  %v6667_v48 = vld [vmem:[#allocation70_spill] sm:$0xff] }
 0x1dc   : > { %v1941_v56 = vmul.f32 %v5430_v38, %v6665_v33  ;;  %v1943_v33 = vmul.f32 %v5430_v38, %v6666_v36  ;;  %v2036_v19 = vsel %vm676_vm1, %v2034_v17, %v2035_v26  ;;  %v2039_v51 = vrot.slane %v1939_v1, 2  ;;  %v5584_v17 = vld [vmem:[%s2638_s14 + $0xcc] sm:$0xe]  ;;  %v6670_v1 = vld [vmem:[#allocation18_spill] sm:$0xff] }
 0x1dd   : > { %v2040_v59 = vrot.slane %v1940_v62, 2  ;;  %v2141_v0 = vadd.f32 %v2031_v11, %v5411_v24  ;;  %v2142_v57 = vadd.f32 %v2033_v25, %v5421_v13  ;;  %v6668_v8 = vunpack.c.l.bf16 %v6667_v48  ;;  %v6669_v11 = vld [vmem:[#allocation25_spill] sm:$0xff] }
 0x1de   : > { %v2038_v36 = vsel %vm676_vm1, %v2035_v26, %v2037_v23  ;;  %v2042_v30 = vrot.slane %v1941_v56, 2  ;;  %v1945_v62 = vmul.f32 %v5430_v38, %v1920_v35  ;;  %v2143_v2 = vadd.f32 %v2036_v19, %v5425_v42 }
 0x1df   : > { %v1944_v49 = vmul.f32 %v5430_v38, %v6668_v8  ;;  %v2173_v24 = vadd.f32 %v2142_v57, %v2141_v0  ;;  %v1946_v13 = vmul.f32 %v5430_v38, %v6669_v11  ;;  %v2041_v25 = vsel %vm676_vm1, %v2039_v51, %v2040_v59 }
 0x1e0   : > { %v2044_v48 = vrot.slane %v1942_v34, 2  ;;  %v2045_v12 = vrot.slane %v1943_v33, 2  ;;  %v2144_v8 = vadd.f32 %v2038_v36, %v5433_v45  ;;  %v2211_v56 = vmul.f32 %v2141_v0, %v2141_v0 }
 0x1e1   : > { %v2174_v26 = vadd.f32 %v2173_v24, %v2143_v2  ;;  %v2212_v23 = vmul.f32 %v2142_v57, %v2142_v57  ;;  %v6671_v10 = vunpack.c.l.bf16 %v6670_v1  ;;  %v2043_v42 = vsel %vm676_vm1, %v2040_v59, %v2042_v30  ;;  %v6673_v30 = vld [vmem:[#allocation6_spill] sm:$0xff] }
 0x1e2   : > { %v2047_v19 = vrot.slane %v1944_v49, 2  ;;  %v1948_v11 = vmul.f32 %v5430_v38, %v1921_v32  ;;  %v2145_v51 = vadd.f32 %v2041_v25, %v5436_v21  ;;  %v2213_v33 = vmul.f32 %v2143_v2, %v2143_v2 }
 0x1e3   : > { %v1947_v35 = vmul.f32 %v5430_v38, %v6671_v10  ;;  %v2175_v34 = vadd.f32 %v2174_v26, %v2144_v8  ;;  %v1949_v45 = vmul.f32 %v5430_v38, %v6672_v58  ;;  %v2046_v57 = vsel %vm676_vm1, %v2044_v48, %v2045_v12 }
 0x1e4   : > { %v2049_v0 = vrot.slane %v1945_v62, 2  ;;  %v2050_v36 = vrot.slane %v1946_v13, 2  ;;  %v2146_v1 = vadd.f32 %v2043_v42, %v5439_v47  ;;  %v2214_v10 = vmul.f32 %v2144_v8, %v2144_v8  ;;  %v6675_v13 = vld [vmem:[#allocation12_spill] sm:$0xff] }
 0x1e5   : > { %v2176_v24 = vadd.f32 %v2175_v34, %v2145_v51  ;;  %v2243_v4 = vadd.f32 %v2212_v23, %v2211_v56  ;;  %v6674_v49 = vunpack.c.l.bf16 %v6673_v30  ;;  %v1951_v21 = vmul.f32 %v5430_v38, %v1922_v7  ;;  %v6676_v30 = vld [vmem:[#allocation21_spill] sm:$0xff] }
 0x1e6   : > { %v2048_v2 = vsel %vm676_vm1, %v2045_v12, %v2047_v19  ;;  %v2052_v59 = vrot.slane %v1947_v35, 2  ;;  %v2147_v58 = vadd.f32 %v2046_v57, %v5442_v9  ;;  %v2215_v48 = vmul.f32 %v2145_v51, %v2145_v51 }
 0x1e7   : > { %v1950_v32 = vmul.f32 %v5430_v38, %v6674_v49  ;;  %v2177_v25 = vadd.f32 %v2176_v24, %v2146_v1  ;;  %v2244_v62 = vadd.f32 %v2243_v4, %v2213_v33  ;;  %v1952_v47 = vmul.f32 %v5430_v38, %v6675_v13 }
 0x1e8   : > { %v2051_v8 = vsel %vm676_vm1, %v2049_v0, %v2050_v36  ;;  %v2054_v26 = vrot.slane %v1948_v11, 2  ;;  %v2055_v56 = vrot.slane %v1949_v45, 2  ;;  %v2148_v23 = vadd.f32 %v2048_v2, %v5445_v46  ;;  %v6679_v46 = vld [vmem:[#allocation67_spill] sm:$0xff] }
 0x1e9   : > { %v2178_v42 = vadd.f32 %v2177_v25, %v2147_v58  ;;  %v2216_v34 = vmul.f32 %v2146_v1, %v2146_v1  ;;  %v2245_v7 = vadd.f32 %v2244_v62, %v2214_v10  ;;  %v6677_v12 = vunpack.c.l.bf16 %v6676_v30  ;;  %v6680_v62 = vld [vmem:[#allocation51_spill] sm:$0xff] }
 0x1ea   : > { %v6678_v9 = vunpack.c.l.bf16 %v5521_v37  ;;  %v2053_v19 = vsel %vm676_vm1, %v2050_v36, %v2052_v59  ;;  %v2057_v51 = vrot.slane %v1950_v32, 2  ;;  %v2149_v33 = vadd.f32 %v2051_v8, %v5448_v50 }
 0x1eb   : > { %v1953_v35 = vmul.f32 %v5430_v38, %v6677_v12  ;;  %v2179_v11 = vadd.f32 %v2178_v42, %v2148_v23  ;;  %v2217_v45 = vmul.f32 %v2147_v58, %v2147_v58  ;;  %v2246_v57 = vadd.f32 %v2245_v7, %v2215_v48 }
 0x1ec   : > { %v1954_v4 = vmul.f32 %v5430_v38, %v6678_v9  ;;  %v1955_v0 = vmul.f32 %v5430_v38, %v6679_v46  ;;  %v2056_v1 = vsel %vm676_vm1, %v2054_v26, %v2055_v56  ;;  %v2059_v24 = vrot.slane %v1951_v21, 2  ;;  %v6684_v9 = vld [vmem:[#allocation52_spill] sm:$0xff] }
 0x1ed   : > { %v2060_v10 = vrot.slane %v1952_v47, 2  ;;  %v2150_v49 = vadd.f32 %v2053_v19, %v5451_v39  ;;  %v2180_v37 = vadd.f32 %v2179_v11, %v2149_v33  ;;  %v2218_v2 = vmul.f32 %v2148_v23, %v2148_v23  ;;  %v6683_v39 = vld [vmem:[#allocation29_spill] sm:$0xff] }
 0x1ee   : > { %v2247_v25 = vadd.f32 %v2246_v57, %v2216_v34  ;;  %v6681_v36 = vunpack.c.l.bf16 %v6680_v62  ;;  %v6682_v50 = vunpack.c.l.bf16 %v5536_v63  ;;  %v2058_v58 = vsel %vm676_vm1, %v2055_v56, %v2057_v51 }
 0x1ef   : > { %v2062_v48 = vrot.slane %v1953_v35, 2  ;;  %v2151_v13 = vadd.f32 %v2056_v1, %v5454_v52  ;;  %v2181_v21 = vadd.f32 %v2180_v37, %v2150_v49  ;;  %v2219_v47 = vmul.f32 %v2149_v33, %v2149_v33 }
 0x1f0   : > { %v1956_v32 = vmul.f32 %v5430_v38, %v6681_v36  ;;  %v1957_v59 = vmul.f32 %v5430_v38, %v6682_v50  ;;  %v2248_v8 = vadd.f32 %v2247_v25, %v2217_v45  ;;  %v1958_v26 = vmul.f32 %v5430_v38, %v6683_v39  ;;  %v6688_v25 = vld [vmem:[#allocation23_spill] sm:$0xff] }
 0x1f1   : > { %v2061_v23 = vsel %vm676_vm1, %v2059_v24, %v2060_v10  ;;  %v2064_v42 = vrot.slane %v1954_v4, 2  ;;  %v2065_v34 = vrot.slane %v1955_v0, 2  ;;  %v2152_v7 = vadd.f32 %v2058_v58, %v5457_v54  ;;  %v6687_v54 = vld [vmem:[#allocation4_spill] sm:$0xff] }
 0x1f2   : > { %v2182_v63 = vadd.f32 %v2181_v21, %v2151_v13  ;;  %v2220_v30 = vmul.f32 %v2150_v49, %v2150_v49  ;;  %v2249_v12 = vadd.f32 %v2248_v8, %v2218_v2  ;;  %v6685_v56 = vunpack.c.l.bf16 %v6684_v9 }
 0x1f3   : > { %v6686_v52 = vunpack.c.l.bf16 %v5539_v31  ;;  %v2063_v51 = vsel %vm676_vm1, %v2060_v10, %v2062_v48  ;;  %v2067_v33 = vrot.slane %v1956_v32, 2  ;;  %v2153_v11 = vadd.f32 %v2061_v23, %v5460_v44 }
 0x1f4   : > { %v1959_v35 = vmul.f32 %v5430_v38, %v6685_v56  ;;  %v2183_v4 = vadd.f32 %v2182_v63, %v2152_v7  ;;  %v2221_v45 = vmul.f32 %v2151_v13, %v2151_v13  ;;  %v2250_v57 = vadd.f32 %v2249_v12, %v2219_v47 }
 0x1f5   : > { %v1960_v19 = vmul.f32 %v5430_v38, %v6686_v52  ;;  %v1961_v46 = vmul.f32 %v5430_v38, %v6687_v54  ;;  %v2066_v0 = vsel %vm676_vm1, %v2064_v42, %v2065_v34  ;;  %v2069_v1 = vrot.slane %v1957_v59, 2 }
 0x1f6   : > { %v2070_v24 = vrot.slane %v1958_v26, 2  ;;  %v2154_v49 = vadd.f32 %v2063_v51, %v5463_v5  ;;  %v2184_v31 = vadd.f32 %v2183_v4, %v2153_v11  ;;  %v2222_v37 = vmul.f32 %v2152_v7, %v2152_v7  ;;  %v6691_v5 = vld [vmem:[#allocation14_spill] sm:$0xff]  ;;  %v6692_v7 = vld [vmem:[#allocation39_spill] sm:$0xff] }
 0x1f7   : > { %v2251_v2 = vadd.f32 %v2250_v57, %v2220_v30  ;;  %v6689_v10 = vunpack.c.l.bf16 %v6688_v25  ;;  %v6690_v44 = vunpack.c.l.bf16 %v5542_v61  ;;  %v2068_v32 = vsel %vm676_vm1, %v2065_v34, %v2067_v33 }
 0x1f8   : > { %v2072_v50 = vrot.slane %v1959_v35, 2  ;;  %v2155_v58 = vadd.f32 %v2066_v0, %v5466_v40  ;;  %v2185_v59 = vadd.f32 %v2184_v31, %v2154_v49  ;;  %v2223_v48 = vmul.f32 %v2153_v11, %v2153_v11 }
 0x1f9   : > { %v1962_v62 = vmul.f32 %v5430_v38, %v6689_v10  ;;  %v1963_v36 = vmul.f32 %v5430_v38, %v6690_v44  ;;  %v2252_v13 = vadd.f32 %v2251_v2, %v2221_v45  ;;  %v1964_v21 = vmul.f32 %v5430_v38, %v6691_v5 }
 0x1fa   : > { %v2071_v47 = vsel %vm676_vm1, %v2069_v1, %v2070_v24  ;;  %v2074_v8 = vrot.slane %v1960_v19, 2  ;;  %v2075_v39 = vrot.slane %v1961_v46, 2  ;;  %v2156_v26 = vadd.f32 %v2068_v32, %v5470_v3  ;;  %v6695_v3 = vld [vmem:[#allocation53_spill] sm:$0xff]  ;;  %v6696_v46 = vld [vmem:[#allocation11_spill] sm:$0xff] }
 0x1fb   : > { %v2186_v61 = vadd.f32 %v2185_v59, %v2155_v58  ;;  %v2224_v23 = vmul.f32 %v2154_v49, %v2154_v49  ;;  %v2253_v42 = vadd.f32 %v2252_v13, %v2222_v37  ;;  %v6693_v34 = vunpack.c.l.bf16 %v6692_v7 }
 0x1fc   : > { %v6694_v40 = vunpack.c.l.bf16 %v5551_v41  ;;  %v2073_v12 = vsel %vm676_vm1, %v2070_v24, %v2072_v50  ;;  %v2077_v9 = vrot.slane %v1962_v62, 2  ;;  %v2157_v56 = vadd.f32 %v2071_v47, %v5481_v28 }
 0x1fd   : > { %v1965_v63 = vmul.f32 %v5430_v38, %v6693_v34  ;;  %v2187_v35 = vadd.f32 %v2186_v61, %v2156_v26  ;;  %v2225_v52 = vmul.f32 %v2155_v58, %v2155_v58  ;;  %v2254_v19 = vadd.f32 %v2253_v42, %v2223_v48  ;;  %v6700_v48 = vld [vmem:[#allocation54_spill] sm:$0xff] }
 0x1fe   : > { %v1966_v30 = vmul.f32 %v5430_v38, %v6694_v40  ;;  %v1967_v51 = vmul.f32 %v5430_v38, %v6695_v3  ;;  %v2076_v33 = vsel %vm676_vm1, %v2074_v8, %v2075_v39  ;;  %v2079_v11 = vrot.slane %v1963_v36, 2 }
 0x1ff   : > { %v2080_v4 = vrot.slane %v1964_v21, 2  ;;  %v2158_v45 = vadd.f32 %v2073_v12, %v5484_v53  ;;  %v2188_v41 = vadd.f32 %v2187_v35, %v2157_v56  ;;  %v2226_v57 = vmul.f32 %v2156_v26, %v2156_v26  ;;  %v6699_v53 = vld [vmem:[#allocation32_spill] sm:$0xff] }
 0x200   : > { %v2255_v54 = vadd.f32 %v2254_v19, %v2224_v23  ;;  %v6697_v0 = vunpack.c.l.bf16 %v6696_v46  ;;  %v6698_v28 = vunpack.c.l.bf16 %v5554_v60  ;;  %v2078_v49 = vsel %vm676_vm1, %v2075_v39, %v2077_v9  ;;  %v6704_v9 = vld [vmem:[#allocation55_spill] sm:$0xff] }
 0x201   : > { %v2082_v31 = vrot.slane %v1965_v63, 2  ;;  %v2159_v37 = vadd.f32 %v2076_v33, %v5487_v16  ;;  %v2189_v2 = vadd.f32 %v2188_v41, %v2158_v45  ;;  %v2227_v25 = vmul.f32 %v2157_v56, %v2157_v56 }
 0x202   : > { %v1968_v1 = vmul.f32 %v5430_v38, %v6697_v0  ;;  %v1969_v24 = vmul.f32 %v5430_v38, %v6698_v28  ;;  %v2256_v10 = vadd.f32 %v2255_v54, %v2225_v52  ;;  %v1970_v62 = vmul.f32 %v5430_v38, %v6699_v53  ;;  %v6708_v28 = vld [vmem:[#allocation72_spill] sm:$0xff] }
 0x203   : > { %v2081_v44 = vsel %vm676_vm1, %v2079_v11, %v2080_v4  ;;  %v2084_v36 = vrot.slane %v1966_v30, 2  ;;  %v2085_v32 = vrot.slane %v1967_v51, 2  ;;  %v2160_v50 = vadd.f32 %v2078_v49, %v5490_v22  ;;  %v6703_v22 = vld [vmem:[#allocation8_spill] sm:$0xff] }
 0x204   : > { %v2190_v60 = vadd.f32 %v2189_v2, %v2159_v37  ;;  %v2228_v58 = vmul.f32 %v2158_v45, %v2158_v45  ;;  %v2257_v59 = vadd.f32 %v2256_v10, %v2226_v57  ;;  %v6701_v13 = vunpack.c.l.bf16 %v6700_v48  ;;  %v6712_v48 = vld [vmem:[#allocation65_spill] sm:$0xff] }
 0x205   : > { %v6702_v16 = vunpack.c.l.bf16 %v5562_v15  ;;  %v2083_v47 = vsel %vm676_vm1, %v2080_v4, %v2082_v31  ;;  %v2087_v8 = vrot.slane %v1968_v1, 2  ;;  %v2161_v39 = vadd.f32 %v2081_v44, %v5493_v29 }
 0x206   : > { %v1971_v5 = vmul.f32 %v5430_v38, %v6701_v13  ;;  %v2191_v26 = vadd.f32 %v2190_v60, %v2160_v50  ;;  %v2229_v61 = vmul.f32 %v2159_v37, %v2159_v37  ;;  %v2258_v23 = vadd.f32 %v2257_v59, %v2227_v25 }
 0x207   : > { %v1972_v21 = vmul.f32 %v5430_v38, %v6702_v16  ;;  %v1973_v42 = vmul.f32 %v5430_v38, %v6703_v22  ;;  %v2086_v7 = vsel %vm676_vm1, %v2084_v36, %v2085_v32  ;;  %v2089_v34 = vrot.slane %v1969_v24, 2  ;;  %v6716_v22 = vld [vmem:[#allocation73_spill] sm:$0xff] }
 0x208   : > { %v2090_v63 = vrot.slane %v1970_v62, 2  ;;  %v2162_v40 = vadd.f32 %v2083_v47, %v5502_v27  ;;  %v2192_v15 = vadd.f32 %v2191_v26, %v2161_v39  ;;  %v2230_v30 = vmul.f32 %v2160_v50, %v2160_v50  ;;  %v6707_v27 = vld [vmem:[#allocation62_spill] sm:$0xff] }
 0x209   : > { %v2259_v12 = vadd.f32 %v2258_v23, %v2228_v58  ;;  %v6705_v56 = vunpack.c.l.bf16 %v6704_v9  ;;  %v6706_v29 = vunpack.c.l.bf16 %v5569_v55  ;;  %v2088_v19 = vsel %vm676_vm1, %v2085_v32, %v2087_v8  ;;  %v6715_v8 = vld [vmem:[#allocation60_spill] sm:$0xff]  ;;  %v6720_v9 = vld [vmem:[#allocation22_spill] sm:$0xff] }
 0x20a   : > { %v2092_v3 = vrot.slane %v1971_v5, 2  ;;  %v2163_v51 = vadd.f32 %v2086_v7, %v5505_v6  ;;  %v2193_v33 = vadd.f32 %v2192_v15, %v2162_v40  ;;  %v2231_v11 = vmul.f32 %v2161_v39, %v2161_v39  ;;  %v6713_v5 = vld [vmem:[#allocation64_spill] sm:$0xff] }
 0x20b   : > { %v1974_v35 = vmul.f32 %v5430_v38, %v6705_v56  ;;  %v1975_v52 = vmul.f32 %v5430_v38, %v6706_v29  ;;  %v2260_v4 = vadd.f32 %v2259_v12, %v2229_v61  ;;  %v1976_v45 = vmul.f32 %v5430_v38, %v6707_v27  ;;  %v6719_v12 = vld [vmem:[#allocation7_spill] sm:$0xff] }
 0x20c   : > { %v2091_v41 = vsel %vm676_vm1, %v2089_v34, %v2090_v63  ;;  %v2094_v57 = vrot.slane %v1972_v21, 2  ;;  %v2095_v54 = vrot.slane %v1973_v42, 2  ;;  %v2164_v46 = vadd.f32 %v2088_v19, %v5508_v18  ;;  %v6711_v18 = vld [vmem:[#allocation10_spill] sm:$0xff] }
 0x20d   : > { %v2194_v55 = vadd.f32 %v2193_v33, %v2163_v51  ;;  %v2232_v0 = vmul.f32 %v2162_v40, %v2162_v40  ;;  %v2261_v1 = vadd.f32 %v2260_v4, %v2230_v30  ;;  %v6709_v24 = vunpack.c.l.bf16 %v6708_v28  ;;  %v6721_v33 = vld [vmem:[#allocation71_spill] sm:$0xff] }
 0x20e   : > { %v6710_v6 = vunpack.c.l.bf16 %v5584_v17  ;;  %v2093_v37 = vsel %vm676_vm1, %v2090_v63, %v2092_v3  ;;  %v2097_v2 = vrot.slane %v1974_v35, 2  ;;  %v2165_v25 = vadd.f32 %v2091_v41, %v5511_v20 }
 0x20f   : > { %v1977_v49 = vmul.f32 %v5430_v38, %v6709_v24  ;;  %v2195_v10 = vadd.f32 %v2194_v55, %v2164_v46  ;;  %v2233_v53 = vmul.f32 %v2163_v51, %v2163_v51  ;;  %v2262_v62 = vadd.f32 %v2261_v1, %v2231_v11  ;;  %v6722_v11 = vld [vmem:[#allocation30_spill] sm:$0xff] }
 0x210   : > { %v1978_v31 = vmul.f32 %v5430_v38, %v6710_v6  ;;  %v1979_v44 = vmul.f32 %v5430_v38, %v6711_v18  ;;  %v2096_v36 = vsel %vm676_vm1, %v2094_v57, %v2095_v54  ;;  %v2099_v32 = vrot.slane %v1975_v52, 2 }
 0x211   : > { %v2100_v50 = vrot.slane %v1976_v45, 2  ;;  %v2166_v60 = vadd.f32 %v2093_v37, %v5527_v14  ;;  %v2196_v17 = vadd.f32 %v2195_v10, %v2165_v25  ;;  %v2234_v58 = vmul.f32 %v2164_v46, %v2164_v46  ;;  %v6717_v14 = vld [vmem:[#allocation28_spill] sm:$0xff] }
 0x212   : > { %v2263_v59 = vadd.f32 %v2262_v62, %v2232_v0  ;;  %v1896_v13 = vadd.f32 %v5404_v43, %v6712_v48  ;;  %v6714_v20 = vunpack.c.l.bf16 %v6713_v5  ;;  %v2098_v21 = vsel %vm676_vm1, %v2095_v54, %v2097_v2  ;;  %v6718_v43 = vld [vmem:[#allocation31_spill] sm:$0xff] }
 0x213   : > { %v2102_v47 = vrot.slane %v1977_v49, 2  ;;  %v2167_v39 = vadd.f32 %v2096_v36, %v6715_v8  ;;  %v2197_v26 = vadd.f32 %v2196_v17, %v2166_v60  ;;  %v2235_v61 = vmul.f32 %v2165_v25, %v2165_v25 }
 0x214   : > { %v1980_v16 = vmul.f32 %v5430_v38, %v6714_v20  ;;  %v2264_v23 = vadd.f32 %v2263_v59, %v2233_v53  ;;  %v1897_v42 = vadd.f32 %v6717_v14, %v6716_v22  ;;  %v2101_v7 = vsel %vm676_vm1, %v2099_v32, %v2100_v50 }
 0x215   : > { %v2104_v34 = vrot.slane %v1978_v31, 2  ;;  %v2105_v63 = vrot.slane %v1979_v44, 2  ;;  %v2168_v40 = vadd.f32 %v2098_v21, %v6718_v43  ;;  %v2198_v15 = vadd.f32 %v2197_v26, %v2167_v39 }
 0x216   : > { %v2236_v30 = vmul.f32 %v2166_v60, %v2166_v60  ;;  %v2265_v38 = vadd.f32 %v2264_v23, %v2234_v58  ;;  %v1898_v56 = vadd.f32 %v6720_v9, %v6719_v12  ;;  %v2103_v35 = vsel %vm676_vm1, %v2100_v50, %v2102_v47 }
 0x217   : > { %v2107_v29 = vrot.slane %v1980_v16, 2  ;;  %v2169_v52 = vadd.f32 %v2101_v7, %v1896_v13  ;;  %v2199_v19 = vadd.f32 %v2198_v15, %v2168_v40  ;;  %v2237_v3 = vmul.f32 %v2167_v39, %v2167_v39 }
 0x218   : > { %v2266_v51 = vadd.f32 %v2265_v38, %v2235_v61  ;;  %v1899_v4 = vadd.f32 %v6722_v11, %v6721_v33  ;;  %v2106_v27 = vsel %vm676_vm1, %v2104_v34, %v2105_v63  ;;  %v2170_v45 = vadd.f32 %v2103_v35, %v1897_v42 }
 0x219   : > { %v2200_v41 = vadd.f32 %v2199_v19, %v2169_v52  ;;  %v2238_v57 = vmul.f32 %v2168_v40, %v2168_v40  ;;  %v2108_v46 = vsel %vm676_vm1, %v2105_v63, %v2107_v29  ;;  %v2171_v55 = vadd.f32 %v2106_v27, %v1898_v56 }
 0x21a   : > { %v2267_v54 = vadd.f32 %v2266_v51, %v2236_v30  ;;  %v2239_v1 = vmul.f32 %v2169_v52, %v2169_v52  ;;  %v2172_v24 = vadd.f32 %v2108_v46, %v1899_v4  ;;  %v2240_v6 = vmul.f32 %v2170_v45, %v2170_v45 }
 0x21b   : > { %v2201_v0 = vadd.f32 %v2200_v41, %v2170_v45  ;;  %v2241_v2 = vmul.f32 %v2171_v55, %v2171_v55 }
 0x21c   : > { %v2268_v28 = vadd.f32 %v2267_v54, %v2237_v3  ;;  %v2242_v53 = vmul.f32 %v2172_v24, %v2172_v24 }
 0x21d   : > { %v2202_v49 = vadd.f32 %v2201_v0, %v2171_v55 }
 0x21e   : > { %v2269_v31 = vadd.f32 %v2268_v28, %v2238_v57 }
 0x21f   : > { %v2203_v37 = vadd.f32 %v2202_v49, %v2172_v24 }
 0x220   : > { %v2270_v25 = vadd.f32 %v2269_v31, %v2239_v1 }
 0x221   : > { %v2204_v10 = vrot.slane %v2203_v37, 4 }
 0x222   : > { %v2271_v62 = vadd.f32 %v2270_v25, %v2240_v6 }
 0x223   : > { %v2205_v18 = vadd.f32 %v2204_v10, %v2203_v37 }
 0x224   : > { %v2272_v44 = vadd.f32 %v2271_v62, %v2241_v2 }
 0x225   : > { %v2206_v36 = vrot.slane %v2205_v18, 2 }
 0x226   : > { %v2273_v32 = vadd.f32 %v2272_v44, %v2242_v53 }
 0x227   : > { %v2207_v50 = vadd.f32 %v2206_v36, %v2205_v18 }
 0x228   : > { %v2274_v60 = vrot.slane %v2273_v32, 4 }
 0x229   : > { %v2208_v17 = vrot.slane %v2207_v50, 1 }
 0x22a   : > { %v2275_v58 = vadd.f32 %v2274_v60, %v2273_v32 }
 0x22b   : > { %v2209_v59 = vadd.f32 %v2208_v17, %v2207_v50 }
 0x22c   : > { %v2276_v48 = vrot.slane %v2275_v58, 2 }
 0x22d   : > { %2210 = vst [vmem:[%s141_s24] sm:$0x1] %v2209_v59 }
 0x22e   : > { %v2277_v13 = vadd.f32 %v2276_v48, %v2275_v58 }
 0x230   : > { %v2278_v5 = vrot.slane %v2277_v13, 1 }
 0x232   : > { %v2279_v20 = vadd.f32 %v2278_v5, %v2277_v13 }
 0x234   : > { %2280 = vst [vmem:[%s141_s24 + $0x1] sm:$0x1] %v2279_v20 }
 0x235 PF: > { %s12_s9 = sadd.s32 1, %s2607_s9  }
 0x236   : > { %p9_p4 = scmp.ge.s32.totalorder %s12_s9, 4  }
 0x238   :  { %11 = sbr.rel (!%p9_p4) target bundleno = 1 (0x1), region = 60 }

// kernel: depthwise_separable_conv.3
= control target key start
LH: loop header
LB: loop body
LE: loop exit
PB: predicated region body
PF: predicated region fallthrough
CT: control target
= control target key end

     0   :  { %s3233_s18 = smov 0   ;;  %s4277_s0 = inlined_call_operand.vmem [shape: bf16[2,18,18,128], index: 0, kind: input, shape index: {}]   ;;  %s4278_s1 = inlined_call_operand.vmem [shape: f32[9,128], index: 1, kind: input, shape index: {}]   ;;  %s4279_s2 = inlined_call_operand.vmem [shape: f32[1,128], index: 2, kind: input, shape index: {}]   ;;  %s4280_s3 = inlined_call_operand.vmem [shape: bf16[128,128], index: 3, kind: input, shape index: {}]   ;;  %s4281_s4 = inlined_call_operand.vmem [shape: bf16[2,16,16,128], index: 4, kind: output, shape index: {0}]   ;;  %s4282_s5 = inlined_call_operand.vmem [shape: f32[2,2,128], index: 5, kind: output, shape index: {1}]  }
   0x1 LB: > { %s2762_s19 = sadd.s32 4294967295, %s3201_s18   ;;  %p2766_p0 = scmp.ge.s32.totalorder %s3201_s18, 1  ;;  %s3201_s18 = sphi %s3233_s18, %s16_s18  }
   0x2   : > { %p190_p1 = scmp.lt.s32.totalorder %s3201_s18, 3 }
   0x4   : > { %p191_p2 = pnand %p2766_p0, %p190_p1 }
   0x5   : > { %p222_p3 = scmp.lt.s32.totalorder (!%p191_p2), %s2762_s19, 1 }
   0x6   : > { %194 = sbr.rel (%p191_p2) target bundleno = 525 (0x20d), region = 36 }
   0xb   : > { %v2941_v0 = vld [vmem:[%s4280_s3 + $0x38] sm:$0xff]  ;;  %v2940_v1 = vld [vmem:[%s4280_s3 + $0x30] sm:$0xff]  ;;  %s4284_s19 = smov (!%p222_p3, %s2762_s19), 1  ;;  %v236_v2 = vld [vmem:[%s4278_s1] sm:$0xff]  ;;  %vm496_vm0 = vcmask 1046528   ;;  %vm770_vm1 = vcmask 1045504  }
   0xc   : > { %2415 = vmatpush.bf16.msra.mxu0 %v2941_v0  ;;  %3156 = vmatpush.bf16.msra.mxu1 %v2941_v0  ;;  %s3180_s26 = smul.u32 216, %s4284_s19  ;;  %v3253_v3 = vperm.slane %v236_v2, 0  ;;  %v3255_v4 = vperm.slane %v236_v2, 1  ;;  %v3257_v5 = vperm.slane %v236_v2, 2  ;;  %v2939_v6 = vld [vmem:[%s4280_s3 + $0x28] sm:$0xff]  ;;  %v3267_v7 = vperm.slane %v236_v2, 3 }
   0xd   : > { %3157 = vmatpush.bf16.msra.mxu2 %v2941_v0  ;;  %3158 = vmatpush.bf16.msra.mxu3 %v2941_v0  ;;  %v3269_v8 = vperm.slane %v236_v2, 4  ;;  %v3271_v9 = vperm.slane %v236_v2, 5  ;;  %v3273_v10 = vperm.slane %v236_v2, 6  ;;  %v3278_v14 = vperm.slane %v236_v2, 7  ;;  %v2938_v27 = vld [vmem:[%s4280_s3 + $0x20] sm:$0xff]  ;;  %v2937_v44 = vld [vmem:[%s4280_s3 + $0x18] sm:$0xff] }
   0xe   : > { %s3265_s6 = scalar_lea.vmem %s4277_s0, %s3180_s26  ;;  %v2936_v61 = vld [vmem:[%s4280_s3 + $0x10] sm:$0xff]  ;;  %s2933_s7 = sshll.u32 %s4284_s19, 7 }
   0xf   : > { %v2943_v11 = vld [vmem:[%s3265_s6] sm:$0xff]   ;;  %v367_v12 = vld [vmem:[%s3265_s6 + $0x8] sm:$0x1]  ;;  %v2771_v19 = vld [vmem:[%s3265_s6 + $0xc] sm:$0xff]   ;;  %s4198_s9 = scalar_lea.vmem %s4281_s4, %s2933_s7  ;;  %s2770_s10 = sshll.u32 %s4284_s19, 1 }
  0x10   : > { %2416 = vmatpush.bf16.msra.mxu0 %v2940_v1  ;;  %3159 = vmatpush.bf16.msra.mxu1 %v2940_v1  ;;  %v641_v13 = vld [vmem:[%s3265_s6] sm:$0xe]  ;;  %v2944_v15 = vunpack.c.l.bf16 %v2943_v11  ;;  %v2945_v16 = vunpack.c.h.bf16 %v2943_v11  ;;  %v383_v17 = vunpack.c.l.bf16 %v367_v12  ;;  %v2803_v20 = vld [vmem:[%s3265_s6 + $0x14] sm:$0x1]  ;;  %v2819_v21 = vld [vmem:[%s3265_s6 + $0xc] sm:$0xe]  ;;  %v948_v22 = vunpack.c.l.bf16 %v2771_v19  ;;  %s235_s13 = scalar_lea.vmem %s4282_s5, %s2770_s10 }
  0x11   : > { %3160 = vmatpush.bf16.msra.mxu2 %v2940_v1  ;;  %3161 = vmatpush.bf16.msra.mxu3 %v2940_v1  ;;  %v657_v18 = vunpack.c.l.bf16 %v641_v13  ;;  %v949_v23 = vunpack.c.h.bf16 %v2771_v19  ;;  %v1061_v24 = vunpack.c.l.bf16 %v2803_v20  ;;  %v1334_v25 = vunpack.c.l.bf16 %v2819_v21  ;;  %v3133_v26 = vld [vmem:[%s3265_s6 + $0x18] sm:$0xff]   ;;  %v2867_v2 = vld [vmem:[%s3265_s6 + $0x20] sm:$0x1] }
  0x12   : > { %v303_v28 = vmul.f32 %v2944_v15, %v3253_v3  ;;  %v304_v29 = vmul.f32 %v2945_v16, %v3253_v3  ;;  %v400_v30 = vmul.f32 %v2944_v15, %v3255_v4  ;;  %v3290_v31 = vunpack.c.l.bf16 %v3133_v26  ;;  %v2883_v15 = vld [vmem:[%s3265_s6 + $0x18] sm:$0xe] }
  0x13   : > { %v401_v32 = vmul.f32 %v2945_v16, %v3255_v4  ;;  %v402_v33 = vmul.f32 %v3255_v4, %v383_v17  ;;  %v674_v34 = vmul.f32 %v3257_v5, %v657_v18  ;;  %v675_v35 = vmul.f32 %v2945_v16, %v3257_v5  ;;  %v3324_v16 = vld [vmem:[%s4278_s1 + $0x8] ss:$0 sm:$0xff] }
  0x14   : > { %2417 = vmatpush.bf16.msra.mxu0 %v2939_v6  ;;  %3162 = vmatpush.bf16.msra.mxu1 %v2939_v6  ;;  %v497_v36 = vrot.slane %v400_v30, 1  ;;  %v676_v37 = vmul.f32 %v3257_v5, %v383_v17  ;;  %v981_v38 = vmul.f32 %v3267_v7, %v948_v22  ;;  %v982_v39 = vmul.f32 %v3267_v7, %v949_v23  ;;  %v3119_v30 = vld [vmem:[%s3265_s6 + $0x30] sm:$0xff]  }
  0x15   : > { %3163 = vmatpush.bf16.msra.mxu2 %v2939_v6  ;;  %3164 = vmatpush.bf16.msra.mxu3 %v2939_v6  ;;  %v498_v40 = vrot.slane %v401_v32, 1  ;;  %v500_v41 = vrot.slane %v402_v33, 1  ;;  %v771_v42 = vrot.slane %v674_v34, 2  ;;  %v772_v43 = vrot.slane %v675_v35, 2 }
  0x16   : > { %v774_v45 = vrot.slane %v676_v37, 2  ;;  %v1078_v46 = vmul.f32 %v3269_v8, %v948_v22  ;;  %v1079_v47 = vmul.f32 %v3269_v8, %v949_v23  ;;  %v1080_v48 = vmul.f32 %v3269_v8, %v1061_v24 }
  0x17   : > { %v499_v49 = vsel %vm496_vm0, %v497_v36, %v498_v40  ;;  %v501_v50 = vsel %vm496_vm0, %v498_v40, %v500_v41  ;;  %v773_v51 = vsel %vm770_vm1, %v771_v42, %v772_v43  ;;  %v1351_v52 = vmul.f32 %v3271_v9, %v1334_v25  ;;  %v2935_v25 = vld [vmem:[%s4280_s3 + $0x8] sm:$0xff] }
  0x18   : > { %2418 = vmatpush.bf16.msra.mxu0 %v2938_v27  ;;  %3165 = vmatpush.bf16.msra.mxu1 %v2938_v27  ;;  %v609_v53 = vadd.f32 %v499_v49, %v303_v28  ;;  %v610_v54 = vadd.f32 %v501_v50, %v304_v29  ;;  %v775_v55 = vsel %vm770_vm1, %v772_v43, %v774_v45  ;;  %v1174_v56 = vrot.slane %v1078_v46, 1  ;;  %v2934_v45 = vld [vmem:[%s4280_s3] sm:$0xff]  ;;  %v645_v50 = vld [vmem:[%s3265_s6 + $0x30] sm:$0xe] }
  0x19   : > { %3166 = vmatpush.bf16.msra.mxu2 %v2938_v27  ;;  %3167 = vmatpush.bf16.msra.mxu3 %v2938_v27  ;;  %v1175_v57 = vrot.slane %v1079_v47, 1  ;;  %v1177_v58 = vrot.slane %v1080_v48, 1  ;;  %v1352_v59 = vmul.f32 %v3271_v9, %v949_v23  ;;  %v1353_v60 = vmul.f32 %v3271_v9, %v1061_v24 }
  0x1a   : > { %v883_v62 = vadd.f32 %v773_v51, %v609_v53  ;;  %v884_v63 = vadd.f32 %v775_v55, %v610_v54  ;;  %v1447_v0 = vrot.slane %v1351_v52, 2  ;;  %v3315_v1 = vunpack.c.h.bf16 %v3133_v26  ;;  %v2779_v55 = vld [vmem:[%s3265_s6 + $0x3c] sm:$0xff]  }
  0x1b   : > { %v1176_v6 = vsel %vm496_vm0, %v1174_v56, %v1175_v57  ;;  %v1178_v11 = vsel %vm496_vm0, %v1175_v57, %v1177_v58  ;;  %v1448_v12 = vrot.slane %v1352_v59, 2  ;;  %v1450_v13 = vrot.slane %v1353_v60, 2  ;;  %v3364_v59 = vld [vmem:[%s4279_s2] ss:$0 sm:$0xff] }
  0x1c   : > { %2419 = vmatpush.bf16.msra.mxu0 %v2937_v44  ;;  %3168 = vmatpush.bf16.msra.mxu1 %v2937_v44  ;;  %v1013_v17 = vadd.f32 %v981_v38, %v883_v62  ;;  %v1014_v18 = vadd.f32 %v982_v39, %v884_v63  ;;  %v1657_v19 = vmul.f32 %v3290_v31, %v3273_v10  ;;  %v1737_v23 = vunpack.c.l.bf16 %v2867_v2 }
  0x1d   : > { %3169 = vmatpush.bf16.msra.mxu2 %v2937_v44  ;;  %v1658_v20 = vmul.f32 %v3315_v1, %v3273_v10  ;;  %3170 = vmatpush.bf16.msra.mxu3 %v2937_v44  ;;  %v1449_v21 = vsel %vm770_vm1, %v1447_v0, %v1448_v12  ;;  %v1451_v22 = vsel %vm770_vm1, %v1448_v12, %v1450_v13  ;;  %v2010_v29 = vunpack.c.l.bf16 %v2883_v15  ;;  %v371_v44 = vld [vmem:[%s3265_s6 + $0x38] sm:$0x1] }
  0x1e   : > { %v1754_v24 = vmul.f32 %v3290_v31, %v3278_v14  ;;  %v1286_v26 = vadd.f32 %v1176_v6, %v1013_v17  ;;  %v1287_v27 = vadd.f32 %v1178_v11, %v1014_v18  ;;  %v1755_v28 = vmul.f32 %v3315_v1, %v3278_v14 }
  0x1f   : > { %v1756_v32 = vmul.f32 %v3278_v14, %v1737_v23  ;;  %v2028_v34 = vmul.f32 %v3324_v16, %v3315_v1  ;;  %v2029_v35 = vmul.f32 %v3324_v16, %v1737_v23  ;;  %v2027_v39 = vmul.f32 %v3324_v16, %v2010_v29 }
  0x20   : > { %2420 = vmatpush.bf16.msra.mxu0 %v2936_v61  ;;  %3171 = vmatpush.bf16.msra.mxu1 %v2936_v61  ;;  %v1850_v33 = vrot.slane %v1754_v24, 1  ;;  %v1559_v36 = vadd.f32 %v1449_v21, %v1286_v26  ;;  %v1560_v37 = vadd.f32 %v1451_v22, %v1287_v27  ;;  %v1851_v38 = vrot.slane %v1755_v28, 1  ;;  %v2807_v27 = vld [vmem:[%s3265_s6 + $0x44] sm:$0x1] }
  0x21   : > { %3172 = vmatpush.bf16.msra.mxu2 %v2936_v61  ;;  %3173 = vmatpush.bf16.msra.mxu3 %v2936_v61  ;;  %v1853_v40 = vrot.slane %v1756_v32, 1  ;;  %v2124_v41 = vrot.slane %v2028_v34, 2  ;;  %v2126_v42 = vrot.slane %v2029_v35, 2  ;;  %v3345_v43 = vunpack.c.l.bf16 %v3119_v30 }
  0x22   : > { %v1689_v46 = vadd.f32 %v1657_v19, %v1559_v36  ;;  %v1690_v47 = vadd.f32 %v1658_v20, %v1560_v37  ;;  %v1852_v48 = vsel %vm496_vm0, %v1850_v33, %v1851_v38  ;;  %v2123_v49 = vrot.slane %v2027_v39, 2  ;;  %v2823_v33 = vld [vmem:[%s3265_s6 + $0x3c] sm:$0xe] }
  0x23   : > { %v1854_v51 = vsel %vm496_vm0, %v1851_v38, %v1853_v40  ;;  %v2127_v52 = vsel %vm770_vm1, %v2124_v41, %v2126_v42  ;;  %v3355_v53 = vunpack.c.h.bf16 %v3119_v30  ;;  %v311_v54 = vmul.f32 %v3345_v43, %v3253_v3 }
  0x24   : > { %2421 = vmatpush.bf16.msra.mxu0 %v2935_v25  ;;  %3174 = vmatpush.bf16.msra.mxu1 %v2935_v25  ;;  %v1962_v56 = vadd.f32 %v1852_v48, %v1689_v46  ;;  %v1963_v57 = vadd.f32 %v1854_v51, %v1690_v47  ;;  %v2125_v58 = vsel %vm770_vm1, %v2123_v49, %v2124_v41  ;;  %v387_v60 = vunpack.c.l.bf16 %v371_v44  ;;  %v3135_v47 = vld [vmem:[%s3265_s6 + $0x48] sm:$0xff]  }
  0x25   : > { %3175 = vmatpush.bf16.msra.mxu2 %v2935_v25  ;;  %3176 = vmatpush.bf16.msra.mxu3 %v2935_v25  ;;  %v312_v61 = vmul.f32 %v3355_v53, %v3253_v3  ;;  %v412_v62 = vmul.f32 %v3345_v43, %v3255_v4  ;;  %v413_v63 = vmul.f32 %v3355_v53, %v3255_v4  ;;  %v661_v0 = vunpack.c.l.bf16 %v645_v50 }
  0x26   : > { %v2235_v2 = vadd.f32 %v2125_v58, %v1962_v56  ;;  %v2236_v6 = vadd.f32 %v2127_v52, %v1963_v57  ;;  %v414_v11 = vmul.f32 %v3255_v4, %v387_v60  ;;  %v956_v12 = vunpack.c.l.bf16 %v2779_v55  ;;  %v2871_v57 = vld [vmem:[%s3265_s6 + $0x50] sm:$0x1] }
  0x27   : > { %v517_v13 = vrot.slane %v412_v62, 1  ;;  %v518_v15 = vrot.slane %v413_v63, 1  ;;  %v686_v17 = vmul.f32 %v3257_v5, %v661_v0  ;;  %v687_v18 = vmul.f32 %v3355_v53, %v3257_v5 }
  0x28   : > { %2422 = vmatpush.bf16.msra.mxu0 %v2934_v45  ;;  %3177 = vmatpush.bf16.msra.mxu1 %v2934_v45  ;;  %v2271_v19 = vadd.f32 %v3364_v59, %v2235_v2  ;;  %v2272_v20 = vadd.f32 %v3364_v59, %v2236_v6  ;;  %v520_v21 = vrot.slane %v414_v11, 1  ;;  %v688_v22 = vmul.f32 %v3257_v5, %v387_v60 }
  0x29   : > { %3178 = vmatpush.bf16.msra.mxu2 %v2934_v45  ;;  %3179 = vmatpush.bf16.msra.mxu3 %v2934_v45  ;;  %v519_v23 = vsel %vm496_vm0, %v517_v13, %v518_v15  ;;  %v791_v24 = vrot.slane %v686_v17, 2  ;;  %v792_v25 = vrot.slane %v687_v18, 2  ;;  %v957_v26 = vunpack.c.h.bf16 %v2779_v55  ;;  %v2887_v17 = vld [vmem:[%s3265_s6 + $0x48] sm:$0xe] }
  0x2a   : > { %v2303_v28 = vmax.f32 %v2271_v19, 0.0  ;;  %v2304_v29 = vmax.f32 %v2272_v20, 0.0  ;;  %v521_v30 = vsel %vm496_vm0, %v518_v15, %v520_v21  ;;  %v617_v32 = vadd.f32 %v519_v23, %v311_v54 }
  0x2b   : > { %v618_v34 = vadd.f32 %v521_v30, %v312_v61  ;;  %v793_v35 = vsel %vm770_vm1, %v791_v24, %v792_v25  ;;  %v794_v36 = vrot.slane %v688_v22, 2  ;;  %v989_v37 = vmul.f32 %v3267_v7, %v956_v12  ;;  %v240_v30 = vld [vmem:[%s3265_s6 + $0xc] sm:$0xff]  }
  0x2c   : > { %v2335_v38 = vpack.c.bf16 %v2304_v29, %v2303_v28  ;;  %v891_v39 = vadd.f32 %v793_v35, %v617_v32  ;;  %v990_v40 = vmul.f32 %v3267_v7, %v957_v26  ;;  %v1065_v41 = vunpack.c.l.bf16 %v2807_v27 }
  0x2d   : > { %v795_v42 = vsel %vm770_vm1, %v792_v25, %v794_v36  ;;  %v1090_v44 = vmul.f32 %v3269_v8, %v956_v12  ;;  %v1091_v45 = vmul.f32 %v3269_v8, %v957_v26  ;;  %v1338_v46 = vunpack.c.l.bf16 %v2823_v33 }
  0x2e   : > { %2423 = vmatmul.bf16.vlgmr.msra.gmra.mxu0 %v2335_v38  ;;  %v892_v48 = vadd.f32 %v795_v42, %v618_v34  ;;  %v1021_v49 = vadd.f32 %v989_v37, %v891_v39  ;;  %v1092_v50 = vmul.f32 %v3269_v8, %v1065_v41  ;;  %v1364_v51 = vmul.f32 %v3271_v9, %v957_v26 }
  0x2f   : > { %v1194_v52 = vrot.slane %v1090_v44, 1  ;;  %v1195_v54 = vrot.slane %v1091_v45, 1  ;;  %v1363_v55 = vmul.f32 %v3271_v9, %v1338_v46  ;;  %v1365_v56 = vmul.f32 %v3271_v9, %v1065_v41  ;;  %v642_v46 = vld [vmem:[%s3265_s6 + $0xc] sm:$0xe] }
  0x30   : > { %v1022_v58 = vadd.f32 %v990_v40, %v892_v48  ;;  %v1197_v60 = vrot.slane %v1092_v50, 1  ;;  %v1468_v61 = vrot.slane %v1364_v51, 2  ;;  %v3395_v62 = vunpack.c.l.bf16 %v3135_v47  ;;  %v368_v40 = vld [vmem:[%s3265_s6 + $0x14] sm:$0x1] }
  0x31   : > { %v1196_v63 = vsel %vm496_vm0, %v1194_v52, %v1195_v54  ;;  %v1467_v0 = vrot.slane %v1363_v55, 2  ;;  %v1470_v2 = vrot.slane %v1365_v56, 2  ;;  %v3398_v6 = vunpack.c.h.bf16 %v3135_v47 }
  0x32   : > { %v1198_v11 = vsel %vm496_vm0, %v1195_v54, %v1197_v60  ;;  %v1294_v12 = vadd.f32 %v1196_v63, %v1021_v49  ;;  %v1665_v13 = vmul.f32 %v3395_v62, %v3273_v10  ;;  %v1741_v15 = vunpack.c.l.bf16 %v2871_v57 }
  0x33   : > { %v1295_v18 = vadd.f32 %v1198_v11, %v1022_v58  ;;  %v1469_v19 = vsel %vm770_vm1, %v1467_v0, %v1468_v61  ;;  %v1471_v20 = vsel %vm770_vm1, %v1468_v61, %v1470_v2  ;;  %v1666_v21 = vmul.f32 %v3398_v6, %v3273_v10 }
  0x34   : > { %v1567_v22 = vadd.f32 %v1469_v19, %v1294_v12  ;;  %v1766_v23 = vmul.f32 %v3395_v62, %v3278_v14  ;;  %v1767_v24 = vmul.f32 %v3398_v6, %v3278_v14  ;;  %v1768_v25 = vmul.f32 %v3278_v14, %v1741_v15 }
  0x35   : > { %v1568_v26 = vadd.f32 %v1471_v20, %v1295_v18  ;;  %v2014_v27 = vunpack.c.l.bf16 %v2887_v17  ;;  %v2040_v28 = vmul.f32 %v3324_v16, %v3398_v6  ;;  %v2041_v29 = vmul.f32 %v3324_v16, %v1741_v15 }
  0x36   : > { %v1697_v32 = vadd.f32 %v1665_v13, %v1567_v22  ;;  %v1870_v33 = vrot.slane %v1766_v23, 1  ;;  %v1871_v34 = vrot.slane %v1767_v24, 1  ;;  %v1873_v35 = vrot.slane %v1768_v25, 1 }
  0x37   : > { %v1698_v36 = vadd.f32 %v1666_v21, %v1568_v26  ;;  %v2039_v37 = vmul.f32 %v3324_v16, %v2014_v27  ;;  %v2144_v38 = vrot.slane %v2040_v28, 2  ;;  %v2146_v39 = vrot.slane %v2041_v29, 2  ;;  %v2804_v21 = vld [vmem:[%s3265_s6 + $0x20] sm:$0x1] }
  0x38   : > { %v1872_v41 = vsel %vm496_vm0, %v1870_v33, %v1871_v34  ;;  %v1874_v42 = vsel %vm496_vm0, %v1871_v34, %v1873_v35  ;;  %v272_v44 = vunpack.c.l.bf16 %v240_v30  ;;  %v273_v45 = vunpack.c.h.bf16 %v240_v30  ;;  %v2820_v30 = vld [vmem:[%s3265_s6 + $0x18] sm:$0xe] }
  0x39   : > { %v1970_v47 = vadd.f32 %v1872_v41, %v1697_v32  ;;  %v1971_v48 = vadd.f32 %v1874_v42, %v1698_v36  ;;  %v2143_v49 = vrot.slane %v2039_v37, 2  ;;  %v2147_v50 = vsel %vm770_vm1, %v2144_v38, %v2146_v39 }
  0x3a   : > { %v305_v51 = vmul.f32 %v3253_v3, %v272_v44  ;;  %v306_v52 = vmul.f32 %v3253_v3, %v273_v45  ;;  %v384_v54 = vunpack.c.l.bf16 %v368_v40  ;;  %v403_v55 = vmul.f32 %v3255_v4, %v272_v44 }
  0x3b   : > { %v2145_v56 = vsel %vm770_vm1, %v2143_v49, %v2144_v38  ;;  %v2244_v57 = vadd.f32 %v2147_v50, %v1971_v48  ;;  %v404_v58 = vmul.f32 %v3255_v4, %v273_v45  ;;  %v658_v60 = vunpack.c.l.bf16 %v642_v46  ;;  %v2868_v50 = vld [vmem:[%s3265_s6 + $0x2c] sm:$0x1] }
  0x3c   : > { %v2243_v61 = vadd.f32 %v2145_v56, %v1970_v47  ;;  %v405_v63 = vmul.f32 %v3255_v4, %v384_v54  ;;  %v502_v0 = vrot.slane %v403_v55, 1  ;;  %v678_v2 = vmul.f32 %v3257_v5, %v273_v45  ;;  %v2837_v45 = vld [vmem:[%s3265_s6 + $0x24] sm:$0xff]  }
  0x3d   : > { %v2280_v11 = vadd.f32 %v3364_v59, %v2244_v57  ;;  %v503_v12 = vrot.slane %v404_v58, 1  ;;  %v677_v13 = vmul.f32 %v3257_v5, %v658_v60  ;;  %v679_v15 = vmul.f32 %v3257_v5, %v384_v54 }
  0x3e   : > { %v2279_v17 = vadd.f32 %v3364_v59, %v2243_v61  ;;  %v505_v18 = vrot.slane %v405_v63, 1  ;;  %v777_v19 = vrot.slane %v678_v2, 2  ;;  %v983_v20 = vmul.f32 %v3290_v31, %v3267_v7 }
  0x3f   : > { %v2312_v22 = vmax.f32 %v2280_v11, 0.0  ;;  %v504_v23 = vsel %vm496_vm0, %v502_v0, %v503_v12  ;;  %v776_v24 = vrot.slane %v677_v13, 2  ;;  %v779_v25 = vrot.slane %v679_v15, 2  ;;  %v2884_v11 = vld [vmem:[%s3265_s6 + $0x24] sm:$0xe] }
  0x40   : > { %v2311_v26 = vmax.f32 %v2279_v17, 0.0  ;;  %v506_v27 = vsel %vm496_vm0, %v503_v12, %v505_v18  ;;  %v611_v28 = vadd.f32 %v504_v23, %v305_v51  ;;  %v984_v29 = vmul.f32 %v3315_v1, %v3267_v7 }
  0x41   : > { %v612_v32 = vadd.f32 %v506_v27, %v306_v52  ;;  %v778_v33 = vsel %vm770_vm1, %v776_v24, %v777_v19  ;;  %v780_v34 = vsel %vm770_vm1, %v777_v19, %v779_v25  ;;  %v1062_v35 = vunpack.c.l.bf16 %v2804_v21 }
  0x42   : > { %v2339_v36 = vpack.c.bf16 %v2312_v22, %v2311_v26  ;;  %v885_v37 = vadd.f32 %v778_v33, %v611_v28  ;;  %v1081_v38 = vmul.f32 %v3290_v31, %v3269_v8  ;;  %v1082_v39 = vmul.f32 %v3315_v1, %v3269_v8  ;;  %v3121_v26 = vld [vmem:[%s3265_s6 + $0x60] sm:$0xff]  }
  0x43   : > { %v886_v40 = vadd.f32 %v780_v34, %v612_v32  ;;  %v1083_v41 = vmul.f32 %v3269_v8, %v1062_v35  ;;  %v1335_v42 = vunpack.c.l.bf16 %v2820_v30  ;;  %v1355_v44 = vmul.f32 %v3315_v1, %v3271_v9 }
  0x44   : > { %2443 = vmatmul.bf16.vlgmr.msra.gmra.mxu1 %v2339_v36  ;;  %v1015_v46 = vadd.f32 %v983_v20, %v885_v37  ;;  %v1179_v47 = vrot.slane %v1081_v38, 1  ;;  %v1180_v48 = vrot.slane %v1082_v39, 1  ;;  %v1356_v49 = vmul.f32 %v3271_v9, %v1062_v35  ;;  %v375_v36 = vld [vmem:[%s3265_s6 + $0x68] sm:$0x1] }
  0x45   : > { %v1016_v51 = vadd.f32 %v984_v29, %v886_v40  ;;  %v1182_v52 = vrot.slane %v1083_v41, 1  ;;  %v1354_v54 = vmul.f32 %v3271_v9, %v1335_v42  ;;  %v1453_v55 = vrot.slane %v1355_v44, 2 }
  0x46   : > { %v1181_v56 = vsel %vm496_vm0, %v1179_v47, %v1180_v48  ;;  %v1455_v57 = vrot.slane %v1356_v49, 2  ;;  %v1626_v58 = vunpack.c.l.bf16 %v2837_v45  ;;  %v1627_v60 = vunpack.c.h.bf16 %v2837_v45 }
  0x47   : > { %v1183_v61 = vsel %vm496_vm0, %v1180_v48, %v1182_v52  ;;  %v1288_v63 = vadd.f32 %v1181_v56, %v1015_v46  ;;  %v1452_v0 = vrot.slane %v1354_v54, 2  ;;  %v1738_v2 = vunpack.c.l.bf16 %v2868_v50  ;;  %v649_v46 = vld [vmem:[%s3265_s6 + $0x60] sm:$0xe]  ;;  %v2787_v56 = vld [vmem:[%s3265_s6 + $0x6c] sm:$0xff]  }
  0x48   : > { %v1289_v12 = vadd.f32 %v1183_v61, %v1016_v51  ;;  %v1456_v13 = vsel %vm770_vm1, %v1453_v55, %v1455_v57  ;;  %v1659_v15 = vmul.f32 %v3273_v10, %v1626_v58  ;;  %v1660_v17 = vmul.f32 %v3273_v10, %v1627_v60 }
  0x49   : > { %v1454_v18 = vsel %vm770_vm1, %v1452_v0, %v1453_v55  ;;  %v1757_v19 = vmul.f32 %v3278_v14, %v1626_v58  ;;  %v1758_v20 = vmul.f32 %v3278_v14, %v1627_v60  ;;  %v1759_v21 = vmul.f32 %v3278_v14, %v1738_v2 }
  0x4a   : > { %v1561_v22 = vadd.f32 %v1454_v18, %v1288_v63  ;;  %v1562_v23 = vadd.f32 %v1456_v13, %v1289_v12  ;;  %v2011_v24 = vunpack.c.l.bf16 %v2884_v11  ;;  %v2031_v25 = vmul.f32 %v3324_v16, %v1627_v60 }
  0x4b   : > { %v1855_v27 = vrot.slane %v1757_v19, 1  ;;  %v1856_v28 = vrot.slane %v1758_v20, 1  ;;  %v1858_v29 = vrot.slane %v1759_v21, 1  ;;  %v2032_v30 = vmul.f32 %v3324_v16, %v1738_v2 }
  0x4c   : > { %v1691_v32 = vadd.f32 %v1659_v15, %v1561_v22  ;;  %v1692_v33 = vadd.f32 %v1660_v17, %v1562_v23  ;;  %v2030_v34 = vmul.f32 %v3324_v16, %v2011_v24  ;;  %v2129_v35 = vrot.slane %v2031_v25, 2  ;;  %v2811_v22 = vld [vmem:[%s3265_s6 + $0x74] sm:$0x1] }
  0x4d   : > { %v1857_v37 = vsel %vm496_vm0, %v1855_v27, %v1856_v28  ;;  %v1859_v38 = vsel %vm496_vm0, %v1856_v28, %v1858_v29  ;;  %v2131_v39 = vrot.slane %v2032_v30, 2  ;;  %v2960_v40 = vunpack.c.l.bf16 %v3121_v26 }
  0x4e   : > { %v1964_v41 = vadd.f32 %v1857_v37, %v1691_v32  ;;  %v1965_v42 = vadd.f32 %v1859_v38, %v1692_v33  ;;  %v2128_v44 = vrot.slane %v2030_v34, 2  ;;  %v2961_v45 = vunpack.c.h.bf16 %v3121_v26  ;;  %v2827_v32 = vld [vmem:[%s3265_s6 + $0x6c] sm:$0xe] }
  0x4f   : > { %v2132_v47 = vsel %vm770_vm1, %v2129_v35, %v2131_v39  ;;  %v319_v48 = vmul.f32 %v2960_v40, %v3253_v3  ;;  %v391_v49 = vunpack.c.l.bf16 %v375_v36  ;;  %v424_v50 = vmul.f32 %v2960_v40, %v3255_v4 }
  0x50   : > { %v2130_v51 = vsel %vm770_vm1, %v2128_v44, %v2129_v35  ;;  %v2238_v52 = vadd.f32 %v2132_v47, %v1965_v42  ;;  %v320_v54 = vmul.f32 %v2961_v45, %v3253_v3  ;;  %v425_v55 = vmul.f32 %v2961_v45, %v3255_v4  ;;  %v2875_v47 = vld [vmem:[%s3265_s6 + $0x80] sm:$0x1] }
  0x51   : > { %v2237_v57 = vadd.f32 %v2130_v51, %v1964_v41  ;;  %v426_v58 = vmul.f32 %v3255_v4, %v391_v49  ;;  %v537_v60 = vrot.slane %v424_v50, 1  ;;  %v665_v61 = vunpack.c.l.bf16 %v649_v46  ;;  %v3137_v41 = vld [vmem:[%s3265_s6 + $0x78] sm:$0xff]  }
  0x52   : > { %v2274_v63 = vadd.f32 %v3364_v59, %v2238_v52  ;;  %v538_v0 = vrot.slane %v425_v55, 1  ;;  %v699_v2 = vmul.f32 %v2961_v45, %v3257_v5  ;;  %v700_v11 = vmul.f32 %v3257_v5, %v391_v49 }
  0x53   : > { %v2273_v12 = vadd.f32 %v3364_v59, %v2237_v57  ;;  %v540_v13 = vrot.slane %v426_v58, 1  ;;  %v698_v15 = vmul.f32 %v3257_v5, %v665_v61  ;;  %v964_v17 = vunpack.c.l.bf16 %v2787_v56 }
  0x54   : > { %v2306_v18 = vmax.f32 %v2274_v63, 0.0  ;;  %v539_v19 = vsel %vm496_vm0, %v537_v60, %v538_v0  ;;  %v812_v20 = vrot.slane %v699_v2, 2  ;;  %v814_v21 = vrot.slane %v700_v11, 2  ;;  %v2891_v63 = vld [vmem:[%s3265_s6 + $0x78] sm:$0xe] }
  0x55   : > { %v2305_v23 = vmax.f32 %v2273_v12, 0.0  ;;  %v541_v24 = vsel %vm496_vm0, %v538_v0, %v540_v13  ;;  %v625_v25 = vadd.f32 %v539_v19, %v319_v48  ;;  %v811_v26 = vrot.slane %v698_v15, 2 }
  0x56   : > { %v626_v27 = vadd.f32 %v541_v24, %v320_v54  ;;  %v815_v28 = vsel %vm770_vm1, %v812_v20, %v814_v21  ;;  %v965_v29 = vunpack.c.h.bf16 %v2787_v56  ;;  %v997_v30 = vmul.f32 %v3267_v7, %v964_v17 }
  0x57   : > { %v2336_v33 = vpack.c.bf16 %v2306_v18, %v2305_v23  ;;  %v813_v34 = vsel %vm770_vm1, %v811_v26, %v812_v20  ;;  %v1069_v35 = vunpack.c.l.bf16 %v2811_v22  ;;  %v1102_v36 = vmul.f32 %v3269_v8, %v964_v17  ;;  %v248_v23 = vld [vmem:[%s3265_s6 + $0x3c] sm:$0xff]  }
  0x58   : > { %v899_v37 = vadd.f32 %v813_v34, %v625_v25  ;;  %v900_v38 = vadd.f32 %v815_v28, %v626_v27  ;;  %v998_v39 = vmul.f32 %v3267_v7, %v965_v29  ;;  %v1103_v40 = vmul.f32 %v3269_v8, %v965_v29 }
  0x59   : > { %2428 = vmatmul.bf16.gmra.mxu0 %v2336_v33  ;;  %v1104_v42 = vmul.f32 %v3269_v8, %v1069_v35  ;;  %v1214_v44 = vrot.slane %v1102_v36, 1  ;;  %v1342_v45 = vunpack.c.l.bf16 %v2827_v32  ;;  %v1376_v46 = vmul.f32 %v3271_v9, %v965_v29 }
  0x5a   : > { %v1029_v48 = vadd.f32 %v997_v30, %v899_v37  ;;  %v1030_v49 = vadd.f32 %v998_v39, %v900_v38  ;;  %v1215_v50 = vrot.slane %v1103_v40, 1  ;;  %v1377_v51 = vmul.f32 %v3271_v9, %v1069_v35  ;;  %v372_v37 = vld [vmem:[%s3265_s6 + $0x44] sm:$0x1] }
  0x5b   : > { %v1217_v52 = vrot.slane %v1104_v42, 1  ;;  %v1375_v54 = vmul.f32 %v3271_v9, %v1342_v45  ;;  %v1488_v55 = vrot.slane %v1376_v46, 2  ;;  %v3502_v56 = vunpack.c.l.bf16 %v3137_v41 }
  0x5c   : > { %v1216_v57 = vsel %vm496_vm0, %v1214_v44, %v1215_v50  ;;  %v1490_v58 = vrot.slane %v1377_v51, 2  ;;  %v3505_v60 = vunpack.c.h.bf16 %v3137_v41  ;;  %v1745_v61 = vunpack.c.l.bf16 %v2875_v47  ;;  %v646_v47 = vld [vmem:[%s3265_s6 + $0x3c] sm:$0xe] }
  0x5d   : > { %v1218_v0 = vsel %vm496_vm0, %v1215_v50, %v1217_v52  ;;  %v1302_v2 = vadd.f32 %v1216_v57, %v1029_v48  ;;  %v1487_v11 = vrot.slane %v1375_v54, 2  ;;  %v1673_v12 = vmul.f32 %v3502_v56, %v3273_v10 }
  0x5e   : > { %v1303_v13 = vadd.f32 %v1218_v0, %v1030_v49  ;;  %v1491_v15 = vsel %vm770_vm1, %v1488_v55, %v1490_v58  ;;  %v1674_v17 = vmul.f32 %v3505_v60, %v3273_v10  ;;  %v1778_v18 = vmul.f32 %v3502_v56, %v3278_v14 }
  0x5f   : > { %v1489_v19 = vsel %vm770_vm1, %v1487_v11, %v1488_v55  ;;  %v1779_v20 = vmul.f32 %v3505_v60, %v3278_v14  ;;  %v1780_v21 = vmul.f32 %v3278_v14, %v1745_v61  ;;  %v2018_v22 = vunpack.c.l.bf16 %v2891_v63 }
  0x60   : > { %v1575_v24 = vadd.f32 %v1489_v19, %v1302_v2  ;;  %v1576_v25 = vadd.f32 %v1491_v15, %v1303_v13  ;;  %v1890_v26 = vrot.slane %v1778_v18, 1  ;;  %v2052_v27 = vmul.f32 %v3324_v16, %v3505_v60 }
  0x61   : > { %v1891_v28 = vrot.slane %v1779_v20, 1  ;;  %v1893_v29 = vrot.slane %v1780_v21, 1  ;;  %v2051_v30 = vmul.f32 %v3324_v16, %v2018_v22  ;;  %v2053_v32 = vmul.f32 %v3324_v16, %v1745_v61  ;;  %v2808_v20 = vld [vmem:[%s3265_s6 + $0x50] sm:$0x1] }
  0x62   : > { %v1705_v33 = vadd.f32 %v1673_v12, %v1575_v24  ;;  %v1706_v34 = vadd.f32 %v1674_v17, %v1576_v25  ;;  %v2164_v35 = vrot.slane %v2052_v27, 2  ;;  %v280_v36 = vunpack.c.l.bf16 %v248_v23  ;;  %v2824_v25 = vld [vmem:[%s3265_s6 + $0x48] sm:$0xe] }
  0x63   : > { %v1892_v38 = vsel %vm496_vm0, %v1890_v26, %v1891_v28  ;;  %v1894_v39 = vsel %vm496_vm0, %v1891_v28, %v1893_v29  ;;  %v2163_v40 = vrot.slane %v2051_v30, 2  ;;  %v2166_v41 = vrot.slane %v2053_v32, 2 }
  0x64   : > { %v1978_v42 = vadd.f32 %v1892_v38, %v1705_v33  ;;  %v1979_v44 = vadd.f32 %v1894_v39, %v1706_v34  ;;  %v281_v45 = vunpack.c.h.bf16 %v248_v23  ;;  %v313_v46 = vmul.f32 %v3253_v3, %v280_v36 }
  0x65   : > { %v2165_v48 = vsel %vm770_vm1, %v2163_v40, %v2164_v35  ;;  %v2167_v49 = vsel %vm770_vm1, %v2164_v35, %v2166_v41  ;;  %v388_v50 = vunpack.c.l.bf16 %v372_v37  ;;  %v415_v51 = vmul.f32 %v3255_v4, %v280_v36 }
  0x66   : > { %v2251_v52 = vadd.f32 %v2165_v48, %v1978_v42  ;;  %v2252_v54 = vadd.f32 %v2167_v49, %v1979_v44  ;;  %v314_v55 = vmul.f32 %v3253_v3, %v281_v45  ;;  %v416_v57 = vmul.f32 %v3255_v4, %v281_v45  ;;  %v2845_v44 = vld [vmem:[%s3265_s6 + $0x54] sm:$0xff]   ;;  %v2872_v48 = vld [vmem:[%s3265_s6 + $0x5c] sm:$0x1] }
  0x67   : > { %v417_v58 = vmul.f32 %v3255_v4, %v388_v50  ;;  %v522_v61 = vrot.slane %v415_v51, 1  ;;  %v662_v63 = vunpack.c.l.bf16 %v646_v47  ;;  %v690_v0 = vmul.f32 %v3257_v5, %v281_v45 }
  0x68   : > { %v2287_v2 = vadd.f32 %v3364_v59, %v2251_v52  ;;  %v2288_v11 = vadd.f32 %v3364_v59, %v2252_v54  ;;  %v523_v12 = vrot.slane %v416_v57, 1  ;;  %v691_v13 = vmul.f32 %v3257_v5, %v388_v50 }
  0x69   : > { %v525_v15 = vrot.slane %v417_v58, 1  ;;  %v689_v17 = vmul.f32 %v3257_v5, %v662_v63  ;;  %v797_v18 = vrot.slane %v690_v0, 2  ;;  %v991_v19 = vmul.f32 %v3395_v62, %v3267_v7 }
  0x6a   : > { %v2319_v21 = vmax.f32 %v2287_v2, 0.0  ;;  %v2320_v22 = vmax.f32 %v2288_v11, 0.0  ;;  %v524_v23 = vsel %vm496_vm0, %v522_v61, %v523_v12  ;;  %v799_v24 = vrot.slane %v691_v13, 2  ;;  %v2888_v2 = vld [vmem:[%s3265_s6 + $0x54] sm:$0xe] }
  0x6b   : > { %v526_v26 = vsel %vm496_vm0, %v523_v12, %v525_v15  ;;  %v619_v27 = vadd.f32 %v524_v23, %v313_v46  ;;  %v796_v28 = vrot.slane %v689_v17, 2  ;;  %v992_v29 = vmul.f32 %v3398_v6, %v3267_v7 }
  0x6c   : > { %v2343_v30 = vpack.c.bf16 %v2320_v22, %v2319_v21  ;;  %v620_v32 = vadd.f32 %v526_v26, %v314_v55  ;;  %v800_v33 = vsel %vm770_vm1, %v797_v18, %v799_v24  ;;  %v1066_v34 = vunpack.c.l.bf16 %v2808_v20 }
  0x6d   : > { %v798_v35 = vsel %vm770_vm1, %v796_v28, %v797_v18  ;;  %v1093_v36 = vmul.f32 %v3395_v62, %v3269_v8  ;;  %v1094_v37 = vmul.f32 %v3398_v6, %v3269_v8  ;;  %v1339_v38 = vunpack.c.l.bf16 %v2824_v25 }
  0x6e   : > { %2463 = vmatmul.bf16.vlgmr.msra.gmra.mxu2 %v2343_v30  ;;  %v893_v39 = vadd.f32 %v798_v35, %v619_v27  ;;  %v894_v40 = vadd.f32 %v800_v33, %v620_v32  ;;  %v1095_v41 = vmul.f32 %v3269_v8, %v1066_v34  ;;  %v1367_v42 = vmul.f32 %v3398_v6, %v3271_v9 }
  0x6f   : > { %v1199_v45 = vrot.slane %v1093_v36, 1  ;;  %v1200_v46 = vrot.slane %v1094_v37, 1  ;;  %v1366_v47 = vmul.f32 %v3271_v9, %v1339_v38  ;;  %v1368_v62 = vmul.f32 %v3271_v9, %v1066_v34 }
  0x70   : > { %v1023_v49 = vadd.f32 %v991_v19, %v893_v39  ;;  %v1024_v50 = vadd.f32 %v992_v29, %v894_v40  ;;  %v1202_v51 = vrot.slane %v1095_v41, 1  ;;  %v1473_v52 = vrot.slane %v1367_v42, 2  ;;  %v369_v29 = vld [vmem:[%s3265_s6 + $0x20] sm:$0x1]  ;;  %v643_v39 = vld [vmem:[%s3265_s6 + $0x18] sm:$0xe] }
  0x71   : > { %v1201_v54 = vsel %vm496_vm0, %v1199_v45, %v1200_v46  ;;  %v1472_v55 = vrot.slane %v1366_v47, 2  ;;  %v1475_v57 = vrot.slane %v1368_v62, 2  ;;  %v1634_v58 = vunpack.c.l.bf16 %v2845_v44 }
  0x72   : > { %v1203_v6 = vsel %vm496_vm0, %v1200_v46, %v1202_v51  ;;  %v1296_v61 = vadd.f32 %v1201_v54, %v1023_v49  ;;  %v1635_v63 = vunpack.c.h.bf16 %v2845_v44  ;;  %v1742_v0 = vunpack.c.l.bf16 %v2872_v48 }
  0x73   : > { %v1297_v11 = vadd.f32 %v1203_v6, %v1024_v50  ;;  %v1474_v12 = vsel %vm770_vm1, %v1472_v55, %v1473_v52  ;;  %v1476_v13 = vsel %vm770_vm1, %v1473_v52, %v1475_v57  ;;  %v1667_v15 = vmul.f32 %v3273_v10, %v1634_v58  ;;  %v2775_v52 = vld [vmem:[%s3265_s6 + $0x24] sm:$0xff]  }
  0x74   : > { %v1569_v17 = vadd.f32 %v1474_v12, %v1296_v61  ;;  %v1668_v18 = vmul.f32 %v3273_v10, %v1635_v63  ;;  %v1769_v19 = vmul.f32 %v3278_v14, %v1634_v58  ;;  %v1770_v20 = vmul.f32 %v3278_v14, %v1635_v63 }
  0x75   : > { %v1570_v21 = vadd.f32 %v1476_v13, %v1297_v11  ;;  %v1771_v22 = vmul.f32 %v3278_v14, %v1742_v0  ;;  %v2015_v23 = vunpack.c.l.bf16 %v2888_v2  ;;  %v2043_v24 = vmul.f32 %v3324_v16, %v1635_v63 }
  0x76   : > { %v1699_v25 = vadd.f32 %v1667_v15, %v1569_v17  ;;  %v1875_v26 = vrot.slane %v1769_v19, 1  ;;  %v1876_v27 = vrot.slane %v1770_v20, 1  ;;  %v2044_v28 = vmul.f32 %v3324_v16, %v1742_v0 }
  0x77   : > { %v1700_v30 = vadd.f32 %v1668_v18, %v1570_v21  ;;  %v1878_v32 = vrot.slane %v1771_v22, 1  ;;  %v2042_v33 = vmul.f32 %v3324_v16, %v2015_v23  ;;  %v2149_v34 = vrot.slane %v2043_v24, 2  ;;  %v2821_v23 = vld [vmem:[%s3265_s6 + $0x24] sm:$0xe] }
  0x78   : > { %v1877_v35 = vsel %vm496_vm0, %v1875_v26, %v1876_v27  ;;  %v2151_v36 = vrot.slane %v2044_v28, 2  ;;  %v307_v37 = vmul.f32 %v3290_v31, %v3253_v3  ;;  %v308_v38 = vmul.f32 %v3315_v1, %v3253_v3 }
  0x79   : > { %v1879_v40 = vsel %vm496_vm0, %v1876_v27, %v1878_v32  ;;  %v1972_v41 = vadd.f32 %v1877_v35, %v1699_v25  ;;  %v2148_v42 = vrot.slane %v2042_v33, 2  ;;  %v385_v44 = vunpack.c.l.bf16 %v369_v29 }
  0x7a   : > { %v1973_v45 = vadd.f32 %v1879_v40, %v1700_v30  ;;  %v2152_v46 = vsel %vm770_vm1, %v2149_v34, %v2151_v36  ;;  %v406_v47 = vmul.f32 %v3290_v31, %v3255_v4  ;;  %v407_v62 = vmul.f32 %v3315_v1, %v3255_v4 }
  0x7b   : > { %v2150_v48 = vsel %vm770_vm1, %v2148_v42, %v2149_v34  ;;  %v408_v49 = vmul.f32 %v3255_v4, %v385_v44  ;;  %v659_v50 = vunpack.c.l.bf16 %v643_v39  ;;  %v681_v51 = vmul.f32 %v3315_v1, %v3257_v5  ;;  %v2805_v1 = vld [vmem:[%s3265_s6 + $0x2c] sm:$0x1] }
  0x7c   : > { %v2245_v54 = vadd.f32 %v2150_v48, %v1972_v41  ;;  %v2246_v55 = vadd.f32 %v2152_v46, %v1973_v45  ;;  %v507_v57 = vrot.slane %v406_v47, 1  ;;  %v508_v58 = vrot.slane %v407_v62, 1  ;;  %v2869_v41 = vld [vmem:[%s3265_s6 + $0x38] sm:$0x1] }
  0x7d   : > { %v510_v6 = vrot.slane %v408_v49, 1  ;;  %v680_v31 = vmul.f32 %v3257_v5, %v659_v50  ;;  %v682_v61 = vmul.f32 %v3257_v5, %v385_v44  ;;  %v782_v63 = vrot.slane %v681_v51, 2  ;;  %v2885_v50 = vld [vmem:[%s3265_s6 + $0x30] sm:$0xe] }
  0x7e   : > { %v2281_v0 = vadd.f32 %v3364_v59, %v2245_v54  ;;  %v2282_v2 = vadd.f32 %v3364_v59, %v2246_v55  ;;  %v509_v11 = vsel %vm496_vm0, %v507_v57, %v508_v58  ;;  %v952_v12 = vunpack.c.l.bf16 %v2775_v52 }
  0x7f   : > { %v511_v13 = vsel %vm496_vm0, %v508_v58, %v510_v6  ;;  %v613_v15 = vadd.f32 %v509_v11, %v307_v37  ;;  %v781_v17 = vrot.slane %v680_v31, 2  ;;  %v784_v18 = vrot.slane %v682_v61, 2  ;;  %v256_v11 = vld [vmem:[%s3265_s6 + $0x6c] sm:$0xff]  }
  0x80   : > { %v2313_v19 = vmax.f32 %v2281_v0, 0.0  ;;  %v2314_v20 = vmax.f32 %v2282_v2, 0.0  ;;  %v614_v21 = vadd.f32 %v511_v13, %v308_v38  ;;  %v953_v22 = vunpack.c.h.bf16 %v2775_v52 }
  0x81   : > { %v783_v24 = vsel %vm770_vm1, %v781_v17, %v782_v63  ;;  %v785_v25 = vsel %vm770_vm1, %v782_v63, %v784_v18  ;;  %v985_v26 = vmul.f32 %v3267_v7, %v952_v12  ;;  %v1063_v27 = vunpack.c.l.bf16 %v2805_v1 }
  0x82   : > { %v2340_v28 = vpack.c.bf16 %v2314_v20, %v2313_v19  ;;  %v887_v29 = vadd.f32 %v783_v24, %v613_v15  ;;  %v888_v30 = vadd.f32 %v785_v25, %v614_v21  ;;  %v986_v32 = vmul.f32 %v3267_v7, %v953_v22  ;;  %v3633_v19 = vld [vmem:[%s4278_s1 + $0x8] ss:$0 sm:$0xff]  ;;  %v376_v25 = vld [vmem:[%s3265_s6 + $0x74] sm:$0x1] }
  0x83   : > { %v1084_v33 = vmul.f32 %v3269_v8, %v952_v12  ;;  %v1085_v34 = vmul.f32 %v3269_v8, %v953_v22  ;;  %v1086_v35 = vmul.f32 %v3269_v8, %v1063_v27  ;;  %v1336_v36 = vunpack.c.l.bf16 %v2821_v23 }
  0x84   : > { %2448 = vmatmul.bf16.gmra.mxu1 %v2340_v28  ;;  %v1017_v37 = vadd.f32 %v985_v26, %v887_v29  ;;  %v1018_v38 = vadd.f32 %v986_v32, %v888_v30  ;;  %v1358_v39 = vmul.f32 %v3271_v9, %v953_v22  ;;  %v1359_v40 = vmul.f32 %v3271_v9, %v1063_v27 }
  0x85   : > { %v1184_v42 = vrot.slane %v1084_v33, 1  ;;  %v1185_v44 = vrot.slane %v1085_v34, 1  ;;  %v1187_v45 = vrot.slane %v1086_v35, 1  ;;  %v1357_v46 = vmul.f32 %v3271_v9, %v1336_v36  ;;  %v650_v33 = vld [vmem:[%s3265_s6 + $0x6c] sm:$0xe] }
  0x86   : > { %v1458_v47 = vrot.slane %v1358_v39, 2  ;;  %v1460_v62 = vrot.slane %v1359_v40, 2  ;;  %v1661_v48 = vmul.f32 %v3345_v43, %v3273_v10  ;;  %v1662_v49 = vmul.f32 %v3355_v53, %v3273_v10 }
  0x87   : > { %v1186_v51 = vsel %vm496_vm0, %v1184_v42, %v1185_v44  ;;  %v1188_v52 = vsel %vm496_vm0, %v1185_v44, %v1187_v45  ;;  %v1457_v54 = vrot.slane %v1357_v46, 2  ;;  %v1739_v55 = vunpack.c.l.bf16 %v2869_v41 }
  0x88   : > { %v1290_v57 = vadd.f32 %v1186_v51, %v1017_v37  ;;  %v1291_v58 = vadd.f32 %v1188_v52, %v1018_v38  ;;  %v1461_v6 = vsel %vm770_vm1, %v1458_v47, %v1460_v62  ;;  %v1760_v31 = vmul.f32 %v3345_v43, %v3278_v14 }
  0x89   : > { %v1459_v61 = vsel %vm770_vm1, %v1457_v54, %v1458_v47  ;;  %v1761_v63 = vmul.f32 %v3355_v53, %v3278_v14  ;;  %v1762_v0 = vmul.f32 %v3278_v14, %v1739_v55  ;;  %v2012_v2 = vunpack.c.l.bf16 %v2885_v50 }
  0x8a   : > { %v1563_v12 = vadd.f32 %v1459_v61, %v1290_v57  ;;  %v1564_v1 = vadd.f32 %v1461_v6, %v1291_v58  ;;  %v1860_v13 = vrot.slane %v1760_v31, 1  ;;  %v2034_v15 = vmul.f32 %v3324_v16, %v3355_v53  ;;  %v2828_v61 = vld [vmem:[%s3265_s6 + $0x78] sm:$0xe] }
  0x8b   : > { %v1861_v17 = vrot.slane %v1761_v63, 1  ;;  %v1863_v18 = vrot.slane %v1762_v0, 1  ;;  %v2033_v43 = vmul.f32 %v3324_v16, %v2012_v2  ;;  %v2035_v20 = vmul.f32 %v3633_v19, %v1739_v55  ;;  %v2812_v55 = vld [vmem:[%s3265_s6 + $0x80] sm:$0x1] }
  0x8c   : > { %v1693_v21 = vadd.f32 %v1661_v48, %v1563_v12  ;;  %v1694_v22 = vadd.f32 %v1662_v49, %v1564_v1  ;;  %v2134_v23 = vrot.slane %v2034_v15, 2  ;;  %v288_v24 = vunpack.c.l.bf16 %v256_v11 }
  0x8d   : > { %v1862_v26 = vsel %vm496_vm0, %v1860_v13, %v1861_v17  ;;  %v1864_v53 = vsel %vm496_vm0, %v1861_v17, %v1863_v18  ;;  %v2133_v27 = vrot.slane %v2033_v43, 2  ;;  %v2136_v28 = vrot.slane %v2035_v20, 2 }
  0x8e   : > { %v1966_v16 = vadd.f32 %v1862_v26, %v1693_v21  ;;  %v1967_v29 = vadd.f32 %v1864_v53, %v1694_v22  ;;  %v289_v30 = vunpack.c.h.bf16 %v256_v11  ;;  %v321_v32 = vmul.f32 %v3253_v3, %v288_v24 }
  0x8f   : > { %v2135_v34 = vsel %vm770_vm1, %v2133_v27, %v2134_v23  ;;  %v2137_v35 = vsel %vm770_vm1, %v2134_v23, %v2136_v28  ;;  %v392_v36 = vunpack.c.l.bf16 %v376_v25  ;;  %v427_v37 = vmul.f32 %v3255_v4, %v288_v24  ;;  %v2853_v24 = vld [vmem:[%s3265_s6 + $0x84] sm:$0xff]   ;;  %v2876_v27 = vld [vmem:[%s3265_s6 + $0x8c] sm:$0x1] }
  0x90   : > { %v2239_v38 = vadd.f32 %v2135_v34, %v1966_v16  ;;  %v2240_v39 = vadd.f32 %v2137_v35, %v1967_v29  ;;  %v322_v40 = vmul.f32 %v3253_v3, %v289_v30  ;;  %v428_v41 = vmul.f32 %v3255_v4, %v289_v30 }
  0x91   : > { %v429_v42 = vmul.f32 %v3255_v4, %v392_v36  ;;  %v542_v44 = vrot.slane %v427_v37, 1  ;;  %v666_v45 = vunpack.c.l.bf16 %v650_v33  ;;  %v702_v46 = vmul.f32 %v3257_v5, %v289_v30 }
  0x92   : > { %v2275_v47 = vadd.f32 %v3364_v59, %v2239_v38  ;;  %v2276_v62 = vadd.f32 %v3364_v59, %v2240_v39  ;;  %v543_v48 = vrot.slane %v428_v41, 1  ;;  %v703_v49 = vmul.f32 %v3257_v5, %v392_v36  ;;  %v2892_v39 = vld [vmem:[%s3265_s6 + $0x84] sm:$0xe] }
  0x93   : > { %v545_v50 = vrot.slane %v429_v42, 1  ;;  %v701_v51 = vmul.f32 %v3257_v5, %v666_v45  ;;  %v817_v52 = vrot.slane %v702_v46, 2  ;;  %v999_v54 = vmul.f32 %v3502_v56, %v3267_v7 }
  0x94   : > { %v2307_v57 = vmax.f32 %v2275_v47, 0.0  ;;  %v2308_v58 = vmax.f32 %v2276_v62, 0.0  ;;  %v544_v6 = vsel %vm496_vm0, %v542_v44, %v543_v48  ;;  %v819_v31 = vrot.slane %v703_v49, 2 }
  0x95   : > { %v546_v63 = vsel %vm496_vm0, %v543_v48, %v545_v50  ;;  %v627_v59 = vadd.f32 %v544_v6, %v321_v32  ;;  %v816_v0 = vrot.slane %v701_v51, 2  ;;  %v1000_v2 = vmul.f32 %v3505_v60, %v3267_v7  ;;  %v379_v6 = vld [vmem:[%s3265_s6 + $0x98] sm:$0x1] }
  0x96   : > { %v2337_v11 = vpack.c.bf16 %v2308_v58, %v2307_v57  ;;  %v628_v12 = vadd.f32 %v546_v63, %v322_v40  ;;  %v820_v1 = vsel %vm770_vm1, %v817_v52, %v819_v31  ;;  %v1070_v13 = vunpack.c.l.bf16 %v2812_v55 }
  0x97   : > { %v818_v15 = vsel %vm770_vm1, %v816_v0, %v817_v52  ;;  %v1105_v17 = vmul.f32 %v3502_v56, %v3269_v8  ;;  %v1106_v18 = vmul.f32 %v3505_v60, %v3269_v8  ;;  %v1343_v43 = vunpack.c.l.bf16 %v2828_v61  ;;  %v3123_v52 = vld [vmem:[%s3265_s6 + $0x90] sm:$0xff]  }
  0x98   : > { %2433 = vmatmul.bf16.gmra.mxu0 %v2337_v11  ;;  %v901_v20 = vadd.f32 %v818_v15, %v627_v59  ;;  %v902_v21 = vadd.f32 %v820_v1, %v628_v12  ;;  %v1107_v22 = vmul.f32 %v3269_v8, %v1070_v13  ;;  %v1379_v23 = vmul.f32 %v3505_v60, %v3271_v9 }
  0x99   : > { %v1219_v25 = vrot.slane %v1105_v17, 1  ;;  %v1220_v26 = vrot.slane %v1106_v18, 1  ;;  %v1378_v53 = vmul.f32 %v3271_v9, %v1343_v43  ;;  %v1380_v56 = vmul.f32 %v3271_v9, %v1070_v13  ;;  %v653_v18 = vld [vmem:[%s3265_s6 + $0x90] sm:$0xe] }
  0x9a   : > { %v1031_v28 = vadd.f32 %v999_v54, %v901_v20  ;;  %v1032_v16 = vadd.f32 %v1000_v2, %v902_v21  ;;  %v1222_v29 = vrot.slane %v1107_v22, 1  ;;  %v1493_v30 = vrot.slane %v1379_v23, 2 }
  0x9b   : > { %v1221_v32 = vsel %vm496_vm0, %v1219_v25, %v1220_v26  ;;  %v1492_v33 = vrot.slane %v1378_v53, 2  ;;  %v1495_v34 = vrot.slane %v1380_v56, 2  ;;  %v1642_v35 = vunpack.c.l.bf16 %v2853_v24 }
  0x9c   : > { %v1223_v60 = vsel %vm496_vm0, %v1220_v26, %v1222_v29  ;;  %v1304_v36 = vadd.f32 %v1221_v32, %v1031_v28  ;;  %v1643_v37 = vunpack.c.h.bf16 %v2853_v24  ;;  %v1746_v38 = vunpack.c.l.bf16 %v2876_v27 }
  0x9d   : > { %v1305_v40 = vadd.f32 %v1223_v60, %v1032_v16  ;;  %v1494_v41 = vsel %vm770_vm1, %v1492_v33, %v1493_v30  ;;  %v1496_v42 = vsel %vm770_vm1, %v1493_v30, %v1495_v34  ;;  %v1675_v44 = vmul.f32 %v3273_v10, %v1642_v35  ;;  %v2795_v16 = vld [vmem:[%s3265_s6 + $0x9c] sm:$0xff]  }
  0x9e   : > { %v1577_v45 = vadd.f32 %v1494_v41, %v1304_v36  ;;  %v1676_v46 = vmul.f32 %v3273_v10, %v1643_v37  ;;  %v1781_v47 = vmul.f32 %v3278_v14, %v1642_v35  ;;  %v1782_v62 = vmul.f32 %v3278_v14, %v1643_v37  ;;  %v3713_v34 = vld [vmem:[%s4279_s2] ss:$0 sm:$0xff] }
  0x9f   : > { %v1578_v48 = vadd.f32 %v1496_v42, %v1305_v40  ;;  %v1783_v49 = vmul.f32 %v3278_v14, %v1746_v38  ;;  %v2019_v50 = vunpack.c.l.bf16 %v2892_v39  ;;  %v2055_v51 = vmul.f32 %v3633_v19, %v1643_v37  ;;  %v2815_v42 = vld [vmem:[%s3265_s6 + $0xa4] sm:$0x1] }
  0xa0   : > { %v1707_v54 = vadd.f32 %v1675_v44, %v1577_v45  ;;  %v1895_v55 = vrot.slane %v1781_v47, 1  ;;  %v1896_v57 = vrot.slane %v1782_v62, 1  ;;  %v2056_v58 = vmul.f32 %v3633_v19, %v1746_v38  ;;  %v2831_v62 = vld [vmem:[%s3265_s6 + $0x9c] sm:$0xe] }
  0xa1   : > { %v1708_v31 = vadd.f32 %v1676_v46, %v1578_v48  ;;  %v1898_v61 = vrot.slane %v1783_v49, 1  ;;  %v2054_v63 = vmul.f32 %v3633_v19, %v2019_v50  ;;  %v2169_v59 = vrot.slane %v2055_v51, 2 }
  0xa2   : > { %v1897_v0 = vsel %vm496_vm0, %v1895_v55, %v1896_v57  ;;  %v2171_v2 = vrot.slane %v2056_v58, 2  ;;  %v3689_v11 = vunpack.c.l.bf16 %v3123_v52  ;;  %v3691_v12 = vunpack.c.h.bf16 %v3123_v52 }
  0xa3   : > { %v1899_v1 = vsel %vm496_vm0, %v1896_v57, %v1898_v61  ;;  %v1980_v13 = vadd.f32 %v1897_v0, %v1707_v54  ;;  %v2168_v15 = vrot.slane %v2054_v63, 2  ;;  %v395_v17 = vunpack.c.l.bf16 %v379_v6  ;;  %v3139_v63 = vld [vmem:[%s3265_s6 + $0xa8] sm:$0xff]  }
  0xa4   : > { %v1981_v43 = vadd.f32 %v1899_v1, %v1708_v31  ;;  %v2172_v20 = vsel %vm770_vm1, %v2169_v59, %v2171_v2  ;;  %v327_v21 = vmul.f32 %v3689_v11, %v3253_v3  ;;  %v328_v22 = vmul.f32 %v3691_v12, %v3253_v3 }
  0xa5   : > { %v2170_v23 = vsel %vm770_vm1, %v2168_v15, %v2169_v59  ;;  %v436_v24 = vmul.f32 %v3689_v11, %v3255_v4  ;;  %v437_v25 = vmul.f32 %v3691_v12, %v3255_v4  ;;  %v438_v26 = vmul.f32 %v3255_v4, %v395_v17 }
  0xa6   : > { %v2253_v53 = vadd.f32 %v2170_v23, %v1980_v13  ;;  %v2254_v56 = vadd.f32 %v2172_v20, %v1981_v43  ;;  %v669_v27 = vunpack.c.l.bf16 %v653_v18  ;;  %v711_v28 = vmul.f32 %v3691_v12, %v3257_v5  ;;  %v2879_v43 = vld [vmem:[%s3265_s6 + $0xb0] sm:$0x1] }
  0xa7   : > { %v557_v29 = vrot.slane %v436_v24, 1  ;;  %v558_v30 = vrot.slane %v437_v25, 1  ;;  %v560_v32 = vrot.slane %v438_v26, 1  ;;  %v712_v33 = vmul.f32 %v3257_v5, %v395_v17 }
  0xa8   : > { %v2289_v35 = vadd.f32 %v3713_v34, %v2253_v53  ;;  %v2290_v60 = vadd.f32 %v3713_v34, %v2254_v56  ;;  %v710_v36 = vmul.f32 %v3257_v5, %v669_v27  ;;  %v832_v37 = vrot.slane %v711_v28, 2 }
  0xa9   : > { %v559_v38 = vsel %vm496_vm0, %v557_v29, %v558_v30  ;;  %v561_v39 = vsel %vm496_vm0, %v558_v30, %v560_v32  ;;  %v834_v40 = vrot.slane %v712_v33, 2  ;;  %v972_v41 = vunpack.c.l.bf16 %v2795_v16  ;;  %v2895_v29 = vld [vmem:[%s3265_s6 + $0xa8] sm:$0xe] }
  0xaa   : > { %v2321_v44 = vmax.f32 %v2289_v35, 0.0  ;;  %v2322_v45 = vmax.f32 %v2290_v60, 0.0  ;;  %v633_v46 = vadd.f32 %v559_v38, %v327_v21  ;;  %v634_v47 = vadd.f32 %v561_v39, %v328_v22 }
  0xab   : > { %v831_v48 = vrot.slane %v710_v36, 2  ;;  %v835_v49 = vsel %vm770_vm1, %v832_v37, %v834_v40  ;;  %v973_v50 = vunpack.c.h.bf16 %v2795_v16  ;;  %v1005_v51 = vmul.f32 %v3267_v7, %v972_v41 }
  0xac   : > { %v2344_v52 = vpack.c.bf16 %v2322_v45, %v2321_v44  ;;  %v908_v54 = vadd.f32 %v835_v49, %v634_v47  ;;  %v1073_v55 = vunpack.c.l.bf16 %v2815_v42  ;;  %v1114_v57 = vmul.f32 %v3269_v8, %v972_v41  ;;  %v3120_v44 = vld [vmem:[%s3265_s6 + $0x48] sm:$0xff]  }
  0xad   : > { %v833_v58 = vsel %vm770_vm1, %v831_v48, %v832_v37  ;;  %v1006_v6 = vmul.f32 %v3267_v7, %v973_v50  ;;  %v1115_v31 = vmul.f32 %v3269_v8, %v973_v50  ;;  %v1346_v61 = vunpack.c.l.bf16 %v2831_v62 }
  0xae   : > { %2468 = vmatmul.bf16.gmra.mxu2 %v2344_v52  ;;  %v907_v59 = vadd.f32 %v833_v58, %v633_v46  ;;  %v1116_v0 = vmul.f32 %v3269_v8, %v1073_v55  ;;  %v1234_v2 = vrot.slane %v1114_v57, 1  ;;  %v1388_v1 = vmul.f32 %v3271_v9, %v973_v50  ;;  %v373_v52 = vld [vmem:[%s3265_s6 + $0x50] sm:$0x1] }
  0xaf   : > { %v1038_v13 = vadd.f32 %v1006_v6, %v908_v54  ;;  %v1235_v15 = vrot.slane %v1115_v31, 1  ;;  %v1387_v17 = vmul.f32 %v3271_v9, %v1346_v61  ;;  %v1389_v18 = vmul.f32 %v3271_v9, %v1073_v55  ;;  %v647_v6 = vld [vmem:[%s3265_s6 + $0x48] sm:$0xe] }
  0xb0   : > { %v1037_v20 = vadd.f32 %v1005_v51, %v907_v59  ;;  %v1237_v21 = vrot.slane %v1116_v0, 1  ;;  %v1508_v22 = vrot.slane %v1388_v1, 2  ;;  %v3734_v23 = vunpack.c.l.bf16 %v3139_v63 }
  0xb1   : > { %v1236_v24 = vsel %vm496_vm0, %v1234_v2, %v1235_v15  ;;  %v1507_v25 = vrot.slane %v1387_v17, 2  ;;  %v1510_v26 = vrot.slane %v1389_v18, 2  ;;  %v3737_v53 = vunpack.c.h.bf16 %v3139_v63 }
  0xb2   : > { %v1238_v56 = vsel %vm496_vm0, %v1235_v15, %v1237_v21  ;;  %v1310_v27 = vadd.f32 %v1236_v24, %v1037_v20  ;;  %v1681_v28 = vmul.f32 %v3734_v23, %v3273_v10  ;;  %v1749_v16 = vunpack.c.l.bf16 %v2879_v43  ;;  %v2783_v20 = vld [vmem:[%s3265_s6 + $0x54] sm:$0xff]  }
  0xb3   : > { %v1311_v30 = vadd.f32 %v1238_v56, %v1038_v13  ;;  %v1509_v32 = vsel %vm770_vm1, %v1507_v25, %v1508_v22  ;;  %v1511_v33 = vsel %vm770_vm1, %v1508_v22, %v1510_v26  ;;  %v1682_v35 = vmul.f32 %v3737_v53, %v3273_v10 }
  0xb4   : > { %v1583_v60 = vadd.f32 %v1509_v32, %v1310_v27  ;;  %v1790_v36 = vmul.f32 %v3734_v23, %v3278_v14  ;;  %v1791_v37 = vmul.f32 %v3737_v53, %v3278_v14  ;;  %v1792_v38 = vmul.f32 %v3278_v14, %v1749_v16 }
  0xb5   : > { %v1584_v39 = vadd.f32 %v1511_v33, %v1311_v30  ;;  %v2022_v40 = vunpack.c.l.bf16 %v2895_v29  ;;  %v2064_v41 = vmul.f32 %v3633_v19, %v3737_v53  ;;  %v2065_v42 = vmul.f32 %v3633_v19, %v1749_v16 }
  0xb6   : > { %v1713_v45 = vadd.f32 %v1681_v28, %v1583_v60  ;;  %v1910_v46 = vrot.slane %v1790_v36, 1  ;;  %v1911_v47 = vrot.slane %v1791_v37, 1  ;;  %v1913_v62 = vrot.slane %v1792_v38, 1  ;;  %v2809_v37 = vld [vmem:[%s3265_s6 + $0x5c] sm:$0x1] }
  0xb7   : > { %v1714_v48 = vadd.f32 %v1682_v35, %v1584_v39  ;;  %v2063_v49 = vmul.f32 %v3633_v19, %v2022_v40  ;;  %v2184_v50 = vrot.slane %v2064_v41, 2  ;;  %v2186_v51 = vrot.slane %v2065_v42, 2  ;;  %v2825_v42 = vld [vmem:[%s3265_s6 + $0x54] sm:$0xe] }
  0xb8   : > { %v1912_v54 = vsel %vm496_vm0, %v1910_v46, %v1911_v47  ;;  %v1914_v55 = vsel %vm496_vm0, %v1911_v47, %v1913_v62  ;;  %v2956_v57 = vunpack.c.l.bf16 %v3120_v44  ;;  %v2957_v58 = vunpack.c.h.bf16 %v3120_v44 }
  0xb9   : > { %v1986_v31 = vadd.f32 %v1912_v54, %v1713_v45  ;;  %v1987_v61 = vadd.f32 %v1914_v55, %v1714_v48  ;;  %v2183_v63 = vrot.slane %v2063_v49, 2  ;;  %v2187_v59 = vsel %vm770_vm1, %v2184_v50, %v2186_v51 }
  0xba   : > { %v315_v0 = vmul.f32 %v2956_v57, %v3253_v3  ;;  %v316_v2 = vmul.f32 %v2957_v58, %v3253_v3  ;;  %v389_v1 = vunpack.c.l.bf16 %v373_v52  ;;  %v418_v13 = vmul.f32 %v2956_v57, %v3255_v4  ;;  %v3136_v57 = vld [vmem:[%s3265_s6 + $0x60] sm:$0xff]  }
  0xbb   : > { %v2185_v15 = vsel %vm770_vm1, %v2183_v63, %v2184_v50  ;;  %v2260_v17 = vadd.f32 %v2187_v59, %v1987_v61  ;;  %v419_v18 = vmul.f32 %v2957_v58, %v3255_v4  ;;  %v663_v43 = vunpack.c.l.bf16 %v647_v6  ;;  %v2873_v63 = vld [vmem:[%s3265_s6 + $0x68] sm:$0x1] }
  0xbc   : > { %v2259_v21 = vadd.f32 %v2185_v15, %v1986_v31  ;;  %v420_v22 = vmul.f32 %v3255_v4, %v389_v1  ;;  %v527_v24 = vrot.slane %v418_v13, 1  ;;  %v693_v25 = vmul.f32 %v2957_v58, %v3257_v5 }
  0xbd   : > { %v2296_v26 = vadd.f32 %v3713_v34, %v2260_v17  ;;  %v528_v56 = vrot.slane %v419_v18, 1  ;;  %v692_v27 = vmul.f32 %v3257_v5, %v663_v43  ;;  %v694_v28 = vmul.f32 %v3257_v5, %v389_v1 }
  0xbe   : > { %v2295_v16 = vadd.f32 %v3713_v34, %v2259_v21  ;;  %v530_v29 = vrot.slane %v420_v22, 1  ;;  %v802_v30 = vrot.slane %v693_v25, 2  ;;  %v960_v32 = vunpack.c.l.bf16 %v2783_v20 }
  0xbf   : > { %v2328_v33 = vmax.f32 %v2296_v26, 0.0  ;;  %v529_v35 = vsel %vm496_vm0, %v527_v24, %v528_v56  ;;  %v801_v60 = vrot.slane %v692_v27, 2  ;;  %v804_v36 = vrot.slane %v694_v28, 2  ;;  %v2889_v24 = vld [vmem:[%s3265_s6 + $0x60] sm:$0xe] }
  0xc0   : > { %v2327_v38 = vmax.f32 %v2295_v16, 0.0  ;;  %v531_v39 = vsel %vm496_vm0, %v528_v56, %v530_v29  ;;  %v621_v40 = vadd.f32 %v529_v35, %v315_v0  ;;  %v961_v41 = vunpack.c.h.bf16 %v2783_v20 }
  0xc1   : > { %v622_v44 = vadd.f32 %v531_v39, %v316_v2  ;;  %v803_v45 = vsel %vm770_vm1, %v801_v60, %v802_v30  ;;  %v805_v46 = vsel %vm770_vm1, %v802_v30, %v804_v36  ;;  %v993_v47 = vmul.f32 %v3267_v7, %v960_v32  ;;  %v244_v36 = vld [vmem:[%s3265_s6 + $0x24] sm:$0xff]  }
  0xc2   : > { %v2347_v62 = vpack.c.bf16 %v2328_v33, %v2327_v38  ;;  %v895_v48 = vadd.f32 %v803_v45, %v621_v40  ;;  %v994_v49 = vmul.f32 %v3267_v7, %v961_v41  ;;  %v1067_v50 = vunpack.c.l.bf16 %v2809_v37 }
  0xc3   : > { %v896_v51 = vadd.f32 %v805_v46, %v622_v44  ;;  %v1096_v52 = vmul.f32 %v3269_v8, %v960_v32  ;;  %v1097_v54 = vmul.f32 %v3269_v8, %v961_v41  ;;  %v1340_v55 = vunpack.c.l.bf16 %v2825_v42 }
  0xc4   : > { %2483 = vmatmul.bf16.vlgmr.msra.gmra.mxu3 %v2347_v62  ;;  %v1025_v58 = vadd.f32 %v993_v47, %v895_v48  ;;  %v1098_v6 = vmul.f32 %v3269_v8, %v1067_v50  ;;  %v1370_v31 = vmul.f32 %v3271_v9, %v961_v41  ;;  %v1371_v61 = vmul.f32 %v3271_v9, %v1067_v50 }
  0xc5   : > { %v1026_v59 = vadd.f32 %v994_v49, %v896_v51  ;;  %v1204_v0 = vrot.slane %v1096_v52, 1  ;;  %v1205_v2 = vrot.slane %v1097_v54, 1  ;;  %v1369_v1 = vmul.f32 %v3271_v9, %v1340_v55  ;;  %v370_v49 = vld [vmem:[%s3265_s6 + $0x2c] sm:$0x1]  ;;  %v644_v55 = vld [vmem:[%s3265_s6 + $0x24] sm:$0xe] }
  0xc6   : > { %v1207_v13 = vrot.slane %v1098_v6, 1  ;;  %v1478_v15 = vrot.slane %v1370_v31, 2  ;;  %v1480_v17 = vrot.slane %v1371_v61, 2  ;;  %v3790_v18 = vunpack.c.l.bf16 %v3136_v57 }
  0xc7   : > { %v1206_v43 = vsel %vm496_vm0, %v1204_v0, %v1205_v2  ;;  %v1477_v20 = vrot.slane %v1369_v1, 2  ;;  %v3793_v21 = vunpack.c.h.bf16 %v3136_v57  ;;  %v1743_v22 = vunpack.c.l.bf16 %v2873_v63 }
  0xc8   : > { %v1208_v25 = vsel %vm496_vm0, %v1205_v2, %v1207_v13  ;;  %v1298_v26 = vadd.f32 %v1206_v43, %v1025_v58  ;;  %v1481_v56 = vsel %vm770_vm1, %v1478_v15, %v1480_v17  ;;  %v1669_v27 = vmul.f32 %v3790_v18, %v3273_v10  ;;  %v3126_v17 = vld [vmem:[%s3265_s6 + $0x30] sm:$0xff]  }
  0xc9   : > { %v1299_v28 = vadd.f32 %v1208_v25, %v1026_v59  ;;  %v1479_v16 = vsel %vm770_vm1, %v1477_v20, %v1478_v15  ;;  %v1670_v29 = vmul.f32 %v3793_v21, %v3273_v10  ;;  %v1772_v30 = vmul.f32 %v3790_v18, %v3278_v14 }
  0xca   : > { %v1571_v32 = vadd.f32 %v1479_v16, %v1298_v26  ;;  %v1773_v33 = vmul.f32 %v3793_v21, %v3278_v14  ;;  %v1774_v35 = vmul.f32 %v3278_v14, %v1743_v22  ;;  %v2016_v60 = vunpack.c.l.bf16 %v2889_v24 }
  0xcb   : > { %v1572_v37 = vadd.f32 %v1481_v56, %v1299_v28  ;;  %v1880_v38 = vrot.slane %v1772_v30, 1  ;;  %v2046_v39 = vmul.f32 %v3633_v19, %v3793_v21  ;;  %v2047_v40 = vmul.f32 %v3633_v19, %v1743_v22 }
  0xcc   : > { %v1701_v41 = vadd.f32 %v1669_v27, %v1571_v32  ;;  %v1881_v42 = vrot.slane %v1773_v33, 1  ;;  %v1883_v44 = vrot.slane %v1774_v35, 1  ;;  %v2045_v45 = vmul.f32 %v3633_v19, %v2016_v60 }
  0xcd   : > { %v1702_v46 = vadd.f32 %v1670_v29, %v1572_v37  ;;  %v2154_v47 = vrot.slane %v2046_v39, 2  ;;  %v2156_v62 = vrot.slane %v2047_v40, 2  ;;  %v276_v48 = vunpack.c.l.bf16 %v244_v36 }
  0xce   : > { %v1882_v50 = vsel %vm496_vm0, %v1880_v38, %v1881_v42  ;;  %v1884_v51 = vsel %vm496_vm0, %v1881_v42, %v1883_v44  ;;  %v2153_v52 = vrot.slane %v2045_v45, 2  ;;  %v277_v54 = vunpack.c.h.bf16 %v244_v36  ;;  %v2806_v36 = vld [vmem:[%s3265_s6 + $0x38] sm:$0x1] }
  0xcf   : > { %v1974_v57 = vadd.f32 %v1882_v50, %v1701_v41  ;;  %v1975_v58 = vadd.f32 %v1884_v51, %v1702_v46  ;;  %v2157_v6 = vsel %vm770_vm1, %v2154_v47, %v2156_v62  ;;  %v309_v31 = vmul.f32 %v3253_v3, %v276_v48  ;;  %v2822_v41 = vld [vmem:[%s3265_s6 + $0x30] sm:$0xe] }
  0xd0   : > { %v2155_v61 = vsel %vm770_vm1, %v2153_v52, %v2154_v47  ;;  %v310_v63 = vmul.f32 %v3253_v3, %v277_v54  ;;  %v386_v59 = vunpack.c.l.bf16 %v370_v49  ;;  %v409_v0 = vmul.f32 %v3255_v4, %v276_v48 }
  0xd1   : > { %v2247_v2 = vadd.f32 %v2155_v61, %v1974_v57  ;;  %v2248_v1 = vadd.f32 %v2157_v6, %v1975_v58  ;;  %v410_v13 = vmul.f32 %v3255_v4, %v277_v54  ;;  %v660_v15 = vunpack.c.l.bf16 %v644_v55  ;;  %v2841_v55 = vld [vmem:[%s3265_s6 + $0x3c] sm:$0xff]   ;;  %v2870_v61 = vld [vmem:[%s3265_s6 + $0x44] sm:$0x1] }
  0xd2   : > { %v411_v43 = vmul.f32 %v3255_v4, %v386_v59  ;;  %v512_v20 = vrot.slane %v409_v0, 1  ;;  %v684_v22 = vmul.f32 %v3257_v5, %v277_v54  ;;  %v685_v24 = vmul.f32 %v3257_v5, %v386_v59 }
  0xd3   : > { %v2283_v25 = vadd.f32 %v3713_v34, %v2247_v2  ;;  %v2284_v26 = vadd.f32 %v3713_v34, %v2248_v1  ;;  %v513_v56 = vrot.slane %v410_v13, 1  ;;  %v683_v27 = vmul.f32 %v3257_v5, %v660_v15 }
  0xd4   : > { %v515_v28 = vrot.slane %v411_v43, 1  ;;  %v787_v16 = vrot.slane %v684_v22, 2  ;;  %v789_v29 = vrot.slane %v685_v24, 2  ;;  %v2980_v30 = vunpack.c.l.bf16 %v3126_v17 }
  0xd5   : > { %v2315_v32 = vmax.f32 %v2283_v25, 0.0  ;;  %v2316_v33 = vmax.f32 %v2284_v26, 0.0  ;;  %v514_v35 = vsel %vm496_vm0, %v512_v20, %v513_v56  ;;  %v786_v60 = vrot.slane %v683_v27, 2 }
  0xd6   : > { %v516_v37 = vsel %vm496_vm0, %v513_v56, %v515_v28  ;;  %v615_v38 = vadd.f32 %v514_v35, %v309_v31  ;;  %v790_v39 = vsel %vm770_vm1, %v787_v16, %v789_v29  ;;  %v2981_v40 = vunpack.c.h.bf16 %v3126_v17 }
  0xd7   : > { %v2341_v42 = vpack.c.bf16 %v2316_v33, %v2315_v32  ;;  %v616_v44 = vadd.f32 %v516_v37, %v310_v63  ;;  %v788_v45 = vsel %vm770_vm1, %v786_v60, %v787_v16  ;;  %v987_v46 = vmul.f32 %v2980_v30, %v3267_v7  ;;  %v2886_v63 = vld [vmem:[%s3265_s6 + $0x3c] sm:$0xe] }
  0xd8   : > { %v889_v47 = vadd.f32 %v788_v45, %v615_v38  ;;  %v988_v62 = vmul.f32 %v2981_v40, %v3267_v7  ;;  %v1064_v48 = vunpack.c.l.bf16 %v2806_v36  ;;  %v1087_v49 = vmul.f32 %v2980_v30, %v3269_v8  ;;  %v3122_v37 = vld [vmem:[%s3265_s6 + $0x78] sm:$0xff]  }
  0xd9   : > { %2453 = vmatmul.bf16.gmra.mxu1 %v2341_v42  ;;  %v890_v50 = vadd.f32 %v790_v39, %v616_v44  ;;  %v1088_v51 = vmul.f32 %v2981_v40, %v3269_v8  ;;  %v1337_v52 = vunpack.c.l.bf16 %v2822_v41  ;;  %v1361_v54 = vmul.f32 %v2981_v40, %v3271_v9  ;;  %v377_v42 = vld [vmem:[%s3265_s6 + $0x80] sm:$0x1] }
  0xda   : > { %v1019_v57 = vadd.f32 %v987_v46, %v889_v47  ;;  %v1089_v58 = vmul.f32 %v3269_v8, %v1064_v48  ;;  %v1189_v6 = vrot.slane %v1087_v49, 1  ;;  %v1362_v31 = vmul.f32 %v3271_v9, %v1064_v48 }
  0xdb   : > { %v1020_v59 = vadd.f32 %v988_v62, %v890_v50  ;;  %v1190_v0 = vrot.slane %v1088_v51, 1  ;;  %v1360_v2 = vmul.f32 %v3271_v9, %v1337_v52  ;;  %v1463_v1 = vrot.slane %v1361_v54, 2 }
  0xdc   : > { %v1192_v13 = vrot.slane %v1089_v58, 1  ;;  %v1465_v15 = vrot.slane %v1362_v31, 2  ;;  %v1630_v17 = vunpack.c.l.bf16 %v2841_v55  ;;  %v1631_v43 = vunpack.c.h.bf16 %v2841_v55 }
  0xdd   : > { %v1191_v20 = vsel %vm496_vm0, %v1189_v6, %v1190_v0  ;;  %v1462_v22 = vrot.slane %v1360_v2, 2  ;;  %v1740_v24 = vunpack.c.l.bf16 %v2870_v61  ;;  %v2013_v25 = vunpack.c.l.bf16 %v2886_v63 }
  0xde   : > { %v1193_v26 = vsel %vm496_vm0, %v1190_v0, %v1192_v13  ;;  %v1292_v56 = vadd.f32 %v1191_v20, %v1019_v57  ;;  %v1466_v27 = vsel %vm770_vm1, %v1463_v1, %v1465_v15  ;;  %v1663_v28 = vmul.f32 %v3273_v10, %v1630_v17  ;;  %v651_v57 = vld [vmem:[%s3265_s6 + $0x78] sm:$0xe] }
  0xdf   : > { %v1293_v16 = vadd.f32 %v1193_v26, %v1020_v59  ;;  %v1464_v29 = vsel %vm770_vm1, %v1462_v22, %v1463_v1  ;;  %v1664_v30 = vmul.f32 %v3273_v10, %v1631_v43  ;;  %v1763_v32 = vmul.f32 %v3278_v14, %v1630_v17 }
  0xe0   : > { %v1565_v33 = vadd.f32 %v1464_v29, %v1292_v56  ;;  %v1764_v35 = vmul.f32 %v3278_v14, %v1631_v43  ;;  %v1765_v60 = vmul.f32 %v3278_v14, %v1740_v24  ;;  %v2036_v36 = vmul.f32 %v3633_v19, %v2013_v25 }
  0xe1   : > { %v1566_v38 = vadd.f32 %v1466_v27, %v1293_v16  ;;  %v1865_v39 = vrot.slane %v1763_v32, 1  ;;  %v2037_v40 = vmul.f32 %v3633_v19, %v1631_v43  ;;  %v2038_v41 = vmul.f32 %v3633_v19, %v1740_v24  ;;  %v2791_v43 = vld [vmem:[%s3265_s6 + $0x84] sm:$0xff]  }
  0xe2   : > { %v1695_v44 = vadd.f32 %v1663_v28, %v1565_v33  ;;  %v1866_v45 = vrot.slane %v1764_v35, 1  ;;  %v1868_v46 = vrot.slane %v1765_v60, 1  ;;  %v2138_v47 = vrot.slane %v2036_v36, 2  ;;  %v2813_v33 = vld [vmem:[%s3265_s6 + $0x8c] sm:$0x1] }
  0xe3   : > { %v1696_v62 = vadd.f32 %v1664_v30, %v1566_v38  ;;  %v2139_v48 = vrot.slane %v2037_v40, 2  ;;  %v2141_v49 = vrot.slane %v2038_v41, 2  ;;  %v2964_v50 = vunpack.c.l.bf16 %v3122_v37 }
  0xe4   : > { %v1867_v51 = vsel %vm496_vm0, %v1865_v39, %v1866_v45  ;;  %v1869_v52 = vsel %vm496_vm0, %v1866_v45, %v1868_v46  ;;  %v2965_v54 = vunpack.c.h.bf16 %v3122_v37  ;;  %v393_v55 = vunpack.c.l.bf16 %v377_v42  ;;  %v2829_v42 = vld [vmem:[%s3265_s6 + $0x84] sm:$0xe] }
  0xe5   : > { %v1968_v58 = vadd.f32 %v1867_v51, %v1695_v44  ;;  %v1969_v6 = vadd.f32 %v1869_v52, %v1696_v62  ;;  %v2140_v31 = vsel %vm770_vm1, %v2138_v47, %v2139_v48  ;;  %v2142_v61 = vsel %vm770_vm1, %v2139_v48, %v2141_v49 }
  0xe6   : > { %v323_v63 = vmul.f32 %v2964_v50, %v3253_v3  ;;  %v324_v59 = vmul.f32 %v2965_v54, %v3253_v3  ;;  %v430_v0 = vmul.f32 %v2964_v50, %v3255_v4  ;;  %v431_v2 = vmul.f32 %v2965_v54, %v3255_v4 }
  0xe7   : > { %v2241_v1 = vadd.f32 %v2140_v31, %v1968_v58  ;;  %v2242_v13 = vadd.f32 %v2142_v61, %v1969_v6  ;;  %v432_v15 = vmul.f32 %v3255_v4, %v393_v55  ;;  %v667_v17 = vunpack.c.l.bf16 %v651_v57  ;;  %v2877_v61 = vld [vmem:[%s3265_s6 + $0x98] sm:$0x1] }
  0xe8   : > { %v547_v20 = vrot.slane %v430_v0, 1  ;;  %v548_v22 = vrot.slane %v431_v2, 1  ;;  %v705_v24 = vmul.f32 %v2965_v54, %v3257_v5  ;;  %v706_v25 = vmul.f32 %v3257_v5, %v393_v55 }
  0xe9   : > { %v2277_v26 = vadd.f32 %v3713_v34, %v2241_v1  ;;  %v2278_v56 = vadd.f32 %v3713_v34, %v2242_v13  ;;  %v550_v27 = vrot.slane %v432_v15, 1  ;;  %v704_v28 = vmul.f32 %v3257_v5, %v667_v17 }
  0xea   : > { %v549_v16 = vsel %vm496_vm0, %v547_v20, %v548_v22  ;;  %v822_v29 = vrot.slane %v705_v24, 2  ;;  %v824_v30 = vrot.slane %v706_v25, 2  ;;  %v968_v32 = vunpack.c.l.bf16 %v2791_v43 }
  0xeb   : > { %v2309_v35 = vmax.f32 %v2277_v26, 0.0  ;;  %v2310_v60 = vmax.f32 %v2278_v56, 0.0  ;;  %v551_v36 = vsel %vm496_vm0, %v548_v22, %v550_v27  ;;  %v629_v37 = vadd.f32 %v549_v16, %v323_v63 }
  0xec   : > { %v630_v38 = vadd.f32 %v551_v36, %v324_v59  ;;  %v821_v39 = vrot.slane %v704_v28, 2  ;;  %v825_v40 = vsel %vm770_vm1, %v822_v29, %v824_v30  ;;  %v969_v41 = vunpack.c.h.bf16 %v2791_v43  ;;  %v2893_v43 = vld [vmem:[%s3265_s6 + $0x90] sm:$0xe] }
  0xed   : > { %v2338_v44 = vpack.c.bf16 %v2310_v60, %v2309_v35  ;;  %v1001_v45 = vmul.f32 %v3267_v7, %v968_v32  ;;  %v1071_v46 = vunpack.c.l.bf16 %v2813_v33  ;;  %v1108_v47 = vmul.f32 %v3269_v8, %v968_v32  ;;  %v264_v33 = vld [vmem:[%s3265_s6 + $0x9c] sm:$0xff]  }
  0xee   : > { %v823_v62 = vsel %vm770_vm1, %v821_v39, %v822_v29  ;;  %v904_v48 = vadd.f32 %v825_v40, %v630_v38  ;;  %v1002_v49 = vmul.f32 %v3267_v7, %v969_v41  ;;  %v1109_v50 = vmul.f32 %v3269_v8, %v969_v41 }
  0xef   : > { %2438 = vmatmul.bf16.gmra.mxu0 %v2338_v44  ;;  %v903_v51 = vadd.f32 %v823_v62, %v629_v37  ;;  %v1110_v52 = vmul.f32 %v3269_v8, %v1071_v46  ;;  %v1224_v54 = vrot.slane %v1108_v47, 1  ;;  %v1344_v55 = vunpack.c.l.bf16 %v2829_v42 }
  0xf0   : > { %v1034_v57 = vadd.f32 %v1002_v49, %v904_v48  ;;  %v1225_v58 = vrot.slane %v1109_v50, 1  ;;  %v1382_v6 = vmul.f32 %v3271_v9, %v969_v41  ;;  %v1383_v31 = vmul.f32 %v3271_v9, %v1071_v46  ;;  %v380_v41 = vld [vmem:[%s3265_s6 + $0xa4] sm:$0x1] }
  0xf1   : > { %v1033_v63 = vadd.f32 %v1001_v45, %v903_v51  ;;  %v1227_v59 = vrot.slane %v1110_v52, 1  ;;  %v1381_v0 = vmul.f32 %v3271_v9, %v1344_v55  ;;  %v1677_v2 = vmul.f32 %v3689_v11, %v3273_v10 }
  0xf2   : > { %v1226_v1 = vsel %vm496_vm0, %v1224_v54, %v1225_v58  ;;  %v1498_v13 = vrot.slane %v1382_v6, 2  ;;  %v1500_v15 = vrot.slane %v1383_v31, 2  ;;  %v1678_v17 = vmul.f32 %v3691_v12, %v3273_v10  ;;  %v654_v54 = vld [vmem:[%s3265_s6 + $0x9c] sm:$0xe] }
  0xf3   : > { %v1228_v20 = vsel %vm496_vm0, %v1225_v58, %v1227_v59  ;;  %v1306_v22 = vadd.f32 %v1226_v1, %v1033_v63  ;;  %v1497_v24 = vrot.slane %v1381_v0, 2  ;;  %v1747_v25 = vunpack.c.l.bf16 %v2877_v61 }
  0xf4   : > { %v1307_v26 = vadd.f32 %v1228_v20, %v1034_v57  ;;  %v1501_v56 = vsel %vm770_vm1, %v1498_v13, %v1500_v15  ;;  %v1784_v27 = vmul.f32 %v3689_v11, %v3278_v14  ;;  %v1785_v28 = vmul.f32 %v3691_v12, %v3278_v14 }
  0xf5   : > { %v1499_v16 = vsel %vm770_vm1, %v1497_v24, %v1498_v13  ;;  %v1786_v29 = vmul.f32 %v3278_v14, %v1747_v25  ;;  %v2020_v30 = vunpack.c.l.bf16 %v2893_v43  ;;  %v2058_v32 = vmul.f32 %v3633_v19, %v3691_v12 }
  0xf6   : > { %v1579_v35 = vadd.f32 %v1499_v16, %v1306_v22  ;;  %v1580_v60 = vadd.f32 %v1501_v56, %v1307_v26  ;;  %v1900_v36 = vrot.slane %v1784_v27, 1  ;;  %v1901_v37 = vrot.slane %v1785_v28, 1  ;;  %v2816_v26 = vld [vmem:[%s3265_s6 + $0xb0] sm:$0x1] }
  0xf7   : > { %v1903_v38 = vrot.slane %v1786_v29, 1  ;;  %v2057_v39 = vmul.f32 %v3633_v19, %v2020_v30  ;;  %v2059_v11 = vmul.f32 %v3633_v19, %v1747_v25  ;;  %v2174_v40 = vrot.slane %v2058_v32, 2  ;;  %v2832_v29 = vld [vmem:[%s3265_s6 + $0xa8] sm:$0xe] }
  0xf8   : > { %v1709_v42 = vadd.f32 %v1677_v2, %v1579_v35  ;;  %v1710_v44 = vadd.f32 %v1678_v17, %v1580_v60  ;;  %v1902_v45 = vsel %vm496_vm0, %v1900_v36, %v1901_v37  ;;  %v296_v46 = vunpack.c.l.bf16 %v264_v33 }
  0xf9   : > { %v1904_v12 = vsel %vm496_vm0, %v1901_v37, %v1903_v38  ;;  %v2173_v47 = vrot.slane %v2057_v39, 2  ;;  %v2176_v62 = vrot.slane %v2059_v11, 2  ;;  %v297_v48 = vunpack.c.h.bf16 %v264_v33 }
  0xfa   : > { %v1982_v49 = vadd.f32 %v1902_v45, %v1709_v42  ;;  %v1983_v50 = vadd.f32 %v1904_v12, %v1710_v44  ;;  %v329_v51 = vmul.f32 %v3253_v3, %v296_v46  ;;  %v396_v52 = vunpack.c.l.bf16 %v380_v41  ;;  %v2861_v42 = vld [vmem:[%s3265_s6 + $0xb4] sm:$0xff]  }
  0xfb   : > { %v2175_v19 = vsel %vm770_vm1, %v2173_v47, %v2174_v40  ;;  %v2177_v55 = vsel %vm770_vm1, %v2174_v40, %v2176_v62  ;;  %v330_v57 = vmul.f32 %v3253_v3, %v297_v48  ;;  %v439_v58 = vmul.f32 %v3255_v4, %v296_v46 }
  0xfc   : > { %v2255_v6 = vadd.f32 %v2175_v19, %v1982_v49  ;;  %v2256_v31 = vadd.f32 %v2177_v55, %v1983_v50  ;;  %v440_v61 = vmul.f32 %v3255_v4, %v297_v48  ;;  %v441_v63 = vmul.f32 %v3255_v4, %v396_v52  ;;  %v2880_v49 = vld [vmem:[%s3265_s6 + $0xbc] sm:$0x1] }
  0xfd   : > { %v562_v59 = vrot.slane %v439_v58, 1  ;;  %v670_v0 = vunpack.c.l.bf16 %v654_v54  ;;  %v714_v2 = vmul.f32 %v3257_v5, %v297_v48  ;;  %v715_v1 = vmul.f32 %v3257_v5, %v396_v52 }
  0xfe   : > { %v2291_v13 = vadd.f32 %v3713_v34, %v2255_v6  ;;  %v2292_v15 = vadd.f32 %v3713_v34, %v2256_v31  ;;  %v563_v17 = vrot.slane %v440_v61, 1  ;;  %v565_v43 = vrot.slane %v441_v63, 1  ;;  %v2896_v63 = vld [vmem:[%s3265_s6 + $0xb4] sm:$0xe] }
  0xff   : > { %v713_v20 = vmul.f32 %v3257_v5, %v670_v0  ;;  %v837_v22 = vrot.slane %v714_v2, 2  ;;  %v839_v24 = vrot.slane %v715_v1, 2  ;;  %v1007_v25 = vmul.f32 %v3734_v23, %v3267_v7 }
 0x100   : > { %v2323_v56 = vmax.f32 %v2291_v13, 0.0  ;;  %v2324_v27 = vmax.f32 %v2292_v15, 0.0  ;;  %v564_v28 = vsel %vm496_vm0, %v562_v59, %v563_v17  ;;  %v566_v16 = vsel %vm496_vm0, %v563_v17, %v565_v43 }
 0x101   : > { %v635_v30 = vadd.f32 %v564_v28, %v329_v51  ;;  %v636_v32 = vadd.f32 %v566_v16, %v330_v57  ;;  %v836_v33 = vrot.slane %v713_v20, 2  ;;  %v840_v35 = vsel %vm770_vm1, %v837_v22, %v839_v24  ;;  %v3961_v24 = vld [vmem:[%s4278_s1 + $0x8] ss:$0 sm:$0xff] }
 0x102   : > { %v2345_v60 = vpack.c.bf16 %v2324_v27, %v2323_v56  ;;  %v1008_v36 = vmul.f32 %v3737_v53, %v3267_v7  ;;  %v1074_v37 = vunpack.c.l.bf16 %v2816_v26  ;;  %v1117_v38 = vmul.f32 %v3734_v23, %v3269_v8  ;;  %v252_v56 = vld [vmem:[%s3265_s6 + $0x54] sm:$0xff]  }
 0x103   : > { %v838_v39 = vsel %vm770_vm1, %v836_v33, %v837_v22  ;;  %v910_v11 = vadd.f32 %v840_v35, %v636_v32  ;;  %v1118_v40 = vmul.f32 %v3737_v53, %v3269_v8  ;;  %v1347_v41 = vunpack.c.l.bf16 %v2832_v29 }
 0x104   : > { %2473 = vmatmul.bf16.gmra.mxu2 %v2345_v60  ;;  %v909_v44 = vadd.f32 %v838_v39, %v635_v30  ;;  %v1119_v45 = vmul.f32 %v3269_v8, %v1074_v37  ;;  %v1239_v46 = vrot.slane %v1117_v38, 1  ;;  %v1391_v12 = vmul.f32 %v3737_v53, %v3271_v9  ;;  %v374_v60 = vld [vmem:[%s3265_s6 + $0x5c] sm:$0x1] }
 0x105   : > { %v1040_v47 = vadd.f32 %v1008_v36, %v910_v11  ;;  %v1240_v62 = vrot.slane %v1118_v40, 1  ;;  %v1390_v23 = vmul.f32 %v3271_v9, %v1347_v41  ;;  %v1392_v48 = vmul.f32 %v3271_v9, %v1074_v37  ;;  %v648_v11 = vld [vmem:[%s3265_s6 + $0x54] sm:$0xe] }
 0x106   : > { %v1039_v50 = vadd.f32 %v1007_v25, %v909_v44  ;;  %v1242_v51 = vrot.slane %v1119_v45, 1  ;;  %v1513_v52 = vrot.slane %v1391_v12, 2  ;;  %v1650_v54 = vunpack.c.l.bf16 %v2861_v42 }
 0x107   : > { %v1241_v19 = vsel %vm496_vm0, %v1239_v46, %v1240_v62  ;;  %v1512_v55 = vrot.slane %v1390_v23, 2  ;;  %v1515_v57 = vrot.slane %v1392_v48, 2  ;;  %v1651_v58 = vunpack.c.h.bf16 %v2861_v42 }
 0x108   : > { %v1243_v6 = vsel %vm496_vm0, %v1240_v62, %v1242_v51  ;;  %v1312_v53 = vadd.f32 %v1241_v19, %v1039_v50  ;;  %v1683_v31 = vmul.f32 %v3273_v10, %v1650_v54  ;;  %v1750_v61 = vunpack.c.l.bf16 %v2880_v49 }
 0x109   : > { %v1313_v59 = vadd.f32 %v1243_v6, %v1040_v47  ;;  %v1514_v0 = vsel %vm770_vm1, %v1512_v55, %v1513_v52  ;;  %v1516_v2 = vsel %vm770_vm1, %v1513_v52, %v1515_v57  ;;  %v1684_v1 = vmul.f32 %v3273_v10, %v1651_v58 }
 0x10a   : > { %v1585_v13 = vadd.f32 %v1514_v0, %v1312_v53  ;;  %v1793_v15 = vmul.f32 %v3278_v14, %v1650_v54  ;;  %v1794_v17 = vmul.f32 %v3278_v14, %v1651_v58  ;;  %v1795_v43 = vmul.f32 %v3278_v14, %v1750_v61 }
 0x10b   : > { %v1586_v20 = vadd.f32 %v1516_v2, %v1313_v59  ;;  %v2023_v22 = vunpack.c.l.bf16 %v2896_v63  ;;  %v2067_v25 = vmul.f32 %v3961_v24, %v1651_v58  ;;  %v2068_v26 = vmul.f32 %v3961_v24, %v1750_v61  ;;  %v2810_v63 = vld [vmem:[%s3265_s6 + $0x68] sm:$0x1] }
 0x10c   : > { %v1715_v27 = vadd.f32 %v1683_v31, %v1585_v13  ;;  %v1915_v28 = vrot.slane %v1793_v15, 1  ;;  %v1916_v16 = vrot.slane %v1794_v17, 1  ;;  %v1918_v29 = vrot.slane %v1795_v43, 1 }
 0x10d   : > { %v1716_v30 = vadd.f32 %v1684_v1, %v1586_v20  ;;  %v2066_v32 = vmul.f32 %v3961_v24, %v2023_v22  ;;  %v2189_v33 = vrot.slane %v2067_v25, 2  ;;  %v2191_v35 = vrot.slane %v2068_v26, 2 }
 0x10e   : > { %v1917_v36 = vsel %vm496_vm0, %v1915_v28, %v1916_v16  ;;  %v1919_v37 = vsel %vm496_vm0, %v1916_v16, %v1918_v29  ;;  %v284_v38 = vunpack.c.l.bf16 %v252_v56  ;;  %v285_v39 = vunpack.c.h.bf16 %v252_v56 }
 0x10f   : > { %v1988_v40 = vadd.f32 %v1917_v36, %v1715_v27  ;;  %v1989_v41 = vadd.f32 %v1919_v37, %v1716_v30  ;;  %v2188_v42 = vrot.slane %v2066_v32, 2  ;;  %v2192_v44 = vsel %vm770_vm1, %v2189_v33, %v2191_v35  ;;  %v2849_v35 = vld [vmem:[%s3265_s6 + $0x6c] sm:$0xff]  }
 0x110   : > { %v317_v45 = vmul.f32 %v3253_v3, %v284_v38  ;;  %v318_v46 = vmul.f32 %v3253_v3, %v285_v39  ;;  %v390_v12 = vunpack.c.l.bf16 %v374_v60  ;;  %v421_v47 = vmul.f32 %v3255_v4, %v284_v38 }
 0x111   : > { %v2190_v62 = vsel %vm770_vm1, %v2188_v42, %v2189_v33  ;;  %v2262_v23 = vadd.f32 %v2192_v44, %v1989_v41  ;;  %v422_v48 = vmul.f32 %v3255_v4, %v285_v39  ;;  %v664_v49 = vunpack.c.l.bf16 %v648_v11 }
 0x112   : > { %v2261_v50 = vadd.f32 %v2190_v62, %v1988_v40  ;;  %v423_v51 = vmul.f32 %v3255_v4, %v390_v12  ;;  %v532_v52 = vrot.slane %v421_v47, 1  ;;  %v696_v54 = vmul.f32 %v3257_v5, %v285_v39  ;;  %v2874_v39 = vld [vmem:[%s3265_s6 + $0x74] sm:$0x1] }
 0x113   : > { %v2298_v19 = vadd.f32 %v3713_v34, %v2262_v23  ;;  %v533_v55 = vrot.slane %v422_v48, 1  ;;  %v695_v57 = vmul.f32 %v3257_v5, %v664_v49  ;;  %v697_v58 = vmul.f32 %v3257_v5, %v390_v12  ;;  %v2890_v23 = vld [vmem:[%s3265_s6 + $0x6c] sm:$0xe] }
 0x114   : > { %v2297_v6 = vadd.f32 %v3713_v34, %v2261_v50  ;;  %v535_v53 = vrot.slane %v423_v51, 1  ;;  %v807_v31 = vrot.slane %v696_v54, 2  ;;  %v995_v61 = vmul.f32 %v3790_v18, %v3267_v7  ;;  %v2826_v34 = vld [vmem:[%s3265_s6 + $0x60] sm:$0xe] }
 0x115   : > { %v2330_v59 = vmax.f32 %v2298_v19, 0.0  ;;  %v534_v0 = vsel %vm496_vm0, %v532_v52, %v533_v55  ;;  %v806_v2 = vrot.slane %v695_v57, 2  ;;  %v809_v1 = vrot.slane %v697_v58, 2 }
 0x116   : > { %v2329_v13 = vmax.f32 %v2297_v6, 0.0  ;;  %v536_v15 = vsel %vm496_vm0, %v533_v55, %v535_v53  ;;  %v623_v17 = vadd.f32 %v534_v0, %v317_v45  ;;  %v996_v43 = vmul.f32 %v3793_v21, %v3267_v7 }
 0x117   : > { %v624_v20 = vadd.f32 %v536_v15, %v318_v46  ;;  %v808_v22 = vsel %vm770_vm1, %v806_v2, %v807_v31  ;;  %v810_v25 = vsel %vm770_vm1, %v807_v31, %v809_v1  ;;  %v1068_v26 = vunpack.c.l.bf16 %v2810_v63  ;;  %v260_v31 = vld [vmem:[%s3265_s6 + $0x84] sm:$0xff]  }
 0x118   : > { %v2348_v56 = vpack.c.bf16 %v2330_v59, %v2329_v13  ;;  %v897_v27 = vadd.f32 %v808_v22, %v623_v17  ;;  %v1099_v28 = vmul.f32 %v3790_v18, %v3269_v8  ;;  %v1100_v16 = vmul.f32 %v3793_v21, %v3269_v8  ;;  %v378_v17 = vld [vmem:[%s3265_s6 + $0x8c] sm:$0x1] }
 0x119   : > { %v898_v29 = vadd.f32 %v810_v25, %v624_v20  ;;  %v1101_v30 = vmul.f32 %v3269_v8, %v1068_v26  ;;  %v1341_v32 = vunpack.c.l.bf16 %v2826_v34  ;;  %v1373_v33 = vmul.f32 %v3793_v21, %v3271_v9 }
 0x11a   : > { %2488 = vmatmul.bf16.gmra.mxu3 %v2348_v56  ;;  %v1027_v60 = vadd.f32 %v995_v61, %v897_v27  ;;  %v1209_v36 = vrot.slane %v1099_v28, 1  ;;  %v1210_v37 = vrot.slane %v1100_v16, 1  ;;  %v1374_v38 = vmul.f32 %v3271_v9, %v1068_v26  ;;  %v652_v28 = vld [vmem:[%s3265_s6 + $0x84] sm:$0xe] }
 0x11b   : > { %v1028_v18 = vadd.f32 %v996_v43, %v898_v29  ;;  %v1212_v11 = vrot.slane %v1101_v30, 1  ;;  %v1372_v40 = vmul.f32 %v3271_v9, %v1341_v32  ;;  %v1483_v41 = vrot.slane %v1373_v33, 2 }
 0x11c   : > { %v1211_v42 = vsel %vm496_vm0, %v1209_v36, %v1210_v37  ;;  %v1485_v44 = vrot.slane %v1374_v38, 2  ;;  %v1638_v45 = vunpack.c.l.bf16 %v2849_v35  ;;  %v1639_v46 = vunpack.c.h.bf16 %v2849_v35 }
 0x11d   : > { %v1213_v21 = vsel %vm496_vm0, %v1210_v37, %v1212_v11  ;;  %v1300_v12 = vadd.f32 %v1211_v42, %v1027_v60  ;;  %v1482_v47 = vrot.slane %v1372_v40, 2  ;;  %v1744_v62 = vunpack.c.l.bf16 %v2874_v39  ;;  %v3130_v37 = vld [vmem:[%s3265_s6 + $0x90] sm:$0xff]   ;;  %v4033_v40 = vld [vmem:[%s4279_s2] ss:$0 sm:$0xff] }
 0x11e   : > { %v1301_v48 = vadd.f32 %v1213_v21, %v1028_v18  ;;  %v1486_v49 = vsel %vm770_vm1, %v1483_v41, %v1485_v44  ;;  %v1671_v50 = vmul.f32 %v3273_v10, %v1638_v45  ;;  %v1672_v51 = vmul.f32 %v3273_v10, %v1639_v46 }
 0x11f   : > { %v1484_v52 = vsel %vm770_vm1, %v1482_v47, %v1483_v41  ;;  %v1775_v54 = vmul.f32 %v3278_v14, %v1638_v45  ;;  %v1776_v19 = vmul.f32 %v3278_v14, %v1639_v46  ;;  %v1777_v55 = vmul.f32 %v3278_v14, %v1744_v62 }
 0x120   : > { %v1573_v57 = vadd.f32 %v1484_v52, %v1300_v12  ;;  %v1574_v58 = vadd.f32 %v1486_v49, %v1301_v48  ;;  %v2017_v6 = vunpack.c.l.bf16 %v2890_v23  ;;  %v2049_v53 = vmul.f32 %v3961_v24, %v1639_v46 }
 0x121   : > { %v1885_v61 = vrot.slane %v1775_v54, 1  ;;  %v1886_v63 = vrot.slane %v1776_v19, 1  ;;  %v1888_v59 = vrot.slane %v1777_v55, 1  ;;  %v2050_v0 = vmul.f32 %v3961_v24, %v1744_v62 }
 0x122   : > { %v1703_v2 = vadd.f32 %v1671_v50, %v1573_v57  ;;  %v1704_v1 = vadd.f32 %v1672_v51, %v1574_v58  ;;  %v2048_v13 = vmul.f32 %v3961_v24, %v2017_v6  ;;  %v2159_v15 = vrot.slane %v2049_v53, 2  ;;  %v2814_v50 = vld [vmem:[%s3265_s6 + $0x98] sm:$0x1]  ;;  %v2830_v53 = vld [vmem:[%s3265_s6 + $0x90] sm:$0xe] }
 0x123   : > { %v1887_v43 = vsel %vm496_vm0, %v1885_v61, %v1886_v63  ;;  %v1889_v34 = vsel %vm496_vm0, %v1886_v63, %v1888_v59  ;;  %v2161_v20 = vrot.slane %v2050_v0, 2  ;;  %v292_v22 = vunpack.c.l.bf16 %v260_v31 }
 0x124   : > { %v1976_v25 = vadd.f32 %v1887_v43, %v1703_v2  ;;  %v1977_v26 = vadd.f32 %v1889_v34, %v1704_v1  ;;  %v2158_v56 = vrot.slane %v2048_v13, 2  ;;  %v293_v27 = vunpack.c.h.bf16 %v260_v31 }
 0x125   : > { %v2162_v16 = vsel %vm770_vm1, %v2159_v15, %v2161_v20  ;;  %v325_v29 = vmul.f32 %v3253_v3, %v292_v22  ;;  %v394_v30 = vunpack.c.l.bf16 %v378_v17  ;;  %v433_v32 = vmul.f32 %v3255_v4, %v292_v22  ;;  %v2878_v22 = vld [vmem:[%s3265_s6 + $0xa4] sm:$0x1] }
 0x126   : > { %v2160_v33 = vsel %vm770_vm1, %v2158_v56, %v2159_v15  ;;  %v2250_v35 = vadd.f32 %v2162_v16, %v1977_v26  ;;  %v326_v60 = vmul.f32 %v3253_v3, %v293_v27  ;;  %v434_v36 = vmul.f32 %v3255_v4, %v293_v27  ;;  %v2857_v15 = vld [vmem:[%s3265_s6 + $0x9c] sm:$0xff]  }
 0x127   : > { %v2249_v38 = vadd.f32 %v2160_v33, %v1976_v25  ;;  %v435_v39 = vmul.f32 %v3255_v4, %v394_v30  ;;  %v552_v18 = vrot.slane %v433_v32, 1  ;;  %v668_v11 = vunpack.c.l.bf16 %v652_v28 }
 0x128   : > { %v2286_v41 = vadd.f32 %v4033_v40, %v2250_v35  ;;  %v553_v42 = vrot.slane %v434_v36, 1  ;;  %v708_v44 = vmul.f32 %v3257_v5, %v293_v27  ;;  %v709_v45 = vmul.f32 %v3257_v5, %v394_v30  ;;  %v2894_v36 = vld [vmem:[%s3265_s6 + $0x9c] sm:$0xe] }
 0x129   : > { %v2285_v46 = vadd.f32 %v4033_v40, %v2249_v38  ;;  %v555_v21 = vrot.slane %v435_v39, 1  ;;  %v707_v12 = vmul.f32 %v3257_v5, %v668_v11  ;;  %v2996_v47 = vunpack.c.l.bf16 %v3130_v37 }
 0x12a   : > { %v2318_v62 = vmax.f32 %v2286_v41, 0.0  ;;  %v554_v23 = vsel %vm496_vm0, %v552_v18, %v553_v42  ;;  %v827_v48 = vrot.slane %v708_v44, 2  ;;  %v829_v49 = vrot.slane %v709_v45, 2 }
 0x12b   : > { %v2317_v51 = vmax.f32 %v2285_v46, 0.0  ;;  %v556_v52 = vsel %vm496_vm0, %v553_v42, %v555_v21  ;;  %v631_v54 = vadd.f32 %v554_v23, %v325_v29  ;;  %v826_v19 = vrot.slane %v707_v12, 2 }
 0x12c   : > { %v632_v55 = vadd.f32 %v556_v52, %v326_v60  ;;  %v830_v57 = vsel %vm770_vm1, %v827_v48, %v829_v49  ;;  %v2997_v58 = vunpack.c.h.bf16 %v3130_v37  ;;  %v1003_v6 = vmul.f32 %v2996_v47, %v3267_v7 }
 0x12d   : > { %v2342_v31 = vpack.c.bf16 %v2318_v62, %v2317_v51  ;;  %v828_v61 = vsel %vm770_vm1, %v826_v19, %v827_v48  ;;  %v1072_v63 = vunpack.c.l.bf16 %v2814_v50  ;;  %v1111_v59 = vmul.f32 %v2996_v47, %v3269_v8  ;;  %v3124_v47 = vld [vmem:[%s3265_s6 + $0xa8] sm:$0xff]  }
 0x12e   : > { %v905_v0 = vadd.f32 %v828_v61, %v631_v54  ;;  %v906_v2 = vadd.f32 %v830_v57, %v632_v55  ;;  %v1004_v1 = vmul.f32 %v2997_v58, %v3267_v7  ;;  %v1112_v13 = vmul.f32 %v2997_v58, %v3269_v8 }
 0x12f   : > { %2458 = vmatmul.bf16.gmra.mxu1 %v2342_v31  ;;  %v1113_v17 = vmul.f32 %v3269_v8, %v1072_v63  ;;  %v1229_v43 = vrot.slane %v1111_v59, 1  ;;  %v1345_v34 = vunpack.c.l.bf16 %v2830_v53  ;;  %v1385_v20 = vmul.f32 %v2997_v58, %v3271_v9 }
 0x130   : > { %v1035_v25 = vadd.f32 %v1003_v6, %v905_v0  ;;  %v1036_v26 = vadd.f32 %v1004_v1, %v906_v2  ;;  %v1230_v56 = vrot.slane %v1112_v13, 1  ;;  %v1386_v27 = vmul.f32 %v3271_v9, %v1072_v63  ;;  %v381_v6 = vld [vmem:[%s3265_s6 + $0xb0] sm:$0x1]  ;;  %v655_v13 = vld [vmem:[%s3265_s6 + $0xa8] sm:$0xe] }
 0x131   : > { %v1232_v28 = vrot.slane %v1113_v17, 1  ;;  %v1384_v16 = vmul.f32 %v3271_v9, %v1345_v34  ;;  %v1503_v29 = vrot.slane %v1385_v20, 2  ;;  %v1646_v30 = vunpack.c.l.bf16 %v2857_v15 }
 0x132   : > { %v1231_v32 = vsel %vm496_vm0, %v1229_v43, %v1230_v56  ;;  %v1505_v33 = vrot.slane %v1386_v27, 2  ;;  %v1647_v35 = vunpack.c.h.bf16 %v2857_v15  ;;  %v1748_v60 = vunpack.c.l.bf16 %v2878_v22 }
 0x133   : > { %v1233_v37 = vsel %vm496_vm0, %v1230_v56, %v1232_v28  ;;  %v1308_v38 = vadd.f32 %v1231_v32, %v1035_v25  ;;  %v1502_v39 = vrot.slane %v1384_v16, 2  ;;  %v1679_v18 = vmul.f32 %v3273_v10, %v1646_v30  ;;  %v2799_v56 = vld [vmem:[%s3265_s6 + $0xb4] sm:$0xff]  }
 0x134   : > { %v1309_v11 = vadd.f32 %v1233_v37, %v1036_v26  ;;  %v1506_v41 = vsel %vm770_vm1, %v1503_v29, %v1505_v33  ;;  %v1680_v42 = vmul.f32 %v3273_v10, %v1647_v35  ;;  %v1787_v44 = vmul.f32 %v3278_v14, %v1646_v30 }
 0x135   : > { %v1504_v45 = vsel %vm770_vm1, %v1502_v39, %v1503_v29  ;;  %v1788_v46 = vmul.f32 %v3278_v14, %v1647_v35  ;;  %v1789_v21 = vmul.f32 %v3278_v14, %v1748_v60  ;;  %v2021_v12 = vunpack.c.l.bf16 %v2894_v36 }
 0x136   : > { %v1581_v62 = vadd.f32 %v1504_v45, %v1308_v38  ;;  %v1582_v23 = vadd.f32 %v1506_v41, %v1309_v11  ;;  %v1905_v48 = vrot.slane %v1787_v44, 1  ;;  %v2061_v49 = vmul.f32 %v3961_v24, %v1647_v35 }
 0x137   : > { %v1906_v50 = vrot.slane %v1788_v46, 1  ;;  %v1908_v51 = vrot.slane %v1789_v21, 1  ;;  %v2060_v52 = vmul.f32 %v3961_v24, %v2021_v12  ;;  %v2062_v54 = vmul.f32 %v3961_v24, %v1748_v60  ;;  %v2833_v12 = vld [vmem:[%s3265_s6 + $0xb4] sm:$0xe] }
 0x138   : > { %v1711_v19 = vadd.f32 %v1679_v18, %v1581_v62  ;;  %v1712_v55 = vadd.f32 %v1680_v42, %v1582_v23  ;;  %v2179_v57 = vrot.slane %v2061_v49, 2  ;;  %v2972_v58 = vunpack.c.l.bf16 %v3124_v47  ;;  %v2817_v42 = vld [vmem:[%s3265_s6 + $0xbc] sm:$0x1] }
 0x139   : > { %v1907_v53 = vsel %vm496_vm0, %v1905_v48, %v1906_v50  ;;  %v1909_v31 = vsel %vm496_vm0, %v1906_v50, %v1908_v51  ;;  %v2178_v61 = vrot.slane %v2060_v52, 2  ;;  %v2181_v63 = vrot.slane %v2062_v54, 2 }
 0x13a   : > { %v1984_v59 = vadd.f32 %v1907_v53, %v1711_v19  ;;  %v1985_v0 = vadd.f32 %v1909_v31, %v1712_v55  ;;  %v2973_v2 = vunpack.c.h.bf16 %v3124_v47  ;;  %v331_v1 = vmul.f32 %v2972_v58, %v3253_v3 }
 0x13b   : > { %v2180_v15 = vsel %vm770_vm1, %v2178_v61, %v2179_v57  ;;  %v2182_v17 = vsel %vm770_vm1, %v2179_v57, %v2181_v63  ;;  %v397_v43 = vunpack.c.l.bf16 %v381_v6  ;;  %v442_v34 = vmul.f32 %v2972_v58, %v3255_v4  ;;  %v3140_v58 = vld [vmem:[%s3265_s6 + $0xc0] sm:$0xff]   ;;  %v2881_v63 = vld [vmem:[%s3265_s6 + $0xc8] sm:$0x1] }
 0x13c   : > { %v2257_v20 = vadd.f32 %v2180_v15, %v1984_v59  ;;  %v2258_v22 = vadd.f32 %v2182_v17, %v1985_v0  ;;  %v332_v25 = vmul.f32 %v2973_v2, %v3253_v3  ;;  %v443_v26 = vmul.f32 %v2973_v2, %v3255_v4 }
 0x13d   : > { %v444_v27 = vmul.f32 %v3255_v4, %v397_v43  ;;  %v567_v28 = vrot.slane %v442_v34, 1  ;;  %v671_v16 = vunpack.c.l.bf16 %v655_v13  ;;  %v717_v29 = vmul.f32 %v2973_v2, %v3257_v5 }
 0x13e   : > { %v2293_v30 = vadd.f32 %v4033_v40, %v2257_v20  ;;  %v2294_v32 = vadd.f32 %v4033_v40, %v2258_v22  ;;  %v568_v33 = vrot.slane %v443_v26, 1  ;;  %v718_v35 = vmul.f32 %v3257_v5, %v397_v43  ;;  %v2897_v26 = vld [vmem:[%s3265_s6 + $0xc0] sm:$0xe] }
 0x13f   : > { %v570_v60 = vrot.slane %v444_v27, 1  ;;  %v716_v36 = vmul.f32 %v3257_v5, %v671_v16  ;;  %v842_v37 = vrot.slane %v717_v29, 2  ;;  %v976_v38 = vunpack.c.l.bf16 %v2799_v56 }
 0x140   : > { %v2325_v39 = vmax.f32 %v2293_v30, 0.0  ;;  %v2326_v18 = vmax.f32 %v2294_v32, 0.0  ;;  %v569_v11 = vsel %vm496_vm0, %v567_v28, %v568_v33  ;;  %v844_v41 = vrot.slane %v718_v35, 2 }
 0x141   : > { %v571_v44 = vsel %vm496_vm0, %v568_v33, %v570_v60  ;;  %v637_v45 = vadd.f32 %v569_v11, %v331_v1  ;;  %v841_v46 = vrot.slane %v716_v36, 2  ;;  %v977_v21 = vunpack.c.h.bf16 %v2799_v56 }
 0x142   : > { %v2346_v47 = vpack.c.bf16 %v2326_v18, %v2325_v39  ;;  %v638_v62 = vadd.f32 %v571_v44, %v332_v25  ;;  %v845_v23 = vsel %vm770_vm1, %v842_v37, %v844_v41  ;;  %v1009_v48 = vmul.f32 %v3267_v7, %v976_v38 }
 0x143   : > { %v843_v49 = vsel %vm770_vm1, %v841_v46, %v842_v37  ;;  %v1010_v50 = vmul.f32 %v3267_v7, %v977_v21  ;;  %v1075_v51 = vunpack.c.l.bf16 %v2817_v42  ;;  %v1120_v52 = vmul.f32 %v3269_v8, %v976_v38  ;;  %v268_v38 = vld [vmem:[%s3265_s6 + $0xb4] sm:$0xff]  }
 0x144   : > { %2478 = vmatmul.bf16.gmra.mxu2 %v2346_v47  ;;  %v911_v54 = vadd.f32 %v843_v49, %v637_v45  ;;  %v912_v19 = vadd.f32 %v845_v23, %v638_v62  ;;  %v1121_v55 = vmul.f32 %v3269_v8, %v977_v21  ;;  %v1348_v57 = vunpack.c.l.bf16 %v2833_v12  ;;  %v382_v23 = vld [vmem:[%s3265_s6 + $0xbc] sm:$0x1] }
 0x145   : > { %v1122_v6 = vmul.f32 %v3269_v8, %v1075_v51  ;;  %v1244_v53 = vrot.slane %v1120_v52, 1  ;;  %v1394_v31 = vmul.f32 %v3271_v9, %v977_v21  ;;  %v1395_v61 = vmul.f32 %v3271_v9, %v1075_v51  ;;  %v656_v52 = vld [vmem:[%s3265_s6 + $0xb4] sm:$0xe] }
 0x146   : > { %v1041_v59 = vadd.f32 %v1009_v48, %v911_v54  ;;  %v1042_v0 = vadd.f32 %v1010_v50, %v912_v19  ;;  %v1245_v2 = vrot.slane %v1121_v55, 1  ;;  %v1393_v1 = vmul.f32 %v3271_v9, %v1348_v57 }
 0x147   : > { %v1247_v13 = vrot.slane %v1122_v6, 1  ;;  %v1518_v15 = vrot.slane %v1394_v31, 2  ;;  %v1520_v17 = vrot.slane %v1395_v61, 2  ;;  %v4103_v43 = vunpack.c.l.bf16 %v3140_v58  ;;  %v4134_v6 = vpop.f32.mrf.mxu1 }
 0x148   : > { %v1246_v34 = vsel %vm496_vm0, %v1244_v53, %v1245_v2  ;;  %v1517_v20 = vrot.slane %v1393_v1, 2  ;;  %v4106_v22 = vunpack.c.h.bf16 %v3140_v58  ;;  %v1751_v25 = vunpack.c.l.bf16 %v2881_v63  ;;  %v4132_v58 = vpop.f32.mrf.mxu0 }
 0x149   : > { %v1248_v56 = vsel %vm496_vm0, %v1245_v2, %v1247_v13  ;;  %v1314_v27 = vadd.f32 %v1246_v34, %v1041_v59  ;;  %v1521_v28 = vsel %vm770_vm1, %v1518_v15, %v1520_v17  ;;  %v1685_v16 = vmul.f32 %v4103_v43, %v3273_v10  ;;  %v4139_v59 = vpop.f32.mrf.mxu2 }
 0x14a   : > { %v1315_v29 = vadd.f32 %v1248_v56, %v1042_v0  ;;  %v1519_v30 = vsel %vm770_vm1, %v1517_v20, %v1518_v15  ;;  %v1686_v32 = vmul.f32 %v4106_v22, %v3273_v10  ;;  %v1796_v33 = vmul.f32 %v4103_v43, %v3278_v14 }
 0x14b   : > { %v1587_v35 = vadd.f32 %v1519_v30, %v1314_v27  ;;  %v1797_v60 = vmul.f32 %v4106_v22, %v3278_v14  ;;  %v1798_v36 = vmul.f32 %v3278_v14, %v1751_v25  ;;  %v2024_v37 = vunpack.c.l.bf16 %v2897_v26 }
 0x14c   : > { %v1588_v39 = vadd.f32 %v1521_v28, %v1315_v29  ;;  %v1920_v18 = vrot.slane %v1796_v33, 1  ;;  %v2070_v11 = vmul.f32 %v3961_v24, %v4106_v22  ;;  %v2071_v41 = vmul.f32 %v3961_v24, %v1751_v25 }
 0x14d   : > { %v1717_v42 = vadd.f32 %v1685_v16, %v1587_v35  ;;  %v1921_v44 = vrot.slane %v1797_v60, 1  ;;  %v1923_v45 = vrot.slane %v1798_v36, 1  ;;  %v2069_v46 = vmul.f32 %v3961_v24, %v2024_v37  ;;  %v2834_v60 = vld [vmem:[%s3265_s6 + $0xc0] sm:$0xe] }
 0x14e   : > { %v1718_v21 = vadd.f32 %v1686_v32, %v1588_v39  ;;  %v2194_v12 = vrot.slane %v2070_v11, 2  ;;  %v2196_v47 = vrot.slane %v2071_v41, 2  ;;  %v300_v62 = vunpack.c.l.bf16 %v268_v38 }
 0x14f   : > { %v1922_v48 = vsel %vm496_vm0, %v1920_v18, %v1921_v44  ;;  %v1924_v49 = vsel %vm496_vm0, %v1921_v44, %v1923_v45  ;;  %v2193_v50 = vrot.slane %v2069_v46, 2  ;;  %v301_v51 = vunpack.c.h.bf16 %v268_v38  ;;  %v4160_v44 = vpop.f32.mrf.mxu1 }
 0x150   : > { %v1990_v54 = vadd.f32 %v1922_v48, %v1717_v42  ;;  %v1991_v19 = vadd.f32 %v1924_v49, %v1718_v21  ;;  %v2197_v55 = vsel %vm770_vm1, %v2194_v12, %v2196_v47  ;;  %v333_v57 = vmul.f32 %v3253_v3, %v300_v62  ;;  %v4158_v42 = vpop.f32.mrf.mxu0  ;;  %v2865_v49 = vld [vmem:[%s3265_s6 + $0xcc] sm:$0xff]  }
 0x151   : > { %v2195_v53 = vsel %vm770_vm1, %v2193_v50, %v2194_v12  ;;  %v334_v31 = vmul.f32 %v3253_v3, %v301_v51  ;;  %v398_v61 = vunpack.c.l.bf16 %v382_v23  ;;  %v445_v63 = vmul.f32 %v3255_v4, %v300_v62 }
 0x152   : > { %v2263_v0 = vadd.f32 %v2195_v53, %v1990_v54  ;;  %v2264_v2 = vadd.f32 %v2197_v55, %v1991_v19  ;;  %v446_v1 = vmul.f32 %v3255_v4, %v301_v51  ;;  %v672_v13 = vunpack.c.l.bf16 %v656_v52  ;;  %v2882_v54 = vld [vmem:[%s3265_s6 + $0xd4] sm:$0x1] }
 0x153   : > { %v447_v15 = vmul.f32 %v3255_v4, %v398_v61  ;;  %v572_v17 = vrot.slane %v445_v63, 1  ;;  %v720_v34 = vmul.f32 %v3257_v5, %v301_v51  ;;  %v721_v20 = vmul.f32 %v3257_v5, %v398_v61  ;;  %v2818_v4 = vld [vmem:[%s3265_s6 + $0xc8] sm:$0x1] }
 0x154   : > { %v2299_v3 = vadd.f32 %v4033_v40, %v2263_v0  ;;  %v2300_v25 = vadd.f32 %v4033_v40, %v2264_v2  ;;  %v573_v26 = vrot.slane %v446_v1, 1  ;;  %v719_v56 = vmul.f32 %v3257_v5, %v672_v13  ;;  %v2898_v13 = vld [vmem:[%s3265_s6 + $0xcc] sm:$0xe] }
 0x155   : > { %v575_v27 = vrot.slane %v447_v15, 1  ;;  %v847_v28 = vrot.slane %v720_v34, 2  ;;  %v849_v16 = vrot.slane %v721_v20, 2  ;;  %v1011_v29 = vmul.f32 %v4103_v43, %v3267_v7  ;;  %v4182_v20 = vpop.f32.mrf.mxu3 }
 0x156   : > { %v2331_v30 = vmax.f32 %v2299_v3, 0.0  ;;  %v2332_v32 = vmax.f32 %v2300_v25, 0.0  ;;  %v574_v33 = vsel %vm496_vm0, %v572_v17, %v573_v26  ;;  %v846_v35 = vrot.slane %v719_v56, 2 }
 0x157   : > { %v576_v36 = vsel %vm496_vm0, %v573_v26, %v575_v27  ;;  %v639_v37 = vadd.f32 %v574_v33, %v333_v57  ;;  %v850_v38 = vsel %vm770_vm1, %v847_v28, %v849_v16  ;;  %v1012_v5 = vmul.f32 %v4106_v22, %v3267_v7  ;;  %v4166_v7 = vpop.f32.mrf.mxu2 }
 0x158   : > { %v2349_v39 = vpack.c.bf16 %v2332_v32, %v2331_v30  ;;  %v640_v18 = vadd.f32 %v576_v36, %v334_v31  ;;  %v848_v11 = vsel %vm770_vm1, %v846_v35, %v847_v28  ;;  %v1076_v41 = vunpack.c.l.bf16 %v2818_v4  ;;  %v2429_v27 = vpop.f32.mrf.mxu0  ;;  %v4188_v28 = vpop.f32.mrf.mxu1 }
 0x159   : > { %v913_v45 = vadd.f32 %v848_v11, %v639_v37  ;;  %v1123_v46 = vmul.f32 %v4103_v43, %v3269_v8  ;;  %v1124_v21 = vmul.f32 %v4106_v22, %v3269_v8  ;;  %v1349_v12 = vunpack.c.l.bf16 %v2834_v60 }
 0x15a   : > { %2493 = vmatmul.bf16.gmra.mxu3 %v2349_v39  ;;  %v914_v47 = vadd.f32 %v850_v38, %v640_v18  ;;  %v1125_v62 = vmul.f32 %v3269_v8, %v1076_v41  ;;  %v1397_v23 = vmul.f32 %v4106_v22, %v3271_v9  ;;  %v1398_v48 = vmul.f32 %v3271_v9, %v1076_v41 }
 0x15b   : > { %v1043_v50 = vadd.f32 %v1011_v29, %v913_v45  ;;  %v1249_v51 = vrot.slane %v1123_v46, 1  ;;  %v1250_v43 = vrot.slane %v1124_v21, 1  ;;  %v1396_v52 = vmul.f32 %v3271_v9, %v1349_v12 }
 0x15c   : > { %v1044_v19 = vadd.f32 %v1012_v5, %v914_v47  ;;  %v1252_v55 = vrot.slane %v1125_v62, 1  ;;  %v1523_v57 = vrot.slane %v1397_v23, 2  ;;  %v1525_v53 = vrot.slane %v1398_v48, 2 }
 0x15d   : > { %v1251_v31 = vsel %vm496_vm0, %v1249_v51, %v1250_v43  ;;  %v1522_v8 = vrot.slane %v1396_v52, 2  ;;  %v1654_v61 = vunpack.c.l.bf16 %v2865_v49  ;;  %v1655_v22 = vunpack.c.h.bf16 %v2865_v49 }
 0x15e   : > { %v1253_v63 = vsel %vm496_vm0, %v1250_v43, %v1252_v55  ;;  %v1316_v0 = vadd.f32 %v1251_v31, %v1043_v50  ;;  %v1526_v2 = vsel %vm770_vm1, %v1523_v57, %v1525_v53  ;;  %v1752_v1 = vunpack.c.l.bf16 %v2882_v54 }
 0x15f   : > { %v1317_v15 = vadd.f32 %v1253_v63, %v1044_v19  ;;  %v1524_v9 = vsel %vm770_vm1, %v1522_v8, %v1523_v57  ;;  %v1687_v17 = vmul.f32 %v3273_v10, %v1654_v61  ;;  %v1688_v34 = vmul.f32 %v3273_v10, %v1655_v22  ;;  %v4192_v10 = vpop.f32.mrf.mxu2  ;;  %v4221_v8 = vpop.f32.mrf.mxu3 }
 0x160   : > { %v1589_v3 = vadd.f32 %v1524_v9, %v1316_v0  ;;  %v1799_v25 = vmul.f32 %v3278_v14, %v1654_v61  ;;  %v1800_v26 = vmul.f32 %v3278_v14, %v1655_v22  ;;  %v1801_v56 = vmul.f32 %v3278_v14, %v1752_v1  ;;  %v2431_v43 = vpop.f32.mrf.mxu0  ;;  %v2451_v52 = vpop.f32.mrf.mxu1 }
 0x161   : > { %v1590_v16 = vadd.f32 %v1526_v2, %v1317_v15  ;;  %v2025_v29 = vunpack.c.l.bf16 %v2898_v13  ;;  %v2073_v4 = vmul.f32 %v3961_v24, %v1655_v22  ;;  %v2074_v30 = vmul.f32 %v3961_v24, %v1752_v1 }
 0x162   : > { %v1719_v32 = vadd.f32 %v1687_v17, %v1589_v3  ;;  %v1925_v33 = vrot.slane %v1799_v25, 1  ;;  %v1926_v35 = vrot.slane %v1800_v26, 1  ;;  %v1928_v60 = vrot.slane %v1801_v56, 1 }
 0x163   : > { %v1720_v36 = vadd.f32 %v1688_v34, %v1590_v16  ;;  %v2072_v37 = vmul.f32 %v3961_v24, %v2025_v29  ;;  %v2199_v14 = vrot.slane %v2073_v4, 2  ;;  %v2201_v38 = vrot.slane %v2074_v30, 2 }
 0x164   : > { %v1927_v5 = vsel %vm496_vm0, %v1925_v33, %v1926_v35  ;;  %v1929_v39 = vsel %vm496_vm0, %v1926_v35, %v1928_v60  ;;  %v3041_v18 = vpack.c.bf16 %v4158_v42, %v4132_v58  ;;  %v2606_v46 = vmul.f32 %v4132_v58, %v4132_v58 }
 0x165   : > { %v1992_v11 = vadd.f32 %v1927_v5, %v1719_v32  ;;  %v1993_v41 = vadd.f32 %v1929_v39, %v1720_v36  ;;  %v2198_v45 = vrot.slane %v2072_v37, 2  ;;  %v2202_v24 = vsel %vm770_vm1, %v2199_v14, %v2201_v38 }
 0x166   : > { %3042 = vst [vmem:[%s4198_s9] sm:$0xff] %v3041_v18   ;;  %v2568_v21 = vadd.f32 %v4158_v42, %v4132_v58  ;;  %v2607_v12 = vmul.f32 %v4158_v42, %v4158_v42  ;;  %v2608_v47 = vmul.f32 %v2429_v27, %v2429_v27  ;;  %v3061_v48 = vpack.c.bf16 %v4160_v44, %v4134_v6 }
 0x167   : > { %v2200_v62 = vsel %vm770_vm1, %v2198_v45, %v2199_v14  ;;  %v2266_v23 = vadd.f32 %v2202_v24, %v1993_v41  ;;  %v3046_v58 = vpack.c.bf16 %v2431_v43, %v2429_v27  ;;  %v2609_v42 = vmul.f32 %v2431_v43, %v2431_v43  ;;  %v4219_v31 = vpop.f32.mrf.mxu2 }
 0x168   : > { %v2265_v49 = vadd.f32 %v2200_v62, %v1992_v11  ;;  %v2638_v50 = vadd.f32 %v2607_v12, %v2606_v46  ;;  %v2569_v51 = vadd.f32 %v2568_v21, %v2429_v27  ;;  %3144 = vst [vmem:[%s4198_s9 + $0x20] sm:$0xff] %v3061_v48   ;;  %v3066_v53 = vpack.c.bf16 %v2451_v52, %v4188_v28  ;;  %v2434_v13 = vpop.f32.mrf.mxu0  ;;  %v2454_v15 = vpop.f32.mrf.mxu1 }
 0x169   : > { %v2302_v54 = vadd.f32 %v4033_v40, %v2266_v23  ;;  %3141 = vst [vmem:[%s4198_s9 + $0x8] sm:$0xff] %v3046_v58   ;;  %v3081_v22 = vpack.c.bf16 %v4166_v7, %v4139_v59  ;;  %v3101_v2 = vpack.c.bf16 %v4221_v8, %v4182_v20  ;;  %v2610_v17 = vmul.f32 %v2434_v13, %v2434_v13 }
 0x16a   : > { %v2301_v19 = vadd.f32 %v4033_v40, %v2265_v49  ;;  %v2639_v55 = vadd.f32 %v2638_v50, %v2608_v47  ;;  %v2570_v57 = vadd.f32 %v2569_v51, %v2431_v43  ;;  %3145 = vst [vmem:[%s4198_s9 + $0x28] sm:$0xff] %v3066_v53   ;;  %v3086_v40 = vpack.c.bf16 %v4219_v31, %v4192_v10 }
 0x16b   : > { %v2334_v61 = vmax.f32 %v2302_v54, 0.0  ;;  %3148 = vst [vmem:[%s4198_s9 + $0x40] sm:$0xff] %v3081_v22   ;;  %v2614_v14 = vmul.f32 %v4134_v6, %v4134_v6  ;;  %v2615_v39 = vmul.f32 %v4160_v44, %v4160_v44  ;;  %v2616_v41 = vmul.f32 %v4188_v28, %v4188_v28 }
 0x16c   : > { %v2333_v63 = vmax.f32 %v2301_v19, 0.0  ;;  %v2640_v0 = vadd.f32 %v2639_v55, %v2609_v42  ;;  %3149 = vst [vmem:[%s4198_s9 + $0x48] sm:$0xff] %v3086_v40   ;;  %v2571_v9 = vadd.f32 %v2570_v57, %v2434_v13  ;;  %v2617_v46 = vmul.f32 %v2451_v52, %v2451_v52 }
 0x16d   : > { %3152 = vst [vmem:[%s4198_s9 + $0x60] sm:$0xff] %v3101_v2   ;;  %v2618_v47 = vmul.f32 %v2454_v15, %v2454_v15  ;;  %v2623_v2 = vmul.f32 %v4166_v7, %v4166_v7 }
 0x16e   : > { %v2350_v1 = vpack.c.bf16 %v2334_v61, %v2333_v63  ;;  %v2641_v34 = vadd.f32 %v2640_v0, %v2610_v17  ;;  %v2622_v63 = vmul.f32 %v4139_v59, %v4139_v59 }
 0x170   : > { %2498 = vmatmul.bf16.gmra.mxu3 %v2350_v1  ;;  %v2436_v3 = vpop.f32.mrf.mxu0  ;;  %v2456_v25 = vpop.f32.mrf.mxu1 }
 0x171   : > { %v3051_v26 = vpack.c.bf16 %v2436_v3, %v2434_v13  ;;  %v2572_v56 = vadd.f32 %v2571_v9, %v2436_v3  ;;  %v2611_v27 = vmul.f32 %v2436_v3, %v2436_v3  ;;  %v3071_v16 = vpack.c.bf16 %v2456_v25, %v2454_v15 }
 0x172   : > { %v2619_v48 = vmul.f32 %v2456_v25, %v2456_v25 }
 0x173   : > { %3142 = vst [vmem:[%s4198_s9 + $0x10] sm:$0xff] %v3051_v26   ;;  %v2642_v29 = vadd.f32 %v2641_v34, %v2611_v27  ;;  %v2625_v34 = vmul.f32 %v4219_v31, %v4219_v31 }
 0x174   : > { %3146 = vst [vmem:[%s4198_s9 + $0x30] sm:$0xff] %v3071_v16  }
 0x178   : > { %v2439_v4 = vpop.f32.mrf.mxu0 }
 0x179   : > { %v2573_v30 = vadd.f32 %v2572_v56, %v2439_v4  ;;  %v2612_v32 = vmul.f32 %v2439_v4, %v2439_v4 }
 0x17b   : > { %v2643_v33 = vadd.f32 %v2642_v29, %v2612_v32 }
 0x180   : > { %v2441_v35 = vpop.f32.mrf.mxu0 }
 0x181   : > { %v3056_v60 = vpack.c.bf16 %v2441_v35, %v2439_v4  ;;  %v2574_v36 = vadd.f32 %v2573_v30, %v2441_v35  ;;  %v2613_v37 = vmul.f32 %v2441_v35, %v2441_v35 }
 0x183   : > { %3143 = vst [vmem:[%s4198_s9 + $0x18] sm:$0xff] %v3056_v60   ;;  %v2575_v38 = vadd.f32 %v2574_v36, %v4134_v6  ;;  %v2644_v5 = vadd.f32 %v2643_v33, %v2613_v37  ;;  %v2630_v37 = vmul.f32 %v4182_v20, %v4182_v20 }
 0x185   : > { %v2576_v18 = vadd.f32 %v2575_v38, %v4160_v44  ;;  %v2645_v11 = vadd.f32 %v2644_v5, %v2614_v14  ;;  %v2631_v38 = vmul.f32 %v4221_v8, %v4221_v8 }
 0x187   : > { %v2577_v45 = vadd.f32 %v2576_v18, %v4188_v28  ;;  %v2646_v24 = vadd.f32 %v2645_v11, %v2615_v39  ;;  %v2474_v23 = vpop.f32.mrf.mxu2 }
 0x189   : > { %v2647_v21 = vadd.f32 %v2646_v24, %v2616_v41  ;;  %v2578_v12 = vadd.f32 %v2577_v45, %v2451_v52 }
 0x18b   : > { %v2579_v6 = vadd.f32 %v2578_v12, %v2454_v15  ;;  %v2648_v62 = vadd.f32 %v2647_v21, %v2617_v46  ;;  %v2624_v15 = vmul.f32 %v4192_v10, %v4192_v10 }
 0x18d   : > { %v2580_v49 = vadd.f32 %v2579_v6, %v2456_v25  ;;  %v2649_v50 = vadd.f32 %v2648_v62, %v2618_v47 }
 0x18f   : > { %v2650_v44 = vadd.f32 %v2649_v50, %v2619_v48  ;;  %v2476_v43 = vpop.f32.mrf.mxu2 }
 0x190   : > { %v3091_v54 = vpack.c.bf16 %v2476_v43, %v2474_v23  ;;  %v2627_v16 = vmul.f32 %v2476_v43, %v2476_v43 }
 0x192   : > { %3150 = vst [vmem:[%s4198_s9 + $0x50] sm:$0xff] %v3091_v54  }
 0x19d   : > { %v2489_v51 = vpop.f32.mrf.mxu3 }
 0x19e   : > { %v2632_v18 = vmul.f32 %v2489_v51, %v2489_v51 }
 0x1a5   : > { %v2491_v28 = vpop.f32.mrf.mxu3 }
 0x1a6   : > { %v3106_v58 = vpack.c.bf16 %v2491_v28, %v2489_v51  ;;  %v2633_v45 = vmul.f32 %v2491_v28, %v2491_v28 }
 0x1a8   : > { %3153 = vst [vmem:[%s4198_s9 + $0x68] sm:$0xff] %v3106_v58  }
 0x1ac   : > { %v2459_v42 = vpop.f32.mrf.mxu1 }
 0x1ad   : > { %v2581_v19 = vadd.f32 %v2580_v49, %v2459_v42  ;;  %v2620_v55 = vmul.f32 %v2459_v42, %v2459_v42 }
 0x1af   : > { %v2651_v52 = vadd.f32 %v2650_v44, %v2620_v55 }
 0x1b4   : > { %v2461_v57 = vpop.f32.mrf.mxu1 }
 0x1b5   : > { %v3076_v53 = vpack.c.bf16 %v2461_v57, %v2459_v42  ;;  %v2582_v61 = vadd.f32 %v2581_v19, %v2461_v57  ;;  %v2621_v22 = vmul.f32 %v2461_v57, %v2461_v57 }
 0x1b7   : > { %3147 = vst [vmem:[%s4198_s9 + $0x38] sm:$0xff] %v3076_v53   ;;  %v2583_v0 = vadd.f32 %v2582_v61, %v4139_v59  ;;  %v2652_v40 = vadd.f32 %v2651_v52, %v2621_v22  ;;  %v2626_v59 = vmul.f32 %v2474_v23, %v2474_v23 }
 0x1b9   : > { %v2584_v1 = vadd.f32 %v2583_v0, %v4166_v7  ;;  %v2653_v13 = vadd.f32 %v2652_v40, %v2622_v63 }
 0x1bb   : > { %v2585_v9 = vadd.f32 %v2584_v1, %v4192_v10  ;;  %v2654_v17 = vadd.f32 %v2653_v13, %v2623_v2 }
 0x1bd   : > { %v2655_v3 = vadd.f32 %v2654_v17, %v2624_v15  ;;  %v2586_v25 = vadd.f32 %v2585_v9, %v4219_v31 }
 0x1bf   : > { %v2587_v26 = vadd.f32 %v2586_v25, %v2474_v23  ;;  %v2656_v56 = vadd.f32 %v2655_v3, %v2625_v34 }
 0x1c1   : > { %v2588_v27 = vadd.f32 %v2587_v26, %v2476_v43  ;;  %v2657_v7 = vadd.f32 %v2656_v56, %v2626_v59 }
 0x1c3   : > { %v2658_v29 = vadd.f32 %v2657_v7, %v2627_v16 }
 0x1c7   : > { %v2479_v4 = vpop.f32.mrf.mxu2 }
 0x1c8   : > { %v2589_v30 = vadd.f32 %v2588_v27, %v2479_v4  ;;  %v2628_v32 = vmul.f32 %v2479_v4, %v2479_v4 }
 0x1ca   : > { %v2659_v33 = vadd.f32 %v2658_v29, %v2628_v32 }
 0x1cf   : > { %v2481_v10 = vpop.f32.mrf.mxu2 }
 0x1d0   : > { %v3096_v35 = vpack.c.bf16 %v2481_v10, %v2479_v4  ;;  %v2590_v60 = vadd.f32 %v2589_v30, %v2481_v10  ;;  %v2629_v36 = vmul.f32 %v2481_v10, %v2481_v10 }
 0x1d2   : > { %3151 = vst [vmem:[%s4198_s9 + $0x58] sm:$0xff] %v3096_v35   ;;  %v2591_v31 = vadd.f32 %v2590_v60, %v4182_v20  ;;  %v2660_v14 = vadd.f32 %v2659_v33, %v2629_v36 }
 0x1d4   : > { %v2592_v5 = vadd.f32 %v2591_v31, %v4221_v8  ;;  %v2661_v39 = vadd.f32 %v2660_v14, %v2630_v37 }
 0x1d6   : > { %v2593_v11 = vadd.f32 %v2592_v5, %v2489_v51  ;;  %v2662_v41 = vadd.f32 %v2661_v39, %v2631_v38 }
 0x1d8   : > { %v2663_v24 = vadd.f32 %v2662_v41, %v2632_v18  ;;  %v2594_v46 = vadd.f32 %v2593_v11, %v2491_v28 }
 0x1da   : > { %v2664_v21 = vadd.f32 %v2663_v24, %v2633_v45 }
 0x1dd   : > { %v2494_v12 = vpop.f32.mrf.mxu3 }
 0x1de   : > { %v2634_v20 = vmul.f32 %v2494_v12, %v2494_v12  ;;  %v2595_v62 = vadd.f32 %v2594_v46, %v2494_v12 }
 0x1e0   : > { %v2665_v23 = vadd.f32 %v2664_v21, %v2634_v20 }
 0x1e5   : > { %v2496_v47 = vpop.f32.mrf.mxu3 }
 0x1e6   : > { %v3111_v6 = vpack.c.bf16 %v2496_v47, %v2494_v12  ;;  %v2596_v49 = vadd.f32 %v2595_v62, %v2496_v47  ;;  %v2635_v50 = vmul.f32 %v2496_v47, %v2496_v47 }
 0x1e8   : > { %3154 = vst [vmem:[%s4198_s9 + $0x70] sm:$0xff] %v3111_v6   ;;  %v2666_v8 = vadd.f32 %v2665_v23, %v2635_v50 }
 0x1f3   : > { %v2499_v48 = vpop.f32.mrf.mxu3 }
 0x1f4   : > { %v2597_v44 = vadd.f32 %v2596_v49, %v2499_v48  ;;  %v2636_v51 = vmul.f32 %v2499_v48, %v2499_v48 }
 0x1f6   : > { %v2667_v43 = vadd.f32 %v2666_v8, %v2636_v51 }
 0x1fb   : > { %v2501_v54 = vpop.f32.mrf.mxu3 }
 0x1fc   : > { %v3116_v58 = vpack.c.bf16 %v2501_v54, %v2499_v48  ;;  %v2598_v28 = vadd.f32 %v2597_v44, %v2501_v54  ;;  %v2637_v42 = vmul.f32 %v2501_v54, %v2501_v54 }
 0x1fe   : > { %3155 = vst [vmem:[%s4198_s9 + $0x78] sm:$0xff] %v3116_v58   ;;  %v2599_v19 = vrot.slane %v2598_v28, 4  ;;  %v2668_v55 = vadd.f32 %v2667_v43, %v2637_v42 }
 0x200   : > { %v2600_v52 = vadd.f32 %v2599_v19, %v2598_v28  ;;  %v2669_v57 = vrot.slane %v2668_v55, 4 }
 0x202   : > { %v2601_v53 = vrot.slane %v2600_v52, 2  ;;  %v2670_v61 = vadd.f32 %v2669_v57, %v2668_v55 }
 0x204   : > { %v2602_v22 = vadd.f32 %v2601_v53, %v2600_v52  ;;  %v2671_v63 = vrot.slane %v2670_v61, 2 }
 0x206   : > { %v2603_v0 = vrot.slane %v2602_v22, 1  ;;  %v2672_v40 = vadd.f32 %v2671_v63, %v2670_v61 }
 0x208   : > { %v2604_v2 = vadd.f32 %v2603_v0, %v2602_v22  ;;  %v2673_v1 = vrot.slane %v2672_v40, 1 }
 0x20a   : > { %2605 = vst [vmem:[%s235_s13] sm:$0x1] %v2604_v2  ;;  %v2674_v13 = vadd.f32 %v2673_v1, %v2672_v40 }
 0x20c   : > { %2675 = vst [vmem:[%s235_s13 + $0x1] sm:$0x1] %v2674_v13 }
 0x20d PF: > { %s16_s18 = sadd.s32 1, %s3201_s18  }
 0x20e   : > { %p13_p4 = scmp.ge.s32.totalorder %s16_s18, 4  }
 0x210   :  { %15 = sbr.rel (!%p13_p4) target bundleno = 1 (0x1), region = 80 }

</bundles_post_ra>
